<compile_context>
chip_gen: v5e
topology: v5e:2x2
jax: 0.10.0
libtpu: 0.0.40
codegen_flags: <defaults>
</compile_context>

<pallas_src>
import jax
import jax.numpy as jnp
from jax.experimental import pallas as pl
from jax.experimental.pallas import tpu as pltpu

IN_DIM = 2048
HID_DIM = 1024
LANE = 128


def _round_up(x, m):
    return (x + m - 1) // m * m


def _leaky_relu(x, slope=0.2):
    return jnp.where(x > 0, x, slope * x)


def _discriminator_kernel(z_ref, w1_ref, b1_ref, w2_ref, b2_ref,
                          w3_ref, b3_ref, o_ref):
    # Layer 1: Linear(2048 -> 1024) + LeakyReLU(0.2).  bf16 inputs, f32 acc (MXU).
    h = jnp.dot(z_ref[...], w1_ref[...],
                preferred_element_type=jnp.float32) + b1_ref[...]
    h = _leaky_relu(h)
    # Dropout(0.3): identity in eval mode.
    # TODO(synk): train-mode dropout would need pltpu.prng_seed + pltpu.stateful_bernoulli.

    # Layer 2: Linear(1024 -> 1024) + LeakyReLU(0.2)
    h = jnp.dot(h.astype(jnp.bfloat16), w2_ref[...],
                preferred_element_type=jnp.float32) + b2_ref[...]
    h = _leaky_relu(h)
    # Dropout(0.3): identity in eval mode.

    # Layer 3: Linear(1024 -> n_attr_padded) + Sigmoid (lane-padded to 128).
    logits = jnp.dot(h.astype(jnp.bfloat16), w3_ref[...],
                     preferred_element_type=jnp.float32) + b3_ref[...]
    o_ref[...] = jax.nn.sigmoid(logits).astype(o_ref.dtype)


def discriminator_forward(z, params, *, tm=256):
    """Eval-mode forward. z: (B, 2048) or (B, C, H, W) with C*H*W == 2048.

    tm: batch tile rows. 256 matches the v6e/v7x MXU height; use 128 on v5e.
    """
    if z.ndim > 2:
        z = z.reshape(z.shape[0], -1)
    assert z.shape[1] == IN_DIM, f"expected {IN_DIM} features, got {z.shape}"
    B = z.shape[0]

    w1, b1, w2, b2, w3, b3 = params
    n_attr = w3.shape[1]

    # Small batches just round up to one 8-sublane tile; big batches tile at tm.
    TM = tm if B >= tm else _round_up(B, 8)
    B_pad = _round_up(B, TM)
    N_pad = _round_up(n_attr, LANE)

    # bf16 activations halve the z DMA as well; accumulation stays f32.
    z_b = z.astype(jnp.bfloat16)
    if B_pad != B:
        z_b = jnp.pad(z_b, ((0, B_pad - B), (0, 0)))
    # Lane-pad the last layer so the final matmul / output store are full tiles.
    w3_p = jnp.pad(w3, ((0, 0), (0, N_pad - n_attr)))
    b3_p = jnp.pad(b3, ((0, 0), (0, N_pad - n_attr)))

    # Weights / biases are grid-invariant: constant index_map keeps them resident
    # in VMEM across all batch tiles (Pallas skips re-DMA of unchanged blocks).
    def resident(shape):
        return pl.BlockSpec(shape, lambda i: (0,) * len(shape))

    out = pl.pallas_call(
        _discriminator_kernel,
        out_shape=jax.ShapeDtypeStruct((B_pad, N_pad), jnp.float32),
        grid=(B_pad // TM,),
        in_specs=[
            pl.BlockSpec((TM, IN_DIM), lambda i: (i, 0)),   # z tile (pipelined)
            resident((IN_DIM, HID_DIM)),                    # w1 (bf16)
            resident((1, HID_DIM)),                         # b1
            resident((HID_DIM, HID_DIM)),                   # w2 (bf16)
            resident((1, HID_DIM)),                         # b2
            resident((HID_DIM, N_pad)),                     # w3 (bf16, lane-padded)
            resident((1, N_pad)),                           # b3 (lane-padded)
        ],
        out_specs=pl.BlockSpec((TM, N_pad), lambda i: (i, 0)),
        compiler_params=pltpu.CompilerParams(
            # Batch tiles are independent -> shard across both TCs on v7x.
            dimension_semantics=("parallel",),
            # Actual usage ~16 MiB; keep limit well under v7x's 64 MiB physical.
            vmem_limit_bytes=40 << 20,
        ),
    )(z_b, w1, b1, w2, b2, w3_p, b3_p)

    return out[:B, :n_attr]


def init_params(key, n_attributes):
    """Init mimicking nn.Linear default (U[-1/sqrt(fan_in), +]); weights -> bf16."""
    def linear(k, fan_in, fan_out):
        kw, kb = jax.random.split(k)
        bound = 1.0 / jnp.sqrt(fan_in)
        w = jax.random.uniform(kw, (fan_in, fan_out), jnp.float32, -bound, bound)
        b = jax.random.uniform(kb, (1, fan_out), jnp.float32, -bound, bound)
        return w.astype(jnp.bfloat16), b   # bf16 weights, f32 biases

    k1, k2, k3 = jax.random.split(key, 3)
    w1, b1 = linear(k1, IN_DIM, HID_DIM)
    w2, b2 = linear(k2, HID_DIM, HID_DIM)
    w3, b3 = linear(k3, HID_DIM, n_attributes)
    return (w1, b1, w2, b2, w3, b3)


def _reference_forward(z, params):
    """Pure-JAX reference following the same bf16-input / f32-accumulate path."""
    if z.ndim > 2:
        z = z.reshape(z.shape[0], -1)
    w1, b1, w2, b2, w3, b3 = params
    h = jnp.dot(z.astype(jnp.bfloat16), w1,
                preferred_element_type=jnp.float32) + b1
    h = jnp.where(h > 0, h, 0.2 * h)
    h = jnp.dot(h.astype(jnp.bfloat16), w2,
                preferred_element_type=jnp.float32) + b2
    h = jnp.where(h > 0, h, 0.2 * h)
    logits = jnp.dot(h.astype(jnp.bfloat16), w3,
                     preferred_element_type=jnp.float32) + b3
    return jax.nn.sigmoid(logits)


if __name__ == "__main__":
    key = jax.random.PRNGKey(0)
    k_in, k_par = jax.random.split(key)

    n_attributes = 10
    batch = 2
    # Latent as an NCHW tensor (B, 8, 16, 16) -> 8*16*16 = 2048 features,
    # exercising the z.view(z.size(0), -1) branch.
    z = jax.random.normal(k_in, (batch, 8, 16, 16), dtype=jnp.float32)

    params = init_params(k_par, n_attributes)

    out = discriminator_forward(z, params)
    out = jax.block_until_ready(out)

    ref = _reference_forward(z, params)
    assert out.shape == (batch, n_attributes)
    assert jnp.allclose(out, ref, atol=1e-3, rtol=1e-3), "mismatch vs reference"

    print("KERNEL_OK")
</pallas_src>

<mosaic_0001>
module attributes {stable_mosaic.version = 11 : i64} {
  func.func @_discriminator_kernel(%arg0: i32, %arg1: memref<8x2048xbf16, #tpu.memory_space<vmem>>, %arg2: memref<2048x1024xbf16, #tpu.memory_space<vmem>>, %arg3: memref<1x1024xf32, #tpu.memory_space<vmem>>, %arg4: memref<1024x1024xbf16, #tpu.memory_space<vmem>>, %arg5: memref<1x1024xf32, #tpu.memory_space<vmem>>, %arg6: memref<1024x128xbf16, #tpu.memory_space<vmem>>, %arg7: memref<1x128xf32, #tpu.memory_space<vmem>>, %arg8: memref<8x128xf32, #tpu.memory_space<vmem>>) attributes {dimension_semantics = [#tpu.dimension_semantics<parallel>], iteration_bounds = array<i64: 1>, scalar_prefetch = 0 : i64, scratch_operands = 0 : i64, tpu.core_type = #tpu.core_type<tc>, window_params = [{transform_indices = @transform_0, window_bounds = array<i64: 8, 2048>}, {pipeline_mode = #tpu.pipeline_mode<synchronous>, transform_indices = @transform_1, window_bounds = array<i64: 2048, 1024>}, {pipeline_mode = #tpu.pipeline_mode<synchronous>, transform_indices = @transform_2, window_bounds = array<i64: 1, 1024>}, {pipeline_mode = #tpu.pipeline_mode<synchronous>, transform_indices = @transform_3, window_bounds = array<i64: 1024, 1024>}, {pipeline_mode = #tpu.pipeline_mode<synchronous>, transform_indices = @transform_4, window_bounds = array<i64: 1, 1024>}, {pipeline_mode = #tpu.pipeline_mode<synchronous>, transform_indices = @transform_5, window_bounds = array<i64: 1024, 128>}, {pipeline_mode = #tpu.pipeline_mode<synchronous>, transform_indices = @transform_6, window_bounds = array<i64: 1, 128>}, {transform_indices = @transform_7, window_bounds = array<i64: 8, 128>}]} {
    %c0 = arith.constant 0 : index
    %c0_0 = arith.constant 0 : index
    %0 = vector.load %arg1[%c0, %c0_0] : memref<8x2048xbf16, #tpu.memory_space<vmem>>, vector<8x2048xbf16>
    %c0_1 = arith.constant 0 : index
    %c0_2 = arith.constant 0 : index
    %1 = vector.load %arg2[%c0_1, %c0_2] : memref<2048x1024xbf16, #tpu.memory_space<vmem>>, vector<2048x1024xbf16>
    %cst = arith.constant dense<0.000000e+00> : vector<8x1024xf32>
    %2 = tpu.matmul %0, %1, %cst {dimension_numbers = #tpu.dot_dimension_numbers<[1], [0], [0], [1], [0, 0, 1, 1], [], []>} : vector<8x2048xbf16>, vector<2048x1024xbf16>, vector<8x1024xf32> -> vector<8x1024xf32>
    %c0_3 = arith.constant 0 : index
    %c0_4 = arith.constant 0 : index
    %3 = vector.load %arg3[%c0_3, %c0_4] : memref<1x1024xf32, #tpu.memory_space<vmem>>, vector<1x1024xf32>
    %4 = vector.broadcast %3 : vector<1x1024xf32> to vector<8x1024xf32>
    %5 = arith.addf %2, %4 : vector<8x1024xf32>
    %cst_5 = arith.constant 0.000000e+00 : f32
    %6 = vector.broadcast %cst_5 : f32 to vector<8x1024xf32>
    %7 = arith.cmpf ogt, %5, %6 : vector<8x1024xf32>
    %cst_6 = arith.constant 2.000000e-01 : f32
    %8 = vector.broadcast %cst_6 : f32 to vector<8x1024xf32>
    %9 = arith.mulf %8, %5 : vector<8x1024xf32>
    %10 = arith.select %7, %5, %9 : vector<8x1024xi1>, vector<8x1024xf32>
    %11 = arith.truncf %10 : vector<8x1024xf32> to vector<8x1024xbf16>
    %c0_7 = arith.constant 0 : index
    %c0_8 = arith.constant 0 : index
    %12 = vector.load %arg4[%c0_7, %c0_8] : memref<1024x1024xbf16, #tpu.memory_space<vmem>>, vector<1024x1024xbf16>
    %cst_9 = arith.constant dense<0.000000e+00> : vector<8x1024xf32>
    %13 = tpu.matmul %11, %12, %cst_9 {dimension_numbers = #tpu.dot_dimension_numbers<[1], [0], [0], [1], [0, 0, 1, 1], [], []>} : vector<8x1024xbf16>, vector<1024x1024xbf16>, vector<8x1024xf32> -> vector<8x1024xf32>
    %c0_10 = arith.constant 0 : index
    %c0_11 = arith.constant 0 : index
    %14 = vector.load %arg5[%c0_10, %c0_11] : memref<1x1024xf32, #tpu.memory_space<vmem>>, vector<1x1024xf32>
    %15 = vector.broadcast %14 : vector<1x1024xf32> to vector<8x1024xf32>
    %16 = arith.addf %13, %15 : vector<8x1024xf32>
    %cst_12 = arith.constant 0.000000e+00 : f32
    %17 = vector.broadcast %cst_12 : f32 to vector<8x1024xf32>
    %18 = arith.cmpf ogt, %16, %17 : vector<8x1024xf32>
    %cst_13 = arith.constant 2.000000e-01 : f32
    %19 = vector.broadcast %cst_13 : f32 to vector<8x1024xf32>
    %20 = arith.mulf %19, %16 : vector<8x1024xf32>
    %21 = arith.select %18, %16, %20 : vector<8x1024xi1>, vector<8x1024xf32>
    %22 = arith.truncf %21 : vector<8x1024xf32> to vector<8x1024xbf16>
    %c0_14 = arith.constant 0 : index
    %c0_15 = arith.constant 0 : index
    %23 = vector.load %arg6[%c0_14, %c0_15] : memref<1024x128xbf16, #tpu.memory_space<vmem>>, vector<1024x128xbf16>
    %cst_16 = arith.constant dense<0.000000e+00> : vector<8x128xf32>
    %24 = tpu.matmul %22, %23, %cst_16 {dimension_numbers = #tpu.dot_dimension_numbers<[1], [0], [0], [1], [0, 0, 1, 1], [], []>} : vector<8x1024xbf16>, vector<1024x128xbf16>, vector<8x128xf32> -> vector<8x128xf32>
    %c0_17 = arith.constant 0 : index
    %c0_18 = arith.constant 0 : index
    %25 = vector.load %arg7[%c0_17, %c0_18] : memref<1x128xf32, #tpu.memory_space<vmem>>, vector<1x128xf32>
    %26 = vector.broadcast %25 : vector<1x128xf32> to vector<8x128xf32>
    %27 = arith.addf %24, %26 : vector<8x128xf32>
    %28 = arith.negf %27 : vector<8x128xf32>
    %29 = math.exp %28 : vector<8x128xf32>
    %cst_19 = arith.constant 1.000000e+00 : f32
    %30 = vector.broadcast %cst_19 : f32 to vector<8x128xf32>
    %31 = arith.addf %30, %29 : vector<8x128xf32>
    %32 = arith.divf %30, %31 : vector<8x128xf32>
    %c0_20 = arith.constant 0 : index
    %c0_21 = arith.constant 0 : index
    %33 = vector.load %arg8[%c0_20, %c0_21] : memref<8x128xf32, #tpu.memory_space<vmem>>, vector<8x128xf32>
    tpu.vector_store %arg8[%c0_20, %c0_21], %32 {strides = array<i32>} : memref<8x128xf32, #tpu.memory_space<vmem>>, vector<8x128xf32>,
    return
  }
  func.func @transform_0(%arg0: i32) -> (i32, i32) {
    %c0_i32 = arith.constant 0 : i32
    %c0_i32_0 = arith.constant 0 : i32
    return %arg0, %c0_i32 : i32, i32
  }
  func.func @transform_1(%arg0: i32) -> (i32, i32) {
    %c0_i32 = arith.constant 0 : i32
    %c0_i32_0 = arith.constant 0 : i32
    %c0_i32_1 = arith.constant 0 : i32
    return %c0_i32, %c0_i32_0 : i32, i32
  }
  func.func @transform_2(%arg0: i32) -> (i32, i32) {
    %c0_i32 = arith.constant 0 : i32
    %c0_i32_0 = arith.constant 0 : i32
    %c0_i32_1 = arith.constant 0 : i32
    return %c0_i32, %c0_i32_0 : i32, i32
  }
  func.func @transform_3(%arg0: i32) -> (i32, i32) {
    %c0_i32 = arith.constant 0 : i32
    %c0_i32_0 = arith.constant 0 : i32
    %c0_i32_1 = arith.constant 0 : i32
    return %c0_i32, %c0_i32_0 : i32, i32
  }
  func.func @transform_4(%arg0: i32) -> (i32, i32) {
    %c0_i32 = arith.constant 0 : i32
    %c0_i32_0 = arith.constant 0 : i32
    %c0_i32_1 = arith.constant 0 : i32
    return %c0_i32, %c0_i32_0 : i32, i32
  }
  func.func @transform_5(%arg0: i32) -> (i32, i32) {
    %c0_i32 = arith.constant 0 : i32
    %c0_i32_0 = arith.constant 0 : i32
    %c0_i32_1 = arith.constant 0 : i32
    return %c0_i32, %c0_i32_0 : i32, i32
  }
  func.func @transform_6(%arg0: i32) -> (i32, i32) {
    %c0_i32 = arith.constant 0 : i32
    %c0_i32_0 = arith.constant 0 : i32
    %c0_i32_1 = arith.constant 0 : i32
    return %c0_i32, %c0_i32_0 : i32, i32
  }
  func.func @transform_7(%arg0: i32) -> (i32, i32) {
    %c0_i32 = arith.constant 0 : i32
    %c0_i32_0 = arith.constant 0 : i32
    return %arg0, %c0_i32 : i32, i32
  }
}

</mosaic_0001>

<bundles_post_ra>
// kernel: tpu_custom_call.1
= control target key start
LH: loop header
LB: loop body
LE: loop exit
PB: predicated region body
PF: predicated region fallthrough
CT: control target
= control target key end

     0   :  { %12 = vsyncpa [#allocation3], 0  ;;  %s21482_s0 = inlined_call_operand.hbm [shape: bf16[8,2048], index: 0, kind: input, shape index: {}]   ;;  %s21483_s1 = inlined_call_operand.hbm [shape: bf16[2048,1024], index: 1, kind: input, shape index: {}]   ;;  %s21484_s2 = inlined_call_operand.hbm [shape: f32[1,1024], index: 2, kind: input, shape index: {}]   ;;  %s21485_s3 = inlined_call_operand.hbm [shape: bf16[1024,1024], index: 3, kind: input, shape index: {}]   ;;  %s21486_s4 = inlined_call_operand.hbm [shape: f32[1,1024], index: 4, kind: input, shape index: {}]   ;;  %s21487_s5 = inlined_call_operand.hbm [shape: bf16[1024,128], index: 5, kind: input, shape index: {}]   ;;  %s21488_s6 = inlined_call_operand.hbm [shape: f32[1,128], index: 6, kind: input, shape index: {}]   ;;  %s21489_s7 = inlined_call_operand.hbm [shape: f32[8,128], index: 7, kind: output, shape index: {}]  }
   0x1   :  { %13 = vsyncpa [#allocation6], 0 }
   0x2   :  { %14 = vsyncpa [#allocation9], 0 }
   0x3   :  { %15 = vsyncpa [#allocation12], 0  ;;  %s32_s26 = sshll.u32 %s21483_s1, 4  ;;  %s33_s26 = int_to_ptr.hbm [resolvable:$true] %s32_s26 }
   0x4   :  { %16 = vsyncpa [#allocation4], 0  ;;  %s20894_s27 = smov [#allocation5]   ;;  %s56_s8 = sshll.u32 %s21485_s3, 4  ;;  %s57_s8 = int_to_ptr.hbm [resolvable:$true] %s56_s8 }
   0x5   :  { %s34_s28 = sshll.u32 %s20894_s27, 4  ;;  %s20895_s9 = smov 512   ;;  %s35_s28 = int_to_ptr.vmem [resolvable:$true] %s34_s28 }
   0x6   :  { %s20896_s10 = smov 32   ;;  %s20897_s11 = smov [#allocation8]  }
   0x7   :  { %40 = dma.hbm_to_vmem [thread:$0]  %s33_s26, 131072, %s35_s28, [#allocation6], %s20895_s9, %s20895_s9, %s20896_s10  }
   0x8   :  { %s58_s12 = sshll.u32 %s20897_s11, 4  ;;  %s80_s15 = sshll.u32 %s21487_s5, 4  ;;  %s59_s12 = int_to_ptr.vmem [resolvable:$true] %s58_s12  ;;  %s81_s15 = int_to_ptr.hbm [resolvable:$true] %s80_s15 }
   0x9   :  { %64 = dma.hbm_to_vmem [thread:$0]  %s57_s8, 65536, %s59_s12, [#allocation9], %s20895_s9, %s20895_s9, %s20896_s10  }
   0xa   :  { %s20898_s1 = smov [#allocation11]   ;;  %s22_s3 = sshll.u32 %s21482_s0, 4  ;;  %s23_s3 = int_to_ptr.hbm [resolvable:$true] %s22_s3 }
   0xb   :  { %s82_s16 = sshll.u32 %s20898_s1, 4  ;;  %s20899_s19 = smov 64   ;;  %s83_s16 = int_to_ptr.vmem [resolvable:$true] %s82_s16 }
   0xc   :  { %s20900_s20 = smov 4   ;;  %s20901_s21 = smov [#allocation2]  }
   0xd   :  { %88 = dma.hbm_to_vmem [thread:$0]  %s81_s15, 8192, %s83_s16, [#allocation12], %s20899_s19, %s20899_s19, %s20900_s20  }
   0xe   :  { %s24_s22 = sshll.u32 %s20901_s21, 4  ;;  %s46_s5 = sshll.u32 %s21484_s2, 4  ;;  %s25_s22 = int_to_ptr.vmem [resolvable:$true] %s24_s22  ;;  %s47_s5 = int_to_ptr.hbm [resolvable:$true] %s46_s5 }
   0xf   :  { %27 = dma.hbm_to_vmem [thread:$0]  %s23_s3, 1024, %s25_s22, [#allocation3]  }
  0x10   :  { %s70_s27 = sshll.u32 %s21486_s4, 4  ;;  %s20902_s28 = smov [#allocation7]   ;;  %s71_s27 = int_to_ptr.hbm [resolvable:$true] %s70_s27 }
  0x11   :  { %s48_s29 = sshll.u32 %s20902_s28, 4  ;;  %s20903_s0 = smov [#allocation10]   ;;  %s49_s29 = int_to_ptr.vmem [resolvable:$true] %s48_s29 }
  0x12   :  { %51 = dma.hbm_to_vmem [thread:$0]  %s47_s5, 128, %s49_s29, [#allocation6]  }
  0x13   :  { %s72_s30 = sshll.u32 %s20903_s0, 4  ;;  %s94_s10 = sshll.u32 %s21488_s6, 4  ;;  %s73_s30 = int_to_ptr.vmem [resolvable:$true] %s72_s30  ;;  %s95_s10 = int_to_ptr.hbm [resolvable:$true] %s94_s10 }
  0x14   :  { %75 = dma.hbm_to_vmem [thread:$0]  %s71_s27, 128, %s73_s30, [#allocation9]  }
  0x15   :  { %s20904_s2 = smov [#allocation13]  }
  0x16   :  { %s96_s11 = sshll.u32 %s20904_s2, 4  ;;  %s97_s11 = int_to_ptr.vmem [resolvable:$true] %s96_s11 }
  0x17   :  { %99 = dma.hbm_to_vmem [thread:$0]  %s95_s10, 16, %s97_s11, [#allocation12]  }
  0x18   :  { %20884 = dma.done.wait [#allocation3], 1024  }
  0x19   :  { %20885 = vsyncadd [#allocation3], 4294966272 }
  0x1a   :  { %20886 = dma.done.wait [#allocation6], 131200  }
  0x1b   :  { %20887 = vsyncadd [#allocation6], 4294836096 }
  0x1c   :  { %20888 = dma.done.wait [#allocation9], 65664  }
  0x1d   :  { %20889 = vsyncadd [#allocation9], 4294901632 }
  0x1e   :  { %20890 = dma.done.wait [#allocation12], 8208  }
  0x1f   :  { %20891 = vsyncadd [#allocation12], 4294959088  ;;  %v12890_v0 = vld [vmem:[#allocation5 + $0x1c0] sm:$0xf]  ;;  %s20905_s4 = smov [#allocation14]   ;;  %s12651_s14 = sshll.u32 %s21489_s7, 4  ;;  %s12652_s14 = int_to_ptr.hbm [resolvable:$true] %s12651_s14 }
  0x20   :  { %v19125_v1 = vld [vmem:[#allocation5 + $0x1dc] sm:$0xf0]  ;;  %s12649_s6 = sshll.u32 %s20905_s4, 4  ;;  %s12650_s6 = int_to_ptr.vmem [resolvable:$true] %s12649_s6 }
  0x21   :  { %v13146_v2 = vld [vmem:[#allocation5 + $0x3c0] sm:$0xf]  ;;  %v12891_v3 = vor.u32 %v19125_v1, %v12890_v0 }
  0x22   :  { %v19189_v4 = vld [vmem:[#allocation5 + $0x3dc] sm:$0xf0] }
  0x23   :  { %v13402_v5 = vld [vmem:[#allocation5 + $0x5c0] sm:$0xf]  ;;  %v13147_v7 = vor.u32 %v19189_v4, %v13146_v2  ;;  %6354 = vmatpush.bf16.msra.mxu0 %v12891_v3 }
  0x24   :  { %v19253_v6 = vld [vmem:[#allocation5 + $0x5dc] sm:$0xf0] }
  0x25   :  { %v13403_v8 = vor.u32 %v19253_v6, %v13402_v5  ;;  %v13658_v9 = vld [vmem:[#allocation5 + $0x7c0] sm:$0xf]  ;;  %6367 = vmatpush.bf16.msra.mxu1 %v13147_v7 }
  0x26   :  { %v19317_v10 = vld [vmem:[#allocation5 + $0x7dc] sm:$0xf0] }
  0x27   :  { %v12858_v11 = vld [vmem:[#allocation5 + $0x180] sm:$0xf]  ;;  %v13659_v12 = vor.u32 %v19317_v10, %v13658_v9  ;;  %6380 = vmatpush.bf16.msra.mxu2 %v13403_v8 }
  0x28   :  { %v19117_v13 = vld [vmem:[#allocation5 + $0x19c] sm:$0xf0] }
  0x29   :  { %v13114_v14 = vld [vmem:[#allocation5 + $0x380] sm:$0xf]  ;;  %v12859_v16 = vor.u32 %v19117_v13, %v12858_v11  ;;  %6393 = vmatpush.bf16.msra.mxu3 %v13659_v12 }
  0x2a   :  { %v19181_v15 = vld [vmem:[#allocation5 + $0x39c] sm:$0xf0] }
  0x2b   :  { %v13115_v17 = vor.u32 %v19181_v15, %v13114_v14  ;;  %v13370_v18 = vld [vmem:[#allocation5 + $0x580] sm:$0xf]  ;;  %6355 = vmatpush.bf16.msra.mxu0 %v12859_v16 }
  0x2c   :  { %v19245_v19 = vld [vmem:[#allocation5 + $0x59c] sm:$0xf0] }
  0x2d   :  { %v13626_v20 = vld [vmem:[#allocation5 + $0x780] sm:$0xf]  ;;  %v13371_v21 = vor.u32 %v19245_v19, %v13370_v18  ;;  %6368 = vmatpush.bf16.msra.mxu1 %v13115_v17 }
  0x2e   :  { %v19309_v22 = vld [vmem:[#allocation5 + $0x79c] sm:$0xf0] }
  0x2f   :  { %v12826_v23 = vld [vmem:[#allocation5 + $0x140] sm:$0xf]  ;;  %v13627_v25 = vor.u32 %v19309_v22, %v13626_v20  ;;  %6381 = vmatpush.bf16.msra.mxu2 %v13371_v21 }
  0x30   :  { %v19109_v24 = vld [vmem:[#allocation5 + $0x15c] sm:$0xf0] }
  0x31   :  { %v13082_v26 = vld [vmem:[#allocation5 + $0x340] sm:$0xf]  ;;  %v12827_v29 = vor.u32 %v19109_v24, %v12826_v23  ;;  %6394 = vmatpush.bf16.msra.mxu3 %v13627_v25 }
  0x32   :  { %v19173_v27 = vld [vmem:[#allocation5 + $0x35c] sm:$0xf0] }
  0x33   :  { %v13338_v28 = vld [vmem:[#allocation5 + $0x540] sm:$0xf]  ;;  %v13083_v33 = vor.u32 %v19173_v27, %v13082_v26  ;;  %6356 = vmatpush.bf16.msra.mxu0 %v12827_v29 }
  0x34   :  { %v19237_v30 = vld [vmem:[#allocation5 + $0x55c] sm:$0xf0] }
  0x35   :  { %v13594_v31 = vld [vmem:[#allocation5 + $0x740] sm:$0xf]  ;;  %v13339_v34 = vor.u32 %v19237_v30, %v13338_v28  ;;  %6369 = vmatpush.bf16.msra.mxu1 %v13083_v33 }
  0x36   :  { %v19301_v32 = vld [vmem:[#allocation5 + $0x75c] sm:$0xf0] }
  0x37   :  { %v12794_v35 = vld [vmem:[#allocation5 + $0x100] sm:$0xf]  ;;  %v13595_v38 = vor.u32 %v19301_v32, %v13594_v31  ;;  %6382 = vmatpush.bf16.msra.mxu2 %v13339_v34 }
  0x38   :  { %v19101_v36 = vld [vmem:[#allocation5 + $0x11c] sm:$0xf0] }
  0x39   :  { %v13050_v37 = vld [vmem:[#allocation5 + $0x300] sm:$0xf]  ;;  %v12795_v44 = vor.u32 %v19101_v36, %v12794_v35  ;;  %6395 = vmatpush.bf16.msra.mxu3 %v13595_v38 }
  0x3a   :  { %v19165_v39 = vld [vmem:[#allocation5 + $0x31c] sm:$0xf0] }
  0x3b   :  { %v13306_v40 = vld [vmem:[#allocation5 + $0x500] sm:$0xf]  ;;  %v13051_v45 = vor.u32 %v19165_v39, %v13050_v37  ;;  %6357 = vmatpush.bf16.msra.mxu0 %v12795_v44 }
  0x3c   :  { %v19229_v41 = vld [vmem:[#allocation5 + $0x51c] sm:$0xf0] }
  0x3d   :  { %v13562_v42 = vld [vmem:[#allocation5 + $0x700] sm:$0xf]  ;;  %v13307_v46 = vor.u32 %v19229_v41, %v13306_v40  ;;  %6370 = vmatpush.bf16.msra.mxu1 %v13051_v45 }
  0x3e   :  { %v19293_v43 = vld [vmem:[#allocation5 + $0x71c] sm:$0xf0] }
  0x3f   :  { %v12762_v47 = vld [vmem:[#allocation5 + $0xc0] sm:$0xf]  ;;  %v13563_v50 = vor.u32 %v19293_v43, %v13562_v42  ;;  %6383 = vmatpush.bf16.msra.mxu2 %v13307_v46 }
  0x40   :  { %v19093_v48 = vld [vmem:[#allocation5 + $0xdc] sm:$0xf0] }
  0x41   :  { %v13018_v49 = vld [vmem:[#allocation5 + $0x2c0] sm:$0xf]  ;;  %v12763_v56 = vor.u32 %v19093_v48, %v12762_v47  ;;  %6396 = vmatpush.bf16.msra.mxu3 %v13563_v50 }
  0x42   :  { %v19157_v51 = vld [vmem:[#allocation5 + $0x2dc] sm:$0xf0] }
  0x43   :  { %v13274_v52 = vld [vmem:[#allocation5 + $0x4c0] sm:$0xf]  ;;  %v13019_v57 = vor.u32 %v19157_v51, %v13018_v49  ;;  %6358 = vmatpush.bf16.msra.mxu0 %v12763_v56 }
  0x44   :  { %v19221_v53 = vld [vmem:[#allocation5 + $0x4dc] sm:$0xf0] }
  0x45   :  { %v13530_v54 = vld [vmem:[#allocation5 + $0x6c0] sm:$0xf]  ;;  %v13275_v58 = vor.u32 %v19221_v53, %v13274_v52  ;;  %6371 = vmatpush.bf16.msra.mxu1 %v13019_v57 }
  0x46   :  { %v19285_v55 = vld [vmem:[#allocation5 + $0x6dc] sm:$0xf0] }
  0x47   :  { %v12730_v59 = vld [vmem:[#allocation5 + $0x80] sm:$0xf]  ;;  %v13531_v62 = vor.u32 %v19285_v55, %v13530_v54  ;;  %6384 = vmatpush.bf16.msra.mxu2 %v13275_v58 }
  0x48   :  { %v19085_v60 = vld [vmem:[#allocation5 + $0x9c] sm:$0xf0] }
  0x49   :  { %v12986_v61 = vld [vmem:[#allocation5 + $0x280] sm:$0xf]  ;;  %v12731_v4 = vor.u32 %v19085_v60, %v12730_v59  ;;  %6397 = vmatpush.bf16.msra.mxu3 %v13531_v62 }
  0x4a   :  { %v19149_v63 = vld [vmem:[#allocation5 + $0x29c] sm:$0xf0] }
  0x4b   :  { %v13242_v0 = vld [vmem:[#allocation5 + $0x480] sm:$0xf]  ;;  %v12987_v5 = vor.u32 %v19149_v63, %v12986_v61  ;;  %6359 = vmatpush.bf16.msra.mxu0 %v12731_v4 }
  0x4c   :  { %v19213_v1 = vld [vmem:[#allocation5 + $0x49c] sm:$0xf0] }
  0x4d   :  { %v13498_v2 = vld [vmem:[#allocation5 + $0x680] sm:$0xf]  ;;  %v13243_v6 = vor.u32 %v19213_v1, %v13242_v0  ;;  %6372 = vmatpush.bf16.msra.mxu1 %v12987_v5 }
  0x4e   :  { %v19277_v3 = vld [vmem:[#allocation5 + $0x69c] sm:$0xf0] }
  0x4f   :  { %v12698_v7 = vld [vmem:[#allocation5 + $0x40] sm:$0xf]  ;;  %v13499_v10 = vor.u32 %v19277_v3, %v13498_v2  ;;  %6385 = vmatpush.bf16.msra.mxu2 %v13243_v6  ;;  %v129_v2 = vld [vmem:[#allocation2 + $0x8] sm:$0xff] }
  0x50   :  { %v19077_v8 = vld [vmem:[#allocation5 + $0x5c] sm:$0xf0] }
  0x51   :  { %v12954_v9 = vld [vmem:[#allocation5 + $0x240] sm:$0xf]  ;;  %v12699_v16 = vor.u32 %v19077_v8, %v12698_v7  ;;  %6398 = vmatpush.bf16.msra.mxu3 %v13499_v10  ;;  %v1188_v8 = vunpack.c.l.b16 %v129_v2  ;;  %v1189_v10 = vunpack.c.h.b16 %v129_v2 }
  0x52   :  { %v19141_v11 = vld [vmem:[#allocation5 + $0x25c] sm:$0xf0] }
  0x53   :  { %v13210_v12 = vld [vmem:[#allocation5 + $0x440] sm:$0xf]  ;;  %v12955_v19 = vor.u32 %v19141_v11, %v12954_v9  ;;  %6360 = vmatpush.bf16.msra.mxu0 %v12699_v16 }
  0x54   :  { %v19205_v13 = vld [vmem:[#allocation5 + $0x45c] sm:$0xf0] }
  0x55   :  { %v13466_v14 = vld [vmem:[#allocation5 + $0x640] sm:$0xf]  ;;  %v13211_v20 = vor.u32 %v19205_v13, %v13210_v12  ;;  %6373 = vmatpush.bf16.msra.mxu1 %v12955_v19 }
  0x56   :  { %v19269_v15 = vld [vmem:[#allocation5 + $0x65c] sm:$0xf0] }
  0x57   :  { %v12666_v17 = vld [vmem:[#allocation5] sm:$0xf]  ;;  %v13467_v24 = vor.u32 %v19269_v15, %v13466_v14  ;;  %6386 = vmatpush.bf16.msra.mxu2 %v13211_v20  ;;  %v20971_v20 = vpack.c.b16 %v1189_v10, %v1189_v10 }
  0x58   :  { %v19069_v18 = vld [vmem:[#allocation5 + $0x1c] sm:$0xf0] }
  0x59   :  { %v12922_v21 = vld [vmem:[#allocation5 + $0x200] sm:$0xf]  ;;  %v12667_v31 = vor.u32 %v19069_v18, %v12666_v17  ;;  %6399 = vmatpush.bf16.msra.mxu3 %v13467_v24  ;;  %v20967_v18 = vpack.c.b16 %v1188_v8, %v1188_v8 }
  0x5a   :  { %v19133_v22 = vld [vmem:[#allocation5 + $0x21c] sm:$0xf0] }
  0x5b   :  { %v13178_v23 = vld [vmem:[#allocation5 + $0x400] sm:$0xf]  ;;  %v12923_v35 = vor.u32 %v19133_v22, %v12922_v21  ;;  %6361 = vmatpush.bf16.msra.mxu0 %v12667_v31 }
  0x5c   :  { %v19197_v25 = vld [vmem:[#allocation5 + $0x41c] sm:$0xf0] }
  0x5d   :  { %v13434_v26 = vld [vmem:[#allocation5 + $0x600] sm:$0xf]  ;;  %v13179_v36 = vor.u32 %v19197_v25, %v13178_v23  ;;  %6374 = vmatpush.bf16.msra.mxu1 %v12923_v35 }
  0x5e   :  { %v19261_v27 = vld [vmem:[#allocation5 + $0x61c] sm:$0xf0] }
  0x5f   :  { %v13914_v28 = vld [vmem:[#allocation5 + $0x9c0] sm:$0xf]  ;;  %v13435_v39 = vor.u32 %v19261_v27, %v13434_v26  ;;  %6387 = vmatpush.bf16.msra.mxu2 %v13179_v36 }
  0x60   :  { %v19381_v29 = vld [vmem:[#allocation5 + $0x9dc] sm:$0xf0] }
  0x61   :  { %v14170_v30 = vld [vmem:[#allocation5 + $0xbc0] sm:$0xf]  ;;  %v13915_v40 = vor.u32 %v19381_v29, %v13914_v28  ;;  %6400 = vmatpush.bf16.msra.mxu3 %v13435_v39 }
  0x62   :  { %v19445_v32 = vld [vmem:[#allocation5 + $0xbdc] sm:$0xf0]  ;;  %6388 = vmatmul.bf16.vlgmr.msra.gmra.mxu2 %v20967_v18 }
  0x63   :  { %v14426_v33 = vld [vmem:[#allocation5 + $0xdc0] sm:$0xf]  ;;  %v14171_v41 = vor.u32 %v19445_v32, %v14170_v30  ;;  %6406 = vmatpush.bf16.msrb.mxu0 %v13915_v40 }
  0x64   :  { %v19509_v34 = vld [vmem:[#allocation5 + $0xddc] sm:$0xf0]  ;;  %6401 = vmatmul.bf16.vlgmr.msra.gmra.mxu3 %v20971_v20 }
  0x65   :  { %v14682_v37 = vld [vmem:[#allocation5 + $0xfc0] sm:$0xf]  ;;  %v14427_v42 = vor.u32 %v19509_v34, %v14426_v33  ;;  %6419 = vmatpush.bf16.msrb.mxu1 %v14171_v41 }
  0x66   :  { %v19573_v38 = vld [vmem:[#allocation5 + $0xfdc] sm:$0xf0] }
  0x67   :  { %v13882_v43 = vld [vmem:[#allocation5 + $0x980] sm:$0xf]  ;;  %v14683_v46 = vor.u32 %v19573_v38, %v14682_v37  ;;  %6432 = vmatpush.bf16.msrb.mxu2 %v14427_v42 }
  0x68   :  { %v19373_v44 = vld [vmem:[#allocation5 + $0x99c] sm:$0xf0] }
  0x69   :  { %v14138_v45 = vld [vmem:[#allocation5 + $0xb80] sm:$0xf]  ;;  %v13883_v52 = vor.u32 %v19373_v44, %v13882_v43  ;;  %6445 = vmatpush.bf16.msrb.mxu3 %v14683_v46 }
  0x6a   :  { %v19437_v47 = vld [vmem:[#allocation5 + $0xb9c] sm:$0xf0] }
  0x6b   :  { %v14394_v48 = vld [vmem:[#allocation5 + $0xd80] sm:$0xf]  ;;  %v14139_v54 = vor.u32 %v19437_v47, %v14138_v45  ;;  %6407 = vmatpush.bf16.msrb.mxu0 %v13883_v52 }
  0x6c   :  { %v19501_v49 = vld [vmem:[#allocation5 + $0xd9c] sm:$0xf0] }
  0x6d   :  { %v14650_v50 = vld [vmem:[#allocation5 + $0xf80] sm:$0xf]  ;;  %v14395_v55 = vor.u32 %v19501_v49, %v14394_v48  ;;  %6420 = vmatpush.bf16.msrb.mxu1 %v14139_v54 }
  0x6e   :  { %v19565_v51 = vld [vmem:[#allocation5 + $0xf9c] sm:$0xf0] }
  0x6f   :  { %v13850_v53 = vld [vmem:[#allocation5 + $0x940] sm:$0xf]  ;;  %v14651_v59 = vor.u32 %v19565_v51, %v14650_v50  ;;  %6433 = vmatpush.bf16.msrb.mxu2 %v14395_v55 }
  0x70   :  { %v19365_v56 = vld [vmem:[#allocation5 + $0x95c] sm:$0xf0] }
  0x71   :  { %v14106_v57 = vld [vmem:[#allocation5 + $0xb40] sm:$0xf]  ;;  %v13851_v0 = vor.u32 %v19365_v56, %v13850_v53  ;;  %6446 = vmatpush.bf16.msrb.mxu3 %v14651_v59 }
  0x72   :  { %v19429_v58 = vld [vmem:[#allocation5 + $0xb5c] sm:$0xf0] }
  0x73   :  { %v14362_v60 = vld [vmem:[#allocation5 + $0xd40] sm:$0xf]  ;;  %v14107_v1 = vor.u32 %v19429_v58, %v14106_v57  ;;  %6408 = vmatpush.bf16.msrb.mxu0 %v13851_v0 }
  0x74   :  { %v19493_v61 = vld [vmem:[#allocation5 + $0xd5c] sm:$0xf0] }
  0x75   :  { %v14618_v62 = vld [vmem:[#allocation5 + $0xf40] sm:$0xf]  ;;  %v14363_v4 = vor.u32 %v19493_v61, %v14362_v60  ;;  %6421 = vmatpush.bf16.msrb.mxu1 %v14107_v1 }
  0x76   :  { %v19557_v63 = vld [vmem:[#allocation5 + $0xf5c] sm:$0xf0] }
  0x77   :  { %v128_v3 = vld [vmem:[#allocation2] sm:$0xff]  ;;  %v14619_v11 = vor.u32 %v19557_v63, %v14618_v62  ;;  %6434 = vmatpush.bf16.msrb.mxu2 %v14363_v4 }
  0x78   :  { %v13818_v5 = vld [vmem:[#allocation5 + $0x900] sm:$0xf]  ;;  %v1186_v9 = vunpack.c.l.b16 %v128_v3  ;;  %v1187_v15 = vunpack.c.h.b16 %v128_v3  ;;  %v131_v3 = vld [vmem:[#allocation2 + $0x18] sm:$0xff] }
  0x79   :  { %v19357_v6 = vld [vmem:[#allocation5 + $0x91c] sm:$0xf0]  ;;  %6447 = vmatpush.bf16.msrb.mxu3 %v14619_v11 }
  0x7a   :  { %v14074_v7 = vld [vmem:[#allocation5 + $0xb00] sm:$0xf]  ;;  %v20969_v19 = vpack.c.b16 %v1186_v9, %v1186_v9  ;;  %v13819_v21 = vor.u32 %v19357_v6, %v13818_v5  ;;  %v20973_v22 = vpack.c.b16 %v1187_v15, %v1187_v15  ;;  %v1192_v15 = vunpack.c.l.b16 %v131_v3 }
  0x7b   :  { %v19421_v12 = vld [vmem:[#allocation5 + $0xb1c] sm:$0xf0] }
  0x7c   :  { %v14330_v13 = vld [vmem:[#allocation5 + $0xd00] sm:$0xf]  ;;  %v14075_v23 = vor.u32 %v19421_v12, %v14074_v7  ;;  %6362 = vmatmul.bf16.vlgmr.msra.gmra.mxu0 %v20969_v19  ;;  %6375 = vmatmul.bf16.vlgmr.msra.gmra.mxu1 %v20973_v22  ;;  %v130_v7 = vld [vmem:[#allocation2 + $0x10] sm:$0xff] }
  0x7d   :  { %v19485_v14 = vld [vmem:[#allocation5 + $0xd1c] sm:$0xf0]  ;;  %6409 = vmatpush.bf16.msrb.mxu0 %v13819_v21 }
  0x7e   :  { %v14586_v16 = vld [vmem:[#allocation5 + $0xf00] sm:$0xf]  ;;  %v14331_v24 = vor.u32 %v19485_v14, %v14330_v13  ;;  %6422 = vmatpush.bf16.msrb.mxu1 %v14075_v23 }
  0x7f   :  { %v19549_v17 = vld [vmem:[#allocation5 + $0xf1c] sm:$0xf0] }
  0x80   :  { %v13786_v25 = vld [vmem:[#allocation5 + $0x8c0] sm:$0xf]  ;;  %v14587_v28 = vor.u32 %v19549_v17, %v14586_v16  ;;  %6435 = vmatpush.bf16.msrb.mxu2 %v14331_v24  ;;  %v1190_v24 = vunpack.c.l.b16 %v130_v7 }
  0x81   :  { %v19349_v26 = vld [vmem:[#allocation5 + $0x8dc] sm:$0xf0] }
  0x82   :  { %v14042_v27 = vld [vmem:[#allocation5 + $0xac0] sm:$0xf]  ;;  %v13787_v34 = vor.u32 %v19349_v26, %v13786_v25  ;;  %6448 = vmatpush.bf16.msrb.mxu3 %v14587_v28  ;;  %v1193_v25 = vunpack.c.h.b16 %v131_v3  ;;  %v1191_v28 = vunpack.c.h.b16 %v130_v7 }
  0x83   :  { %v19413_v29 = vld [vmem:[#allocation5 + $0xadc] sm:$0xf0] }
  0x84   :  { %v14298_v30 = vld [vmem:[#allocation5 + $0xcc0] sm:$0xf]  ;;  %v14043_v35 = vor.u32 %v19413_v29, %v14042_v27  ;;  %6410 = vmatpush.bf16.msrb.mxu0 %v13787_v34 }
  0x85   :  { %v19477_v31 = vld [vmem:[#allocation5 + $0xcdc] sm:$0xf0] }
  0x86   :  { %v14554_v32 = vld [vmem:[#allocation5 + $0xec0] sm:$0xf]  ;;  %v14299_v36 = vor.u32 %v19477_v31, %v14298_v30  ;;  %6423 = vmatpush.bf16.msrb.mxu1 %v14043_v35 }
  0x87   :  { %v19541_v33 = vld [vmem:[#allocation5 + $0xedc] sm:$0xf0] }
  0x88   :  { %v13754_v37 = vld [vmem:[#allocation5 + $0x880] sm:$0xf]  ;;  %v14555_v40 = vor.u32 %v19541_v33, %v14554_v32  ;;  %6436 = vmatpush.bf16.msrb.mxu2 %v14299_v36 }
  0x89   :  { %v19341_v38 = vld [vmem:[#allocation5 + $0x89c] sm:$0xf0] }
  0x8a   :  { %v14010_v39 = vld [vmem:[#allocation5 + $0xa80] sm:$0xf]  ;;  %v13755_v46 = vor.u32 %v19341_v38, %v13754_v37  ;;  %6449 = vmatpush.bf16.msrb.mxu3 %v14555_v40  ;;  %v20979_v38 = vpack.c.b16 %v1192_v15, %v1192_v15 }
  0x8b   :  { %v19405_v41 = vld [vmem:[#allocation5 + $0xa9c] sm:$0xf0] }
  0x8c   :  { %v14266_v42 = vld [vmem:[#allocation5 + $0xc80] sm:$0xf]  ;;  %v14011_v47 = vor.u32 %v19405_v41, %v14010_v39  ;;  %6411 = vmatpush.bf16.msrb.mxu0 %v13755_v46  ;;  %v20981_v41 = vpack.c.b16 %v1190_v24, %v1190_v24 }
  0x8d   :  { %v19469_v43 = vld [vmem:[#allocation5 + $0xc9c] sm:$0xf0] }
  0x8e   :  { %v14522_v44 = vld [vmem:[#allocation5 + $0xe80] sm:$0xf]  ;;  %v14267_v48 = vor.u32 %v19469_v43, %v14266_v42  ;;  %6424 = vmatpush.bf16.msrb.mxu1 %v14011_v47  ;;  %v20983_v42 = vpack.c.b16 %v1193_v25, %v1193_v25 }
  0x8f   :  { %v19533_v45 = vld [vmem:[#allocation5 + $0xe9c] sm:$0xf0] }
  0x90   :  { %v13722_v49 = vld [vmem:[#allocation5 + $0x840] sm:$0xf]  ;;  %v14523_v52 = vor.u32 %v19533_v45, %v14522_v44  ;;  %6437 = vmatpush.bf16.msrb.mxu2 %v14267_v48  ;;  %v20985_v44 = vpack.c.b16 %v1191_v28, %v1191_v28 }
  0x91   :  { %v19333_v50 = vld [vmem:[#allocation5 + $0x85c] sm:$0xf0] }
  0x92   :  { %v13978_v51 = vld [vmem:[#allocation5 + $0xa40] sm:$0xf]  ;;  %v13723_v59 = vor.u32 %v19333_v50, %v13722_v49  ;;  %6450 = vmatpush.bf16.msrb.mxu3 %v14523_v52 }
  0x93   :  { %v19397_v53 = vld [vmem:[#allocation5 + $0xa5c] sm:$0xf0] }
  0x94   :  { %v14234_v54 = vld [vmem:[#allocation5 + $0xc40] sm:$0xf]  ;;  %v13979_v63 = vor.u32 %v19397_v53, %v13978_v51  ;;  %6412 = vmatpush.bf16.msrb.mxu0 %v13723_v59 }
  0x95   :  { %v19461_v55 = vld [vmem:[#allocation5 + $0xc5c] sm:$0xf0] }
  0x96   :  { %v14490_v56 = vld [vmem:[#allocation5 + $0xe40] sm:$0xf]  ;;  %v14235_v0 = vor.u32 %v19461_v55, %v14234_v54  ;;  %6425 = vmatpush.bf16.msrb.mxu1 %v13979_v63 }
  0x97   :  { %v19525_v57 = vld [vmem:[#allocation5 + $0xe5c] sm:$0xf0] }
  0x98   :  { %v13690_v58 = vld [vmem:[#allocation5 + $0x800] sm:$0xf]  ;;  %v14491_v4 = vor.u32 %v19525_v57, %v14490_v56  ;;  %6438 = vmatpush.bf16.msrb.mxu2 %v14235_v0 }
  0x99   :  { %v19325_v60 = vld [vmem:[#allocation5 + $0x81c] sm:$0xf0] }
  0x9a   :  { %v13946_v61 = vld [vmem:[#allocation5 + $0xa00] sm:$0xf]  ;;  %v13691_v11 = vor.u32 %v19325_v60, %v13690_v58  ;;  %6451 = vmatpush.bf16.msrb.mxu3 %v14491_v4 }
  0x9b   :  { %v19389_v62 = vld [vmem:[#allocation5 + $0xa1c] sm:$0xf0] }
  0x9c   :  { %v14202_v1 = vld [vmem:[#allocation5 + $0xc00] sm:$0xf]  ;;  %v13947_v16 = vor.u32 %v19389_v62, %v13946_v61  ;;  %6413 = vmatpush.bf16.msrb.mxu0 %v13691_v11 }
  0x9d   :  { %v19453_v2 = vld [vmem:[#allocation5 + $0xc1c] sm:$0xf0] }
  0x9e   :  { %v14458_v5 = vld [vmem:[#allocation5 + $0xe00] sm:$0xf]  ;;  %v14203_v17 = vor.u32 %v19453_v2, %v14202_v1  ;;  %6426 = vmatpush.bf16.msrb.mxu1 %v13947_v16 }
  0x9f   :  { %v19517_v6 = vld [vmem:[#allocation5 + $0xe1c] sm:$0xf0]  ;;  %6414 = vmatmul.bf16.vlgmr.msrb.gmra.mxu0 %v20981_v41 }
  0xa0   :  { %v14938_v8 = vld [vmem:[#allocation5 + $0x11c0] sm:$0xf]  ;;  %v14459_v26 = vor.u32 %v19517_v6, %v14458_v5  ;;  %6439 = vmatpush.bf16.msrb.mxu2 %v14203_v17 }
  0xa1   :  { %v19637_v9 = vld [vmem:[#allocation5 + $0x11dc] sm:$0xf0]  ;;  %6427 = vmatmul.bf16.vlgmr.msrb.gmra.mxu1 %v20985_v44 }
  0xa2   :  { %v15194_v10 = vld [vmem:[#allocation5 + $0x13c0] sm:$0xf]  ;;  %v14939_v27 = vor.u32 %v19637_v9, %v14938_v8  ;;  %6452 = vmatpush.bf16.msrb.mxu3 %v14459_v26 }
  0xa3   :  { %v19701_v12 = vld [vmem:[#allocation5 + $0x13dc] sm:$0xf0]  ;;  %6440 = vmatmul.bf16.vlgmr.msrb.gmra.mxu2 %v20979_v38 }
  0xa4   :  { %v15450_v13 = vld [vmem:[#allocation5 + $0x15c0] sm:$0xf]  ;;  %v15195_v29 = vor.u32 %v19701_v12, %v15194_v10  ;;  %6458 = vmatpush.bf16.msra.mxu0 %v14939_v27 }
  0xa5   :  { %v19765_v14 = vld [vmem:[#allocation5 + $0x15dc] sm:$0xf0]  ;;  %6453 = vmatmul.bf16.vlgmr.msrb.gmra.mxu3 %v20983_v42 }
  0xa6   :  { %v15706_v21 = vld [vmem:[#allocation5 + $0x17c0] sm:$0xf]  ;;  %v15451_v30 = vor.u32 %v19765_v14, %v15450_v13  ;;  %6471 = vmatpush.bf16.msra.mxu1 %v15195_v29 }
  0xa7   :  { %v19829_v23 = vld [vmem:[#allocation5 + $0x17dc] sm:$0xf0] }
  0xa8   :  { %v14906_v31 = vld [vmem:[#allocation5 + $0x1180] sm:$0xf]  ;;  %v15707_v34 = vor.u32 %v19829_v23, %v15706_v21  ;;  %6484 = vmatpush.bf16.msra.mxu2 %v15451_v30 }
  0xa9   :  { %v19629_v32 = vld [vmem:[#allocation5 + $0x119c] sm:$0xf0] }
  0xaa   :  { %v15162_v33 = vld [vmem:[#allocation5 + $0x1380] sm:$0xf]  ;;  %v14907_v43 = vor.u32 %v19629_v32, %v14906_v31  ;;  %6497 = vmatpush.bf16.msra.mxu3 %v15707_v34 }
  0xab   :  { %v19693_v35 = vld [vmem:[#allocation5 + $0x139c] sm:$0xf0] }
  0xac   :  { %v15418_v36 = vld [vmem:[#allocation5 + $0x1580] sm:$0xf]  ;;  %v15163_v45 = vor.u32 %v19693_v35, %v15162_v33  ;;  %6459 = vmatpush.bf16.msra.mxu0 %v14907_v43 }
  0xad   :  { %v19757_v37 = vld [vmem:[#allocation5 + $0x159c] sm:$0xf0] }
  0xae   :  { %v15674_v39 = vld [vmem:[#allocation5 + $0x1780] sm:$0xf]  ;;  %v15419_v46 = vor.u32 %v19757_v37, %v15418_v36  ;;  %6472 = vmatpush.bf16.msra.mxu1 %v15163_v45 }
  0xaf   :  { %v19821_v40 = vld [vmem:[#allocation5 + $0x179c] sm:$0xf0] }
  0xb0   :  { %v14874_v47 = vld [vmem:[#allocation5 + $0x1140] sm:$0xf]  ;;  %v15675_v50 = vor.u32 %v19821_v40, %v15674_v39  ;;  %6485 = vmatpush.bf16.msra.mxu2 %v15419_v46 }
  0xb1   :  { %v19621_v48 = vld [vmem:[#allocation5 + $0x115c] sm:$0xf0] }
  0xb2   :  { %v15130_v49 = vld [vmem:[#allocation5 + $0x1340] sm:$0xf]  ;;  %v14875_v56 = vor.u32 %v19621_v48, %v14874_v47  ;;  %6498 = vmatpush.bf16.msra.mxu3 %v15675_v50 }
  0xb3   :  { %v19685_v51 = vld [vmem:[#allocation5 + $0x135c] sm:$0xf0] }
  0xb4   :  { %v15386_v52 = vld [vmem:[#allocation5 + $0x1540] sm:$0xf]  ;;  %v15131_v57 = vor.u32 %v19685_v51, %v15130_v49  ;;  %6460 = vmatpush.bf16.msra.mxu0 %v14875_v56 }
  0xb5   :  { %v19749_v53 = vld [vmem:[#allocation5 + $0x155c] sm:$0xf0] }
  0xb6   :  { %v15642_v54 = vld [vmem:[#allocation5 + $0x1740] sm:$0xf]  ;;  %v15387_v58 = vor.u32 %v19749_v53, %v15386_v52  ;;  %6473 = vmatpush.bf16.msra.mxu1 %v15131_v57 }
  0xb7   :  { %v19813_v55 = vld [vmem:[#allocation5 + $0x175c] sm:$0xf0] }
  0xb8   :  { %v14842_v59 = vld [vmem:[#allocation5 + $0x1100] sm:$0xf]  ;;  %v15643_v62 = vor.u32 %v19813_v55, %v15642_v54  ;;  %6486 = vmatpush.bf16.msra.mxu2 %v15387_v58 }
  0xb9   :  { %v19613_v60 = vld [vmem:[#allocation5 + $0x111c] sm:$0xf0] }
  0xba   :  { %v15098_v61 = vld [vmem:[#allocation5 + $0x1300] sm:$0xf]  ;;  %v14843_v4 = vor.u32 %v19613_v60, %v14842_v59  ;;  %6499 = vmatpush.bf16.msra.mxu3 %v15643_v62 }
  0xbb   :  { %v19677_v63 = vld [vmem:[#allocation5 + $0x131c] sm:$0xf0] }
  0xbc   :  { %v15354_v0 = vld [vmem:[#allocation5 + $0x1500] sm:$0xf]  ;;  %v15099_v5 = vor.u32 %v19677_v63, %v15098_v61  ;;  %6461 = vmatpush.bf16.msra.mxu0 %v14843_v4  ;;  %v133_v61 = vld [vmem:[#allocation2 + $0x28] sm:$0xff] }
  0xbd   :  { %v19741_v1 = vld [vmem:[#allocation5 + $0x151c] sm:$0xf0] }
  0xbe   :  { %v15610_v2 = vld [vmem:[#allocation5 + $0x1700] sm:$0xf]  ;;  %v15355_v6 = vor.u32 %v19741_v1, %v15354_v0  ;;  %6474 = vmatpush.bf16.msra.mxu1 %v15099_v5 }
  0xbf   :  { %v19805_v3 = vld [vmem:[#allocation5 + $0x171c] sm:$0xf0] }
  0xc0   :  { %v14810_v7 = vld [vmem:[#allocation5 + $0x10c0] sm:$0xf]  ;;  %v15611_v10 = vor.u32 %v19805_v3, %v15610_v2  ;;  %6487 = vmatpush.bf16.msra.mxu2 %v15355_v6 }
  0xc1   :  { %v19605_v8 = vld [vmem:[#allocation5 + $0x10dc] sm:$0xf0] }
  0xc2   :  { %v15066_v9 = vld [vmem:[#allocation5 + $0x12c0] sm:$0xf]  ;;  %v14811_v16 = vor.u32 %v19605_v8, %v14810_v7  ;;  %6500 = vmatpush.bf16.msra.mxu3 %v15611_v10  ;;  %v1196_v10 = vunpack.c.l.b16 %v133_v61 }
  0xc3   :  { %v19669_v11 = vld [vmem:[#allocation5 + $0x12dc] sm:$0xf0] }
  0xc4   :  { %v15322_v12 = vld [vmem:[#allocation5 + $0x14c0] sm:$0xf]  ;;  %v15067_v17 = vor.u32 %v19669_v11, %v15066_v9  ;;  %6462 = vmatpush.bf16.msra.mxu0 %v14811_v16 }
  0xc5   :  { %v19733_v13 = vld [vmem:[#allocation5 + $0x14dc] sm:$0xf0] }
  0xc6   :  { %v15578_v14 = vld [vmem:[#allocation5 + $0x16c0] sm:$0xf]  ;;  %v15323_v21 = vor.u32 %v19733_v13, %v15322_v12  ;;  %6475 = vmatpush.bf16.msra.mxu1 %v15067_v17 }
  0xc7   :  { %v19797_v15 = vld [vmem:[#allocation5 + $0x16dc] sm:$0xf0] }
  0xc8   :  { %v14778_v23 = vld [vmem:[#allocation5 + $0x1080] sm:$0xf]  ;;  %v15579_v26 = vor.u32 %v19797_v15, %v15578_v14  ;;  %6488 = vmatpush.bf16.msra.mxu2 %v15323_v21  ;;  %v1197_v14 = vunpack.c.h.b16 %v133_v61 }
  0xc9   :  { %v19597_v24 = vld [vmem:[#allocation5 + $0x109c] sm:$0xf0] }
  0xca   :  { %v15034_v25 = vld [vmem:[#allocation5 + $0x1280] sm:$0xf]  ;;  %v14779_v32 = vor.u32 %v19597_v24, %v14778_v23  ;;  %6501 = vmatpush.bf16.msra.mxu3 %v15579_v26 }
  0xcb   :  { %v19661_v27 = vld [vmem:[#allocation5 + $0x129c] sm:$0xf0] }
  0xcc   :  { %v15290_v28 = vld [vmem:[#allocation5 + $0x1480] sm:$0xf]  ;;  %v15035_v34 = vor.u32 %v19661_v27, %v15034_v25  ;;  %6463 = vmatpush.bf16.msra.mxu0 %v14779_v32 }
  0xcd   :  { %v19725_v29 = vld [vmem:[#allocation5 + $0x149c] sm:$0xf0] }
  0xce   :  { %v15546_v30 = vld [vmem:[#allocation5 + $0x1680] sm:$0xf]  ;;  %v15291_v35 = vor.u32 %v19725_v29, %v15290_v28  ;;  %6476 = vmatpush.bf16.msra.mxu1 %v15035_v34  ;;  %v20993_v29 = vpack.c.b16 %v1196_v10, %v1196_v10 }
  0xcf   :  { %v19789_v31 = vld [vmem:[#allocation5 + $0x169c] sm:$0xf0] }
  0xd0   :  { %v14746_v33 = vld [vmem:[#allocation5 + $0x1040] sm:$0xf]  ;;  %v15547_v40 = vor.u32 %v19789_v31, %v15546_v30  ;;  %6489 = vmatpush.bf16.msra.mxu2 %v15291_v35 }
  0xd1   :  { %v19589_v36 = vld [vmem:[#allocation5 + $0x105c] sm:$0xf0] }
  0xd2   :  { %v15002_v37 = vld [vmem:[#allocation5 + $0x1240] sm:$0xf]  ;;  %v14747_v49 = vor.u32 %v19589_v36, %v14746_v33  ;;  %6502 = vmatpush.bf16.msra.mxu3 %v15547_v40  ;;  %v20997_v33 = vpack.c.b16 %v1197_v14, %v1197_v14 }
  0xd3   :  { %v19653_v39 = vld [vmem:[#allocation5 + $0x125c] sm:$0xf0] }
  0xd4   :  { %v15258_v43 = vld [vmem:[#allocation5 + $0x1440] sm:$0xf]  ;;  %v15003_v53 = vor.u32 %v19653_v39, %v15002_v37  ;;  %6464 = vmatpush.bf16.msra.mxu0 %v14747_v49 }
  0xd5   :  { %v19717_v45 = vld [vmem:[#allocation5 + $0x145c] sm:$0xf0] }
  0xd6   :  { %v15514_v46 = vld [vmem:[#allocation5 + $0x1640] sm:$0xf]  ;;  %v15259_v54 = vor.u32 %v19717_v45, %v15258_v43  ;;  %6477 = vmatpush.bf16.msra.mxu1 %v15003_v53 }
  0xd7   :  { %v19781_v47 = vld [vmem:[#allocation5 + $0x165c] sm:$0xf0] }
  0xd8   :  { %v14714_v48 = vld [vmem:[#allocation5 + $0x1000] sm:$0xf]  ;;  %v15515_v58 = vor.u32 %v19781_v47, %v15514_v46  ;;  %6490 = vmatpush.bf16.msra.mxu2 %v15259_v54 }
  0xd9   :  { %v19581_v50 = vld [vmem:[#allocation5 + $0x101c] sm:$0xf0] }
  0xda   :  { %v14970_v51 = vld [vmem:[#allocation5 + $0x1200] sm:$0xf]  ;;  %v14715_v1 = vor.u32 %v19581_v50, %v14714_v48  ;;  %6503 = vmatpush.bf16.msra.mxu3 %v15515_v58 }
  0xdb   :  { %v19645_v52 = vld [vmem:[#allocation5 + $0x121c] sm:$0xf0] }
  0xdc   :  { %v15226_v55 = vld [vmem:[#allocation5 + $0x1400] sm:$0xf]  ;;  %v14971_v6 = vor.u32 %v19645_v52, %v14970_v51  ;;  %6465 = vmatpush.bf16.msra.mxu0 %v14715_v1 }
  0xdd   :  { %v19709_v56 = vld [vmem:[#allocation5 + $0x141c] sm:$0xf0] }
  0xde   :  { %v132_v57 = vld [vmem:[#allocation2 + $0x20] sm:$0xff]  ;;  %v15227_v7 = vor.u32 %v19709_v56, %v15226_v55  ;;  %6478 = vmatpush.bf16.msra.mxu1 %v14971_v6 }
  0xdf   :  { %v15482_v59 = vld [vmem:[#allocation5 + $0x1600] sm:$0xf]  ;;  %v1194_v5 = vunpack.c.l.b16 %v132_v57  ;;  %v1195_v11 = vunpack.c.h.b16 %v132_v57 }
  0xe0   :  { %v19773_v60 = vld [vmem:[#allocation5 + $0x161c] sm:$0xf0]  ;;  %6491 = vmatpush.bf16.msra.mxu2 %v15227_v7 }
  0xe1   :  { %v15962_v62 = vld [vmem:[#allocation5 + $0x19c0] sm:$0xf]  ;;  %v15483_v12 = vor.u32 %v19773_v60, %v15482_v59  ;;  %v20991_v25 = vpack.c.b16 %v1194_v5, %v1194_v5  ;;  %v20995_v30 = vpack.c.b16 %v1195_v11, %v1195_v11 }
  0xe2   :  { %v19893_v63 = vld [vmem:[#allocation5 + $0x19dc] sm:$0xf0] }
  0xe3   :  { %v16218_v0 = vld [vmem:[#allocation5 + $0x1bc0] sm:$0xf]  ;;  %v15963_v13 = vor.u32 %v19893_v63, %v15962_v62  ;;  %6504 = vmatpush.bf16.msra.mxu3 %v15483_v12  ;;  %6466 = vmatmul.bf16.vlgmr.msra.gmra.mxu0 %v20991_v25 }
  0xe4   :  { %v19957_v2 = vld [vmem:[#allocation5 + $0x1bdc] sm:$0xf0]  ;;  %6492 = vmatmul.bf16.vlgmr.msra.gmra.mxu2 %v20993_v29  ;;  %6479 = vmatmul.bf16.vlgmr.msra.gmra.mxu1 %v20995_v30 }
  0xe5   :  { %v16474_v3 = vld [vmem:[#allocation5 + $0x1dc0] sm:$0xf]  ;;  %v16219_v15 = vor.u32 %v19957_v2, %v16218_v0  ;;  %6510 = vmatpush.bf16.msrb.mxu0 %v15963_v13 }
  0xe6   :  { %v20021_v4 = vld [vmem:[#allocation5 + $0x1ddc] sm:$0xf0]  ;;  %6505 = vmatmul.bf16.vlgmr.msra.gmra.mxu3 %v20997_v33 }
  0xe7   :  { %v16730_v8 = vld [vmem:[#allocation5 + $0x1fc0] sm:$0xf]  ;;  %v16475_v16 = vor.u32 %v20021_v4, %v16474_v3  ;;  %6523 = vmatpush.bf16.msrb.mxu1 %v16219_v15 }
  0xe8   :  { %v20085_v9 = vld [vmem:[#allocation5 + $0x1fdc] sm:$0xf0] }
  0xe9   :  { %v15930_v17 = vld [vmem:[#allocation5 + $0x1980] sm:$0xf]  ;;  %v16731_v24 = vor.u32 %v20085_v9, %v16730_v8  ;;  %6536 = vmatpush.bf16.msrb.mxu2 %v16475_v16 }
  0xea   :  { %v19885_v21 = vld [vmem:[#allocation5 + $0x199c] sm:$0xf0] }
  0xeb   :  { %v16186_v23 = vld [vmem:[#allocation5 + $0x1b80] sm:$0xf]  ;;  %v15931_v34 = vor.u32 %v19885_v21, %v15930_v17  ;;  %6549 = vmatpush.bf16.msrb.mxu3 %v16731_v24 }
  0xec   :  { %v19949_v26 = vld [vmem:[#allocation5 + $0x1b9c] sm:$0xf0] }
  0xed   :  { %v16442_v27 = vld [vmem:[#allocation5 + $0x1d80] sm:$0xf]  ;;  %v16187_v35 = vor.u32 %v19949_v26, %v16186_v23  ;;  %6511 = vmatpush.bf16.msrb.mxu0 %v15931_v34 }
  0xee   :  { %v20013_v28 = vld [vmem:[#allocation5 + $0x1d9c] sm:$0xf0] }
  0xef   :  { %v16698_v31 = vld [vmem:[#allocation5 + $0x1f80] sm:$0xf]  ;;  %v16443_v36 = vor.u32 %v20013_v28, %v16442_v27  ;;  %6524 = vmatpush.bf16.msrb.mxu1 %v16187_v35 }
  0xf0   :  { %v20077_v32 = vld [vmem:[#allocation5 + $0x1f9c] sm:$0xf0] }
  0xf1   :  { %v15898_v37 = vld [vmem:[#allocation5 + $0x1940] sm:$0xf]  ;;  %v16699_v43 = vor.u32 %v20077_v32, %v16698_v31  ;;  %6537 = vmatpush.bf16.msrb.mxu2 %v16443_v36 }
  0xf2   :  { %v19877_v39 = vld [vmem:[#allocation5 + $0x195c] sm:$0xf0] }
  0xf3   :  { %v16154_v40 = vld [vmem:[#allocation5 + $0x1b40] sm:$0xf]  ;;  %v15899_v50 = vor.u32 %v19877_v39, %v15898_v37  ;;  %6550 = vmatpush.bf16.msrb.mxu3 %v16699_v43 }
  0xf4   :  { %v19941_v45 = vld [vmem:[#allocation5 + $0x1b5c] sm:$0xf0] }
  0xf5   :  { %v16410_v46 = vld [vmem:[#allocation5 + $0x1d40] sm:$0xf]  ;;  %v16155_v51 = vor.u32 %v19941_v45, %v16154_v40  ;;  %6512 = vmatpush.bf16.msrb.mxu0 %v15899_v50 }
  0xf6   :  { %v20005_v47 = vld [vmem:[#allocation5 + $0x1d5c] sm:$0xf0] }
  0xf7   :  { %v16666_v48 = vld [vmem:[#allocation5 + $0x1f40] sm:$0xf]  ;;  %v16411_v52 = vor.u32 %v20005_v47, %v16410_v46  ;;  %6525 = vmatpush.bf16.msrb.mxu1 %v16155_v51 }
  0xf8   :  { %v20069_v49 = vld [vmem:[#allocation5 + $0x1f5c] sm:$0xf0] }
  0xf9   :  { %v15866_v53 = vld [vmem:[#allocation5 + $0x1900] sm:$0xf]  ;;  %v16667_v56 = vor.u32 %v20069_v49, %v16666_v48  ;;  %6538 = vmatpush.bf16.msrb.mxu2 %v16411_v52 }
  0xfa   :  { %v19869_v54 = vld [vmem:[#allocation5 + $0x191c] sm:$0xf0] }
  0xfb   :  { %v16122_v55 = vld [vmem:[#allocation5 + $0x1b00] sm:$0xf]  ;;  %v15867_v62 = vor.u32 %v19869_v54, %v15866_v53  ;;  %6551 = vmatpush.bf16.msrb.mxu3 %v16667_v56 }
  0xfc   :  { %v19933_v57 = vld [vmem:[#allocation5 + $0x1b1c] sm:$0xf0] }
  0xfd   :  { %v16378_v58 = vld [vmem:[#allocation5 + $0x1d00] sm:$0xf]  ;;  %v16123_v63 = vor.u32 %v19933_v57, %v16122_v55  ;;  %6513 = vmatpush.bf16.msrb.mxu0 %v15867_v62  ;;  %v134_v55 = vld [vmem:[#allocation2 + $0x30] sm:$0xff]  ;;  %v19185_v62 = vld [vmem:[#allocation5 + $0x3c4] sm:$0xf] }
  0xfe   :  { %v19997_v59 = vld [vmem:[#allocation5 + $0x1d1c] sm:$0xf0] }
  0xff   :  { %v16634_v60 = vld [vmem:[#allocation5 + $0x1f00] sm:$0xf]  ;;  %v16379_v0 = vor.u32 %v19997_v59, %v16378_v58  ;;  %6526 = vmatpush.bf16.msrb.mxu1 %v16123_v63  ;;  %v135_v59 = vld [vmem:[#allocation2 + $0x38] sm:$0xff] }
 0x100   :  { %v20061_v61 = vld [vmem:[#allocation5 + $0x1f1c] sm:$0xf0] }
 0x101   :  { %v15834_v1 = vld [vmem:[#allocation5 + $0x18c0] sm:$0xf]  ;;  %v16635_v4 = vor.u32 %v20061_v61, %v16634_v60  ;;  %6539 = vmatpush.bf16.msrb.mxu2 %v16379_v0  ;;  %v19121_v60 = vld [vmem:[#allocation5 + $0x1c4] sm:$0xf] }
 0x102   :  { %v19861_v2 = vld [vmem:[#allocation5 + $0x18dc] sm:$0xf0]  ;;  %v12892_v61 = vld [vmem:[#allocation5 + $0x1e0] sm:$0xf0] }
 0x103   :  { %v16090_v3 = vld [vmem:[#allocation5 + $0x1ac0] sm:$0xf]  ;;  %v15835_v10 = vor.u32 %v19861_v2, %v15834_v1  ;;  %6552 = vmatpush.bf16.msrb.mxu3 %v16635_v4  ;;  %v13148_v0 = vld [vmem:[#allocation5 + $0x3e0] sm:$0xf0] }
 0x104   :  { %v19925_v5 = vld [vmem:[#allocation5 + $0x1adc] sm:$0xf0]  ;;  %v19249_v1 = vld [vmem:[#allocation5 + $0x5c4] sm:$0xf] }
 0x105   :  { %v16346_v6 = vld [vmem:[#allocation5 + $0x1cc0] sm:$0xf]  ;;  %v16091_v11 = vor.u32 %v19925_v5, %v16090_v3  ;;  %6514 = vmatpush.bf16.msrb.mxu0 %v15835_v10  ;;  %v13404_v2 = vld [vmem:[#allocation5 + $0x5e0] sm:$0xf0]  ;;  %v1198_v3 = vunpack.c.l.b16 %v134_v55 }
 0x106   :  { %v19989_v7 = vld [vmem:[#allocation5 + $0x1cdc] sm:$0xf0] }
 0x107   :  { %v16602_v8 = vld [vmem:[#allocation5 + $0x1ec0] sm:$0xf]  ;;  %v16347_v12 = vor.u32 %v19989_v7, %v16346_v6  ;;  %6527 = vmatpush.bf16.msrb.mxu1 %v16091_v11  ;;  %v19313_v6 = vld [vmem:[#allocation5 + $0x7c4] sm:$0xf]  ;;  %v12895_v11 = vor.u32 %v19121_v60, %v12892_v61 }
 0x108   :  { %v20053_v9 = vld [vmem:[#allocation5 + $0x1edc] sm:$0xf0]  ;;  %v13660_v7 = vld [vmem:[#allocation5 + $0x7e0] sm:$0xf0] }
 0x109   :  { %v15802_v13 = vld [vmem:[#allocation5 + $0x1880] sm:$0xf]  ;;  %v16603_v16 = vor.u32 %v20053_v9, %v16602_v8  ;;  %6540 = vmatpush.bf16.msrb.mxu2 %v16347_v12  ;;  %v1200_v8 = vunpack.c.l.b16 %v135_v59  ;;  %v1199_v9 = vunpack.c.h.b16 %v134_v55  ;;  %v1201_v12 = vunpack.c.h.b16 %v135_v59  ;;  %v19097_v55 = vld [vmem:[#allocation5 + $0x104] sm:$0xf] }
 0x10a   :  { %v19853_v14 = vld [vmem:[#allocation5 + $0x189c] sm:$0xf0]  ;;  %v13052_v59 = vld [vmem:[#allocation5 + $0x320] sm:$0xf0] }
 0x10b   :  { %v16058_v15 = vld [vmem:[#allocation5 + $0x1a80] sm:$0xf]  ;;  %v15803_v27 = vor.u32 %v19853_v14, %v15802_v13  ;;  %6553 = vmatpush.bf16.msrb.mxu3 %v16603_v16  ;;  %v13151_v13 = vor.u32 %v19185_v62, %v13148_v0  ;;  %v13407_v14 = vor.u32 %v19249_v1, %v13404_v2  ;;  %v12860_v16 = vld [vmem:[#allocation5 + $0x1a0] sm:$0xf0] }
 0x10c   :  { %v19917_v17 = vld [vmem:[#allocation5 + $0x1a9c] sm:$0xf0]  ;;  %v19225_v60 = vld [vmem:[#allocation5 + $0x504] sm:$0xf] }
 0x10d   :  { %v16314_v21 = vld [vmem:[#allocation5 + $0x1c80] sm:$0xf]  ;;  %v16059_v28 = vor.u32 %v19917_v17, %v16058_v15  ;;  %6515 = vmatpush.bf16.msrb.mxu0 %v15803_v27  ;;  %v19113_v15 = vld [vmem:[#allocation5 + $0x184] sm:$0xf] }
 0x10e   :  { %v19981_v23 = vld [vmem:[#allocation5 + $0x1c9c] sm:$0xf0]  ;;  %v19177_v17 = vld [vmem:[#allocation5 + $0x384] sm:$0xf] }
 0x10f   :  { %v16570_v24 = vld [vmem:[#allocation5 + $0x1e80] sm:$0xf]  ;;  %v16315_v31 = vor.u32 %v19981_v23, %v16314_v21  ;;  %6528 = vmatpush.bf16.msrb.mxu1 %v16059_v28  ;;  %v13663_v21 = vor.u32 %v19313_v6, %v13660_v7  ;;  %v21003_v23 = vpack.c.b16 %v1198_v3, %v1198_v3  ;;  %v13372_v27 = vld [vmem:[#allocation5 + $0x5a0] sm:$0xf0]  ;;  %v21005_v28 = vpack.c.b16 %v1200_v8, %v1200_v8 }
 0x110   :  { %v20045_v26 = vld [vmem:[#allocation5 + $0x1e9c] sm:$0xf0]  ;;  %v13308_v61 = vld [vmem:[#allocation5 + $0x520] sm:$0xf0] }
 0x111   :  { %v15770_v32 = vld [vmem:[#allocation5 + $0x1840] sm:$0xf]  ;;  %v16571_v36 = vor.u32 %v20045_v26, %v16570_v24  ;;  %6541 = vmatpush.bf16.msrb.mxu2 %v16315_v31  ;;  %v13116_v24 = vld [vmem:[#allocation5 + $0x3a0] sm:$0xf0]  ;;  %v21007_v31 = vpack.c.b16 %v1199_v9, %v1199_v9  ;;  %v13311_v2 = vor.u32 %v19225_v60, %v13308_v61 }
 0x112   :  { %v19845_v34 = vld [vmem:[#allocation5 + $0x185c] sm:$0xf0]  ;;  %v19241_v26 = vld [vmem:[#allocation5 + $0x584] sm:$0xf] }
 0x113   :  { %v16026_v35 = vld [vmem:[#allocation5 + $0x1a40] sm:$0xf]  ;;  %v15771_v47 = vor.u32 %v19845_v34, %v15770_v32  ;;  %6554 = vmatpush.bf16.msrb.mxu3 %v16571_v36  ;;  %v19305_v32 = vld [vmem:[#allocation5 + $0x784] sm:$0xf]  ;;  %v12863_v36 = vor.u32 %v19113_v15, %v12860_v16 }
 0x114   :  { %v19909_v37 = vld [vmem:[#allocation5 + $0x1a5c] sm:$0xf0]  ;;  %v13628_v34 = vld [vmem:[#allocation5 + $0x7a0] sm:$0xf0] }
 0x115   :  { %v16282_v39 = vld [vmem:[#allocation5 + $0x1c40] sm:$0xf]  ;;  %v16027_v51 = vor.u32 %v19909_v37, %v16026_v35  ;;  %6516 = vmatpush.bf16.msrb.mxu0 %v15771_v47  ;;  %v21009_v35 = vpack.c.b16 %v1201_v12, %v1201_v12  ;;  %v13119_v37 = vor.u32 %v19177_v17, %v13116_v24  ;;  %v13084_v47 = vld [vmem:[#allocation5 + $0x360] sm:$0xf0] }
 0x116   :  { %v19973_v40 = vld [vmem:[#allocation5 + $0x1c5c] sm:$0xf0]  ;;  %v19289_v62 = vld [vmem:[#allocation5 + $0x704] sm:$0xf] }
 0x117   :  { %v16538_v43 = vld [vmem:[#allocation5 + $0x1e40] sm:$0xf]  ;;  %v16283_v52 = vor.u32 %v19973_v40, %v16282_v39  ;;  %6529 = vmatpush.bf16.msrb.mxu1 %v16027_v51  ;;  %v13375_v39 = vor.u32 %v19241_v26, %v13372_v27  ;;  %v19105_v40 = vld [vmem:[#allocation5 + $0x144] sm:$0xf] }
 0x118   :  { %v20037_v45 = vld [vmem:[#allocation5 + $0x1e5c] sm:$0xf0]  ;;  %v13596_v51 = vld [vmem:[#allocation5 + $0x760] sm:$0xf0] }
 0x119   :  { %v15738_v46 = vld [vmem:[#allocation5 + $0x1800] sm:$0xf]  ;;  %v16539_v56 = vor.u32 %v20037_v45, %v16538_v43  ;;  %6542 = vmatpush.bf16.msrb.mxu2 %v16283_v52  ;;  %v12828_v43 = vld [vmem:[#allocation5 + $0x160] sm:$0xf0] }
 0x11a   :  { %v19837_v48 = vld [vmem:[#allocation5 + $0x181c] sm:$0xf0]  ;;  %v19169_v45 = vld [vmem:[#allocation5 + $0x344] sm:$0xf]  ;;  %v12831_v52 = vor.u32 %v19105_v40, %v12828_v43 }
 0x11b   :  { %v15994_v49 = vld [vmem:[#allocation5 + $0x1a00] sm:$0xf]  ;;  %v15739_v63 = vor.u32 %v19837_v48, %v15738_v46  ;;  %6555 = vmatpush.bf16.msrb.mxu3 %v16539_v56  ;;  %v13631_v46 = vor.u32 %v19305_v32, %v13628_v34  ;;  %v19233_v48 = vld [vmem:[#allocation5 + $0x544] sm:$0xf] }
 0x11c   :  { %v19901_v50 = vld [vmem:[#allocation5 + $0x1a1c] sm:$0xf0]  ;;  %v12796_v56 = vld [vmem:[#allocation5 + $0x120] sm:$0xf0] }
 0x11d   :  { %v16250_v53 = vld [vmem:[#allocation5 + $0x1c00] sm:$0xf]  ;;  %v15995_v4 = vor.u32 %v19901_v50, %v15994_v49  ;;  %6517 = vmatpush.bf16.msrb.mxu0 %v15739_v63  ;;  %v13340_v49 = vld [vmem:[#allocation5 + $0x560] sm:$0xf0]  ;;  %v12799_v0 = vor.u32 %v19097_v55, %v12796_v56 }
 0x11e   :  { %v19965_v54 = vld [vmem:[#allocation5 + $0x1c1c] sm:$0xf0]  ;;  %v19297_v50 = vld [vmem:[#allocation5 + $0x744] sm:$0xf] }
 0x11f   :  { %v16506_v57 = vld [vmem:[#allocation5 + $0x1e00] sm:$0xf]  ;;  %v16251_v5 = vor.u32 %v19965_v54, %v16250_v53  ;;  %6530 = vmatpush.bf16.msrb.mxu1 %v15995_v4  ;;  %v13087_v53 = vor.u32 %v19169_v45, %v13084_v47  ;;  %v13343_v54 = vor.u32 %v19233_v48, %v13340_v49  ;;  %v13564_v63 = vld [vmem:[#allocation5 + $0x720] sm:$0xf0] }
 0x120   :  { %v20029_v58 = vld [vmem:[#allocation5 + $0x1e1c] sm:$0xf0]  ;;  %6518 = vmatmul.bf16.vlgmr.msrb.gmra.mxu0 %v21003_v23  ;;  %v19089_v3 = vld [vmem:[#allocation5 + $0xc4] sm:$0xf]  ;;  %v13567_v6 = vor.u32 %v19289_v62, %v13564_v63 }
 0x121   :  { %v16507_v10 = vor.u32 %v20029_v58, %v16506_v57  ;;  %6543 = vmatpush.bf16.msrb.mxu2 %v16251_v5  ;;  %6562 = vmatpush.bf16.msra.mxu0 %v12895_v11  ;;  %v19161_v57 = vld [vmem:[#allocation5 + $0x304] sm:$0xf]  ;;  %v13599_v58 = vor.u32 %v19297_v50, %v13596_v51 }
 0x122   :  { %6531 = vmatmul.bf16.vlgmr.msrb.gmra.mxu1 %v21007_v31  ;;  %v13055_v1 = vor.u32 %v19161_v57, %v13052_v59  ;;  %v12764_v4 = vld [vmem:[#allocation5 + $0xe0] sm:$0xf0] }
 0x123   :  { %6556 = vmatpush.bf16.msrb.mxu3 %v16507_v10  ;;  %6575 = vmatpush.bf16.msra.mxu1 %v13151_v13  ;;  %v19153_v5 = vld [vmem:[#allocation5 + $0x2c4] sm:$0xf]  ;;  %v12767_v12 = vor.u32 %v19089_v3, %v12764_v4 }
 0x124   :  { %6544 = vmatmul.bf16.vlgmr.msrb.gmra.mxu2 %v21005_v28  ;;  %v13020_v7 = vld [vmem:[#allocation5 + $0x2e0] sm:$0xf0] }
 0x125   :  { %6588 = vmatpush.bf16.msra.mxu2 %v13407_v14  ;;  %6563 = vmatpush.bf16.msra.mxu0 %v12863_v36  ;;  %v19217_v8 = vld [vmem:[#allocation5 + $0x4c4] sm:$0xf]  ;;  %v13023_v13 = vor.u32 %v19153_v5, %v13020_v7 }
 0x126   :  { %6557 = vmatmul.bf16.vlgmr.msrb.gmra.mxu3 %v21009_v35  ;;  %v13276_v9 = vld [vmem:[#allocation5 + $0x4e0] sm:$0xf0] }
 0x127   :  { %6601 = vmatpush.bf16.msra.mxu3 %v13663_v21  ;;  %6576 = vmatpush.bf16.msra.mxu1 %v13119_v37  ;;  %v19281_v10 = vld [vmem:[#allocation5 + $0x6c4] sm:$0xf]  ;;  %v13279_v14 = vor.u32 %v19217_v8, %v13276_v9 }
 0x128   :  { %v13532_v11 = vld [vmem:[#allocation5 + $0x6e0] sm:$0xf0] }
 0x129   :  { %6589 = vmatpush.bf16.msra.mxu2 %v13375_v39  ;;  %6564 = vmatpush.bf16.msra.mxu0 %v12831_v52  ;;  %v19081_v15 = vld [vmem:[#allocation5 + $0x84] sm:$0xf]  ;;  %v13535_v21 = vor.u32 %v19281_v10, %v13532_v11 }
 0x12a   :  { %v12732_v16 = vld [vmem:[#allocation5 + $0xa0] sm:$0xf0] }
 0x12b   :  { %6602 = vmatpush.bf16.msra.mxu3 %v13631_v46  ;;  %6577 = vmatpush.bf16.msra.mxu1 %v13087_v53  ;;  %v19145_v17 = vld [vmem:[#allocation5 + $0x284] sm:$0xf]  ;;  %v12735_v36 = vor.u32 %v19081_v15, %v12732_v16 }
 0x12c   :  { %v12988_v24 = vld [vmem:[#allocation5 + $0x2a0] sm:$0xf0] }
 0x12d   :  { %6590 = vmatpush.bf16.msra.mxu2 %v13343_v54  ;;  %6565 = vmatpush.bf16.msra.mxu0 %v12799_v0  ;;  %v19209_v26 = vld [vmem:[#allocation5 + $0x484] sm:$0xf]  ;;  %v12991_v37 = vor.u32 %v19145_v17, %v12988_v24 }
 0x12e   :  { %v13244_v27 = vld [vmem:[#allocation5 + $0x4a0] sm:$0xf0] }
 0x12f   :  { %6603 = vmatpush.bf16.msra.mxu3 %v13599_v58  ;;  %6578 = vmatpush.bf16.msra.mxu1 %v13055_v1  ;;  %v19273_v32 = vld [vmem:[#allocation5 + $0x684] sm:$0xf]  ;;  %v13247_v39 = vor.u32 %v19209_v26, %v13244_v27 }
 0x130   :  { %v13500_v34 = vld [vmem:[#allocation5 + $0x6a0] sm:$0xf0] }
 0x131   :  { %6591 = vmatpush.bf16.msra.mxu2 %v13311_v2  ;;  %6566 = vmatpush.bf16.msra.mxu0 %v12767_v12  ;;  %v19073_v40 = vld [vmem:[#allocation5 + $0x44] sm:$0xf]  ;;  %v13503_v46 = vor.u32 %v19273_v32, %v13500_v34 }
 0x132   :  { %v12700_v43 = vld [vmem:[#allocation5 + $0x60] sm:$0xf0] }
 0x133   :  { %6604 = vmatpush.bf16.msra.mxu3 %v13567_v6  ;;  %6579 = vmatpush.bf16.msra.mxu1 %v13023_v13  ;;  %v19137_v45 = vld [vmem:[#allocation5 + $0x244] sm:$0xf]  ;;  %v12703_v52 = vor.u32 %v19073_v40, %v12700_v43 }
 0x134   :  { %v12956_v47 = vld [vmem:[#allocation5 + $0x260] sm:$0xf0] }
 0x135   :  { %6592 = vmatpush.bf16.msra.mxu2 %v13279_v14  ;;  %v19201_v48 = vld [vmem:[#allocation5 + $0x444] sm:$0xf]  ;;  %6567 = vmatpush.bf16.msra.mxu0 %v12735_v36  ;;  %v12959_v55 = vor.u32 %v19137_v45, %v12956_v47 }
 0x136   :  { %v13212_v49 = vld [vmem:[#allocation5 + $0x460] sm:$0xf0] }
 0x137   :  { %6605 = vmatpush.bf16.msra.mxu3 %v13535_v21  ;;  %v19265_v50 = vld [vmem:[#allocation5 + $0x644] sm:$0xf]  ;;  %6580 = vmatpush.bf16.msra.mxu1 %v12991_v37  ;;  %v13215_v56 = vor.u32 %v19201_v48, %v13212_v49 }
 0x138   :  { %v13468_v51 = vld [vmem:[#allocation5 + $0x660] sm:$0xf0] }
 0x139   :  { %v19065_v53 = vld [vmem:[#allocation5 + $0x4] sm:$0xf]  ;;  %6593 = vmatpush.bf16.msra.mxu2 %v13247_v39  ;;  %v13471_v60 = vor.u32 %v19265_v50, %v13468_v51  ;;  %6568 = vmatpush.bf16.msra.mxu0 %v12703_v52 }
 0x13a   :  { %v12668_v54 = vld [vmem:[#allocation5 + $0x20] sm:$0xf0] }
 0x13b   :  { %v19129_v57 = vld [vmem:[#allocation5 + $0x204] sm:$0xf]  ;;  %6606 = vmatpush.bf16.msra.mxu3 %v13503_v46  ;;  %v12671_v3 = vor.u32 %v19065_v53, %v12668_v54  ;;  %6581 = vmatpush.bf16.msra.mxu1 %v12959_v55 }
 0x13c   :  { %v12924_v58 = vld [vmem:[#allocation5 + $0x220] sm:$0xf0] }
 0x13d   :  { %v19193_v59 = vld [vmem:[#allocation5 + $0x404] sm:$0xf]  ;;  %6594 = vmatpush.bf16.msra.mxu2 %v13215_v56  ;;  %v12927_v7 = vor.u32 %v19129_v57, %v12924_v58  ;;  %6569 = vmatpush.bf16.msra.mxu0 %v12671_v3 }
 0x13e   :  { %v13180_v61 = vld [vmem:[#allocation5 + $0x420] sm:$0xf0] }
 0x13f   :  { %v19257_v62 = vld [vmem:[#allocation5 + $0x604] sm:$0xf]  ;;  %v13183_v8 = vor.u32 %v19193_v59, %v13180_v61  ;;  %6607 = vmatpush.bf16.msra.mxu3 %v13471_v60  ;;  %6582 = vmatpush.bf16.msra.mxu1 %v12927_v7 }
 0x140   :  { %v13436_v63 = vld [vmem:[#allocation5 + $0x620] sm:$0xf0]  ;;  %6570 = vmatmul.bf16.vlgmr.msra.gmra.mxu0 %v20969_v19 }
 0x141   :  { %v19377_v0 = vld [vmem:[#allocation5 + $0x9c4] sm:$0xf]  ;;  %v13439_v11 = vor.u32 %v19257_v62, %v13436_v63  ;;  %6595 = vmatpush.bf16.msra.mxu2 %v13183_v8 }
 0x142   :  { %v13916_v1 = vld [vmem:[#allocation5 + $0x9e0] sm:$0xf0]  ;;  %6583 = vmatmul.bf16.vlgmr.msra.gmra.mxu1 %v20973_v22 }
 0x143   :  { %v19441_v2 = vld [vmem:[#allocation5 + $0xbc4] sm:$0xf]  ;;  %v13919_v12 = vor.u32 %v19377_v0, %v13916_v1  ;;  %6608 = vmatpush.bf16.msra.mxu3 %v13439_v11 }
 0x144   :  { %v14172_v4 = vld [vmem:[#allocation5 + $0xbe0] sm:$0xf0]  ;;  %6596 = vmatmul.bf16.vlgmr.msra.gmra.mxu2 %v20967_v18 }
 0x145   :  { %v19505_v5 = vld [vmem:[#allocation5 + $0xdc4] sm:$0xf]  ;;  %v14175_v13 = vor.u32 %v19441_v2, %v14172_v4  ;;  %6614 = vmatpush.bf16.msrb.mxu0 %v13919_v12 }
 0x146   :  { %v14428_v6 = vld [vmem:[#allocation5 + $0xde0] sm:$0xf0]  ;;  %6609 = vmatmul.bf16.vlgmr.msra.gmra.mxu3 %v20971_v20 }
 0x147   :  { %v19569_v9 = vld [vmem:[#allocation5 + $0xfc4] sm:$0xf]  ;;  %v14431_v14 = vor.u32 %v19505_v5, %v14428_v6  ;;  %6627 = vmatpush.bf16.msrb.mxu1 %v14175_v13 }
 0x148   :  { %v14684_v10 = vld [vmem:[#allocation5 + $0xfe0] sm:$0xf0] }
 0x149   :  { %v19369_v15 = vld [vmem:[#allocation5 + $0x984] sm:$0xf]  ;;  %v14687_v21 = vor.u32 %v19569_v9, %v14684_v10  ;;  %6640 = vmatpush.bf16.msrb.mxu2 %v14431_v14 }
 0x14a   :  { %v13884_v16 = vld [vmem:[#allocation5 + $0x9a0] sm:$0xf0] }
 0x14b   :  { %v19433_v17 = vld [vmem:[#allocation5 + $0xb84] sm:$0xf]  ;;  %v13887_v36 = vor.u32 %v19369_v15, %v13884_v16  ;;  %6653 = vmatpush.bf16.msrb.mxu3 %v14687_v21 }
 0x14c   :  { %v14140_v24 = vld [vmem:[#allocation5 + $0xba0] sm:$0xf0] }
 0x14d   :  { %v19497_v26 = vld [vmem:[#allocation5 + $0xd84] sm:$0xf]  ;;  %v14143_v37 = vor.u32 %v19433_v17, %v14140_v24  ;;  %6615 = vmatpush.bf16.msrb.mxu0 %v13887_v36 }
 0x14e   :  { %v14396_v27 = vld [vmem:[#allocation5 + $0xda0] sm:$0xf0] }
 0x14f   :  { %v19561_v32 = vld [vmem:[#allocation5 + $0xf84] sm:$0xf]  ;;  %v14399_v39 = vor.u32 %v19497_v26, %v14396_v27  ;;  %6628 = vmatpush.bf16.msrb.mxu1 %v14143_v37 }
 0x150   :  { %v14652_v34 = vld [vmem:[#allocation5 + $0xfa0] sm:$0xf0] }
 0x151   :  { %v19361_v40 = vld [vmem:[#allocation5 + $0x944] sm:$0xf]  ;;  %v14655_v46 = vor.u32 %v19561_v32, %v14652_v34  ;;  %6641 = vmatpush.bf16.msrb.mxu2 %v14399_v39 }
 0x152   :  { %v13852_v43 = vld [vmem:[#allocation5 + $0x960] sm:$0xf0] }
 0x153   :  { %v19425_v45 = vld [vmem:[#allocation5 + $0xb44] sm:$0xf]  ;;  %v13855_v52 = vor.u32 %v19361_v40, %v13852_v43  ;;  %6654 = vmatpush.bf16.msrb.mxu3 %v14655_v46  ;;  %v6363_v40 = vpop.f32.mrf.mxu0 }
 0x154   :  { %v14108_v47 = vld [vmem:[#allocation5 + $0xb60] sm:$0xf0] }
 0x155   :  { %v19489_v48 = vld [vmem:[#allocation5 + $0xd44] sm:$0xf]  ;;  %v14111_v53 = vor.u32 %v19425_v45, %v14108_v47  ;;  %6616 = vmatpush.bf16.msrb.mxu0 %v13855_v52 }
 0x156   :  { %v14364_v49 = vld [vmem:[#allocation5 + $0xd60] sm:$0xf0] }
 0x157   :  { %v19553_v50 = vld [vmem:[#allocation5 + $0xf44] sm:$0xf]  ;;  %v14367_v54 = vor.u32 %v19489_v48, %v14364_v49  ;;  %6629 = vmatpush.bf16.msrb.mxu1 %v14111_v53 }
 0x158   :  { %v14620_v51 = vld [vmem:[#allocation5 + $0xf60] sm:$0xf0] }
 0x159   :  { %v19353_v55 = vld [vmem:[#allocation5 + $0x904] sm:$0xf]  ;;  %v14623_v58 = vor.u32 %v19553_v50, %v14620_v51  ;;  %6642 = vmatpush.bf16.msrb.mxu2 %v14367_v54  ;;  %v6376_v50 = vpop.f32.mrf.mxu1 }
 0x15a   :  { %v13820_v56 = vld [vmem:[#allocation5 + $0x920] sm:$0xf0] }
 0x15b   :  { %v19417_v57 = vld [vmem:[#allocation5 + $0xb04] sm:$0xf]  ;;  %v13823_v0 = vor.u32 %v19353_v55, %v13820_v56  ;;  %6655 = vmatpush.bf16.msrb.mxu3 %v14623_v58 }
 0x15c   :  { %v14076_v59 = vld [vmem:[#allocation5 + $0xb20] sm:$0xf0] }
 0x15d   :  { %v19481_v60 = vld [vmem:[#allocation5 + $0xd04] sm:$0xf]  ;;  %v14079_v2 = vor.u32 %v19417_v57, %v14076_v59  ;;  %6617 = vmatpush.bf16.msrb.mxu0 %v13823_v0 }
 0x15e   :  { %v14332_v61 = vld [vmem:[#allocation5 + $0xd20] sm:$0xf0] }
 0x15f   :  { %v19545_v62 = vld [vmem:[#allocation5 + $0xf04] sm:$0xf]  ;;  %v14335_v3 = vor.u32 %v19481_v60, %v14332_v61  ;;  %6630 = vmatpush.bf16.msrb.mxu1 %v14079_v2  ;;  %v6389_v2 = vpop.f32.mrf.mxu2 }
 0x160   :  { %v14588_v63 = vld [vmem:[#allocation5 + $0xf20] sm:$0xf0] }
 0x161   :  { %v19345_v1 = vld [vmem:[#allocation5 + $0x8c4] sm:$0xf]  ;;  %v14591_v7 = vor.u32 %v19545_v62, %v14588_v63  ;;  %6643 = vmatpush.bf16.msrb.mxu2 %v14335_v3 }
 0x162   :  { %v13788_v4 = vld [vmem:[#allocation5 + $0x8e0] sm:$0xf0] }
 0x163   :  { %v19409_v5 = vld [vmem:[#allocation5 + $0xac4] sm:$0xf]  ;;  %v13791_v13 = vor.u32 %v19345_v1, %v13788_v4  ;;  %6656 = vmatpush.bf16.msrb.mxu3 %v14591_v7 }
 0x164   :  { %v14044_v6 = vld [vmem:[#allocation5 + $0xae0] sm:$0xf0] }
 0x165   :  { %v19473_v8 = vld [vmem:[#allocation5 + $0xcc4] sm:$0xf]  ;;  %v14047_v15 = vor.u32 %v19409_v5, %v14044_v6  ;;  %6618 = vmatpush.bf16.msrb.mxu0 %v13791_v13 }
 0x166   :  { %v14300_v9 = vld [vmem:[#allocation5 + $0xce0] sm:$0xf0] }
 0x167   :  { %v1160_v10 = vld [vmem:[#allocation7] sm:$0xff]  ;;  %v14303_v16 = vor.u32 %v19473_v8, %v14300_v9  ;;  %6631 = vmatpush.bf16.msrb.mxu1 %v14047_v15  ;;  %v6402_v8 = vpop.f32.mrf.mxu3 }
 0x168   :  { %v19537_v11 = vld [vmem:[#allocation5 + $0xec4] sm:$0xf]  ;;  %v1162_v24 = vperm.slane %v1160_v10, 0 }
 0x169   :  { %v14556_v12 = vld [vmem:[#allocation5 + $0xee0] sm:$0xf0]  ;;  %6644 = vmatpush.bf16.msrb.mxu2 %v14303_v16 }
 0x16a   :  { %v19337_v14 = vld [vmem:[#allocation5 + $0x884] sm:$0xf]  ;;  %v14559_v26 = vor.u32 %v19537_v11, %v14556_v12  ;;  %v6364_v49 = vadd.f32 %v6363_v40, %v1162_v24 }
 0x16b   :  { %v13756_v17 = vld [vmem:[#allocation5 + $0x8a0] sm:$0xf0] }
 0x16c   :  { %v19401_v21 = vld [vmem:[#allocation5 + $0xa84] sm:$0xf]  ;;  %v13759_v39 = vor.u32 %v19337_v14, %v13756_v17  ;;  %6657 = vmatpush.bf16.msrb.mxu3 %v14559_v26  ;;  %v6377_v57 = vadd.f32 %v6376_v50, %v6364_v49  ;;  %v6365_v17 = vpop.f32.mrf.mxu0 }
 0x16d   :  { %v14012_v27 = vld [vmem:[#allocation5 + $0xaa0] sm:$0xf0] }
 0x16e   :  { %v19465_v32 = vld [vmem:[#allocation5 + $0xc84] sm:$0xf]  ;;  %v14015_v43 = vor.u32 %v19401_v21, %v14012_v27  ;;  %6619 = vmatpush.bf16.msrb.mxu0 %v13759_v39  ;;  %v6390_v7 = vadd.f32 %v6389_v2, %v6377_v57 }
 0x16f   :  { %v14268_v34 = vld [vmem:[#allocation5 + $0xca0] sm:$0xf0] }
 0x170   :  { %v19529_v36 = vld [vmem:[#allocation5 + $0xe84] sm:$0xf]  ;;  %v14271_v45 = vor.u32 %v19465_v32, %v14268_v34  ;;  %6632 = vmatpush.bf16.msrb.mxu1 %v14015_v43  ;;  %v21019_v16 = vadd.f32 %v6402_v8, %v6390_v7  ;;  %v6378_v32 = vpop.f32.mrf.mxu1 }
 0x171   :  { %v14524_v37 = vld [vmem:[#allocation5 + $0xea0] sm:$0xf0] }
 0x172   :  { %v19329_v46 = vld [vmem:[#allocation5 + $0x844] sm:$0xf]  ;;  %v14527_v51 = vor.u32 %v19529_v36, %v14524_v37  ;;  %6645 = vmatpush.bf16.msrb.mxu2 %v14271_v45 }
 0x173   :  { %v13724_v47 = vld [vmem:[#allocation5 + $0x860] sm:$0xf0] }
 0x174   :  { %v19393_v48 = vld [vmem:[#allocation5 + $0xa44] sm:$0xf]  ;;  %v13727_v58 = vor.u32 %v19329_v46, %v13724_v47  ;;  %6658 = vmatpush.bf16.msrb.mxu3 %v14527_v51 }
 0x175   :  { %v13980_v52 = vld [vmem:[#allocation5 + $0xa60] sm:$0xf0] }
 0x176   :  { %v19457_v53 = vld [vmem:[#allocation5 + $0xc44] sm:$0xf]  ;;  %v13983_v61 = vor.u32 %v19393_v48, %v13980_v52  ;;  %6620 = vmatpush.bf16.msrb.mxu0 %v13727_v58  ;;  %v6391_v52 = vpop.f32.mrf.mxu2 }
 0x177   :  { %v14236_v54 = vld [vmem:[#allocation5 + $0xc60] sm:$0xf0] }
 0x178   :  { %v19521_v55 = vld [vmem:[#allocation5 + $0xe44] sm:$0xf]  ;;  %v14239_v62 = vor.u32 %v19457_v53, %v14236_v54  ;;  %6633 = vmatpush.bf16.msrb.mxu1 %v13983_v61  ;;  %v6404_v54 = vpop.f32.mrf.mxu3 }
 0x179   :  { %v14492_v56 = vld [vmem:[#allocation5 + $0xe60] sm:$0xf0] }
 0x17a   :  { %v19321_v59 = vld [vmem:[#allocation5 + $0x804] sm:$0xf]  ;;  %v14495_v3 = vor.u32 %v19521_v55, %v14492_v56  ;;  %6646 = vmatpush.bf16.msrb.mxu2 %v14239_v62 }
 0x17b   :  { %v13692_v60 = vld [vmem:[#allocation5 + $0x820] sm:$0xf0] }
 0x17c   :  { %v19385_v63 = vld [vmem:[#allocation5 + $0xa04] sm:$0xf]  ;;  %v13695_v12 = vor.u32 %v19321_v59, %v13692_v60  ;;  %6659 = vmatpush.bf16.msrb.mxu3 %v14495_v3 }
 0x17d   :  { %v13948_v0 = vld [vmem:[#allocation5 + $0xa20] sm:$0xf0] }
 0x17e   :  { %v19449_v1 = vld [vmem:[#allocation5 + $0xc04] sm:$0xf]  ;;  %v13951_v21 = vor.u32 %v19385_v63, %v13948_v0  ;;  %6621 = vmatpush.bf16.msrb.mxu0 %v13695_v12 }
 0x17f   :  { %v14204_v4 = vld [vmem:[#allocation5 + $0xc20] sm:$0xf0] }
 0x180   :  { %v19513_v5 = vld [vmem:[#allocation5 + $0xe04] sm:$0xf]  ;;  %v14207_v24 = vor.u32 %v19449_v1, %v14204_v4  ;;  %6634 = vmatpush.bf16.msrb.mxu1 %v13951_v21 }
 0x181   :  { %v14460_v6 = vld [vmem:[#allocation5 + $0xe20] sm:$0xf0]  ;;  %6622 = vmatmul.bf16.vlgmr.msrb.gmra.mxu0 %v20981_v41 }
 0x182   :  { %v19633_v9 = vld [vmem:[#allocation5 + $0x11c4] sm:$0xf]  ;;  %v14463_v34 = vor.u32 %v19513_v5, %v14460_v6  ;;  %6647 = vmatpush.bf16.msrb.mxu2 %v14207_v24 }
 0x183   :  { %v14940_v10 = vld [vmem:[#allocation5 + $0x11e0] sm:$0xf0]  ;;  %6635 = vmatmul.bf16.vlgmr.msrb.gmra.mxu1 %v20985_v44 }
 0x184   :  { %v19697_v11 = vld [vmem:[#allocation5 + $0x13c4] sm:$0xf]  ;;  %v14943_v36 = vor.u32 %v19633_v9, %v14940_v10  ;;  %6660 = vmatpush.bf16.msrb.mxu3 %v14463_v34  ;;  %v6428_v34 = vpop.f32.mrf.mxu1 }
 0x185   :  { %v15196_v13 = vld [vmem:[#allocation5 + $0x13e0] sm:$0xf0]  ;;  %6648 = vmatmul.bf16.vlgmr.msrb.gmra.mxu2 %v20979_v38 }
 0x186   :  { %v19761_v14 = vld [vmem:[#allocation5 + $0x15c4] sm:$0xf]  ;;  %v15199_v37 = vor.u32 %v19697_v11, %v15196_v13  ;;  %6666 = vmatpush.bf16.msra.mxu0 %v14943_v36 }
 0x187   :  { %v15452_v15 = vld [vmem:[#allocation5 + $0x15e0] sm:$0xf0]  ;;  %6661 = vmatmul.bf16.vlgmr.msrb.gmra.mxu3 %v20983_v42 }
 0x188   :  { %v19825_v26 = vld [vmem:[#allocation5 + $0x17c4] sm:$0xf]  ;;  %v15455_v39 = vor.u32 %v19761_v14, %v15452_v15  ;;  %6679 = vmatpush.bf16.msra.mxu1 %v15199_v37  ;;  %v6415_v15 = vpop.f32.mrf.mxu0 }
 0x189   :  { %v15708_v27 = vld [vmem:[#allocation5 + $0x17e0] sm:$0xf0]  ;;  %v6416_v32 = vadd.f32 %v6415_v15, %v21019_v16 }
 0x18a   :  { %v19625_v40 = vld [vmem:[#allocation5 + $0x1184] sm:$0xf]  ;;  %v15711_v46 = vor.u32 %v19825_v26, %v15708_v27  ;;  %6692 = vmatpush.bf16.msra.mxu2 %v15455_v39 }
 0x18b   :  { %v14908_v43 = vld [vmem:[#allocation5 + $0x11a0] sm:$0xf0] }
 0x18c   :  { %v19689_v45 = vld [vmem:[#allocation5 + $0x1384] sm:$0xf]  ;;  %v14911_v53 = vor.u32 %v19625_v40, %v14908_v43  ;;  %6705 = vmatpush.bf16.msra.mxu3 %v15711_v46  ;;  %v6429_v46 = vadd.f32 %v6428_v34, %v6416_v32 }
 0x18d   :  { %v15164_v47 = vld [vmem:[#allocation5 + $0x13a0] sm:$0xf0] }
 0x18e   :  { %v19753_v48 = vld [vmem:[#allocation5 + $0x1584] sm:$0xf]  ;;  %v15167_v55 = vor.u32 %v19689_v45, %v15164_v47  ;;  %6667 = vmatpush.bf16.msra.mxu0 %v14911_v53  ;;  %v6441_v53 = vpop.f32.mrf.mxu2 }
 0x18f   :  { %v15420_v49 = vld [vmem:[#allocation5 + $0x15a0] sm:$0xf0] }
 0x190   :  { %v19817_v50 = vld [vmem:[#allocation5 + $0x1784] sm:$0xf]  ;;  %v15423_v56 = vor.u32 %v19753_v48, %v15420_v49  ;;  %6680 = vmatpush.bf16.msra.mxu1 %v15167_v55 }
 0x191   :  { %v15676_v51 = vld [vmem:[#allocation5 + $0x17a0] sm:$0xf0] }
 0x192   :  { %v19617_v57 = vld [vmem:[#allocation5 + $0x1144] sm:$0xf]  ;;  %v15679_v60 = vor.u32 %v19817_v50, %v15676_v51  ;;  %6693 = vmatpush.bf16.msra.mxu2 %v15423_v56 }
 0x193   :  { %v14876_v58 = vld [vmem:[#allocation5 + $0x1160] sm:$0xf0] }
 0x194   :  { %v19681_v59 = vld [vmem:[#allocation5 + $0x1344] sm:$0xf]  ;;  %v14879_v2 = vor.u32 %v19617_v57, %v14876_v58  ;;  %6706 = vmatpush.bf16.msra.mxu3 %v15679_v60  ;;  %v6442_v57 = vadd.f32 %v6441_v53, %v6429_v46  ;;  %v6454_v58 = vpop.f32.mrf.mxu3 }
 0x195   :  { %v15132_v61 = vld [vmem:[#allocation5 + $0x1360] sm:$0xf0] }
 0x196   :  { %v19745_v62 = vld [vmem:[#allocation5 + $0x1544] sm:$0xf]  ;;  %v15135_v3 = vor.u32 %v19681_v59, %v15132_v61  ;;  %6668 = vmatpush.bf16.msra.mxu0 %v14879_v2 }
 0x197   :  { %v15388_v63 = vld [vmem:[#allocation5 + $0x1560] sm:$0xf0] }
 0x198   :  { %v19809_v0 = vld [vmem:[#allocation5 + $0x1744] sm:$0xf]  ;;  %v15391_v4 = vor.u32 %v19745_v62, %v15388_v63  ;;  %6681 = vmatpush.bf16.msra.mxu1 %v15135_v3  ;;  %v21026_v62 = vadd.f32 %v6454_v58, %v6442_v57  ;;  %v6417_v63 = vpop.f32.mrf.mxu0 }
 0x199   :  { %v15644_v1 = vld [vmem:[#allocation5 + $0x1760] sm:$0xf0] }
 0x19a   :  { %v19609_v5 = vld [vmem:[#allocation5 + $0x1104] sm:$0xf]  ;;  %v15647_v8 = vor.u32 %v19809_v0, %v15644_v1  ;;  %6694 = vmatpush.bf16.msra.mxu2 %v15391_v4 }
 0x19b   :  { %v14844_v6 = vld [vmem:[#allocation5 + $0x1120] sm:$0xf0] }
 0x19c   :  { %v19673_v7 = vld [vmem:[#allocation5 + $0x1304] sm:$0xf]  ;;  %v14847_v14 = vor.u32 %v19609_v5, %v14844_v6  ;;  %6707 = vmatpush.bf16.msra.mxu3 %v15647_v8  ;;  %v6430_v5 = vpop.f32.mrf.mxu1 }
 0x19d   :  { %v15100_v9 = vld [vmem:[#allocation5 + $0x1320] sm:$0xf0] }
 0x19e   :  { %v19737_v10 = vld [vmem:[#allocation5 + $0x1504] sm:$0xf]  ;;  %v15103_v17 = vor.u32 %v19673_v7, %v15100_v9  ;;  %6669 = vmatpush.bf16.msra.mxu0 %v14847_v14 }
 0x19f   :  { %v15356_v11 = vld [vmem:[#allocation5 + $0x1520] sm:$0xf0] }
 0x1a0   :  { %v19801_v12 = vld [vmem:[#allocation5 + $0x1704] sm:$0xf]  ;;  %v15359_v21 = vor.u32 %v19737_v10, %v15356_v11  ;;  %6682 = vmatpush.bf16.msra.mxu1 %v15103_v17 }
 0x1a1   :  { %v15612_v13 = vld [vmem:[#allocation5 + $0x1720] sm:$0xf0] }
 0x1a2   :  { %v19601_v24 = vld [vmem:[#allocation5 + $0x10c4] sm:$0xf]  ;;  %v15615_v36 = vor.u32 %v19801_v12, %v15612_v13  ;;  %6695 = vmatpush.bf16.msra.mxu2 %v15359_v21 }
 0x1a3   :  { %v14812_v26 = vld [vmem:[#allocation5 + $0x10e0] sm:$0xf0] }
 0x1a4   :  { %v19665_v27 = vld [vmem:[#allocation5 + $0x12c4] sm:$0xf]  ;;  %v14815_v47 = vor.u32 %v19601_v24, %v14812_v26  ;;  %6708 = vmatpush.bf16.msra.mxu3 %v15615_v36 }
 0x1a5   :  { %v15068_v37 = vld [vmem:[#allocation5 + $0x12e0] sm:$0xf0] }
 0x1a6   :  { %v19729_v39 = vld [vmem:[#allocation5 + $0x14c4] sm:$0xf]  ;;  %v15071_v48 = vor.u32 %v19665_v27, %v15068_v37  ;;  %6670 = vmatpush.bf16.msra.mxu0 %v14815_v47  ;;  %v6443_v27 = vpop.f32.mrf.mxu2 }
 0x1a7   :  { %v15324_v40 = vld [vmem:[#allocation5 + $0x14e0] sm:$0xf0] }
 0x1a8   :  { %v19793_v43 = vld [vmem:[#allocation5 + $0x16c4] sm:$0xf]  ;;  %v15327_v49 = vor.u32 %v19729_v39, %v15324_v40  ;;  %6683 = vmatpush.bf16.msra.mxu1 %v15071_v48  ;;  %v6456_v39 = vpop.f32.mrf.mxu3 }
 0x1a9   :  { %v15580_v45 = vld [vmem:[#allocation5 + $0x16e0] sm:$0xf0]  ;;  %v6467_v39 = vpop.f32.mrf.mxu0 }
 0x1aa   :  { %v19593_v50 = vld [vmem:[#allocation5 + $0x1084] sm:$0xf]  ;;  %v15583_v16 = vor.u32 %v19793_v43, %v15580_v45  ;;  %6696 = vmatpush.bf16.msra.mxu2 %v15327_v49 }
 0x1ab   :  { %v14780_v51 = vld [vmem:[#allocation5 + $0x10a0] sm:$0xf0] }
 0x1ac   :  { %v19657_v52 = vld [vmem:[#allocation5 + $0x1284] sm:$0xf]  ;;  %v14783_v61 = vor.u32 %v19593_v50, %v14780_v51  ;;  %6709 = vmatpush.bf16.msra.mxu3 %v15583_v16 }
 0x1ad   :  { %v15036_v54 = vld [vmem:[#allocation5 + $0x12a0] sm:$0xf0] }
 0x1ae   :  { %v19721_v55 = vld [vmem:[#allocation5 + $0x1484] sm:$0xf]  ;;  %v15039_v0 = vor.u32 %v19657_v52, %v15036_v54  ;;  %6671 = vmatpush.bf16.msra.mxu0 %v14783_v61 }
 0x1af   :  { %v15292_v56 = vld [vmem:[#allocation5 + $0x14a0] sm:$0xf0] }
 0x1b0   :  { %v19785_v59 = vld [vmem:[#allocation5 + $0x1684] sm:$0xf]  ;;  %v15295_v1 = vor.u32 %v19721_v55, %v15292_v56  ;;  %6684 = vmatpush.bf16.msra.mxu1 %v15039_v0 }
 0x1b1   :  { %v15548_v60 = vld [vmem:[#allocation5 + $0x16a0] sm:$0xf0] }
 0x1b2   :  { %v19585_v2 = vld [vmem:[#allocation5 + $0x1044] sm:$0xf]  ;;  %v15551_v6 = vor.u32 %v19785_v59, %v15548_v60  ;;  %6697 = vmatpush.bf16.msra.mxu2 %v15295_v1 }
 0x1b3   :  { %v14748_v3 = vld [vmem:[#allocation5 + $0x1060] sm:$0xf0] }
 0x1b4   :  { %v19649_v4 = vld [vmem:[#allocation5 + $0x1244] sm:$0xf]  ;;  %v14751_v12 = vor.u32 %v19585_v2, %v14748_v3  ;;  %6710 = vmatpush.bf16.msra.mxu3 %v15551_v6 }
 0x1b5   :  { %v15004_v7 = vld [vmem:[#allocation5 + $0x1260] sm:$0xf0] }
 0x1b6   :  { %v19713_v8 = vld [vmem:[#allocation5 + $0x1444] sm:$0xf]  ;;  %v15007_v15 = vor.u32 %v19649_v4, %v15004_v7  ;;  %6672 = vmatpush.bf16.msra.mxu0 %v14751_v12 }
 0x1b7   :  { %v15260_v9 = vld [vmem:[#allocation5 + $0x1460] sm:$0xf0] }
 0x1b8   :  { %v19777_v10 = vld [vmem:[#allocation5 + $0x1644] sm:$0xf]  ;;  %v15263_v17 = vor.u32 %v19713_v8, %v15260_v9  ;;  %6685 = vmatpush.bf16.msra.mxu1 %v15007_v15 }
 0x1b9   :  { %v15516_v11 = vld [vmem:[#allocation5 + $0x1660] sm:$0xf0] }
 0x1ba   :  { %v19577_v13 = vld [vmem:[#allocation5 + $0x1004] sm:$0xf]  ;;  %v15519_v32 = vor.u32 %v19777_v10, %v15516_v11  ;;  %6698 = vmatpush.bf16.msra.mxu2 %v15263_v17 }
 0x1bb   :  { %v14716_v14 = vld [vmem:[#allocation5 + $0x1020] sm:$0xf0] }
 0x1bc   :  { %v19641_v21 = vld [vmem:[#allocation5 + $0x1204] sm:$0xf]  ;;  %v14719_v46 = vor.u32 %v19577_v13, %v14716_v14  ;;  %6711 = vmatpush.bf16.msra.mxu3 %v15519_v32 }
 0x1bd   :  { %v14972_v24 = vld [vmem:[#allocation5 + $0x1220] sm:$0xf0] }
 0x1be   :  { %v19705_v26 = vld [vmem:[#allocation5 + $0x1404] sm:$0xf]  ;;  %v14975_v50 = vor.u32 %v19641_v21, %v14972_v24  ;;  %6673 = vmatpush.bf16.msra.mxu0 %v14719_v46 }
 0x1bf   :  { %v15228_v34 = vld [vmem:[#allocation5 + $0x1420] sm:$0xf0] }
 0x1c0   :  { %v19769_v36 = vld [vmem:[#allocation5 + $0x1604] sm:$0xf]  ;;  %v15231_v51 = vor.u32 %v19705_v26, %v15228_v34  ;;  %6686 = vmatpush.bf16.msra.mxu1 %v14975_v50 }
 0x1c1   :  { %v15484_v37 = vld [vmem:[#allocation5 + $0x1620] sm:$0xf0]  ;;  %6674 = vmatmul.bf16.vlgmr.msra.gmra.mxu0 %v20991_v25 }
 0x1c2   :  { %v19889_v40 = vld [vmem:[#allocation5 + $0x19c4] sm:$0xf]  ;;  %v15487_v16 = vor.u32 %v19769_v36, %v15484_v37  ;;  %6699 = vmatpush.bf16.msra.mxu2 %v15231_v51 }
 0x1c3   :  { %v15964_v43 = vld [vmem:[#allocation5 + $0x19e0] sm:$0xf0]  ;;  %6687 = vmatmul.bf16.vlgmr.msra.gmra.mxu1 %v20995_v30 }
 0x1c4   :  { %v19953_v45 = vld [vmem:[#allocation5 + $0x1bc4] sm:$0xf]  ;;  %v15967_v54 = vor.u32 %v19889_v40, %v15964_v43  ;;  %6712 = vmatpush.bf16.msra.mxu3 %v15487_v16 }
 0x1c5   :  { %v16220_v47 = vld [vmem:[#allocation5 + $0x1be0] sm:$0xf0]  ;;  %6700 = vmatmul.bf16.vlgmr.msra.gmra.mxu2 %v20993_v29 }
 0x1c6   :  { %v20017_v48 = vld [vmem:[#allocation5 + $0x1dc4] sm:$0xf]  ;;  %v16223_v55 = vor.u32 %v19953_v45, %v16220_v47  ;;  %6718 = vmatpush.bf16.msrb.mxu0 %v15967_v54  ;;  %v6468_v45 = vadd.f32 %v6467_v39, %v21026_v62  ;;  %v6480_v47 = vpop.f32.mrf.mxu1 }
 0x1c7   :  { %v16476_v49 = vld [vmem:[#allocation5 + $0x1de0] sm:$0xf0]  ;;  %6713 = vmatmul.bf16.vlgmr.msra.gmra.mxu3 %v20997_v33 }
 0x1c8   :  { %v20081_v52 = vld [vmem:[#allocation5 + $0x1fc4] sm:$0xf]  ;;  %v16479_v56 = vor.u32 %v20017_v48, %v16476_v49  ;;  %6731 = vmatpush.bf16.msrb.mxu1 %v16223_v55  ;;  %v6481_v16 = vadd.f32 %v6480_v47, %v6468_v45 }
 0x1c9   :  { %v16732_v53 = vld [vmem:[#allocation5 + $0x1fe0] sm:$0xf0] }
 0x1ca   :  { %v19881_v57 = vld [vmem:[#allocation5 + $0x1984] sm:$0xf]  ;;  %v16735_v60 = vor.u32 %v20081_v52, %v16732_v53  ;;  %6744 = vmatpush.bf16.msrb.mxu2 %v16479_v56 }
 0x1cb   :  { %v15932_v58 = vld [vmem:[#allocation5 + $0x19a0] sm:$0xf0] }
 0x1cc   :  { %v19945_v59 = vld [vmem:[#allocation5 + $0x1b84] sm:$0xf]  ;;  %v15935_v3 = vor.u32 %v19881_v57, %v15932_v58  ;;  %6757 = vmatpush.bf16.msrb.mxu3 %v16735_v60 }
 0x1cd   :  { %v16188_v61 = vld [vmem:[#allocation5 + $0x1ba0] sm:$0xf0] }
 0x1ce   :  { %v20009_v63 = vld [vmem:[#allocation5 + $0x1d84] sm:$0xf]  ;;  %v16191_v4 = vor.u32 %v19945_v59, %v16188_v61  ;;  %6719 = vmatpush.bf16.msrb.mxu0 %v15935_v3 }
 0x1cf   :  { %v16444_v0 = vld [vmem:[#allocation5 + $0x1da0] sm:$0xf0] }
 0x1d0   :  { %v20073_v1 = vld [vmem:[#allocation5 + $0x1f84] sm:$0xf]  ;;  %v16447_v5 = vor.u32 %v20009_v63, %v16444_v0  ;;  %6732 = vmatpush.bf16.msrb.mxu1 %v16191_v4 }
 0x1d1   :  { %v16700_v2 = vld [vmem:[#allocation5 + $0x1fa0] sm:$0xf0] }
 0x1d2   :  { %v19873_v6 = vld [vmem:[#allocation5 + $0x1944] sm:$0xf]  ;;  %v16703_v9 = vor.u32 %v20073_v1, %v16700_v2  ;;  %6745 = vmatpush.bf16.msrb.mxu2 %v16447_v5  ;;  %v6493_v2 = vpop.f32.mrf.mxu2 }
 0x1d3   :  { %v15900_v7 = vld [vmem:[#allocation5 + $0x1960] sm:$0xf0] }
 0x1d4   :  { %v19937_v8 = vld [vmem:[#allocation5 + $0x1b44] sm:$0xf]  ;;  %v15903_v15 = vor.u32 %v19873_v6, %v15900_v7  ;;  %6758 = vmatpush.bf16.msrb.mxu3 %v16703_v9  ;;  %v6494_v6 = vadd.f32 %v6493_v2, %v6481_v16  ;;  %v6506_v7 = vpop.f32.mrf.mxu3 }
 0x1d5   :  { %v16156_v10 = vld [vmem:[#allocation5 + $0x1b60] sm:$0xf0] }
 0x1d6   :  { %v20001_v11 = vld [vmem:[#allocation5 + $0x1d44] sm:$0xf]  ;;  %v16159_v17 = vor.u32 %v19937_v8, %v16156_v10  ;;  %6720 = vmatpush.bf16.msrb.mxu0 %v15903_v15  ;;  %v6469_v10 = vpop.f32.mrf.mxu0 }
 0x1d7   :  { %v16412_v12 = vld [vmem:[#allocation5 + $0x1d60] sm:$0xf0]  ;;  %v19182_v10 = vld [vmem:[#allocation5 + $0x3a4] sm:$0xf0] }
 0x1d8   :  { %v20065_v13 = vld [vmem:[#allocation5 + $0x1f44] sm:$0xf]  ;;  %v16415_v21 = vor.u32 %v20001_v11, %v16412_v12  ;;  %6733 = vmatpush.bf16.msrb.mxu1 %v16159_v17  ;;  %v6482_v12 = vpop.f32.mrf.mxu1 }
 0x1d9   :  { %v16668_v14 = vld [vmem:[#allocation5 + $0x1f60] sm:$0xf0]  ;;  %v19246_v12 = vld [vmem:[#allocation5 + $0x5a4] sm:$0xf0] }
 0x1da   :  { %v19865_v24 = vld [vmem:[#allocation5 + $0x1904] sm:$0xf]  ;;  %v16671_v32 = vor.u32 %v20065_v13, %v16668_v14  ;;  %6746 = vmatpush.bf16.msrb.mxu2 %v16415_v21  ;;  %v21033_v13 = vadd.f32 %v6506_v7, %v6494_v6  ;;  %v6495_v16 = vpop.f32.mrf.mxu2  ;;  %v12866_v6 = vld [vmem:[#allocation5 + $0x188] sm:$0xf] }
 0x1db   :  { %v15868_v26 = vld [vmem:[#allocation5 + $0x1920] sm:$0xf0]  ;;  %v19118_v7 = vld [vmem:[#allocation5 + $0x1a4] sm:$0xf0] }
 0x1dc   :  { %v19929_v27 = vld [vmem:[#allocation5 + $0x1b04] sm:$0xf]  ;;  %v15871_v46 = vor.u32 %v19865_v24, %v15868_v26  ;;  %6759 = vmatpush.bf16.msrb.mxu3 %v16671_v32  ;;  %v19230_v16 = vld [vmem:[#allocation5 + $0x524] sm:$0xf0] }
 0x1dd   :  { %v16124_v34 = vld [vmem:[#allocation5 + $0x1b20] sm:$0xf0] }
 0x1de   :  { %v19993_v36 = vld [vmem:[#allocation5 + $0x1d04] sm:$0xf]  ;;  %v16127_v48 = vor.u32 %v19929_v27, %v16124_v34  ;;  %6721 = vmatpush.bf16.msrb.mxu0 %v15871_v46 }
 0x1df   :  { %v16380_v37 = vld [vmem:[#allocation5 + $0x1d20] sm:$0xf0] }
 0x1e0   :  { %v20057_v40 = vld [vmem:[#allocation5 + $0x1f04] sm:$0xf]  ;;  %v16383_v49 = vor.u32 %v19993_v36, %v16380_v37  ;;  %6734 = vmatpush.bf16.msrb.mxu1 %v16127_v48 }
 0x1e1   :  { %v16636_v43 = vld [vmem:[#allocation5 + $0x1f20] sm:$0xf0] }
 0x1e2   :  { %v19857_v50 = vld [vmem:[#allocation5 + $0x18c4] sm:$0xf]  ;;  %v16639_v53 = vor.u32 %v20057_v40, %v16636_v43  ;;  %6747 = vmatpush.bf16.msrb.mxu2 %v16383_v49 }
 0x1e3   :  { %v15836_v51 = vld [vmem:[#allocation5 + $0x18e0] sm:$0xf0] }
 0x1e4   :  { %v19921_v52 = vld [vmem:[#allocation5 + $0x1ac4] sm:$0xf]  ;;  %v15839_v59 = vor.u32 %v19857_v50, %v15836_v51  ;;  %6760 = vmatpush.bf16.msrb.mxu3 %v16639_v53 }
 0x1e5   :  { %v16092_v54 = vld [vmem:[#allocation5 + $0x1ae0] sm:$0xf0] }
 0x1e6   :  { %v19985_v55 = vld [vmem:[#allocation5 + $0x1cc4] sm:$0xf]  ;;  %v16095_v62 = vor.u32 %v19921_v52, %v16092_v54  ;;  %6722 = vmatpush.bf16.msrb.mxu0 %v15839_v59  ;;  %v12898_v54 = vld [vmem:[#allocation5 + $0x1c8] sm:$0xf] }
 0x1e7   :  { %v16348_v56 = vld [vmem:[#allocation5 + $0x1ce0] sm:$0xf0]  ;;  %v19190_v59 = vld [vmem:[#allocation5 + $0x3e4] sm:$0xf0] }
 0x1e8   :  { %v20049_v57 = vld [vmem:[#allocation5 + $0x1ec4] sm:$0xf]  ;;  %v16351_v60 = vor.u32 %v19985_v55, %v16348_v56  ;;  %6735 = vmatpush.bf16.msrb.mxu1 %v16095_v62  ;;  %v19126_v55 = vld [vmem:[#allocation5 + $0x1e4] sm:$0xf0] }
 0x1e9   :  { %v16604_v58 = vld [vmem:[#allocation5 + $0x1ee0] sm:$0xf0]  ;;  %v13154_v56 = vld [vmem:[#allocation5 + $0x3c8] sm:$0xf] }
 0x1ea   :  { %v19849_v61 = vld [vmem:[#allocation5 + $0x1884] sm:$0xf]  ;;  %v16607_v1 = vor.u32 %v20049_v57, %v16604_v58  ;;  %6748 = vmatpush.bf16.msrb.mxu2 %v16351_v60  ;;  %v6508_v57 = vpop.f32.mrf.mxu3  ;;  %v13410_v62 = vld [vmem:[#allocation5 + $0x5c8] sm:$0xf] }
 0x1eb   :  { %v15804_v63 = vld [vmem:[#allocation5 + $0x18a0] sm:$0xf0]  ;;  %v19254_v60 = vld [vmem:[#allocation5 + $0x5e4] sm:$0xf0] }
 0x1ec   :  { %v19913_v0 = vld [vmem:[#allocation5 + $0x1a84] sm:$0xf]  ;;  %v15807_v11 = vor.u32 %v19849_v61, %v15804_v63  ;;  %6761 = vmatpush.bf16.msrb.mxu3 %v16607_v1  ;;  %v19318_v1 = vld [vmem:[#allocation5 + $0x7e4] sm:$0xf0] }
 0x1ed   :  { %v16060_v3 = vld [vmem:[#allocation5 + $0x1aa0] sm:$0xf0] }
 0x1ee   :  { %v19977_v4 = vld [vmem:[#allocation5 + $0x1c84] sm:$0xf]  ;;  %v16063_v14 = vor.u32 %v19913_v0, %v16060_v3  ;;  %6723 = vmatpush.bf16.msrb.mxu0 %v15807_v11  ;;  %v13666_v0 = vld [vmem:[#allocation5 + $0x7c8] sm:$0xf]  ;;  %v12899_v3 = vor.u32 %v19126_v55, %v12898_v54  ;;  %v6519_v54 = vpop.f32.mrf.mxu0 }
 0x1ef   :  { %v16316_v5 = vld [vmem:[#allocation5 + $0x1ca0] sm:$0xf0]  ;;  %v13378_v11 = vld [vmem:[#allocation5 + $0x588] sm:$0xf]  ;;  %v6520_v57 = vadd.f32 %v6519_v54, %v21033_v13 }
 0x1f0   :  { %v20041_v8 = vld [vmem:[#allocation5 + $0x1e84] sm:$0xf]  ;;  %v16319_v15 = vor.u32 %v19977_v4, %v16316_v5  ;;  %6736 = vmatpush.bf16.msrb.mxu1 %v16063_v14  ;;  %v13155_v4 = vor.u32 %v19190_v59, %v13154_v56  ;;  %v13411_v5 = vor.u32 %v19254_v60, %v13410_v62  ;;  %v13634_v14 = vld [vmem:[#allocation5 + $0x788] sm:$0xf]  ;;  %v6532_v59 = vpop.f32.mrf.mxu1 }
 0x1f1   :  { %v16572_v9 = vld [vmem:[#allocation5 + $0x1ea0] sm:$0xf0]  ;;  %v13570_v55 = vld [vmem:[#allocation5 + $0x708] sm:$0xf] }
 0x1f2   :  { %v19841_v17 = vld [vmem:[#allocation5 + $0x1844] sm:$0xf]  ;;  %v16575_v26 = vor.u32 %v20041_v8, %v16572_v9  ;;  %6749 = vmatpush.bf16.msrb.mxu2 %v16319_v15  ;;  %v13122_v8 = vld [vmem:[#allocation5 + $0x388] sm:$0xf]  ;;  %v13667_v9 = vor.u32 %v19318_v1, %v13666_v0 }
 0x1f3   :  { %v15772_v21 = vld [vmem:[#allocation5 + $0x1860] sm:$0xf0]  ;;  %v19310_v15 = vld [vmem:[#allocation5 + $0x7a4] sm:$0xf0] }
 0x1f4   :  { %v19905_v24 = vld [vmem:[#allocation5 + $0x1a44] sm:$0xf]  ;;  %v15775_v39 = vor.u32 %v19841_v17, %v15772_v21  ;;  %6762 = vmatpush.bf16.msrb.mxu3 %v16575_v26  ;;  %v12867_v17 = vor.u32 %v19118_v7, %v12866_v6  ;;  %v13123_v21 = vor.u32 %v19182_v10, %v13122_v8  ;;  %v12834_v26 = vld [vmem:[#allocation5 + $0x148] sm:$0xf] }
 0x1f5   :  { %v16028_v27 = vld [vmem:[#allocation5 + $0x1a60] sm:$0xf0]  ;;  %v19294_v56 = vld [vmem:[#allocation5 + $0x724] sm:$0xf0] }
 0x1f6   :  { %v19969_v32 = vld [vmem:[#allocation5 + $0x1c44] sm:$0xf]  ;;  %v16031_v45 = vor.u32 %v19905_v24, %v16028_v27  ;;  %6724 = vmatpush.bf16.msrb.mxu0 %v15775_v39  ;;  %v13379_v24 = vor.u32 %v19246_v12, %v13378_v11  ;;  %v19110_v27 = vld [vmem:[#allocation5 + $0x164] sm:$0xf0]  ;;  %v13571_v1 = vor.u32 %v19294_v56, %v13570_v55 }
 0x1f7   :  { %v16284_v34 = vld [vmem:[#allocation5 + $0x1c60] sm:$0xf0]  ;;  %v19238_v39 = vld [vmem:[#allocation5 + $0x564] sm:$0xf0] }
 0x1f8   :  { %v20033_v36 = vld [vmem:[#allocation5 + $0x1e44] sm:$0xf]  ;;  %v16287_v46 = vor.u32 %v19969_v32, %v16284_v34  ;;  %6737 = vmatpush.bf16.msrb.mxu1 %v16031_v45  ;;  %v13090_v32 = vld [vmem:[#allocation5 + $0x348] sm:$0xf]  ;;  %v13635_v34 = vor.u32 %v19310_v15, %v13634_v14  ;;  %v12835_v45 = vor.u32 %v19110_v27, %v12834_v26  ;;  %v6545_v15 = vpop.f32.mrf.mxu2  ;;  %v6558_v27 = vpop.f32.mrf.mxu3 }
 0x1f9   :  { %v16540_v37 = vld [vmem:[#allocation5 + $0x1e60] sm:$0xf0]  ;;  %v13026_v0 = vld [vmem:[#allocation5 + $0x2c8] sm:$0xf] }
 0x1fa   :  { %v19833_v40 = vld [vmem:[#allocation5 + $0x1804] sm:$0xf]  ;;  %v16543_v50 = vor.u32 %v20033_v36, %v16540_v37  ;;  %6750 = vmatpush.bf16.msrb.mxu2 %v16287_v46  ;;  %v19174_v36 = vld [vmem:[#allocation5 + $0x364] sm:$0xf0] }
 0x1fb   :  { %v15740_v43 = vld [vmem:[#allocation5 + $0x1820] sm:$0xf0]  ;;  %v13346_v37 = vld [vmem:[#allocation5 + $0x548] sm:$0xf]  ;;  %v13091_v46 = vor.u32 %v19174_v36, %v13090_v32  ;;  %v6521_v36 = vpop.f32.mrf.mxu0 }
 0x1fc   :  { %v19897_v47 = vld [vmem:[#allocation5 + $0x1a04] sm:$0xf]  ;;  %v15743_v58 = vor.u32 %v19833_v40, %v15740_v43  ;;  %6763 = vmatpush.bf16.msrb.mxu3 %v16543_v50  ;;  %v13602_v40 = vld [vmem:[#allocation5 + $0x748] sm:$0xf] }
 0x1fd   :  { %v15996_v48 = vld [vmem:[#allocation5 + $0x1a20] sm:$0xf0]  ;;  %v19302_v43 = vld [vmem:[#allocation5 + $0x764] sm:$0xf0] }
 0x1fe   :  { %v19961_v49 = vld [vmem:[#allocation5 + $0x1c04] sm:$0xf]  ;;  %v15999_v61 = vor.u32 %v19897_v47, %v15996_v48  ;;  %6725 = vmatpush.bf16.msrb.mxu0 %v15743_v58  ;;  %v13347_v47 = vor.u32 %v19238_v39, %v13346_v37  ;;  %v12802_v48 = vld [vmem:[#allocation5 + $0x108] sm:$0xf]  ;;  %v6534_v39 = vpop.f32.mrf.mxu1 }
 0x1ff   :  { %v16252_v51 = vld [vmem:[#allocation5 + $0x1c20] sm:$0xf0]  ;;  %v13058_v50 = vld [vmem:[#allocation5 + $0x308] sm:$0xf] }
 0x200   :  { %v20025_v52 = vld [vmem:[#allocation5 + $0x1e04] sm:$0xf]  ;;  %v16255_v63 = vor.u32 %v19961_v49, %v16252_v51  ;;  %6738 = vmatpush.bf16.msrb.mxu1 %v15999_v61  ;;  %v19102_v49 = vld [vmem:[#allocation5 + $0x124] sm:$0xf0]  ;;  %v13603_v51 = vor.u32 %v19302_v43, %v13602_v40 }
 0x201   :  { %v16508_v53 = vld [vmem:[#allocation5 + $0x1e20] sm:$0xf0]  ;;  %6726 = vmatmul.bf16.vlgmr.msrb.gmra.mxu0 %v21003_v23  ;;  %v12803_v58 = vor.u32 %v19102_v49, %v12802_v48  ;;  %v12770_v61 = vld [vmem:[#allocation5 + $0xc8] sm:$0xf] }
 0x202   :  { %v16511_v2 = vor.u32 %v20025_v52, %v16508_v53  ;;  %6751 = vmatpush.bf16.msrb.mxu2 %v16255_v63  ;;  %6770 = vmatpush.bf16.msra.mxu0 %v12899_v3  ;;  %v19166_v52 = vld [vmem:[#allocation5 + $0x324] sm:$0xf0] }
 0x203   :  { %6739 = vmatmul.bf16.vlgmr.msrb.gmra.mxu1 %v21007_v31  ;;  %v13314_v53 = vld [vmem:[#allocation5 + $0x508] sm:$0xf]  ;;  %v13059_v62 = vor.u32 %v19166_v52, %v13058_v50 }
 0x204   :  { %6764 = vmatpush.bf16.msrb.mxu3 %v16511_v2  ;;  %6783 = vmatpush.bf16.msra.mxu1 %v13155_v4  ;;  %v13315_v60 = vor.u32 %v19230_v16, %v13314_v53  ;;  %v19094_v63 = vld [vmem:[#allocation5 + $0xe4] sm:$0xf0]  ;;  %v6533_v2 = vadd.f32 %v6532_v59, %v6520_v57 }
 0x205   :  { %6752 = vmatmul.bf16.vlgmr.msrb.gmra.mxu2 %v21005_v28  ;;  %v19158_v3 = vld [vmem:[#allocation5 + $0x2e4] sm:$0xf0]  ;;  %v12771_v8 = vor.u32 %v19094_v63, %v12770_v61 }
 0x206   :  { %6796 = vmatpush.bf16.msra.mxu2 %v13411_v5  ;;  %6771 = vmatpush.bf16.msra.mxu0 %v12867_v17  ;;  %v13282_v4 = vld [vmem:[#allocation5 + $0x4c8] sm:$0xf]  ;;  %v13027_v13 = vor.u32 %v19158_v3, %v13026_v0  ;;  %v6546_v26 = vadd.f32 %v6545_v15, %v6533_v2  ;;  %v6547_v2 = vpop.f32.mrf.mxu2 }
 0x207   :  { %6765 = vmatmul.bf16.vlgmr.msrb.gmra.mxu3 %v21009_v35  ;;  %v19222_v5 = vld [vmem:[#allocation5 + $0x4e4] sm:$0xf0] }
 0x208   :  { %6809 = vmatpush.bf16.msra.mxu3 %v13667_v9  ;;  %6784 = vmatpush.bf16.msra.mxu1 %v13123_v21  ;;  %v13538_v6 = vld [vmem:[#allocation5 + $0x6c8] sm:$0xf]  ;;  %v13283_v9 = vor.u32 %v19222_v5, %v13282_v4  ;;  %v21040_v40 = vadd.f32 %v6558_v27, %v6546_v26 }
 0x209   :  { %v19286_v7 = vld [vmem:[#allocation5 + $0x6e4] sm:$0xf0] }
 0x20a   :  { %6797 = vmatpush.bf16.msra.mxu2 %v13379_v24  ;;  %6772 = vmatpush.bf16.msra.mxu0 %v12835_v45  ;;  %v12738_v10 = vld [vmem:[#allocation5 + $0x88] sm:$0xf]  ;;  %v13539_v14 = vor.u32 %v19286_v7, %v13538_v6  ;;  %v6560_v6 = vpop.f32.mrf.mxu3  ;;  %vm8018_vm0 = vcmp.gt.f32.partialorder %v21040_v40, 0.0 }
 0x20b   :  { %v19086_v11 = vld [vmem:[#allocation5 + $0xa4] sm:$0xf0] }
 0x20c   :  { %6810 = vmatpush.bf16.msra.mxu3 %v13635_v34  ;;  %6785 = vmatpush.bf16.msra.mxu1 %v13091_v46  ;;  %v12994_v12 = vld [vmem:[#allocation5 + $0x288] sm:$0xf]  ;;  %v12739_v37 = vor.u32 %v19086_v11, %v12738_v10 }
 0x20d   :  { %v19150_v17 = vld [vmem:[#allocation5 + $0x2a4] sm:$0xf0] }
 0x20e   :  { %6798 = vmatpush.bf16.msra.mxu2 %v13347_v47  ;;  %6773 = vmatpush.bf16.msra.mxu0 %v12803_v58  ;;  %v13250_v21 = vld [vmem:[#allocation5 + $0x488] sm:$0xf]  ;;  %v12995_v43 = vor.u32 %v19150_v17, %v12994_v12 }
 0x20f   :  { %v19214_v24 = vld [vmem:[#allocation5 + $0x4a4] sm:$0xf0] }
 0x210   :  { %6811 = vmatpush.bf16.msra.mxu3 %v13603_v51  ;;  %6786 = vmatpush.bf16.msra.mxu1 %v13059_v62  ;;  %v13506_v32 = vld [vmem:[#allocation5 + $0x688] sm:$0xf]  ;;  %v13251_v45 = vor.u32 %v19214_v24, %v13250_v21 }
 0x211   :  { %v19278_v34 = vld [vmem:[#allocation5 + $0x6a4] sm:$0xf0] }
 0x212   :  { %6799 = vmatpush.bf16.msra.mxu2 %v13315_v60  ;;  %6774 = vmatpush.bf16.msra.mxu0 %v12771_v8  ;;  %v12706_v46 = vld [vmem:[#allocation5 + $0x48] sm:$0xf]  ;;  %v13507_v49 = vor.u32 %v19278_v34, %v13506_v32 }
 0x213   :  { %v19078_v47 = vld [vmem:[#allocation5 + $0x64] sm:$0xf0] }
 0x214   :  { %6812 = vmatpush.bf16.msra.mxu3 %v13571_v1  ;;  %6787 = vmatpush.bf16.msra.mxu1 %v13027_v13  ;;  %v12962_v48 = vld [vmem:[#allocation5 + $0x248] sm:$0xf]  ;;  %v12707_v54 = vor.u32 %v19078_v47, %v12706_v46 }
 0x215   :  { %v19142_v50 = vld [vmem:[#allocation5 + $0x264] sm:$0xf0] }
 0x216   :  { %6800 = vmatpush.bf16.msra.mxu2 %v13283_v9  ;;  %v13218_v51 = vld [vmem:[#allocation5 + $0x448] sm:$0xf]  ;;  %6775 = vmatpush.bf16.msra.mxu0 %v12739_v37  ;;  %v12963_v57 = vor.u32 %v19142_v50, %v12962_v48 }
 0x217   :  { %v19206_v52 = vld [vmem:[#allocation5 + $0x464] sm:$0xf0] }
 0x218   :  { %6813 = vmatpush.bf16.msra.mxu3 %v13539_v14  ;;  %v13474_v53 = vld [vmem:[#allocation5 + $0x648] sm:$0xf]  ;;  %6788 = vmatpush.bf16.msra.mxu1 %v12995_v43  ;;  %v13219_v58 = vor.u32 %v19206_v52, %v13218_v51 }
 0x219   :  { %v19270_v16 = vld [vmem:[#allocation5 + $0x664] sm:$0xf0] }
 0x21a   :  { %v12674_v55 = vld [vmem:[#allocation5 + $0x8] sm:$0xf]  ;;  %6801 = vmatpush.bf16.msra.mxu2 %v13251_v45  ;;  %v13475_v61 = vor.u32 %v19270_v16, %v13474_v53  ;;  %6776 = vmatpush.bf16.msra.mxu0 %v12707_v54 }
 0x21b   :  { %v19070_v56 = vld [vmem:[#allocation5 + $0x24] sm:$0xf0] }
 0x21c   :  { %v12930_v59 = vld [vmem:[#allocation5 + $0x208] sm:$0xf]  ;;  %6814 = vmatpush.bf16.msra.mxu3 %v13507_v49  ;;  %v12675_v7 = vor.u32 %v19070_v56, %v12674_v55  ;;  %6789 = vmatpush.bf16.msra.mxu1 %v12963_v57 }
 0x21d   :  { %v19134_v62 = vld [vmem:[#allocation5 + $0x224] sm:$0xf0] }
 0x21e   :  { %v13186_v60 = vld [vmem:[#allocation5 + $0x408] sm:$0xf]  ;;  %6802 = vmatpush.bf16.msra.mxu2 %v13219_v58  ;;  %v12931_v10 = vor.u32 %v19134_v62, %v12930_v59  ;;  %6777 = vmatpush.bf16.msra.mxu0 %v12675_v7 }
 0x21f   :  { %v19198_v63 = vld [vmem:[#allocation5 + $0x424] sm:$0xf0] }
 0x220   :  { %v13442_v0 = vld [vmem:[#allocation5 + $0x608] sm:$0xf]  ;;  %v13187_v11 = vor.u32 %v19198_v63, %v13186_v60  ;;  %6815 = vmatpush.bf16.msra.mxu3 %v13475_v61  ;;  %6790 = vmatpush.bf16.msra.mxu1 %v12931_v10  ;;  %v20682_v63 = vld [vmem:[#allocation7] sm:$0xff] }
 0x221   :  { %v19262_v1 = vld [vmem:[#allocation5 + $0x624] sm:$0xf0]  ;;  %6778 = vmatmul.bf16.vlgmr.msra.gmra.mxu0 %v20969_v19 }
 0x222   :  { %v13922_v3 = vld [vmem:[#allocation5 + $0x9c8] sm:$0xf]  ;;  %v13443_v15 = vor.u32 %v19262_v1, %v13442_v0  ;;  %6803 = vmatpush.bf16.msra.mxu2 %v13187_v11  ;;  %v1163_v0 = vperm.slane %v20682_v63, 1 }
 0x223   :  { %v19382_v4 = vld [vmem:[#allocation5 + $0x9e4] sm:$0xf0]  ;;  %6791 = vmatmul.bf16.vlgmr.msra.gmra.mxu1 %v20973_v22 }
 0x224   :  { %v14178_v5 = vld [vmem:[#allocation5 + $0xbc8] sm:$0xf]  ;;  %v13923_v17 = vor.u32 %v19382_v4, %v13922_v3  ;;  %6816 = vmatpush.bf16.msra.mxu3 %v13443_v15  ;;  %v6584_v15 = vpop.f32.mrf.mxu1 }
 0x225   :  { %v19446_v8 = vld [vmem:[#allocation5 + $0xbe4] sm:$0xf0]  ;;  %6804 = vmatmul.bf16.vlgmr.msra.gmra.mxu2 %v20967_v18 }
 0x226   :  { %v14434_v13 = vld [vmem:[#allocation5 + $0xdc8] sm:$0xf]  ;;  %v14179_v21 = vor.u32 %v19446_v8, %v14178_v5  ;;  %6822 = vmatpush.bf16.msrb.mxu0 %v13923_v17  ;;  %v6571_v8 = vpop.f32.mrf.mxu0 }
 0x227   :  { %v19510_v9 = vld [vmem:[#allocation5 + $0xde4] sm:$0xf0]  ;;  %6817 = vmatmul.bf16.vlgmr.msra.gmra.mxu3 %v20971_v20 }
 0x228   :  { %v14690_v12 = vld [vmem:[#allocation5 + $0xfc8] sm:$0xf]  ;;  %v14435_v24 = vor.u32 %v19510_v9, %v14434_v13  ;;  %6835 = vmatpush.bf16.msrb.mxu1 %v14179_v21 }
 0x229   :  { %v19574_v14 = vld [vmem:[#allocation5 + $0xfe4] sm:$0xf0] }
 0x22a   :  { %v13890_v26 = vld [vmem:[#allocation5 + $0x988] sm:$0xf]  ;;  %v14691_v34 = vor.u32 %v19574_v14, %v14690_v12  ;;  %6848 = vmatpush.bf16.msrb.mxu2 %v14435_v24  ;;  %v6572_v14 = vadd.f32 %v6571_v8, %v1163_v0 }
 0x22b   :  { %v19374_v27 = vld [vmem:[#allocation5 + $0x9a4] sm:$0xf0] }
 0x22c   :  { %v14146_v32 = vld [vmem:[#allocation5 + $0xb88] sm:$0xf]  ;;  %v13891_v46 = vor.u32 %v19374_v27, %v13890_v26  ;;  %6861 = vmatpush.bf16.msrb.mxu3 %v14691_v34  ;;  %v6585_v34 = vadd.f32 %v6584_v15, %v6572_v14  ;;  %v6586_v63 = vpop.f32.mrf.mxu1 }
 0x22d   :  { %v19438_v36 = vld [vmem:[#allocation5 + $0xba4] sm:$0xf0] }
 0x22e   :  { %v14402_v37 = vld [vmem:[#allocation5 + $0xd88] sm:$0xf]  ;;  %v14147_v47 = vor.u32 %v19438_v36, %v14146_v32  ;;  %6823 = vmatpush.bf16.msrb.mxu0 %v13891_v46 }
 0x22f   :  { %v19502_v39 = vld [vmem:[#allocation5 + $0xda4] sm:$0xf0] }
 0x230   :  { %v14658_v43 = vld [vmem:[#allocation5 + $0xf88] sm:$0xf]  ;;  %v14403_v48 = vor.u32 %v19502_v39, %v14402_v37  ;;  %6836 = vmatpush.bf16.msrb.mxu1 %v14147_v47  ;;  %v6597_v47 = vpop.f32.mrf.mxu2 }
 0x231   :  { %v19566_v45 = vld [vmem:[#allocation5 + $0xfa4] sm:$0xf0] }
 0x232   :  { %v13858_v49 = vld [vmem:[#allocation5 + $0x948] sm:$0xf]  ;;  %v14659_v52 = vor.u32 %v19566_v45, %v14658_v43  ;;  %6849 = vmatpush.bf16.msrb.mxu2 %v14403_v48 }
 0x233   :  { %v19366_v50 = vld [vmem:[#allocation5 + $0x964] sm:$0xf0] }
 0x234   :  { %v14114_v51 = vld [vmem:[#allocation5 + $0xb48] sm:$0xf]  ;;  %v13859_v57 = vor.u32 %v19366_v50, %v13858_v49  ;;  %6862 = vmatpush.bf16.msrb.mxu3 %v14659_v52  ;;  %v6598_v52 = vadd.f32 %v6597_v47, %v6585_v34 }
 0x235   :  { %v19430_v53 = vld [vmem:[#allocation5 + $0xb64] sm:$0xf0] }
 0x236   :  { %v14370_v16 = vld [vmem:[#allocation5 + $0xd48] sm:$0xf]  ;;  %v14115_v59 = vor.u32 %v19430_v53, %v14114_v51  ;;  %6824 = vmatpush.bf16.msrb.mxu0 %v13859_v57  ;;  %v6610_v53 = vpop.f32.mrf.mxu3  ;;  %v6573_v57 = vpop.f32.mrf.mxu0 }
 0x237   :  { %v19494_v54 = vld [vmem:[#allocation5 + $0xd64] sm:$0xf0] }
 0x238   :  { %v14626_v55 = vld [vmem:[#allocation5 + $0xf48] sm:$0xf]  ;;  %v14371_v62 = vor.u32 %v19494_v54, %v14370_v16  ;;  %6837 = vmatpush.bf16.msrb.mxu1 %v14115_v59  ;;  %v6599_v14 = vpop.f32.mrf.mxu2 }
 0x239   :  { %v19558_v56 = vld [vmem:[#allocation5 + $0xf64] sm:$0xf0] }
 0x23a   :  { %v13826_v58 = vld [vmem:[#allocation5 + $0x908] sm:$0xf]  ;;  %v14627_v1 = vor.u32 %v19558_v56, %v14626_v55  ;;  %6850 = vmatpush.bf16.msrb.mxu2 %v14371_v62  ;;  %v21046_v56 = vadd.f32 %v6610_v53, %v6598_v52 }
 0x23b   :  { %v19358_v60 = vld [vmem:[#allocation5 + $0x924] sm:$0xf0] }
 0x23c   :  { %v14082_v61 = vld [vmem:[#allocation5 + $0xb08] sm:$0xf]  ;;  %v13827_v7 = vor.u32 %v19358_v60, %v13826_v58  ;;  %6863 = vmatpush.bf16.msrb.mxu3 %v14627_v1 }
 0x23d   :  { %v19422_v2 = vld [vmem:[#allocation5 + $0xb24] sm:$0xf0] }
 0x23e   :  { %v14338_v3 = vld [vmem:[#allocation5 + $0xd08] sm:$0xf]  ;;  %v14083_v13 = vor.u32 %v19422_v2, %v14082_v61  ;;  %6825 = vmatpush.bf16.msrb.mxu0 %v13827_v7 }
 0x23f   :  { %v19486_v4 = vld [vmem:[#allocation5 + $0xd24] sm:$0xf0] }
 0x240   :  { %v14594_v5 = vld [vmem:[#allocation5 + $0xf08] sm:$0xf]  ;;  %v14339_v9 = vor.u32 %v19486_v4, %v14338_v3  ;;  %6838 = vmatpush.bf16.msrb.mxu1 %v14083_v13 }
 0x241   :  { %v19550_v6 = vld [vmem:[#allocation5 + $0xf24] sm:$0xf0] }
 0x242   :  { %v13794_v10 = vld [vmem:[#allocation5 + $0x8c8] sm:$0xf]  ;;  %v14595_v17 = vor.u32 %v19550_v6, %v14594_v5  ;;  %6851 = vmatpush.bf16.msrb.mxu2 %v14339_v9 }
 0x243   :  { %v19350_v11 = vld [vmem:[#allocation5 + $0x8e4] sm:$0xf0] }
 0x244   :  { %v14050_v12 = vld [vmem:[#allocation5 + $0xac8] sm:$0xf]  ;;  %v13795_v36 = vor.u32 %v19350_v11, %v13794_v10  ;;  %6864 = vmatpush.bf16.msrb.mxu3 %v14595_v17 }
 0x245   :  { %v19414_v21 = vld [vmem:[#allocation5 + $0xae4] sm:$0xf0] }
 0x246   :  { %v14306_v24 = vld [vmem:[#allocation5 + $0xcc8] sm:$0xf]  ;;  %v14051_v37 = vor.u32 %v19414_v21, %v14050_v12  ;;  %6826 = vmatpush.bf16.msrb.mxu0 %v13795_v36 }
 0x247   :  { %v19478_v26 = vld [vmem:[#allocation5 + $0xce4] sm:$0xf0] }
 0x248   :  { %v14562_v27 = vld [vmem:[#allocation5 + $0xec8] sm:$0xf]  ;;  %v14307_v39 = vor.u32 %v19478_v26, %v14306_v24  ;;  %6839 = vmatpush.bf16.msrb.mxu1 %v14051_v37  ;;  %v6612_v26 = vpop.f32.mrf.mxu3 }
 0x249   :  { %v19542_v32 = vld [vmem:[#allocation5 + $0xee4] sm:$0xf0] }
 0x24a   :  { %v13762_v43 = vld [vmem:[#allocation5 + $0x888] sm:$0xf]  ;;  %v14563_v48 = vor.u32 %v19542_v32, %v14562_v27  ;;  %6852 = vmatpush.bf16.msrb.mxu2 %v14307_v39 }
 0x24b   :  { %v19342_v45 = vld [vmem:[#allocation5 + $0x8a4] sm:$0xf0] }
 0x24c   :  { %v14018_v46 = vld [vmem:[#allocation5 + $0xa88] sm:$0xf]  ;;  %v13763_v55 = vor.u32 %v19342_v45, %v13762_v43  ;;  %6865 = vmatpush.bf16.msrb.mxu3 %v14563_v48 }
 0x24d   :  { %v19406_v49 = vld [vmem:[#allocation5 + $0xaa4] sm:$0xf0] }
 0x24e   :  { %v14274_v50 = vld [vmem:[#allocation5 + $0xc88] sm:$0xf]  ;;  %v14019_v58 = vor.u32 %v19406_v49, %v14018_v46  ;;  %6827 = vmatpush.bf16.msrb.mxu0 %v13763_v55 }
 0x24f   :  { %v19470_v51 = vld [vmem:[#allocation5 + $0xca4] sm:$0xf0] }
 0x250   :  { %v14530_v16 = vld [vmem:[#allocation5 + $0xe88] sm:$0xf]  ;;  %v14275_v59 = vor.u32 %v19470_v51, %v14274_v50  ;;  %6840 = vmatpush.bf16.msrb.mxu1 %v14019_v58 }
 0x251   :  { %v19534_v54 = vld [vmem:[#allocation5 + $0xea4] sm:$0xf0] }
 0x252   :  { %v13730_v62 = vld [vmem:[#allocation5 + $0x848] sm:$0xf]  ;;  %v14531_v0 = vor.u32 %v19534_v54, %v14530_v16  ;;  %6853 = vmatpush.bf16.msrb.mxu2 %v14275_v59 }
 0x253   :  { %v19334_v60 = vld [vmem:[#allocation5 + $0x864] sm:$0xf0] }
 0x254   :  { %v13986_v61 = vld [vmem:[#allocation5 + $0xa48] sm:$0xf]  ;;  %v13731_v6 = vor.u32 %v19334_v60, %v13730_v62  ;;  %6866 = vmatpush.bf16.msrb.mxu3 %v14531_v0 }
 0x255   :  { %v19398_v1 = vld [vmem:[#allocation5 + $0xa64] sm:$0xf0] }
 0x256   :  { %v14242_v2 = vld [vmem:[#allocation5 + $0xc48] sm:$0xf]  ;;  %v13987_v13 = vor.u32 %v19398_v1, %v13986_v61  ;;  %6828 = vmatpush.bf16.msrb.mxu0 %v13731_v6 }
 0x257   :  { %v19462_v3 = vld [vmem:[#allocation5 + $0xc64] sm:$0xf0] }
 0x258   :  { %v14498_v4 = vld [vmem:[#allocation5 + $0xe48] sm:$0xf]  ;;  %v14243_v9 = vor.u32 %v19462_v3, %v14242_v2  ;;  %6841 = vmatpush.bf16.msrb.mxu1 %v13987_v13 }
 0x259   :  { %v19526_v5 = vld [vmem:[#allocation5 + $0xe64] sm:$0xf0] }
 0x25a   :  { %v13698_v7 = vld [vmem:[#allocation5 + $0x808] sm:$0xf]  ;;  %v14499_v15 = vor.u32 %v19526_v5, %v14498_v4  ;;  %6854 = vmatpush.bf16.msrb.mxu2 %v14243_v9 }
 0x25b   :  { %v19326_v8 = vld [vmem:[#allocation5 + $0x824] sm:$0xf0] }
 0x25c   :  { %v13954_v10 = vld [vmem:[#allocation5 + $0xa08] sm:$0xf]  ;;  %v13699_v36 = vor.u32 %v19326_v8, %v13698_v7  ;;  %6867 = vmatpush.bf16.msrb.mxu3 %v14499_v15 }
 0x25d   :  { %v19390_v11 = vld [vmem:[#allocation5 + $0xa24] sm:$0xf0] }
 0x25e   :  { %v14210_v12 = vld [vmem:[#allocation5 + $0xc08] sm:$0xf]  ;;  %v13955_v45 = vor.u32 %v19390_v11, %v13954_v10  ;;  %6829 = vmatpush.bf16.msrb.mxu0 %v13699_v36  ;;  %v6623_v36 = vpop.f32.mrf.mxu0 }
 0x25f   :  { %v19454_v17 = vld [vmem:[#allocation5 + $0xc24] sm:$0xf0] }
 0x260   :  { %v14466_v21 = vld [vmem:[#allocation5 + $0xe08] sm:$0xf]  ;;  %v14211_v46 = vor.u32 %v19454_v17, %v14210_v12  ;;  %6842 = vmatpush.bf16.msrb.mxu1 %v13955_v45 }
 0x261   :  { %v19518_v24 = vld [vmem:[#allocation5 + $0xe24] sm:$0xf0]  ;;  %6830 = vmatmul.bf16.vlgmr.msrb.gmra.mxu0 %v20981_v41 }
 0x262   :  { %v14946_v27 = vld [vmem:[#allocation5 + $0x11c8] sm:$0xf]  ;;  %v14467_v49 = vor.u32 %v19518_v24, %v14466_v21  ;;  %6855 = vmatpush.bf16.msrb.mxu2 %v14211_v46 }
 0x263   :  { %v19638_v32 = vld [vmem:[#allocation5 + $0x11e4] sm:$0xf0]  ;;  %6843 = vmatmul.bf16.vlgmr.msrb.gmra.mxu1 %v20985_v44 }
 0x264   :  { %v15202_v34 = vld [vmem:[#allocation5 + $0x13c8] sm:$0xf]  ;;  %v14947_v50 = vor.u32 %v19638_v32, %v14946_v27  ;;  %6868 = vmatpush.bf16.msrb.mxu3 %v14467_v49 }
 0x265   :  { %v19702_v37 = vld [vmem:[#allocation5 + $0x13e4] sm:$0xf0]  ;;  %6856 = vmatmul.bf16.vlgmr.msrb.gmra.mxu2 %v20979_v38 }
 0x266   :  { %v15458_v39 = vld [vmem:[#allocation5 + $0x15c8] sm:$0xf]  ;;  %v15203_v51 = vor.u32 %v19702_v37, %v15202_v34  ;;  %6874 = vmatpush.bf16.msra.mxu0 %v14947_v50 }
 0x267   :  { %v19766_v43 = vld [vmem:[#allocation5 + $0x15e4] sm:$0xf0]  ;;  %6869 = vmatmul.bf16.vlgmr.msrb.gmra.mxu3 %v20983_v42 }
 0x268   :  { %v15714_v47 = vld [vmem:[#allocation5 + $0x17c8] sm:$0xf]  ;;  %v15459_v52 = vor.u32 %v19766_v43, %v15458_v39  ;;  %6887 = vmatpush.bf16.msra.mxu1 %v15203_v51 }
 0x269   :  { %v19830_v48 = vld [vmem:[#allocation5 + $0x17e4] sm:$0xf0] }
 0x26a   :  { %v14914_v53 = vld [vmem:[#allocation5 + $0x1188] sm:$0xf]  ;;  %v15715_v55 = vor.u32 %v19830_v48, %v15714_v47  ;;  %6900 = vmatpush.bf16.msra.mxu2 %v15459_v52  ;;  %v6624_v47 = vadd.f32 %v6623_v36, %v21046_v56  ;;  %v6636_v48 = vpop.f32.mrf.mxu1 }
 0x26b   :  { %v19630_v16 = vld [vmem:[#allocation5 + $0x11a4] sm:$0xf0] }
 0x26c   :  { %v15170_v54 = vld [vmem:[#allocation5 + $0x1388] sm:$0xf]  ;;  %v14915_v61 = vor.u32 %v19630_v16, %v14914_v53  ;;  %6913 = vmatpush.bf16.msra.mxu3 %v15715_v55 }
 0x26d   :  { %v19694_v57 = vld [vmem:[#allocation5 + $0x13a4] sm:$0xf0] }
 0x26e   :  { %v15426_v58 = vld [vmem:[#allocation5 + $0x1588] sm:$0xf]  ;;  %v15171_v63 = vor.u32 %v19694_v57, %v15170_v54  ;;  %6875 = vmatpush.bf16.msra.mxu0 %v14915_v61  ;;  %v6637_v54 = vadd.f32 %v6636_v48, %v6624_v47  ;;  %v6649_v61 = vpop.f32.mrf.mxu2 }
 0x26f   :  { %v19758_v59 = vld [vmem:[#allocation5 + $0x15a4] sm:$0xf0] }
 0x270   :  { %v15682_v62 = vld [vmem:[#allocation5 + $0x1788] sm:$0xf]  ;;  %v15427_v0 = vor.u32 %v19758_v59, %v15426_v58  ;;  %6888 = vmatpush.bf16.msra.mxu1 %v15171_v63 }
 0x271   :  { %v19822_v60 = vld [vmem:[#allocation5 + $0x17a4] sm:$0xf0] }
 0x272   :  { %v14882_v1 = vld [vmem:[#allocation5 + $0x1148] sm:$0xf]  ;;  %v15683_v4 = vor.u32 %v19822_v60, %v15682_v62  ;;  %6901 = vmatpush.bf16.msra.mxu2 %v15427_v0 }
 0x273   :  { %v19622_v2 = vld [vmem:[#allocation5 + $0x1164] sm:$0xf0] }
 0x274   :  { %v15138_v3 = vld [vmem:[#allocation5 + $0x1348] sm:$0xf]  ;;  %v14883_v9 = vor.u32 %v19622_v2, %v14882_v1  ;;  %6914 = vmatpush.bf16.msra.mxu3 %v15683_v4  ;;  %v6650_v2 = vadd.f32 %v6649_v61, %v6637_v54 }
 0x275   :  { %v19686_v5 = vld [vmem:[#allocation5 + $0x1364] sm:$0xf0] }
 0x276   :  { %v15394_v6 = vld [vmem:[#allocation5 + $0x1548] sm:$0xf]  ;;  %v15139_v10 = vor.u32 %v19686_v5, %v15138_v3  ;;  %6876 = vmatpush.bf16.msra.mxu0 %v14883_v9  ;;  %v6662_v3 = vpop.f32.mrf.mxu3  ;;  %v6651_v47 = vpop.f32.mrf.mxu2 }
 0x277   :  { %v19750_v7 = vld [vmem:[#allocation5 + $0x1564] sm:$0xf0] }
 0x278   :  { %v15650_v8 = vld [vmem:[#allocation5 + $0x1748] sm:$0xf]  ;;  %v15395_v11 = vor.u32 %v19750_v7, %v15394_v6  ;;  %6889 = vmatpush.bf16.msra.mxu1 %v15139_v10  ;;  %v21053_v7 = vadd.f32 %v6662_v3, %v6650_v2 }
 0x279   :  { %v19814_v13 = vld [vmem:[#allocation5 + $0x1764] sm:$0xf0] }
 0x27a   :  { %v14850_v12 = vld [vmem:[#allocation5 + $0x1108] sm:$0xf]  ;;  %v15651_v17 = vor.u32 %v19814_v13, %v15650_v8  ;;  %6902 = vmatpush.bf16.msra.mxu2 %v15395_v11  ;;  %v6625_v8 = vpop.f32.mrf.mxu0 }
 0x27b   :  { %v19614_v14 = vld [vmem:[#allocation5 + $0x1124] sm:$0xf0] }
 0x27c   :  { %v15106_v15 = vld [vmem:[#allocation5 + $0x1308] sm:$0xf]  ;;  %v14851_v34 = vor.u32 %v19614_v14, %v14850_v12  ;;  %6915 = vmatpush.bf16.msra.mxu3 %v15651_v17  ;;  %v6638_v14 = vpop.f32.mrf.mxu1 }
 0x27d   :  { %v19678_v21 = vld [vmem:[#allocation5 + $0x1324] sm:$0xf0] }
 0x27e   :  { %v15362_v24 = vld [vmem:[#allocation5 + $0x1508] sm:$0xf]  ;;  %v15107_v37 = vor.u32 %v19678_v21, %v15106_v15  ;;  %6877 = vmatpush.bf16.msra.mxu0 %v14851_v34 }
 0x27f   :  { %v19742_v26 = vld [vmem:[#allocation5 + $0x1524] sm:$0xf0] }
 0x280   :  { %v15618_v27 = vld [vmem:[#allocation5 + $0x1708] sm:$0xf]  ;;  %v15363_v39 = vor.u32 %v19742_v26, %v15362_v24  ;;  %6890 = vmatpush.bf16.msra.mxu1 %v15107_v37 }
 0x281   :  { %v19806_v32 = vld [vmem:[#allocation5 + $0x1724] sm:$0xf0] }
 0x282   :  { %v14818_v43 = vld [vmem:[#allocation5 + $0x10c8] sm:$0xf]  ;;  %v15619_v49 = vor.u32 %v19806_v32, %v15618_v27  ;;  %6903 = vmatpush.bf16.msra.mxu2 %v15363_v39 }
 0x283   :  { %v19606_v45 = vld [vmem:[#allocation5 + $0x10e4] sm:$0xf0] }
 0x284   :  { %v15074_v46 = vld [vmem:[#allocation5 + $0x12c8] sm:$0xf]  ;;  %v14819_v55 = vor.u32 %v19606_v45, %v14818_v43  ;;  %6916 = vmatpush.bf16.msra.mxu3 %v15619_v49 }
 0x285   :  { %v19670_v50 = vld [vmem:[#allocation5 + $0x12e4] sm:$0xf0] }
 0x286   :  { %v15330_v51 = vld [vmem:[#allocation5 + $0x14c8] sm:$0xf]  ;;  %v15075_v57 = vor.u32 %v19670_v50, %v15074_v46  ;;  %6878 = vmatpush.bf16.msra.mxu0 %v14819_v55 }
 0x287   :  { %v19734_v52 = vld [vmem:[#allocation5 + $0x14e4] sm:$0xf0] }
 0x288   :  { %v15586_v53 = vld [vmem:[#allocation5 + $0x16c8] sm:$0xf]  ;;  %v15331_v58 = vor.u32 %v19734_v52, %v15330_v51  ;;  %6891 = vmatpush.bf16.msra.mxu1 %v15075_v57  ;;  %v6664_v52 = vpop.f32.mrf.mxu3 }
 0x289   :  { %v19798_v16 = vld [vmem:[#allocation5 + $0x16e4] sm:$0xf0] }
 0x28a   :  { %v14786_v59 = vld [vmem:[#allocation5 + $0x1088] sm:$0xf]  ;;  %v15587_v56 = vor.u32 %v19798_v16, %v15586_v53  ;;  %6904 = vmatpush.bf16.msra.mxu2 %v15331_v58 }
 0x28b   :  { %v19598_v62 = vld [vmem:[#allocation5 + $0x10a4] sm:$0xf0] }
 0x28c   :  { %v15042_v60 = vld [vmem:[#allocation5 + $0x1288] sm:$0xf]  ;;  %v14787_v6 = vor.u32 %v19598_v62, %v14786_v59  ;;  %6917 = vmatpush.bf16.msra.mxu3 %v15587_v56 }
 0x28d   :  { %v19662_v63 = vld [vmem:[#allocation5 + $0x12a4] sm:$0xf0] }
 0x28e   :  { %v15298_v0 = vld [vmem:[#allocation5 + $0x1488] sm:$0xf]  ;;  %v15043_v13 = vor.u32 %v19662_v63, %v15042_v60  ;;  %6879 = vmatpush.bf16.msra.mxu0 %v14787_v6 }
 0x28f   :  { %v19726_v1 = vld [vmem:[#allocation5 + $0x14a4] sm:$0xf0] }
 0x290   :  { %v15554_v4 = vld [vmem:[#allocation5 + $0x1688] sm:$0xf]  ;;  %v15299_v9 = vor.u32 %v19726_v1, %v15298_v0  ;;  %6892 = vmatpush.bf16.msra.mxu1 %v15043_v13 }
 0x291   :  { %v19790_v5 = vld [vmem:[#allocation5 + $0x16a4] sm:$0xf0] }
 0x292   :  { %v14754_v10 = vld [vmem:[#allocation5 + $0x1048] sm:$0xf]  ;;  %v15555_v15 = vor.u32 %v19790_v5, %v15554_v4  ;;  %6905 = vmatpush.bf16.msra.mxu2 %v15299_v9 }
 0x293   :  { %v19590_v11 = vld [vmem:[#allocation5 + $0x1064] sm:$0xf0] }
 0x294   :  { %v15010_v12 = vld [vmem:[#allocation5 + $0x1248] sm:$0xf]  ;;  %v14755_v32 = vor.u32 %v19590_v11, %v14754_v10  ;;  %6918 = vmatpush.bf16.msra.mxu3 %v15555_v15 }
 0x295   :  { %v19654_v17 = vld [vmem:[#allocation5 + $0x1264] sm:$0xf0] }
 0x296   :  { %v15266_v21 = vld [vmem:[#allocation5 + $0x1448] sm:$0xf]  ;;  %v15011_v37 = vor.u32 %v19654_v17, %v15010_v12  ;;  %6880 = vmatpush.bf16.msra.mxu0 %v14755_v32 }
 0x297   :  { %v19718_v24 = vld [vmem:[#allocation5 + $0x1464] sm:$0xf0] }
 0x298   :  { %v15522_v26 = vld [vmem:[#allocation5 + $0x1648] sm:$0xf]  ;;  %v15267_v39 = vor.u32 %v19718_v24, %v15266_v21  ;;  %6893 = vmatpush.bf16.msra.mxu1 %v15011_v37 }
 0x299   :  { %v19782_v27 = vld [vmem:[#allocation5 + $0x1664] sm:$0xf0] }
 0x29a   :  { %v14722_v34 = vld [vmem:[#allocation5 + $0x1008] sm:$0xf]  ;;  %v15523_v48 = vor.u32 %v19782_v27, %v15522_v26  ;;  %6906 = vmatpush.bf16.msra.mxu2 %v15267_v39 }
 0x29b   :  { %v19582_v36 = vld [vmem:[#allocation5 + $0x1024] sm:$0xf0] }
 0x29c   :  { %v14978_v43 = vld [vmem:[#allocation5 + $0x1208] sm:$0xf]  ;;  %v14723_v55 = vor.u32 %v19582_v36, %v14722_v34  ;;  %6919 = vmatpush.bf16.msra.mxu3 %v15523_v48 }
 0x29d   :  { %v19646_v45 = vld [vmem:[#allocation5 + $0x1224] sm:$0xf0] }
 0x29e   :  { %v15234_v46 = vld [vmem:[#allocation5 + $0x1408] sm:$0xf]  ;;  %v14979_v62 = vor.u32 %v19646_v45, %v14978_v43  ;;  %6881 = vmatpush.bf16.msra.mxu0 %v14723_v55 }
 0x29f   :  { %v19710_v49 = vld [vmem:[#allocation5 + $0x1424] sm:$0xf0] }
 0x2a0   :  { %v15490_v50 = vld [vmem:[#allocation5 + $0x1608] sm:$0xf]  ;;  %v15235_v60 = vor.u32 %v19710_v49, %v15234_v46  ;;  %6894 = vmatpush.bf16.msra.mxu1 %v14979_v62 }
 0x2a1   :  { %v19774_v51 = vld [vmem:[#allocation5 + $0x1624] sm:$0xf0]  ;;  %6882 = vmatmul.bf16.vlgmr.msra.gmra.mxu0 %v20991_v25 }
 0x2a2   :  { %v15970_v53 = vld [vmem:[#allocation5 + $0x19c8] sm:$0xf]  ;;  %v15491_v63 = vor.u32 %v19774_v51, %v15490_v50  ;;  %6907 = vmatpush.bf16.msra.mxu2 %v15235_v60 }
 0x2a3   :  { %v19894_v16 = vld [vmem:[#allocation5 + $0x19e4] sm:$0xf0]  ;;  %6895 = vmatmul.bf16.vlgmr.msra.gmra.mxu1 %v20995_v30 }
 0x2a4   :  { %v16226_v54 = vld [vmem:[#allocation5 + $0x1bc8] sm:$0xf]  ;;  %v15971_v0 = vor.u32 %v19894_v16, %v15970_v53  ;;  %6920 = vmatpush.bf16.msra.mxu3 %v15491_v63  ;;  %v6675_v53 = vpop.f32.mrf.mxu0 }
 0x2a5   :  { %v19958_v57 = vld [vmem:[#allocation5 + $0x1be4] sm:$0xf0]  ;;  %6908 = vmatmul.bf16.vlgmr.msra.gmra.mxu2 %v20993_v29  ;;  %v6676_v55 = vadd.f32 %v6675_v53, %v21053_v7 }
 0x2a6   :  { %v16482_v58 = vld [vmem:[#allocation5 + $0x1dc8] sm:$0xf]  ;;  %v16227_v1 = vor.u32 %v19958_v57, %v16226_v54  ;;  %6926 = vmatpush.bf16.msrb.mxu0 %v15971_v0 }
 0x2a7   :  { %v20022_v59 = vld [vmem:[#allocation5 + $0x1de4] sm:$0xf0]  ;;  %6921 = vmatmul.bf16.vlgmr.msra.gmra.mxu3 %v20997_v33 }
 0x2a8   :  { %v16738_v61 = vld [vmem:[#allocation5 + $0x1fc8] sm:$0xf]  ;;  %v16483_v2 = vor.u32 %v20022_v59, %v16482_v58  ;;  %6939 = vmatpush.bf16.msrb.mxu1 %v16227_v1  ;;  %v6688_v58 = vpop.f32.mrf.mxu1 }
 0x2a9   :  { %v20086_v56 = vld [vmem:[#allocation5 + $0x1fe4] sm:$0xf0]  ;;  %v6689_v0 = vadd.f32 %v6688_v58, %v6676_v55 }
 0x2aa   :  { %v15938_v3 = vld [vmem:[#allocation5 + $0x1988] sm:$0xf]  ;;  %v16739_v6 = vor.u32 %v20086_v56, %v16738_v61  ;;  %6952 = vmatpush.bf16.msrb.mxu2 %v16483_v2 }
 0x2ab   :  { %v19886_v4 = vld [vmem:[#allocation5 + $0x19a4] sm:$0xf0] }
 0x2ac   :  { %v16194_v5 = vld [vmem:[#allocation5 + $0x1b88] sm:$0xf]  ;;  %v15939_v12 = vor.u32 %v19886_v4, %v15938_v3  ;;  %6965 = vmatpush.bf16.msrb.mxu3 %v16739_v6 }
 0x2ad   :  { %v19950_v8 = vld [vmem:[#allocation5 + $0x1ba4] sm:$0xf0] }
 0x2ae   :  { %v16450_v13 = vld [vmem:[#allocation5 + $0x1d88] sm:$0xf]  ;;  %v16195_v14 = vor.u32 %v19950_v8, %v16194_v5  ;;  %6927 = vmatpush.bf16.msrb.mxu0 %v15939_v12  ;;  %v6701_v12 = vpop.f32.mrf.mxu2 }
 0x2af   :  { %v20014_v9 = vld [vmem:[#allocation5 + $0x1da4] sm:$0xf0] }
 0x2b0   :  { %v16706_v10 = vld [vmem:[#allocation5 + $0x1f88] sm:$0xf]  ;;  %v16451_v15 = vor.u32 %v20014_v9, %v16450_v13  ;;  %6940 = vmatpush.bf16.msrb.mxu1 %v16195_v14 }
 0x2b1   :  { %v20078_v11 = vld [vmem:[#allocation5 + $0x1fa4] sm:$0xf0] }
 0x2b2   :  { %v15906_v17 = vld [vmem:[#allocation5 + $0x1948] sm:$0xf]  ;;  %v16707_v26 = vor.u32 %v20078_v11, %v16706_v10  ;;  %6953 = vmatpush.bf16.msrb.mxu2 %v16451_v15 }
 0x2b3   :  { %v19878_v21 = vld [vmem:[#allocation5 + $0x1964] sm:$0xf0] }
 0x2b4   :  { %v16162_v24 = vld [vmem:[#allocation5 + $0x1b48] sm:$0xf]  ;;  %v15907_v39 = vor.u32 %v19878_v21, %v15906_v17  ;;  %6966 = vmatpush.bf16.msrb.mxu3 %v16707_v26  ;;  %v6702_v21 = vadd.f32 %v6701_v12, %v6689_v0  ;;  %v13668_v12 = vld [vmem:[#allocation5 + $0x7e8] sm:$0xf0] }
 0x2b5   :  { %v19942_v27 = vld [vmem:[#allocation5 + $0x1b64] sm:$0xf0] }
 0x2b6   :  { %v16418_v32 = vld [vmem:[#allocation5 + $0x1d48] sm:$0xf]  ;;  %v16163_v43 = vor.u32 %v19942_v27, %v16162_v24  ;;  %6928 = vmatpush.bf16.msrb.mxu0 %v15907_v39  ;;  %v6714_v24 = vpop.f32.mrf.mxu3 }
 0x2b7   :  { %v20006_v34 = vld [vmem:[#allocation5 + $0x1d64] sm:$0xf0] }
 0x2b8   :  { %v16674_v36 = vld [vmem:[#allocation5 + $0x1f48] sm:$0xf]  ;;  %v16419_v45 = vor.u32 %v20006_v34, %v16418_v32  ;;  %6941 = vmatpush.bf16.msrb.mxu1 %v16163_v43  ;;  %v6677_v32 = vpop.f32.mrf.mxu0 }
 0x2b9   :  { %v20070_v37 = vld [vmem:[#allocation5 + $0x1f64] sm:$0xf0] }
 0x2ba   :  { %v15874_v46 = vld [vmem:[#allocation5 + $0x1908] sm:$0xf]  ;;  %v16675_v49 = vor.u32 %v20070_v37, %v16674_v36  ;;  %6954 = vmatpush.bf16.msrb.mxu2 %v16419_v45  ;;  %v6690_v36 = vpop.f32.mrf.mxu1  ;;  %v21060_v37 = vadd.f32 %v6714_v24, %v6702_v21  ;;  %v19114_v24 = vld [vmem:[#allocation5 + $0x18c] sm:$0xf] }
 0x2bb   :  { %v19870_v47 = vld [vmem:[#allocation5 + $0x1924] sm:$0xf0]  ;;  %v19242_v36 = vld [vmem:[#allocation5 + $0x58c] sm:$0xf] }
 0x2bc   :  { %v16130_v48 = vld [vmem:[#allocation5 + $0x1b08] sm:$0xf]  ;;  %v15875_v57 = vor.u32 %v19870_v47, %v15874_v46  ;;  %6967 = vmatpush.bf16.msrb.mxu3 %v16675_v49 }
 0x2bd   :  { %v19934_v50 = vld [vmem:[#allocation5 + $0x1b24] sm:$0xf0] }
 0x2be   :  { %v16386_v51 = vld [vmem:[#allocation5 + $0x1d08] sm:$0xf]  ;;  %v16131_v59 = vor.u32 %v19934_v50, %v16130_v48  ;;  %6929 = vmatpush.bf16.msrb.mxu0 %v15875_v57 }
 0x2bf   :  { %v19998_v52 = vld [vmem:[#allocation5 + $0x1d24] sm:$0xf0] }
 0x2c0   :  { %v16642_v16 = vld [vmem:[#allocation5 + $0x1f08] sm:$0xf]  ;;  %v16387_v62 = vor.u32 %v19998_v52, %v16386_v51  ;;  %6942 = vmatpush.bf16.msrb.mxu1 %v16131_v59 }
 0x2c1   :  { %v20062_v54 = vld [vmem:[#allocation5 + $0x1f24] sm:$0xf0] }
 0x2c2   :  { %v15842_v60 = vld [vmem:[#allocation5 + $0x18c8] sm:$0xf]  ;;  %v16643_v63 = vor.u32 %v20062_v54, %v16642_v16  ;;  %6955 = vmatpush.bf16.msrb.mxu2 %v16387_v62 }
 0x2c3   :  { %v19862_v61 = vld [vmem:[#allocation5 + $0x18e4] sm:$0xf0] }
 0x2c4   :  { %v16098_v56 = vld [vmem:[#allocation5 + $0x1ac8] sm:$0xf]  ;;  %v15843_v6 = vor.u32 %v19862_v61, %v15842_v60  ;;  %6968 = vmatpush.bf16.msrb.mxu3 %v16643_v63 }
 0x2c5   :  { %v19926_v1 = vld [vmem:[#allocation5 + $0x1ae4] sm:$0xf0] }
 0x2c6   :  { %v16354_v2 = vld [vmem:[#allocation5 + $0x1cc8] sm:$0xf]  ;;  %v16099_v7 = vor.u32 %v19926_v1, %v16098_v56  ;;  %6930 = vmatpush.bf16.msrb.mxu0 %v15843_v6  ;;  %v6703_v1 = vpop.f32.mrf.mxu2 }
 0x2c7   :  { %v19990_v3 = vld [vmem:[#allocation5 + $0x1ce4] sm:$0xf0]  ;;  %v19226_v1 = vld [vmem:[#allocation5 + $0x50c] sm:$0xf] }
 0x2c8   :  { %v16610_v4 = vld [vmem:[#allocation5 + $0x1ec8] sm:$0xf]  ;;  %v16355_v8 = vor.u32 %v19990_v3, %v16354_v2  ;;  %6943 = vmatpush.bf16.msrb.mxu1 %v16099_v7  ;;  %v19122_v2 = vld [vmem:[#allocation5 + $0x1cc] sm:$0xf] }
 0x2c9   :  { %v20054_v5 = vld [vmem:[#allocation5 + $0x1ee4] sm:$0xf0]  ;;  %v12900_v3 = vld [vmem:[#allocation5 + $0x1e8] sm:$0xf0] }
 0x2ca   :  { %v15810_v13 = vld [vmem:[#allocation5 + $0x1888] sm:$0xf]  ;;  %v16611_v11 = vor.u32 %v20054_v5, %v16610_v4  ;;  %6956 = vmatpush.bf16.msrb.mxu2 %v16355_v8  ;;  %v19186_v4 = vld [vmem:[#allocation5 + $0x3cc] sm:$0xf]  ;;  %v6716_v5 = vpop.f32.mrf.mxu3 }
 0x2cb   :  { %v19854_v9 = vld [vmem:[#allocation5 + $0x18a4] sm:$0xf0]  ;;  %v13156_v7 = vld [vmem:[#allocation5 + $0x3e8] sm:$0xf0] }
 0x2cc   :  { %v16066_v10 = vld [vmem:[#allocation5 + $0x1a88] sm:$0xf]  ;;  %v15811_v34 = vor.u32 %v19854_v9, %v15810_v13  ;;  %6969 = vmatpush.bf16.msrb.mxu3 %v16611_v11  ;;  %v19250_v8 = vld [vmem:[#allocation5 + $0x5cc] sm:$0xf] }
 0x2cd   :  { %v19918_v14 = vld [vmem:[#allocation5 + $0x1aa4] sm:$0xf0]  ;;  %v13412_v13 = vld [vmem:[#allocation5 + $0x5e8] sm:$0xf0] }
 0x2ce   :  { %v16322_v15 = vld [vmem:[#allocation5 + $0x1c88] sm:$0xf]  ;;  %v16067_v39 = vor.u32 %v19918_v14, %v16066_v10  ;;  %6931 = vmatpush.bf16.msrb.mxu0 %v15811_v34  ;;  %v19314_v11 = vld [vmem:[#allocation5 + $0x7cc] sm:$0xf]  ;;  %v13415_v21 = vor.u32 %v19250_v8, %v13412_v13  ;;  %v6740_v8 = vpop.f32.mrf.mxu1 }
 0x2cf   :  { %v19982_v17 = vld [vmem:[#allocation5 + $0x1ca4] sm:$0xf0]  ;;  %v13671_v32 = vor.u32 %v19314_v11, %v13668_v12  ;;  %v13124_v34 = vld [vmem:[#allocation5 + $0x3a8] sm:$0xf0] }
 0x2d0   :  { %v16578_v26 = vld [vmem:[#allocation5 + $0x1e88] sm:$0xf]  ;;  %v16323_v43 = vor.u32 %v19982_v17, %v16322_v15  ;;  %6944 = vmatpush.bf16.msrb.mxu1 %v16067_v39  ;;  %v12903_v15 = vor.u32 %v19122_v2, %v12900_v3  ;;  %v13159_v17 = vor.u32 %v19186_v4, %v13156_v7  ;;  %v13380_v39 = vld [vmem:[#allocation5 + $0x5a8] sm:$0xf0]  ;;  %v6727_v3 = vpop.f32.mrf.mxu0 }
 0x2d1   :  { %v20046_v27 = vld [vmem:[#allocation5 + $0x1ea4] sm:$0xf0]  ;;  %v13316_v2 = vld [vmem:[#allocation5 + $0x528] sm:$0xf0] }
 0x2d2   :  { %v15778_v45 = vld [vmem:[#allocation5 + $0x1848] sm:$0xf]  ;;  %v16579_v48 = vor.u32 %v20046_v27, %v16578_v26  ;;  %6957 = vmatpush.bf16.msrb.mxu2 %v16323_v43  ;;  %v12868_v26 = vld [vmem:[#allocation5 + $0x1a8] sm:$0xf0] }
 0x2d3   :  { %v19846_v46 = vld [vmem:[#allocation5 + $0x1864] sm:$0xf0]  ;;  %v19178_v27 = vld [vmem:[#allocation5 + $0x38c] sm:$0xf] }
 0x2d4   :  { %v16034_v47 = vld [vmem:[#allocation5 + $0x1a48] sm:$0xf]  ;;  %v15779_v16 = vor.u32 %v19846_v46, %v15778_v45  ;;  %6970 = vmatpush.bf16.msrb.mxu3 %v16579_v48  ;;  %v19306_v43 = vld [vmem:[#allocation5 + $0x78c] sm:$0xf]  ;;  %v12871_v46 = vor.u32 %v19114_v24, %v12868_v26  ;;  %v13383_v48 = vor.u32 %v19242_v36, %v13380_v39 }
 0x2d5   :  { %v19910_v49 = vld [vmem:[#allocation5 + $0x1a64] sm:$0xf0]  ;;  %v13636_v45 = vld [vmem:[#allocation5 + $0x7a8] sm:$0xf0] }
 0x2d6   :  { %v16290_v50 = vld [vmem:[#allocation5 + $0x1c48] sm:$0xf]  ;;  %v16035_v57 = vor.u32 %v19910_v49, %v16034_v47  ;;  %6932 = vmatpush.bf16.msrb.mxu0 %v15779_v16  ;;  %v13127_v47 = vor.u32 %v19178_v27, %v13124_v34  ;;  %v19106_v49 = vld [vmem:[#allocation5 + $0x14c] sm:$0xf] }
 0x2d7   :  { %v19974_v51 = vld [vmem:[#allocation5 + $0x1c64] sm:$0xf0]  ;;  %v19234_v16 = vld [vmem:[#allocation5 + $0x54c] sm:$0xf] }
 0x2d8   :  { %v16546_v52 = vld [vmem:[#allocation5 + $0x1e48] sm:$0xf]  ;;  %v16291_v58 = vor.u32 %v19974_v51, %v16290_v50  ;;  %6945 = vmatpush.bf16.msrb.mxu1 %v16035_v57  ;;  %v12836_v50 = vld [vmem:[#allocation5 + $0x168] sm:$0xf0] }
 0x2d9   :  { %v20038_v53 = vld [vmem:[#allocation5 + $0x1e64] sm:$0xf0]  ;;  %v19170_v51 = vld [vmem:[#allocation5 + $0x34c] sm:$0xf] }
 0x2da   :  { %v15746_v54 = vld [vmem:[#allocation5 + $0x1808] sm:$0xf]  ;;  %v16547_v61 = vor.u32 %v20038_v53, %v16546_v52  ;;  %6958 = vmatpush.bf16.msrb.mxu2 %v16291_v58  ;;  %v13639_v52 = vor.u32 %v19306_v43, %v13636_v45  ;;  %v13092_v53 = vld [vmem:[#allocation5 + $0x368] sm:$0xf0]  ;;  %v12839_v58 = vor.u32 %v19106_v49, %v12836_v50 }
 0x2db   :  { %v19838_v55 = vld [vmem:[#allocation5 + $0x1824] sm:$0xf0]  ;;  %v13604_v57 = vld [vmem:[#allocation5 + $0x768] sm:$0xf0] }
 0x2dc   :  { %v16002_v59 = vld [vmem:[#allocation5 + $0x1a08] sm:$0xf]  ;;  %v15747_v6 = vor.u32 %v19838_v55, %v15746_v54  ;;  %6971 = vmatpush.bf16.msrb.mxu3 %v16547_v61  ;;  %v13348_v54 = vld [vmem:[#allocation5 + $0x568] sm:$0xf0] }
 0x2dd   :  { %v19902_v62 = vld [vmem:[#allocation5 + $0x1a24] sm:$0xf0]  ;;  %v19298_v55 = vld [vmem:[#allocation5 + $0x74c] sm:$0xf] }
 0x2de   :  { %v16258_v60 = vld [vmem:[#allocation5 + $0x1c08] sm:$0xf]  ;;  %v16003_v9 = vor.u32 %v19902_v62, %v16002_v59  ;;  %6933 = vmatpush.bf16.msrb.mxu0 %v15747_v6  ;;  %v13095_v59 = vor.u32 %v19170_v51, %v13092_v53  ;;  %v13351_v62 = vor.u32 %v19234_v16, %v13348_v54  ;;  %v12804_v61 = vld [vmem:[#allocation5 + $0x128] sm:$0xf0]  ;;  %v6728_v6 = vadd.f32 %v6727_v3, %v21060_v37  ;;  %v6766_v51 = vpop.f32.mrf.mxu3  ;;  %v6729_v16 = vpop.f32.mrf.mxu0 }
 0x2df   :  { %v19966_v56 = vld [vmem:[#allocation5 + $0x1c24] sm:$0xf0]  ;;  %v19290_v4 = vld [vmem:[#allocation5 + $0x70c] sm:$0xf] }
 0x2e0   :  { %v16514_v63 = vld [vmem:[#allocation5 + $0x1e08] sm:$0xf]  ;;  %v16259_v10 = vor.u32 %v19966_v56, %v16258_v60  ;;  %6946 = vmatpush.bf16.msrb.mxu1 %v16003_v9  ;;  %v19098_v60 = vld [vmem:[#allocation5 + $0x10c] sm:$0xf]  ;;  %v13319_v9 = vor.u32 %v19226_v1, %v13316_v2 }
 0x2e1   :  { %v20030_v0 = vld [vmem:[#allocation5 + $0x1e24] sm:$0xf0]  ;;  %6934 = vmatmul.bf16.vlgmr.msrb.gmra.mxu0 %v21003_v23  ;;  %v19162_v56 = vld [vmem:[#allocation5 + $0x30c] sm:$0xf]  ;;  %v12807_v7 = vor.u32 %v19098_v60, %v12804_v61 }
 0x2e2   :  { %v16515_v14 = vor.u32 %v20030_v0, %v16514_v63  ;;  %6959 = vmatpush.bf16.msrb.mxu2 %v16259_v10  ;;  %6978 = vmatpush.bf16.msra.mxu0 %v12903_v15  ;;  %v13607_v63 = vor.u32 %v19298_v55, %v13604_v57  ;;  %v13060_v0 = vld [vmem:[#allocation5 + $0x328] sm:$0xf0]  ;;  %v6741_v15 = vadd.f32 %v6740_v8, %v6728_v6  ;;  %v6742_v55 = vpop.f32.mrf.mxu1 }
 0x2e3   :  { %6947 = vmatmul.bf16.vlgmr.msrb.gmra.mxu1 %v21007_v31  ;;  %v13572_v5 = vld [vmem:[#allocation5 + $0x728] sm:$0xf0]  ;;  %v13063_v13 = vor.u32 %v19162_v56, %v13060_v0 }
 0x2e4   :  { %6972 = vmatpush.bf16.msrb.mxu3 %v16515_v14  ;;  %6991 = vmatpush.bf16.msra.mxu1 %v13159_v17  ;;  %v19090_v10 = vld [vmem:[#allocation5 + $0xcc] sm:$0xf]  ;;  %v13575_v14 = vor.u32 %v19290_v4, %v13572_v5 }
 0x2e5   :  { %6960 = vmatmul.bf16.vlgmr.msrb.gmra.mxu2 %v21005_v28  ;;  %v12772_v11 = vld [vmem:[#allocation5 + $0xe8] sm:$0xf0] }
 0x2e6   :  { %7004 = vmatpush.bf16.msra.mxu2 %v13415_v21  ;;  %6979 = vmatpush.bf16.msra.mxu0 %v12871_v46  ;;  %v19154_v12 = vld [vmem:[#allocation5 + $0x2cc] sm:$0xf]  ;;  %v6753_v46 = vpop.f32.mrf.mxu2 }
 0x2e7   :  { %6973 = vmatmul.bf16.vlgmr.msrb.gmra.mxu3 %v21009_v35  ;;  %v13028_v17 = vld [vmem:[#allocation5 + $0x2e8] sm:$0xf0]  ;;  %v6754_v50 = vadd.f32 %v6753_v46, %v6741_v15 }
 0x2e8   :  { %7017 = vmatpush.bf16.msra.mxu3 %v13671_v32  ;;  %6992 = vmatpush.bf16.msra.mxu1 %v13127_v47  ;;  %v19218_v21 = vld [vmem:[#allocation5 + $0x4cc] sm:$0xf]  ;;  %v12775_v32 = vor.u32 %v19090_v10, %v12772_v11  ;;  %v13031_v37 = vor.u32 %v19154_v12, %v13028_v17 }
 0x2e9   :  { %v13284_v24 = vld [vmem:[#allocation5 + $0x4e8] sm:$0xf0]  ;;  %v21067_v57 = vadd.f32 %v6766_v51, %v6754_v50 }
 0x2ea   :  { %7005 = vmatpush.bf16.msra.mxu2 %v13383_v48  ;;  %6980 = vmatpush.bf16.msra.mxu0 %v12839_v58  ;;  %v19282_v26 = vld [vmem:[#allocation5 + $0x6cc] sm:$0xf]  ;;  %v13287_v34 = vor.u32 %v19218_v21, %v13284_v24 }
 0x2eb   :  { %v13540_v27 = vld [vmem:[#allocation5 + $0x6e8] sm:$0xf0]  ;;  %vm8019_vm1 = vcmp.gt.f32.partialorder %v21067_v57, 0.0 }
 0x2ec   :  { %7018 = vmatpush.bf16.msra.mxu3 %v13639_v52  ;;  %6993 = vmatpush.bf16.msra.mxu1 %v13095_v59  ;;  %v19082_v36 = vld [vmem:[#allocation5 + $0x8c] sm:$0xf]  ;;  %v13543_v45 = vor.u32 %v19282_v26, %v13540_v27  ;;  %v6768_v27 = vpop.f32.mrf.mxu3 }
 0x2ed   :  { %v12740_v39 = vld [vmem:[#allocation5 + $0xa8] sm:$0xf0] }
 0x2ee   :  { %7006 = vmatpush.bf16.msra.mxu2 %v13351_v62  ;;  %6981 = vmatpush.bf16.msra.mxu0 %v12807_v7  ;;  %v19146_v43 = vld [vmem:[#allocation5 + $0x28c] sm:$0xf]  ;;  %v12743_v54 = vor.u32 %v19082_v36, %v12740_v39  ;;  %v6755_v17 = vpop.f32.mrf.mxu2 }
 0x2ef   :  { %v12996_v47 = vld [vmem:[#allocation5 + $0x2a8] sm:$0xf0] }
 0x2f0   :  { %7019 = vmatpush.bf16.msra.mxu3 %v13607_v63  ;;  %6994 = vmatpush.bf16.msra.mxu1 %v13063_v13  ;;  %v19210_v48 = vld [vmem:[#allocation5 + $0x48c] sm:$0xf]  ;;  %v12999_v58 = vor.u32 %v19146_v43, %v12996_v47 }
 0x2f1   :  { %v13252_v49 = vld [vmem:[#allocation5 + $0x4a8] sm:$0xf0] }
 0x2f2   :  { %7007 = vmatpush.bf16.msra.mxu2 %v13319_v9  ;;  %v19274_v52 = vld [vmem:[#allocation5 + $0x68c] sm:$0xf]  ;;  %6982 = vmatpush.bf16.msra.mxu0 %v12775_v32  ;;  %v13255_v59 = vor.u32 %v19210_v48, %v13252_v49 }
 0x2f3   :  { %v13508_v53 = vld [vmem:[#allocation5 + $0x6a8] sm:$0xf0] }
 0x2f4   :  { %7020 = vmatpush.bf16.msra.mxu3 %v13575_v14  ;;  %6995 = vmatpush.bf16.msra.mxu1 %v13031_v37  ;;  %v19074_v62 = vld [vmem:[#allocation5 + $0x4c] sm:$0xf]  ;;  %v13511_v56 = vor.u32 %v19274_v52, %v13508_v53 }
 0x2f5   :  { %v12708_v60 = vld [vmem:[#allocation5 + $0x68] sm:$0xf0] }
 0x2f6   :  { %7008 = vmatpush.bf16.msra.mxu2 %v13287_v34  ;;  %v19138_v61 = vld [vmem:[#allocation5 + $0x24c] sm:$0xf]  ;;  %6983 = vmatpush.bf16.msra.mxu0 %v12743_v54  ;;  %v12711_v4 = vor.u32 %v19074_v62, %v12708_v60 }
 0x2f7   :  { %v12964_v63 = vld [vmem:[#allocation5 + $0x268] sm:$0xf0] }
 0x2f8   :  { %7021 = vmatpush.bf16.msra.mxu3 %v13543_v45  ;;  %v19202_v0 = vld [vmem:[#allocation5 + $0x44c] sm:$0xf]  ;;  %6996 = vmatpush.bf16.msra.mxu1 %v12999_v58  ;;  %v12967_v7 = vor.u32 %v19138_v61, %v12964_v63 }
 0x2f9   :  { %v13220_v1 = vld [vmem:[#allocation5 + $0x468] sm:$0xf0] }
 0x2fa   :  { %v19266_v2 = vld [vmem:[#allocation5 + $0x64c] sm:$0xf]  ;;  %7009 = vmatpush.bf16.msra.mxu2 %v13255_v59  ;;  %v13223_v8 = vor.u32 %v19202_v0, %v13220_v1  ;;  %6984 = vmatpush.bf16.msra.mxu0 %v12711_v4 }
 0x2fb   :  { %v13476_v3 = vld [vmem:[#allocation5 + $0x668] sm:$0xf0] }
 0x2fc   :  { %v19066_v5 = vld [vmem:[#allocation5 + $0xc] sm:$0xf]  ;;  %7022 = vmatpush.bf16.msra.mxu3 %v13511_v56  ;;  %v13479_v11 = vor.u32 %v19266_v2, %v13476_v3  ;;  %6997 = vmatpush.bf16.msra.mxu1 %v12967_v7 }
 0x2fd   :  { %v12676_v6 = vld [vmem:[#allocation5 + $0x28] sm:$0xf0] }
 0x2fe   :  { %v19130_v13 = vld [vmem:[#allocation5 + $0x20c] sm:$0xf]  ;;  %v12679_v32 = vor.u32 %v19066_v5, %v12676_v6  ;;  %7010 = vmatpush.bf16.msra.mxu2 %v13223_v8 }
 0x2ff   :  { %v12932_v9 = vld [vmem:[#allocation5 + $0x228] sm:$0xf0] }
 0x300   :  { %v19194_v10 = vld [vmem:[#allocation5 + $0x40c] sm:$0xf]  ;;  %v12935_v39 = vor.u32 %v19130_v13, %v12932_v9  ;;  %7023 = vmatpush.bf16.msra.mxu3 %v13479_v11  ;;  %6985 = vmatpush.bf16.msra.mxu0 %v12679_v32 }
 0x301   :  { %v13188_v12 = vld [vmem:[#allocation5 + $0x428] sm:$0xf0] }
 0x302   :  { %v19258_v14 = vld [vmem:[#allocation5 + $0x60c] sm:$0xf]  ;;  %v13191_v43 = vor.u32 %v19194_v10, %v13188_v12  ;;  %6998 = vmatpush.bf16.msra.mxu1 %v12935_v39 }
 0x303   :  { %v13444_v15 = vld [vmem:[#allocation5 + $0x628] sm:$0xf0]  ;;  %6986 = vmatmul.bf16.vlgmr.msra.gmra.mxu0 %v20969_v19 }
 0x304   :  { %v19378_v21 = vld [vmem:[#allocation5 + $0x9cc] sm:$0xf]  ;;  %v13447_v47 = vor.u32 %v19258_v14, %v13444_v15  ;;  %7011 = vmatpush.bf16.msra.mxu2 %v13191_v43  ;;  %v20683_v14 = vld [vmem:[#allocation7] sm:$0xff] }
 0x305   :  { %v13924_v24 = vld [vmem:[#allocation5 + $0x9e8] sm:$0xf0]  ;;  %6999 = vmatmul.bf16.vlgmr.msra.gmra.mxu1 %v20973_v22  ;;  %v1164_v15 = vperm.slane %v20683_v14, 2 }
 0x306   :  { %v19442_v26 = vld [vmem:[#allocation5 + $0xbcc] sm:$0xf]  ;;  %v13927_v48 = vor.u32 %v19378_v21, %v13924_v24  ;;  %7024 = vmatpush.bf16.msra.mxu3 %v13447_v47 }
 0x307   :  { %v14180_v37 = vld [vmem:[#allocation5 + $0xbe8] sm:$0xf0]  ;;  %7012 = vmatmul.bf16.vlgmr.msra.gmra.mxu2 %v20967_v18 }
 0x308   :  { %v19506_v34 = vld [vmem:[#allocation5 + $0xdcc] sm:$0xf]  ;;  %v14183_v49 = vor.u32 %v19442_v26, %v14180_v37  ;;  %7030 = vmatpush.bf16.msrb.mxu0 %v13927_v48  ;;  %v6792_v48 = vpop.f32.mrf.mxu1 }
 0x309   :  { %v14436_v36 = vld [vmem:[#allocation5 + $0xde8] sm:$0xf0]  ;;  %7025 = vmatmul.bf16.vlgmr.msra.gmra.mxu3 %v20971_v20 }
 0x30a   :  { %v19570_v45 = vld [vmem:[#allocation5 + $0xfcc] sm:$0xf]  ;;  %v14439_v50 = vor.u32 %v19506_v34, %v14436_v36  ;;  %7043 = vmatpush.bf16.msrb.mxu1 %v14183_v49  ;;  %v6779_v34 = vpop.f32.mrf.mxu0 }
 0x30b   :  { %v14692_v46 = vld [vmem:[#allocation5 + $0xfe8] sm:$0xf0]  ;;  %v6780_v47 = vadd.f32 %v6779_v34, %v1164_v15 }
 0x30c   :  { %v19370_v51 = vld [vmem:[#allocation5 + $0x98c] sm:$0xf]  ;;  %v14695_v16 = vor.u32 %v19570_v45, %v14692_v46  ;;  %7056 = vmatpush.bf16.msrb.mxu2 %v14439_v50 }
 0x30d   :  { %v13892_v52 = vld [vmem:[#allocation5 + $0x9a8] sm:$0xf0] }
 0x30e   :  { %v19434_v53 = vld [vmem:[#allocation5 + $0xb8c] sm:$0xf]  ;;  %v13895_v60 = vor.u32 %v19370_v51, %v13892_v52  ;;  %7069 = vmatpush.bf16.msrb.mxu3 %v14695_v16 }
 0x30f   :  { %v14148_v54 = vld [vmem:[#allocation5 + $0xba8] sm:$0xf0] }
 0x310   :  { %v19498_v55 = vld [vmem:[#allocation5 + $0xd8c] sm:$0xf]  ;;  %v14151_v61 = vor.u32 %v19434_v53, %v14148_v54  ;;  %7031 = vmatpush.bf16.msrb.mxu0 %v13895_v60  ;;  %v6793_v54 = vadd.f32 %v6792_v48, %v6780_v47  ;;  %v6794_v15 = vpop.f32.mrf.mxu1 }
 0x311   :  { %v14404_v58 = vld [vmem:[#allocation5 + $0xda8] sm:$0xf0] }
 0x312   :  { %v19562_v59 = vld [vmem:[#allocation5 + $0xf8c] sm:$0xf]  ;;  %v14407_v56 = vor.u32 %v19498_v55, %v14404_v58  ;;  %7044 = vmatpush.bf16.msrb.mxu1 %v14151_v61 }
 0x313   :  { %v14660_v62 = vld [vmem:[#allocation5 + $0xfa8] sm:$0xf0] }
 0x314   :  { %v19362_v63 = vld [vmem:[#allocation5 + $0x94c] sm:$0xf]  ;;  %v14663_v2 = vor.u32 %v19562_v59, %v14660_v62  ;;  %7057 = vmatpush.bf16.msrb.mxu2 %v14407_v56  ;;  %v6805_v56 = vpop.f32.mrf.mxu2 }
 0x315   :  { %v13860_v0 = vld [vmem:[#allocation5 + $0x968] sm:$0xf0] }
 0x316   :  { %v19426_v1 = vld [vmem:[#allocation5 + $0xb4c] sm:$0xf]  ;;  %v13863_v8 = vor.u32 %v19362_v63, %v13860_v0  ;;  %7070 = vmatpush.bf16.msrb.mxu3 %v14663_v2 }
 0x317   :  { %v14116_v3 = vld [vmem:[#allocation5 + $0xb68] sm:$0xf0] }
 0x318   :  { %v19490_v4 = vld [vmem:[#allocation5 + $0xd4c] sm:$0xf]  ;;  %v14119_v9 = vor.u32 %v19426_v1, %v14116_v3  ;;  %7032 = vmatpush.bf16.msrb.mxu0 %v13863_v8  ;;  %v6806_v3 = vadd.f32 %v6805_v56, %v6793_v54 }
 0x319   :  { %v14372_v5 = vld [vmem:[#allocation5 + $0xd68] sm:$0xf0] }
 0x31a   :  { %v19554_v6 = vld [vmem:[#allocation5 + $0xf4c] sm:$0xf]  ;;  %v14375_v10 = vor.u32 %v19490_v4, %v14372_v5  ;;  %7045 = vmatpush.bf16.msrb.mxu1 %v14119_v9  ;;  %v6818_v4 = vpop.f32.mrf.mxu3 }
 0x31b   :  { %v14628_v7 = vld [vmem:[#allocation5 + $0xf68] sm:$0xf0]  ;;  %v21073_v8 = vadd.f32 %v6818_v4, %v6806_v3 }
 0x31c   :  { %v19354_v13 = vld [vmem:[#allocation5 + $0x90c] sm:$0xf]  ;;  %v14631_v17 = vor.u32 %v19554_v6, %v14628_v7  ;;  %7058 = vmatpush.bf16.msrb.mxu2 %v14375_v10  ;;  %v6807_v48 = vpop.f32.mrf.mxu2 }
 0x31d   :  { %v13828_v11 = vld [vmem:[#allocation5 + $0x928] sm:$0xf0] }
 0x31e   :  { %v19418_v12 = vld [vmem:[#allocation5 + $0xb0c] sm:$0xf]  ;;  %v13831_v37 = vor.u32 %v19354_v13, %v13828_v11  ;;  %7071 = vmatpush.bf16.msrb.mxu3 %v14631_v17  ;;  %v6781_v13 = vpop.f32.mrf.mxu0 }
 0x31f   :  { %v14084_v21 = vld [vmem:[#allocation5 + $0xb28] sm:$0xf0] }
 0x320   :  { %v19482_v24 = vld [vmem:[#allocation5 + $0xd0c] sm:$0xf]  ;;  %v14087_v36 = vor.u32 %v19418_v12, %v14084_v21  ;;  %7033 = vmatpush.bf16.msrb.mxu0 %v13831_v37 }
 0x321   :  { %v14340_v26 = vld [vmem:[#allocation5 + $0xd28] sm:$0xf0] }
 0x322   :  { %v19546_v27 = vld [vmem:[#allocation5 + $0xf0c] sm:$0xf]  ;;  %v14343_v39 = vor.u32 %v19482_v24, %v14340_v26  ;;  %7046 = vmatpush.bf16.msrb.mxu1 %v14087_v36 }
 0x323   :  { %v14596_v32 = vld [vmem:[#allocation5 + $0xf28] sm:$0xf0] }
 0x324   :  { %v19346_v43 = vld [vmem:[#allocation5 + $0x8cc] sm:$0xf]  ;;  %v14599_v49 = vor.u32 %v19546_v27, %v14596_v32  ;;  %7059 = vmatpush.bf16.msrb.mxu2 %v14343_v39 }
 0x325   :  { %v13796_v45 = vld [vmem:[#allocation5 + $0x8e8] sm:$0xf0] }
 0x326   :  { %v19410_v46 = vld [vmem:[#allocation5 + $0xacc] sm:$0xf]  ;;  %v13799_v55 = vor.u32 %v19346_v43, %v13796_v45  ;;  %7072 = vmatpush.bf16.msrb.mxu3 %v14599_v49 }
 0x327   :  { %v14052_v50 = vld [vmem:[#allocation5 + $0xae8] sm:$0xf0] }
 0x328   :  { %v19474_v51 = vld [vmem:[#allocation5 + $0xccc] sm:$0xf]  ;;  %v14055_v58 = vor.u32 %v19410_v46, %v14052_v50  ;;  %7034 = vmatpush.bf16.msrb.mxu0 %v13799_v55 }
 0x329   :  { %v14308_v52 = vld [vmem:[#allocation5 + $0xce8] sm:$0xf0] }
 0x32a   :  { %v19538_v53 = vld [vmem:[#allocation5 + $0xecc] sm:$0xf]  ;;  %v14311_v59 = vor.u32 %v19474_v51, %v14308_v52  ;;  %7047 = vmatpush.bf16.msrb.mxu1 %v14055_v58 }
 0x32b   :  { %v14564_v16 = vld [vmem:[#allocation5 + $0xee8] sm:$0xf0] }
 0x32c   :  { %v19338_v62 = vld [vmem:[#allocation5 + $0x88c] sm:$0xf]  ;;  %v14567_v63 = vor.u32 %v19538_v53, %v14564_v16  ;;  %7060 = vmatpush.bf16.msrb.mxu2 %v14311_v59  ;;  %v6820_v53 = vpop.f32.mrf.mxu3 }
 0x32d   :  { %v13764_v60 = vld [vmem:[#allocation5 + $0x8a8] sm:$0xf0] }
 0x32e   :  { %v19402_v61 = vld [vmem:[#allocation5 + $0xa8c] sm:$0xf]  ;;  %v13767_v7 = vor.u32 %v19338_v62, %v13764_v60  ;;  %7073 = vmatpush.bf16.msrb.mxu3 %v14567_v63 }
 0x32f   :  { %v14020_v0 = vld [vmem:[#allocation5 + $0xaa8] sm:$0xf0] }
 0x330   :  { %v19466_v1 = vld [vmem:[#allocation5 + $0xc8c] sm:$0xf]  ;;  %v14023_v9 = vor.u32 %v19402_v61, %v14020_v0  ;;  %7035 = vmatpush.bf16.msrb.mxu0 %v13767_v7 }
 0x331   :  { %v14276_v2 = vld [vmem:[#allocation5 + $0xca8] sm:$0xf0] }
 0x332   :  { %v19530_v5 = vld [vmem:[#allocation5 + $0xe8c] sm:$0xf]  ;;  %v14279_v10 = vor.u32 %v19466_v1, %v14276_v2  ;;  %7048 = vmatpush.bf16.msrb.mxu1 %v14023_v9 }
 0x333   :  { %v14532_v6 = vld [vmem:[#allocation5 + $0xea8] sm:$0xf0] }
 0x334   :  { %v19330_v11 = vld [vmem:[#allocation5 + $0x84c] sm:$0xf]  ;;  %v14535_v17 = vor.u32 %v19530_v5, %v14532_v6  ;;  %7061 = vmatpush.bf16.msrb.mxu2 %v14279_v10 }
 0x335   :  { %v13732_v12 = vld [vmem:[#allocation5 + $0x868] sm:$0xf0] }
 0x336   :  { %v19394_v14 = vld [vmem:[#allocation5 + $0xa4c] sm:$0xf]  ;;  %v13735_v37 = vor.u32 %v19330_v11, %v13732_v12  ;;  %7074 = vmatpush.bf16.msrb.mxu3 %v14535_v17 }
 0x337   :  { %v13988_v21 = vld [vmem:[#allocation5 + $0xa68] sm:$0xf0] }
 0x338   :  { %v19458_v24 = vld [vmem:[#allocation5 + $0xc4c] sm:$0xf]  ;;  %v13991_v39 = vor.u32 %v19394_v14, %v13988_v21  ;;  %7036 = vmatpush.bf16.msrb.mxu0 %v13735_v37 }
 0x339   :  { %v14244_v26 = vld [vmem:[#allocation5 + $0xc68] sm:$0xf0] }
 0x33a   :  { %v19522_v27 = vld [vmem:[#allocation5 + $0xe4c] sm:$0xf]  ;;  %v14247_v43 = vor.u32 %v19458_v24, %v14244_v26  ;;  %7049 = vmatpush.bf16.msrb.mxu1 %v13991_v39 }
 0x33b   :  { %v14500_v32 = vld [vmem:[#allocation5 + $0xe68] sm:$0xf0] }
 0x33c   :  { %v19322_v34 = vld [vmem:[#allocation5 + $0x80c] sm:$0xf]  ;;  %v14503_v49 = vor.u32 %v19522_v27, %v14500_v32  ;;  %7062 = vmatpush.bf16.msrb.mxu2 %v14247_v43 }
 0x33d   :  { %v13700_v36 = vld [vmem:[#allocation5 + $0x828] sm:$0xf0] }
 0x33e   :  { %v19386_v45 = vld [vmem:[#allocation5 + $0xa0c] sm:$0xf]  ;;  %v13703_v58 = vor.u32 %v19322_v34, %v13700_v36  ;;  %7075 = vmatpush.bf16.msrb.mxu3 %v14503_v49 }
 0x33f   :  { %v13956_v46 = vld [vmem:[#allocation5 + $0xa28] sm:$0xf0] }
 0x340   :  { %v19450_v47 = vld [vmem:[#allocation5 + $0xc0c] sm:$0xf]  ;;  %v13959_v61 = vor.u32 %v19386_v45, %v13956_v46  ;;  %7037 = vmatpush.bf16.msrb.mxu0 %v13703_v58 }
 0x341   :  { %v14212_v50 = vld [vmem:[#allocation5 + $0xc28] sm:$0xf0] }
 0x342   :  { %v19514_v51 = vld [vmem:[#allocation5 + $0xe0c] sm:$0xf]  ;;  %v14215_v56 = vor.u32 %v19450_v47, %v14212_v50  ;;  %7050 = vmatpush.bf16.msrb.mxu1 %v13959_v61 }
 0x343   :  { %v14468_v52 = vld [vmem:[#allocation5 + $0xe28] sm:$0xf0]  ;;  %7038 = vmatmul.bf16.vlgmr.msrb.gmra.mxu0 %v20981_v41 }
 0x344   :  { %v19634_v16 = vld [vmem:[#allocation5 + $0x11cc] sm:$0xf]  ;;  %v14471_v1 = vor.u32 %v19514_v51, %v14468_v52  ;;  %7063 = vmatpush.bf16.msrb.mxu2 %v14215_v56 }
 0x345   :  { %v14948_v54 = vld [vmem:[#allocation5 + $0x11e8] sm:$0xf0]  ;;  %7051 = vmatmul.bf16.vlgmr.msrb.gmra.mxu1 %v20985_v44 }
 0x346   :  { %v19698_v55 = vld [vmem:[#allocation5 + $0x13cc] sm:$0xf]  ;;  %v14951_v2 = vor.u32 %v19634_v16, %v14948_v54  ;;  %7076 = vmatpush.bf16.msrb.mxu3 %v14471_v1  ;;  %v6844_v1 = vpop.f32.mrf.mxu1 }
 0x347   :  { %v15204_v59 = vld [vmem:[#allocation5 + $0x13e8] sm:$0xf0]  ;;  %7064 = vmatmul.bf16.vlgmr.msrb.gmra.mxu2 %v20979_v38 }
 0x348   :  { %v19762_v62 = vld [vmem:[#allocation5 + $0x15cc] sm:$0xf]  ;;  %v15207_v3 = vor.u32 %v19698_v55, %v15204_v59  ;;  %7082 = vmatpush.bf16.msra.mxu0 %v14951_v2  ;;  %v6831_v59 = vpop.f32.mrf.mxu0 }
 0x349   :  { %v15460_v60 = vld [vmem:[#allocation5 + $0x15e8] sm:$0xf0]  ;;  %7077 = vmatmul.bf16.vlgmr.msrb.gmra.mxu3 %v20983_v42 }
 0x34a   :  { %v19826_v63 = vld [vmem:[#allocation5 + $0x17cc] sm:$0xf]  ;;  %v15463_v4 = vor.u32 %v19762_v62, %v15460_v60  ;;  %7095 = vmatpush.bf16.msra.mxu1 %v15207_v3 }
 0x34b   :  { %v15716_v0 = vld [vmem:[#allocation5 + $0x17e8] sm:$0xf0] }
 0x34c   :  { %v19626_v5 = vld [vmem:[#allocation5 + $0x118c] sm:$0xf]  ;;  %v15719_v13 = vor.u32 %v19826_v63, %v15716_v0  ;;  %7108 = vmatpush.bf16.msra.mxu2 %v15463_v4  ;;  %v6832_v0 = vadd.f32 %v6831_v59, %v21073_v8 }
 0x34d   :  { %v14916_v6 = vld [vmem:[#allocation5 + $0x11a8] sm:$0xf0] }
 0x34e   :  { %v19690_v7 = vld [vmem:[#allocation5 + $0x138c] sm:$0xf]  ;;  %v14919_v15 = vor.u32 %v19626_v5, %v14916_v6  ;;  %7121 = vmatpush.bf16.msra.mxu3 %v15719_v13  ;;  %v6845_v13 = vadd.f32 %v6844_v1, %v6832_v0 }
 0x34f   :  { %v15172_v9 = vld [vmem:[#allocation5 + $0x13a8] sm:$0xf0] }
 0x350   :  { %v19754_v10 = vld [vmem:[#allocation5 + $0x158c] sm:$0xf]  ;;  %v15175_v17 = vor.u32 %v19690_v7, %v15172_v9  ;;  %7083 = vmatpush.bf16.msra.mxu0 %v14919_v15 }
 0x351   :  { %v15428_v11 = vld [vmem:[#allocation5 + $0x15a8] sm:$0xf0] }
 0x352   :  { %v19818_v12 = vld [vmem:[#allocation5 + $0x178c] sm:$0xf]  ;;  %v15431_v21 = vor.u32 %v19754_v10, %v15428_v11  ;;  %7096 = vmatpush.bf16.msra.mxu1 %v15175_v17  ;;  %v6857_v17 = vpop.f32.mrf.mxu2 }
 0x353   :  { %v15684_v14 = vld [vmem:[#allocation5 + $0x17a8] sm:$0xf0] }
 0x354   :  { %v19618_v24 = vld [vmem:[#allocation5 + $0x114c] sm:$0xf]  ;;  %v15687_v32 = vor.u32 %v19818_v12, %v15684_v14  ;;  %7109 = vmatpush.bf16.msra.mxu2 %v15431_v21 }
 0x355   :  { %v14884_v26 = vld [vmem:[#allocation5 + $0x1168] sm:$0xf0] }
 0x356   :  { %v19682_v27 = vld [vmem:[#allocation5 + $0x134c] sm:$0xf]  ;;  %v14887_v45 = vor.u32 %v19618_v24, %v14884_v26  ;;  %7122 = vmatpush.bf16.msra.mxu3 %v15687_v32  ;;  %v6870_v32 = vpop.f32.mrf.mxu3 }
 0x357   :  { %v15140_v37 = vld [vmem:[#allocation5 + $0x1368] sm:$0xf0] }
 0x358   :  { %v19746_v34 = vld [vmem:[#allocation5 + $0x154c] sm:$0xf]  ;;  %v15143_v46 = vor.u32 %v19682_v27, %v15140_v37  ;;  %7084 = vmatpush.bf16.msra.mxu0 %v14887_v45  ;;  %v6858_v27 = vadd.f32 %v6857_v17, %v6845_v13 }
 0x359   :  { %v15396_v36 = vld [vmem:[#allocation5 + $0x1568] sm:$0xf0] }
 0x35a   :  { %v19810_v39 = vld [vmem:[#allocation5 + $0x174c] sm:$0xf]  ;;  %v15399_v47 = vor.u32 %v19746_v34, %v15396_v36  ;;  %7097 = vmatpush.bf16.msra.mxu1 %v15143_v46  ;;  %v6859_v1 = vpop.f32.mrf.mxu2 }
 0x35b   :  { %v15652_v43 = vld [vmem:[#allocation5 + $0x1768] sm:$0xf0] }
 0x35c   :  { %v19610_v48 = vld [vmem:[#allocation5 + $0x110c] sm:$0xf]  ;;  %v15655_v51 = vor.u32 %v19810_v39, %v15652_v43  ;;  %7110 = vmatpush.bf16.msra.mxu2 %v15399_v47  ;;  %v21080_v39 = vadd.f32 %v6870_v32, %v6858_v27  ;;  %v6833_v43 = vpop.f32.mrf.mxu0 }
 0x35d   :  { %v14852_v49 = vld [vmem:[#allocation5 + $0x1128] sm:$0xf0] }
 0x35e   :  { %v19674_v50 = vld [vmem:[#allocation5 + $0x130c] sm:$0xf]  ;;  %v14855_v58 = vor.u32 %v19610_v48, %v14852_v49  ;;  %7123 = vmatpush.bf16.msra.mxu3 %v15655_v51 }
 0x35f   :  { %v15108_v52 = vld [vmem:[#allocation5 + $0x1328] sm:$0xf0] }
 0x360   :  { %v19738_v53 = vld [vmem:[#allocation5 + $0x150c] sm:$0xf]  ;;  %v15111_v62 = vor.u32 %v19674_v50, %v15108_v52  ;;  %7085 = vmatpush.bf16.msra.mxu0 %v14855_v58  ;;  %v6846_v50 = vpop.f32.mrf.mxu1 }
 0x361   :  { %v15364_v16 = vld [vmem:[#allocation5 + $0x1528] sm:$0xf0] }
 0x362   :  { %v19802_v54 = vld [vmem:[#allocation5 + $0x170c] sm:$0xf]  ;;  %v15367_v60 = vor.u32 %v19738_v53, %v15364_v16  ;;  %7098 = vmatpush.bf16.msra.mxu1 %v15111_v62 }
 0x363   :  { %v15620_v55 = vld [vmem:[#allocation5 + $0x1728] sm:$0xf0] }
 0x364   :  { %v19602_v61 = vld [vmem:[#allocation5 + $0x10cc] sm:$0xf]  ;;  %v15623_v2 = vor.u32 %v19802_v54, %v15620_v55  ;;  %7111 = vmatpush.bf16.msra.mxu2 %v15367_v60 }
 0x365   :  { %v14820_v56 = vld [vmem:[#allocation5 + $0x10e8] sm:$0xf0] }
 0x366   :  { %v19666_v63 = vld [vmem:[#allocation5 + $0x12cc] sm:$0xf]  ;;  %v14823_v9 = vor.u32 %v19602_v61, %v14820_v56  ;;  %7124 = vmatpush.bf16.msra.mxu3 %v15623_v2 }
 0x367   :  { %v15076_v3 = vld [vmem:[#allocation5 + $0x12e8] sm:$0xf0] }
 0x368   :  { %v19730_v4 = vld [vmem:[#allocation5 + $0x14cc] sm:$0xf]  ;;  %v15079_v10 = vor.u32 %v19666_v63, %v15076_v3  ;;  %7086 = vmatpush.bf16.msra.mxu0 %v14823_v9 }
 0x369   :  { %v15332_v5 = vld [vmem:[#allocation5 + $0x14e8] sm:$0xf0] }
 0x36a   :  { %v19794_v6 = vld [vmem:[#allocation5 + $0x16cc] sm:$0xf]  ;;  %v15335_v11 = vor.u32 %v19730_v4, %v15332_v5  ;;  %7099 = vmatpush.bf16.msra.mxu1 %v15079_v10 }
 0x36b   :  { %v15588_v7 = vld [vmem:[#allocation5 + $0x16e8] sm:$0xf0] }
 0x36c   :  { %v19594_v12 = vld [vmem:[#allocation5 + $0x108c] sm:$0xf]  ;;  %v15591_v8 = vor.u32 %v19794_v6, %v15588_v7  ;;  %7112 = vmatpush.bf16.msra.mxu2 %v15335_v11  ;;  %v6872_v6 = vpop.f32.mrf.mxu3 }
 0x36d   :  { %v14788_v14 = vld [vmem:[#allocation5 + $0x10a8] sm:$0xf0] }
 0x36e   :  { %v19658_v15 = vld [vmem:[#allocation5 + $0x128c] sm:$0xf]  ;;  %v14791_v36 = vor.u32 %v19594_v12, %v14788_v14  ;;  %7125 = vmatpush.bf16.msra.mxu3 %v15591_v8 }
 0x36f   :  { %v15044_v21 = vld [vmem:[#allocation5 + $0x12a8] sm:$0xf0] }
 0x370   :  { %v19722_v24 = vld [vmem:[#allocation5 + $0x148c] sm:$0xf]  ;;  %v15047_v45 = vor.u32 %v19658_v15, %v15044_v21  ;;  %7087 = vmatpush.bf16.msra.mxu0 %v14791_v36 }
 0x371   :  { %v15300_v26 = vld [vmem:[#allocation5 + $0x14a8] sm:$0xf0] }
 0x372   :  { %v19786_v37 = vld [vmem:[#allocation5 + $0x168c] sm:$0xf]  ;;  %v15303_v46 = vor.u32 %v19722_v24, %v15300_v26  ;;  %7100 = vmatpush.bf16.msra.mxu1 %v15047_v45 }
 0x373   :  { %v15556_v34 = vld [vmem:[#allocation5 + $0x16a8] sm:$0xf0] }
 0x374   :  { %v19586_v47 = vld [vmem:[#allocation5 + $0x104c] sm:$0xf]  ;;  %v15559_v51 = vor.u32 %v19786_v37, %v15556_v34  ;;  %7113 = vmatpush.bf16.msra.mxu2 %v15303_v46 }
 0x375   :  { %v14756_v48 = vld [vmem:[#allocation5 + $0x1068] sm:$0xf0] }
 0x376   :  { %v19650_v49 = vld [vmem:[#allocation5 + $0x124c] sm:$0xf]  ;;  %v14759_v58 = vor.u32 %v19586_v47, %v14756_v48  ;;  %7126 = vmatpush.bf16.msra.mxu3 %v15559_v51 }
 0x377   :  { %v15012_v52 = vld [vmem:[#allocation5 + $0x1268] sm:$0xf0] }
 0x378   :  { %v19714_v53 = vld [vmem:[#allocation5 + $0x144c] sm:$0xf]  ;;  %v15015_v60 = vor.u32 %v19650_v49, %v15012_v52  ;;  %7088 = vmatpush.bf16.msra.mxu0 %v14759_v58 }
 0x379   :  { %v15268_v16 = vld [vmem:[#allocation5 + $0x1468] sm:$0xf0] }
 0x37a   :  { %v19778_v54 = vld [vmem:[#allocation5 + $0x164c] sm:$0xf]  ;;  %v15271_v61 = vor.u32 %v19714_v53, %v15268_v16  ;;  %7101 = vmatpush.bf16.msra.mxu1 %v15015_v60 }
 0x37b   :  { %v15524_v55 = vld [vmem:[#allocation5 + $0x1668] sm:$0xf0] }
 0x37c   :  { %v19578_v59 = vld [vmem:[#allocation5 + $0x100c] sm:$0xf]  ;;  %v15527_v2 = vor.u32 %v19778_v54, %v15524_v55  ;;  %7114 = vmatpush.bf16.msra.mxu2 %v15271_v61 }
 0x37d   :  { %v14724_v62 = vld [vmem:[#allocation5 + $0x1028] sm:$0xf0] }
 0x37e   :  { %v19642_v56 = vld [vmem:[#allocation5 + $0x120c] sm:$0xf]  ;;  %v14727_v10 = vor.u32 %v19578_v59, %v14724_v62  ;;  %7127 = vmatpush.bf16.msra.mxu3 %v15527_v2 }
 0x37f   :  { %v14980_v63 = vld [vmem:[#allocation5 + $0x1228] sm:$0xf0] }
 0x380   :  { %v19706_v0 = vld [vmem:[#allocation5 + $0x140c] sm:$0xf]  ;;  %v14983_v15 = vor.u32 %v19642_v56, %v14980_v63  ;;  %7089 = vmatpush.bf16.msra.mxu0 %v14727_v10 }
 0x381   :  { %v15236_v3 = vld [vmem:[#allocation5 + $0x1428] sm:$0xf0] }
 0x382   :  { %v19770_v4 = vld [vmem:[#allocation5 + $0x160c] sm:$0xf]  ;;  %v15239_v17 = vor.u32 %v19706_v0, %v15236_v3  ;;  %7102 = vmatpush.bf16.msra.mxu1 %v14983_v15 }
 0x383   :  { %v15492_v5 = vld [vmem:[#allocation5 + $0x1628] sm:$0xf0]  ;;  %7090 = vmatmul.bf16.vlgmr.msra.gmra.mxu0 %v20991_v25 }
 0x384   :  { %v19890_v7 = vld [vmem:[#allocation5 + $0x19cc] sm:$0xf]  ;;  %v15495_v24 = vor.u32 %v19770_v4, %v15492_v5  ;;  %7115 = vmatpush.bf16.msra.mxu2 %v15239_v17 }
 0x385   :  { %v15972_v13 = vld [vmem:[#allocation5 + $0x19e8] sm:$0xf0]  ;;  %7103 = vmatmul.bf16.vlgmr.msra.gmra.mxu1 %v20995_v30 }
 0x386   :  { %v19954_v9 = vld [vmem:[#allocation5 + $0x1bcc] sm:$0xf]  ;;  %v15975_v26 = vor.u32 %v19890_v7, %v15972_v13  ;;  %7128 = vmatpush.bf16.msra.mxu3 %v15495_v24  ;;  %v6883_v13 = vpop.f32.mrf.mxu0 }
 0x387   :  { %v16228_v11 = vld [vmem:[#allocation5 + $0x1be8] sm:$0xf0]  ;;  %7116 = vmatmul.bf16.vlgmr.msra.gmra.mxu2 %v20993_v29 }
 0x388   :  { %v20018_v12 = vld [vmem:[#allocation5 + $0x1dcc] sm:$0xf]  ;;  %v16231_v27 = vor.u32 %v19954_v9, %v16228_v11  ;;  %7134 = vmatpush.bf16.msrb.mxu0 %v15975_v26  ;;  %v6884_v11 = vadd.f32 %v6883_v13, %v21080_v39 }
 0x389   :  { %v16484_v14 = vld [vmem:[#allocation5 + $0x1de8] sm:$0xf0]  ;;  %7129 = vmatmul.bf16.vlgmr.msra.gmra.mxu3 %v20997_v33 }
 0x38a   :  { %v20082_v8 = vld [vmem:[#allocation5 + $0x1fcc] sm:$0xf]  ;;  %v16487_v32 = vor.u32 %v20018_v12, %v16484_v14  ;;  %7147 = vmatpush.bf16.msrb.mxu1 %v16231_v27  ;;  %v6896_v14 = vpop.f32.mrf.mxu1 }
 0x38b   :  { %v16740_v21 = vld [vmem:[#allocation5 + $0x1fe8] sm:$0xf0]  ;;  %v6897_v27 = vadd.f32 %v6896_v14, %v6884_v11 }
 0x38c   :  { %v19882_v37 = vld [vmem:[#allocation5 + $0x198c] sm:$0xf]  ;;  %v16743_v43 = vor.u32 %v20082_v8, %v16740_v21  ;;  %7160 = vmatpush.bf16.msrb.mxu2 %v16487_v32 }
 0x38d   :  { %v15940_v34 = vld [vmem:[#allocation5 + $0x19a8] sm:$0xf0] }
 0x38e   :  { %v19946_v36 = vld [vmem:[#allocation5 + $0x1b8c] sm:$0xf]  ;;  %v15943_v50 = vor.u32 %v19882_v37, %v15940_v34  ;;  %7173 = vmatpush.bf16.msrb.mxu3 %v16743_v43 }
 0x38f   :  { %v16196_v45 = vld [vmem:[#allocation5 + $0x1ba8] sm:$0xf0] }
 0x390   :  { %v20010_v46 = vld [vmem:[#allocation5 + $0x1d8c] sm:$0xf]  ;;  %v16199_v51 = vor.u32 %v19946_v36, %v16196_v45  ;;  %7135 = vmatpush.bf16.msrb.mxu0 %v15943_v50 }
 0x391   :  { %v16452_v47 = vld [vmem:[#allocation5 + $0x1da8] sm:$0xf0] }
 0x392   :  { %v20074_v48 = vld [vmem:[#allocation5 + $0x1f8c] sm:$0xf]  ;;  %v16455_v52 = vor.u32 %v20010_v46, %v16452_v47  ;;  %7148 = vmatpush.bf16.msrb.mxu1 %v16199_v51  ;;  %v6909_v51 = vpop.f32.mrf.mxu2 }
 0x393   :  { %v16708_v49 = vld [vmem:[#allocation5 + $0x1fa8] sm:$0xf0] }
 0x394   :  { %v19874_v53 = vld [vmem:[#allocation5 + $0x194c] sm:$0xf]  ;;  %v16711_v55 = vor.u32 %v20074_v48, %v16708_v49  ;;  %7161 = vmatpush.bf16.msrb.mxu2 %v16455_v52 }
 0x395   :  { %v15908_v16 = vld [vmem:[#allocation5 + $0x1968] sm:$0xf0] }
 0x396   :  { %v19938_v54 = vld [vmem:[#allocation5 + $0x1b4c] sm:$0xf]  ;;  %v15911_v56 = vor.u32 %v19874_v53, %v15908_v16  ;;  %7174 = vmatpush.bf16.msrb.mxu3 %v16711_v55  ;;  %v6922_v55 = vpop.f32.mrf.mxu3 }
 0x397   :  { %v16164_v58 = vld [vmem:[#allocation5 + $0x1b68] sm:$0xf0] }
 0x398   :  { %v20002_v59 = vld [vmem:[#allocation5 + $0x1d4c] sm:$0xf]  ;;  %v16167_v63 = vor.u32 %v19938_v54, %v16164_v58  ;;  %7136 = vmatpush.bf16.msrb.mxu0 %v15911_v56  ;;  %v6910_v54 = vadd.f32 %v6909_v51, %v6897_v27  ;;  %v13674_v51 = vld [vmem:[#allocation5 + $0x7d0] sm:$0xf] }
 0x399   :  { %v16420_v62 = vld [vmem:[#allocation5 + $0x1d68] sm:$0xf0] }
 0x39a   :  { %v20066_v60 = vld [vmem:[#allocation5 + $0x1f4c] sm:$0xf]  ;;  %v16423_v0 = vor.u32 %v20002_v59, %v16420_v62  ;;  %7149 = vmatpush.bf16.msrb.mxu1 %v16167_v63  ;;  %v6885_v62 = vpop.f32.mrf.mxu0  ;;  %v21087_v56 = vadd.f32 %v6922_v55, %v6910_v54 }
 0x39b   :  { %v16676_v61 = vld [vmem:[#allocation5 + $0x1f68] sm:$0xf0]  ;;  %v13130_v62 = vld [vmem:[#allocation5 + $0x390] sm:$0xf] }
 0x39c   :  { %v19866_v1 = vld [vmem:[#allocation5 + $0x190c] sm:$0xf]  ;;  %v16679_v4 = vor.u32 %v20066_v60, %v16676_v61  ;;  %7162 = vmatpush.bf16.msrb.mxu2 %v16423_v0  ;;  %v6898_v61 = vpop.f32.mrf.mxu1 }
 0x39d   :  { %v15876_v2 = vld [vmem:[#allocation5 + $0x1928] sm:$0xf0]  ;;  %v19183_v61 = vld [vmem:[#allocation5 + $0x3ac] sm:$0xf0] }
 0x39e   :  { %v19930_v3 = vld [vmem:[#allocation5 + $0x1b0c] sm:$0xf]  ;;  %v15879_v12 = vor.u32 %v19866_v1, %v15876_v2  ;;  %7175 = vmatpush.bf16.msrb.mxu3 %v16679_v4 }
 0x39f   :  { %v16132_v5 = vld [vmem:[#allocation5 + $0x1b28] sm:$0xf0] }
 0x3a0   :  { %v19994_v6 = vld [vmem:[#allocation5 + $0x1d0c] sm:$0xf]  ;;  %v16135_v15 = vor.u32 %v19930_v3, %v16132_v5  ;;  %7137 = vmatpush.bf16.msrb.mxu0 %v15879_v12 }
 0x3a1   :  { %v16388_v7 = vld [vmem:[#allocation5 + $0x1d28] sm:$0xf0] }
 0x3a2   :  { %v20058_v9 = vld [vmem:[#allocation5 + $0x1f0c] sm:$0xf]  ;;  %v16391_v17 = vor.u32 %v19994_v6, %v16388_v7  ;;  %7150 = vmatpush.bf16.msrb.mxu1 %v16135_v15 }
 0x3a3   :  { %v16644_v10 = vld [vmem:[#allocation5 + $0x1f28] sm:$0xf0] }
 0x3a4   :  { %v19858_v8 = vld [vmem:[#allocation5 + $0x18cc] sm:$0xf]  ;;  %v16647_v26 = vor.u32 %v20058_v9, %v16644_v10  ;;  %7163 = vmatpush.bf16.msrb.mxu2 %v16391_v17 }
 0x3a5   :  { %v15844_v21 = vld [vmem:[#allocation5 + $0x18e8] sm:$0xf0] }
 0x3a6   :  { %v19922_v24 = vld [vmem:[#allocation5 + $0x1acc] sm:$0xf]  ;;  %v15847_v45 = vor.u32 %v19858_v8, %v15844_v21  ;;  %7176 = vmatpush.bf16.msrb.mxu3 %v16647_v26 }
 0x3a7   :  { %v16100_v32 = vld [vmem:[#allocation5 + $0x1ae8] sm:$0xf0] }
 0x3a8   :  { %v19986_v37 = vld [vmem:[#allocation5 + $0x1ccc] sm:$0xf]  ;;  %v16103_v39 = vor.u32 %v19922_v24, %v16100_v32  ;;  %7138 = vmatpush.bf16.msrb.mxu0 %v15847_v45  ;;  %v6924_v45 = vpop.f32.mrf.mxu3 }
 0x3a9   :  { %v16356_v34 = vld [vmem:[#allocation5 + $0x1ce8] sm:$0xf0]  ;;  %v13578_v45 = vld [vmem:[#allocation5 + $0x710] sm:$0xf] }
 0x3aa   :  { %v20050_v36 = vld [vmem:[#allocation5 + $0x1ecc] sm:$0xf]  ;;  %v16359_v46 = vor.u32 %v19986_v37, %v16356_v34  ;;  %7151 = vmatpush.bf16.msrb.mxu1 %v16103_v39  ;;  %v6911_v37 = vpop.f32.mrf.mxu2  ;;  %v12906_v34 = vld [vmem:[#allocation5 + $0x1d0] sm:$0xf] }
 0x3ab   :  { %v16612_v43 = vld [vmem:[#allocation5 + $0x1ee8] sm:$0xf0]  ;;  %v19167_v37 = vld [vmem:[#allocation5 + $0x32c] sm:$0xf0] }
 0x3ac   :  { %v19850_v47 = vld [vmem:[#allocation5 + $0x188c] sm:$0xf]  ;;  %v16615_v50 = vor.u32 %v20050_v36, %v16612_v43  ;;  %7164 = vmatpush.bf16.msrb.mxu2 %v16359_v46  ;;  %v19127_v36 = vld [vmem:[#allocation5 + $0x1ec] sm:$0xf0] }
 0x3ad   :  { %v15812_v48 = vld [vmem:[#allocation5 + $0x18a8] sm:$0xf0]  ;;  %v13162_v43 = vld [vmem:[#allocation5 + $0x3d0] sm:$0xf] }
 0x3ae   :  { %v19914_v49 = vld [vmem:[#allocation5 + $0x1a8c] sm:$0xf]  ;;  %v15815_v60 = vor.u32 %v19850_v47, %v15812_v48  ;;  %7177 = vmatpush.bf16.msrb.mxu3 %v16615_v50  ;;  %v19191_v46 = vld [vmem:[#allocation5 + $0x3ec] sm:$0xf0] }
 0x3af   :  { %v16068_v52 = vld [vmem:[#allocation5 + $0x1aa8] sm:$0xf0]  ;;  %v13418_v47 = vld [vmem:[#allocation5 + $0x5d0] sm:$0xf]  ;;  %v13163_v54 = vor.u32 %v19191_v46, %v13162_v43  ;;  %v6935_v43 = vpop.f32.mrf.mxu0 }
 0x3b0   :  { %v19978_v53 = vld [vmem:[#allocation5 + $0x1c8c] sm:$0xf]  ;;  %v16071_v63 = vor.u32 %v19914_v49, %v16068_v52  ;;  %7139 = vmatpush.bf16.msrb.mxu0 %v15815_v60  ;;  %v19255_v48 = vld [vmem:[#allocation5 + $0x5ec] sm:$0xf0]  ;;  %v6936_v46 = vadd.f32 %v6935_v43, %v21087_v56 }
 0x3b1   :  { %v16324_v16 = vld [vmem:[#allocation5 + $0x1ca8] sm:$0xf0]  ;;  %v19319_v52 = vld [vmem:[#allocation5 + $0x7ec] sm:$0xf0]  ;;  %v13419_v55 = vor.u32 %v19255_v48, %v13418_v47  ;;  %v6948_v48 = vpop.f32.mrf.mxu1 }
 0x3b2   :  { %v20042_v58 = vld [vmem:[#allocation5 + $0x1e8c] sm:$0xf]  ;;  %v16327_v0 = vor.u32 %v19978_v53, %v16324_v16  ;;  %7152 = vmatpush.bf16.msrb.mxu1 %v16071_v63  ;;  %v12907_v16 = vor.u32 %v19127_v36, %v12906_v34  ;;  %v13675_v60 = vor.u32 %v19319_v52, %v13674_v51  ;;  %v13386_v63 = vld [vmem:[#allocation5 + $0x590] sm:$0xf] }
 0x3b3   :  { %v16580_v59 = vld [vmem:[#allocation5 + $0x1ea8] sm:$0xf0]  ;;  %v13322_v34 = vld [vmem:[#allocation5 + $0x510] sm:$0xf] }
 0x3b4   :  { %v19842_v1 = vld [vmem:[#allocation5 + $0x184c] sm:$0xf]  ;;  %v16583_v4 = vor.u32 %v20042_v58, %v16580_v59  ;;  %7165 = vmatpush.bf16.msrb.mxu2 %v16327_v0  ;;  %v12874_v58 = vld [vmem:[#allocation5 + $0x190] sm:$0xf] }
 0x3b5   :  { %v15780_v2 = vld [vmem:[#allocation5 + $0x1868] sm:$0xf0]  ;;  %v19119_v59 = vld [vmem:[#allocation5 + $0x1ac] sm:$0xf0] }
 0x3b6   :  { %v19906_v3 = vld [vmem:[#allocation5 + $0x1a4c] sm:$0xf]  ;;  %v15783_v10 = vor.u32 %v19842_v1, %v15780_v2  ;;  %7178 = vmatpush.bf16.msrb.mxu3 %v16583_v4  ;;  %v19247_v0 = vld [vmem:[#allocation5 + $0x5ac] sm:$0xf0]  ;;  %v13131_v4 = vor.u32 %v19183_v61, %v13130_v62 }
 0x3b7   :  { %v16036_v5 = vld [vmem:[#allocation5 + $0x1a68] sm:$0xf0]  ;;  %v13642_v1 = vld [vmem:[#allocation5 + $0x790] sm:$0xf] }
 0x3b8   :  { %v19970_v6 = vld [vmem:[#allocation5 + $0x1c4c] sm:$0xf]  ;;  %v16039_v14 = vor.u32 %v19906_v3, %v16036_v5  ;;  %7140 = vmatpush.bf16.msrb.mxu0 %v15783_v10  ;;  %v19311_v2 = vld [vmem:[#allocation5 + $0x7ac] sm:$0xf0]  ;;  %v12875_v3 = vor.u32 %v19119_v59, %v12874_v58  ;;  %v13387_v5 = vor.u32 %v19247_v0, %v13386_v63 }
 0x3b9   :  { %v16292_v7 = vld [vmem:[#allocation5 + $0x1c68] sm:$0xf0]  ;;  %v19175_v10 = vld [vmem:[#allocation5 + $0x36c] sm:$0xf0] }
 0x3ba   :  { %v20034_v13 = vld [vmem:[#allocation5 + $0x1e4c] sm:$0xf]  ;;  %v16295_v15 = vor.u32 %v19970_v6, %v16292_v7  ;;  %7153 = vmatpush.bf16.msrb.mxu1 %v16039_v14  ;;  %v12842_v6 = vld [vmem:[#allocation5 + $0x150] sm:$0xf] }
 0x3bb   :  { %v16548_v9 = vld [vmem:[#allocation5 + $0x1e68] sm:$0xf0]  ;;  %v19111_v7 = vld [vmem:[#allocation5 + $0x16c] sm:$0xf0] }
 0x3bc   :  { %v19834_v11 = vld [vmem:[#allocation5 + $0x180c] sm:$0xf]  ;;  %v16551_v24 = vor.u32 %v20034_v13, %v16548_v9  ;;  %7166 = vmatpush.bf16.msrb.mxu2 %v16295_v15  ;;  %v13098_v13 = vld [vmem:[#allocation5 + $0x350] sm:$0xf]  ;;  %v13643_v9 = vor.u32 %v19311_v2, %v13642_v1 }
 0x3bd   :  { %v15748_v12 = vld [vmem:[#allocation5 + $0x1828] sm:$0xf0]  ;;  %v13610_v14 = vld [vmem:[#allocation5 + $0x750] sm:$0xf] }
 0x3be   :  { %v19898_v17 = vld [vmem:[#allocation5 + $0x1a0c] sm:$0xf]  ;;  %v15751_v39 = vor.u32 %v19834_v11, %v15748_v12  ;;  %7179 = vmatpush.bf16.msrb.mxu3 %v16551_v24  ;;  %v13354_v11 = vld [vmem:[#allocation5 + $0x550] sm:$0xf] }
 0x3bf   :  { %v16004_v8 = vld [vmem:[#allocation5 + $0x1a28] sm:$0xf0]  ;;  %v19239_v12 = vld [vmem:[#allocation5 + $0x56c] sm:$0xf0] }
 0x3c0   :  { %v19962_v21 = vld [vmem:[#allocation5 + $0x1c0c] sm:$0xf]  ;;  %v16007_v49 = vor.u32 %v19898_v17, %v16004_v8  ;;  %7141 = vmatpush.bf16.msrb.mxu0 %v15751_v39  ;;  %v19303_v15 = vld [vmem:[#allocation5 + $0x76c] sm:$0xf0]  ;;  %v12843_v17 = vor.u32 %v19111_v7, %v12842_v6  ;;  %v13099_v8 = vor.u32 %v19175_v10, %v13098_v13 }
 0x3c1   :  { %v16260_v26 = vld [vmem:[#allocation5 + $0x1c28] sm:$0xf0]  ;;  %v12810_v24 = vld [vmem:[#allocation5 + $0x110] sm:$0xf] }
 0x3c2   :  { %v20026_v27 = vld [vmem:[#allocation5 + $0x1e0c] sm:$0xf]  ;;  %v16263_v50 = vor.u32 %v19962_v21, %v16260_v26  ;;  %7154 = vmatpush.bf16.msrb.mxu1 %v16007_v49  ;;  %v13355_v21 = vor.u32 %v19239_v12, %v13354_v11  ;;  %v19103_v26 = vld [vmem:[#allocation5 + $0x12c] sm:$0xf0]  ;;  %v6937_v12 = vpop.f32.mrf.mxu0 }
 0x3c3   :  { %v16516_v32 = vld [vmem:[#allocation5 + $0x1e28] sm:$0xf0]  ;;  %7142 = vmatmul.bf16.vlgmr.msrb.gmra.mxu0 %v21003_v23  ;;  %v19231_v36 = vld [vmem:[#allocation5 + $0x52c] sm:$0xf0]  ;;  %v12811_v47 = vor.u32 %v19103_v26, %v12810_v24 }
 0x3c4   :  { %v16519_v53 = vor.u32 %v20026_v27, %v16516_v32  ;;  %7167 = vmatpush.bf16.msrb.mxu2 %v16263_v50  ;;  %7186 = vmatpush.bf16.msra.mxu0 %v12907_v16  ;;  %v13066_v27 = vld [vmem:[#allocation5 + $0x310] sm:$0xf]  ;;  %v13611_v32 = vor.u32 %v19303_v15, %v13610_v14  ;;  %v13323_v50 = vor.u32 %v19231_v36, %v13322_v34  ;;  %v6950_v15 = vpop.f32.mrf.mxu1 }
 0x3c5   :  { %7155 = vmatmul.bf16.vlgmr.msrb.gmra.mxu1 %v21007_v31  ;;  %v19295_v39 = vld [vmem:[#allocation5 + $0x72c] sm:$0xf0]  ;;  %v13067_v49 = vor.u32 %v19167_v37, %v13066_v27 }
 0x3c6   :  { %7180 = vmatpush.bf16.msrb.mxu3 %v16519_v53  ;;  %7199 = vmatpush.bf16.msra.mxu1 %v13163_v54  ;;  %v12778_v51 = vld [vmem:[#allocation5 + $0xd0] sm:$0xf]  ;;  %v13579_v16 = vor.u32 %v19295_v39, %v13578_v45  ;;  %v6949_v54 = vadd.f32 %v6948_v48, %v6936_v46 }
 0x3c7   :  { %7168 = vmatmul.bf16.vlgmr.msrb.gmra.mxu2 %v21005_v28  ;;  %v19095_v52 = vld [vmem:[#allocation5 + $0xec] sm:$0xf0] }
 0x3c8   :  { %7212 = vmatpush.bf16.msra.mxu2 %v13419_v55  ;;  %7187 = vmatpush.bf16.msra.mxu0 %v12875_v3  ;;  %v13034_v53 = vld [vmem:[#allocation5 + $0x2d0] sm:$0xf]  ;;  %v12779_v61 = vor.u32 %v19095_v52, %v12778_v51 }
 0x3c9   :  { %7181 = vmatmul.bf16.vlgmr.msrb.gmra.mxu3 %v21009_v35  ;;  %v19159_v55 = vld [vmem:[#allocation5 + $0x2ec] sm:$0xf0] }
 0x3ca   :  { %7225 = vmatpush.bf16.msra.mxu3 %v13675_v60  ;;  %7200 = vmatpush.bf16.msra.mxu1 %v13131_v4  ;;  %v13290_v58 = vld [vmem:[#allocation5 + $0x4d0] sm:$0xf]  ;;  %v13035_v56 = vor.u32 %v19159_v55, %v13034_v53  ;;  %v6961_v4 = vpop.f32.mrf.mxu2 }
 0x3cb   :  { %v19223_v59 = vld [vmem:[#allocation5 + $0x4ec] sm:$0xf0]  ;;  %v6962_v13 = vadd.f32 %v6961_v4, %v6949_v54 }
 0x3cc   :  { %7213 = vmatpush.bf16.msra.mxu2 %v13387_v5  ;;  %7188 = vmatpush.bf16.msra.mxu0 %v12843_v17  ;;  %v13546_v62 = vld [vmem:[#allocation5 + $0x6d0] sm:$0xf]  ;;  %v13291_v63 = vor.u32 %v19223_v59, %v13290_v58 }
 0x3cd   :  { %v19287_v60 = vld [vmem:[#allocation5 + $0x6ec] sm:$0xf0] }
 0x3ce   :  { %7226 = vmatpush.bf16.msra.mxu3 %v13643_v9  ;;  %7201 = vmatpush.bf16.msra.mxu1 %v13099_v8  ;;  %v12746_v0 = vld [vmem:[#allocation5 + $0x90] sm:$0xf]  ;;  %v13547_v3 = vor.u32 %v19287_v60, %v13546_v62  ;;  %v6974_v9 = vpop.f32.mrf.mxu3 }
 0x3cf   :  { %v19087_v1 = vld [vmem:[#allocation5 + $0xac] sm:$0xf0]  ;;  %v21094_v17 = vadd.f32 %v6974_v9, %v6962_v13 }
 0x3d0   :  { %7214 = vmatpush.bf16.msra.mxu2 %v13355_v21  ;;  %7189 = vmatpush.bf16.msra.mxu0 %v12811_v47  ;;  %v13002_v2 = vld [vmem:[#allocation5 + $0x290] sm:$0xf]  ;;  %v12747_v14 = vor.u32 %v19087_v1, %v12746_v0 }
 0x3d1   :  { %v19151_v5 = vld [vmem:[#allocation5 + $0x2ac] sm:$0xf0]  ;;  %vm8020_vm2 = vcmp.gt.f32.partialorder %v21094_v17, 0.0 }
 0x3d2   :  { %7227 = vmatpush.bf16.msra.mxu3 %v13611_v32  ;;  %7202 = vmatpush.bf16.msra.mxu1 %v13067_v49  ;;  %v13258_v6 = vld [vmem:[#allocation5 + $0x490] sm:$0xf]  ;;  %v13003_v8 = vor.u32 %v19151_v5, %v13002_v2  ;;  %v6963_v58 = vpop.f32.mrf.mxu2 }
 0x3d3   :  { %v19215_v7 = vld [vmem:[#allocation5 + $0x4ac] sm:$0xf0] }
 0x3d4   :  { %7215 = vmatpush.bf16.msra.mxu2 %v13323_v50  ;;  %v13514_v10 = vld [vmem:[#allocation5 + $0x690] sm:$0xf]  ;;  %7190 = vmatpush.bf16.msra.mxu0 %v12779_v61  ;;  %v13259_v21 = vor.u32 %v19215_v7, %v13258_v6 }
 0x3d5   :  { %v19279_v11 = vld [vmem:[#allocation5 + $0x6ac] sm:$0xf0] }
 0x3d6   :  { %7228 = vmatpush.bf16.msra.mxu3 %v13579_v16  ;;  %7203 = vmatpush.bf16.msra.mxu1 %v13035_v56  ;;  %v12714_v24 = vld [vmem:[#allocation5 + $0x50] sm:$0xf]  ;;  %v13515_v32 = vor.u32 %v19279_v11, %v13514_v10  ;;  %v6976_v61 = vpop.f32.mrf.mxu3 }
 0x3d7   :  { %v19079_v26 = vld [vmem:[#allocation5 + $0x6c] sm:$0xf0] }
 0x3d8   :  { %7216 = vmatpush.bf16.msra.mxu2 %v13291_v63  ;;  %v12970_v27 = vld [vmem:[#allocation5 + $0x250] sm:$0xf]  ;;  %7191 = vmatpush.bf16.msra.mxu0 %v12747_v14  ;;  %v12715_v39 = vor.u32 %v19079_v26, %v12714_v24 }
 0x3d9   :  { %v19143_v37 = vld [vmem:[#allocation5 + $0x26c] sm:$0xf0] }
 0x3da   :  { %7229 = vmatpush.bf16.msra.mxu3 %v13547_v3  ;;  %v13226_v34 = vld [vmem:[#allocation5 + $0x450] sm:$0xf]  ;;  %7204 = vmatpush.bf16.msra.mxu1 %v13003_v8  ;;  %v12971_v48 = vor.u32 %v19143_v37, %v12970_v27 }
 0x3db   :  { %v19207_v36 = vld [vmem:[#allocation5 + $0x46c] sm:$0xf0] }
 0x3dc   :  { %v13482_v43 = vld [vmem:[#allocation5 + $0x650] sm:$0xf]  ;;  %7217 = vmatpush.bf16.msra.mxu2 %v13259_v21  ;;  %v13227_v49 = vor.u32 %v19207_v36, %v13226_v34  ;;  %7192 = vmatpush.bf16.msra.mxu0 %v12715_v39 }
 0x3dd   :  { %v19271_v45 = vld [vmem:[#allocation5 + $0x66c] sm:$0xf0] }
 0x3de   :  { %v12682_v46 = vld [vmem:[#allocation5 + $0x10] sm:$0xf]  ;;  %7230 = vmatpush.bf16.msra.mxu3 %v13515_v32  ;;  %v13483_v53 = vor.u32 %v19271_v45, %v13482_v43  ;;  %7205 = vmatpush.bf16.msra.mxu1 %v12971_v48 }
 0x3df   :  { %v19071_v47 = vld [vmem:[#allocation5 + $0x2c] sm:$0xf0] }
 0x3e0   :  { %v12938_v50 = vld [vmem:[#allocation5 + $0x210] sm:$0xf]  ;;  %v12683_v56 = vor.u32 %v19071_v47, %v12682_v46  ;;  %7218 = vmatpush.bf16.msra.mxu2 %v13227_v49 }
 0x3e1   :  { %v19135_v51 = vld [vmem:[#allocation5 + $0x22c] sm:$0xf0] }
 0x3e2   :  { %v13194_v52 = vld [vmem:[#allocation5 + $0x410] sm:$0xf]  ;;  %v12939_v2 = vor.u32 %v19135_v51, %v12938_v50  ;;  %7231 = vmatpush.bf16.msra.mxu3 %v13483_v53  ;;  %7193 = vmatpush.bf16.msra.mxu0 %v12683_v56 }
 0x3e3   :  { %v19199_v16 = vld [vmem:[#allocation5 + $0x42c] sm:$0xf0] }
 0x3e4   :  { %v13450_v54 = vld [vmem:[#allocation5 + $0x610] sm:$0xf]  ;;  %v13195_v3 = vor.u32 %v19199_v16, %v13194_v52  ;;  %7206 = vmatpush.bf16.msra.mxu1 %v12939_v2 }
 0x3e5   :  { %v19263_v55 = vld [vmem:[#allocation5 + $0x62c] sm:$0xf0]  ;;  %7194 = vmatmul.bf16.vlgmr.msra.gmra.mxu0 %v20969_v19 }
 0x3e6   :  { %v13930_v59 = vld [vmem:[#allocation5 + $0x9d0] sm:$0xf]  ;;  %v13451_v6 = vor.u32 %v19263_v55, %v13450_v54  ;;  %7219 = vmatpush.bf16.msra.mxu2 %v13195_v3  ;;  %v20684_v55 = vld [vmem:[#allocation7] sm:$0xff] }
 0x3e7   :  { %v19383_v62 = vld [vmem:[#allocation5 + $0x9ec] sm:$0xf0]  ;;  %7207 = vmatmul.bf16.vlgmr.msra.gmra.mxu1 %v20973_v22  ;;  %v1165_v58 = vperm.slane %v20684_v55, 3 }
 0x3e8   :  { %v14186_v60 = vld [vmem:[#allocation5 + $0xbd0] sm:$0xf]  ;;  %v13931_v7 = vor.u32 %v19383_v62, %v13930_v59  ;;  %7232 = vmatpush.bf16.msra.mxu3 %v13451_v6 }
 0x3e9   :  { %v19447_v63 = vld [vmem:[#allocation5 + $0xbec] sm:$0xf0]  ;;  %7220 = vmatmul.bf16.vlgmr.msra.gmra.mxu2 %v20967_v18 }
 0x3ea   :  { %v14442_v0 = vld [vmem:[#allocation5 + $0xdd0] sm:$0xf]  ;;  %v14187_v13 = vor.u32 %v19447_v63, %v14186_v60  ;;  %7238 = vmatpush.bf16.msrb.mxu0 %v13931_v7 }
 0x3eb   :  { %v19511_v1 = vld [vmem:[#allocation5 + $0xdec] sm:$0xf0]  ;;  %7233 = vmatmul.bf16.vlgmr.msra.gmra.mxu3 %v20971_v20 }
 0x3ec   :  { %v14698_v4 = vld [vmem:[#allocation5 + $0xfd0] sm:$0xf]  ;;  %v14443_v9 = vor.u32 %v19511_v1, %v14442_v0  ;;  %7251 = vmatpush.bf16.msrb.mxu1 %v14187_v13  ;;  %v6987_v1 = vpop.f32.mrf.mxu0  ;;  %v7000_v13 = vpop.f32.mrf.mxu1 }
 0x3ed   :  { %v19575_v5 = vld [vmem:[#allocation5 + $0xfec] sm:$0xf0]  ;;  %v6988_v7 = vadd.f32 %v6987_v1, %v1165_v58 }
 0x3ee   :  { %v13898_v10 = vld [vmem:[#allocation5 + $0x990] sm:$0xf]  ;;  %v14699_v14 = vor.u32 %v19575_v5, %v14698_v4  ;;  %7264 = vmatpush.bf16.msrb.mxu2 %v14443_v9 }
 0x3ef   :  { %v19375_v11 = vld [vmem:[#allocation5 + $0x9ac] sm:$0xf0] }
 0x3f0   :  { %v14154_v12 = vld [vmem:[#allocation5 + $0xb90] sm:$0xf]  ;;  %v13899_v27 = vor.u32 %v19375_v11, %v13898_v10  ;;  %7277 = vmatpush.bf16.msrb.mxu3 %v14699_v14 }
 0x3f1   :  { %v19439_v15 = vld [vmem:[#allocation5 + $0xbac] sm:$0xf0] }
 0x3f2   :  { %v14410_v8 = vld [vmem:[#allocation5 + $0xd90] sm:$0xf]  ;;  %v14155_v32 = vor.u32 %v19439_v15, %v14154_v12  ;;  %7239 = vmatpush.bf16.msrb.mxu0 %v13899_v27 }
 0x3f3   :  { %v19503_v21 = vld [vmem:[#allocation5 + $0xdac] sm:$0xf0] }
 0x3f4   :  { %v14666_v24 = vld [vmem:[#allocation5 + $0xf90] sm:$0xf]  ;;  %v14411_v37 = vor.u32 %v19503_v21, %v14410_v8  ;;  %7252 = vmatpush.bf16.msrb.mxu1 %v14155_v32  ;;  %v7001_v8 = vadd.f32 %v7000_v13, %v6988_v7 }
 0x3f5   :  { %v19567_v26 = vld [vmem:[#allocation5 + $0xfac] sm:$0xf0] }
 0x3f6   :  { %v13866_v34 = vld [vmem:[#allocation5 + $0x950] sm:$0xf]  ;;  %v14667_v45 = vor.u32 %v19567_v26, %v14666_v24  ;;  %7265 = vmatpush.bf16.msrb.mxu2 %v14411_v37 }
 0x3f7   :  { %v19367_v36 = vld [vmem:[#allocation5 + $0x96c] sm:$0xf0] }
 0x3f8   :  { %v14122_v43 = vld [vmem:[#allocation5 + $0xb50] sm:$0xf]  ;;  %v13867_v50 = vor.u32 %v19367_v36, %v13866_v34  ;;  %7278 = vmatpush.bf16.msrb.mxu3 %v14667_v45  ;;  %v7013_v34 = vpop.f32.mrf.mxu2 }
 0x3f9   :  { %v19431_v39 = vld [vmem:[#allocation5 + $0xb6c] sm:$0xf0] }
 0x3fa   :  { %v14378_v46 = vld [vmem:[#allocation5 + $0xd50] sm:$0xf]  ;;  %v14123_v52 = vor.u32 %v19431_v39, %v14122_v43  ;;  %7240 = vmatpush.bf16.msrb.mxu0 %v13867_v50 }
 0x3fb   :  { %v19495_v47 = vld [vmem:[#allocation5 + $0xd6c] sm:$0xf0] }
 0x3fc   :  { %v14634_v48 = vld [vmem:[#allocation5 + $0xf50] sm:$0xf]  ;;  %v14379_v53 = vor.u32 %v19495_v47, %v14378_v46  ;;  %7253 = vmatpush.bf16.msrb.mxu1 %v14123_v52  ;;  %v7014_v46 = vadd.f32 %v7013_v34, %v7001_v8  ;;  %v7026_v47 = vpop.f32.mrf.mxu3  ;;  %v6989_v52 = vpop.f32.mrf.mxu0 }
 0x3fd   :  { %v19559_v49 = vld [vmem:[#allocation5 + $0xf6c] sm:$0xf0] }
 0x3fe   :  { %v13834_v51 = vld [vmem:[#allocation5 + $0x910] sm:$0xf]  ;;  %v14635_v59 = vor.u32 %v19559_v49, %v14634_v48  ;;  %7266 = vmatpush.bf16.msrb.mxu2 %v14379_v53 }
 0x3ff   :  { %v19359_v16 = vld [vmem:[#allocation5 + $0x92c] sm:$0xf0] }
 0x400   :  { %v14090_v54 = vld [vmem:[#allocation5 + $0xb10] sm:$0xf]  ;;  %v13835_v0 = vor.u32 %v19359_v16, %v13834_v51  ;;  %7279 = vmatpush.bf16.msrb.mxu3 %v14635_v59  ;;  %v21100_v51 = vadd.f32 %v7026_v47, %v7014_v46  ;;  %v7002_v59 = vpop.f32.mrf.mxu1 }
 0x401   :  { %v19423_v62 = vld [vmem:[#allocation5 + $0xb2c] sm:$0xf0] }
 0x402   :  { %v14346_v60 = vld [vmem:[#allocation5 + $0xd10] sm:$0xf]  ;;  %v14091_v2 = vor.u32 %v19423_v62, %v14090_v54  ;;  %7241 = vmatpush.bf16.msrb.mxu0 %v13835_v0 }
 0x403   :  { %v19487_v61 = vld [vmem:[#allocation5 + $0xd2c] sm:$0xf0] }
 0x404   :  { %v14602_v56 = vld [vmem:[#allocation5 + $0xf10] sm:$0xf]  ;;  %v14347_v3 = vor.u32 %v19487_v61, %v14346_v60  ;;  %7254 = vmatpush.bf16.msrb.mxu1 %v14091_v2 }
 0x405   :  { %v19551_v63 = vld [vmem:[#allocation5 + $0xf2c] sm:$0xf0] }
 0x406   :  { %v13802_v4 = vld [vmem:[#allocation5 + $0x8d0] sm:$0xf]  ;;  %v14603_v9 = vor.u32 %v19551_v63, %v14602_v56  ;;  %7267 = vmatpush.bf16.msrb.mxu2 %v14347_v3 }
 0x407   :  { %v19351_v5 = vld [vmem:[#allocation5 + $0x8ec] sm:$0xf0] }
 0x408   :  { %v14058_v6 = vld [vmem:[#allocation5 + $0xad0] sm:$0xf]  ;;  %v13803_v21 = vor.u32 %v19351_v5, %v13802_v4  ;;  %7280 = vmatpush.bf16.msrb.mxu3 %v14603_v9  ;;  %v7015_v9 = vpop.f32.mrf.mxu2 }
 0x409   :  { %v19415_v10 = vld [vmem:[#allocation5 + $0xaec] sm:$0xf0] }
 0x40a   :  { %v14314_v11 = vld [vmem:[#allocation5 + $0xcd0] sm:$0xf]  ;;  %v14059_v24 = vor.u32 %v19415_v10, %v14058_v6  ;;  %7242 = vmatpush.bf16.msrb.mxu0 %v13803_v21 }
 0x40b   :  { %v19479_v12 = vld [vmem:[#allocation5 + $0xcec] sm:$0xf0] }
 0x40c   :  { %v14570_v14 = vld [vmem:[#allocation5 + $0xed0] sm:$0xf]  ;;  %v14315_v26 = vor.u32 %v19479_v12, %v14314_v11  ;;  %7255 = vmatpush.bf16.msrb.mxu1 %v14059_v24 }
 0x40d   :  { %v19543_v15 = vld [vmem:[#allocation5 + $0xeec] sm:$0xf0] }
 0x40e   :  { %v13770_v27 = vld [vmem:[#allocation5 + $0x890] sm:$0xf]  ;;  %v14571_v36 = vor.u32 %v19543_v15, %v14570_v14  ;;  %7268 = vmatpush.bf16.msrb.mxu2 %v14315_v26  ;;  %v7028_v15 = vpop.f32.mrf.mxu3 }
 0x40f   :  { %v19343_v32 = vld [vmem:[#allocation5 + $0x8ac] sm:$0xf0] }
 0x410   :  { %v14026_v37 = vld [vmem:[#allocation5 + $0xa90] sm:$0xf]  ;;  %v13771_v50 = vor.u32 %v19343_v32, %v13770_v27  ;;  %7281 = vmatpush.bf16.msrb.mxu3 %v14571_v36 }
 0x411   :  { %v19407_v43 = vld [vmem:[#allocation5 + $0xaac] sm:$0xf0] }
 0x412   :  { %v14282_v45 = vld [vmem:[#allocation5 + $0xc90] sm:$0xf]  ;;  %v14027_v53 = vor.u32 %v19407_v43, %v14026_v37  ;;  %7243 = vmatpush.bf16.msrb.mxu0 %v13771_v50 }
 0x413   :  { %v19471_v39 = vld [vmem:[#allocation5 + $0xcac] sm:$0xf0] }
 0x414   :  { %v14538_v48 = vld [vmem:[#allocation5 + $0xe90] sm:$0xf]  ;;  %v14283_v16 = vor.u32 %v19471_v39, %v14282_v45  ;;  %7256 = vmatpush.bf16.msrb.mxu1 %v14027_v53 }
 0x415   :  { %v19535_v49 = vld [vmem:[#allocation5 + $0xeac] sm:$0xf0] }
 0x416   :  { %v13738_v54 = vld [vmem:[#allocation5 + $0x850] sm:$0xf]  ;;  %v14539_v62 = vor.u32 %v19535_v49, %v14538_v48  ;;  %7269 = vmatpush.bf16.msrb.mxu2 %v14283_v16 }
 0x417   :  { %v19335_v55 = vld [vmem:[#allocation5 + $0x86c] sm:$0xf0] }
 0x418   :  { %v13994_v58 = vld [vmem:[#allocation5 + $0xa50] sm:$0xf]  ;;  %v13739_v1 = vor.u32 %v19335_v55, %v13738_v54  ;;  %7282 = vmatpush.bf16.msrb.mxu3 %v14539_v62 }
 0x419   :  { %v19399_v60 = vld [vmem:[#allocation5 + $0xa6c] sm:$0xf0] }
 0x41a   :  { %v14250_v61 = vld [vmem:[#allocation5 + $0xc50] sm:$0xf]  ;;  %v13995_v4 = vor.u32 %v19399_v60, %v13994_v58  ;;  %7244 = vmatpush.bf16.msrb.mxu0 %v13739_v1 }
 0x41b   :  { %v19463_v56 = vld [vmem:[#allocation5 + $0xc6c] sm:$0xf0] }
 0x41c   :  { %v14506_v63 = vld [vmem:[#allocation5 + $0xe50] sm:$0xf]  ;;  %v14251_v5 = vor.u32 %v19463_v56, %v14250_v61  ;;  %7257 = vmatpush.bf16.msrb.mxu1 %v13995_v4 }
 0x41d   :  { %v19527_v0 = vld [vmem:[#allocation5 + $0xe6c] sm:$0xf0] }
 0x41e   :  { %v13706_v2 = vld [vmem:[#allocation5 + $0x810] sm:$0xf]  ;;  %v14507_v10 = vor.u32 %v19527_v0, %v14506_v63  ;;  %7270 = vmatpush.bf16.msrb.mxu2 %v14251_v5 }
 0x41f   :  { %v19327_v3 = vld [vmem:[#allocation5 + $0x82c] sm:$0xf0] }
 0x420   :  { %v13962_v6 = vld [vmem:[#allocation5 + $0xa10] sm:$0xf]  ;;  %v13707_v26 = vor.u32 %v19327_v3, %v13706_v2  ;;  %7283 = vmatpush.bf16.msrb.mxu3 %v14507_v10 }
 0x421   :  { %v19391_v7 = vld [vmem:[#allocation5 + $0xa2c] sm:$0xf0] }
 0x422   :  { %v14218_v13 = vld [vmem:[#allocation5 + $0xc10] sm:$0xf]  ;;  %v13963_v34 = vor.u32 %v19391_v7, %v13962_v6  ;;  %7245 = vmatpush.bf16.msrb.mxu0 %v13707_v26 }
 0x423   :  { %v19455_v11 = vld [vmem:[#allocation5 + $0xc2c] sm:$0xf0] }
 0x424   :  { %v14474_v12 = vld [vmem:[#allocation5 + $0xe10] sm:$0xf]  ;;  %v14219_v36 = vor.u32 %v19455_v11, %v14218_v13  ;;  %7258 = vmatpush.bf16.msrb.mxu1 %v13963_v34 }
 0x425   :  { %v19519_v14 = vld [vmem:[#allocation5 + $0xe2c] sm:$0xf0]  ;;  %7246 = vmatmul.bf16.vlgmr.msrb.gmra.mxu0 %v20981_v41 }
 0x426   :  { %v14954_v8 = vld [vmem:[#allocation5 + $0x11d0] sm:$0xf]  ;;  %v14475_v39 = vor.u32 %v19519_v14, %v14474_v12  ;;  %7271 = vmatpush.bf16.msrb.mxu2 %v14219_v36 }
 0x427   :  { %v19639_v21 = vld [vmem:[#allocation5 + $0x11ec] sm:$0xf0]  ;;  %7259 = vmatmul.bf16.vlgmr.msrb.gmra.mxu1 %v20985_v44 }
 0x428   :  { %v15210_v24 = vld [vmem:[#allocation5 + $0x13d0] sm:$0xf]  ;;  %v14955_v46 = vor.u32 %v19639_v21, %v14954_v8  ;;  %7284 = vmatpush.bf16.msrb.mxu3 %v14475_v39 }
 0x429   :  { %v19703_v27 = vld [vmem:[#allocation5 + $0x13ec] sm:$0xf0]  ;;  %7272 = vmatmul.bf16.vlgmr.msrb.gmra.mxu2 %v20979_v38 }
 0x42a   :  { %v15466_v32 = vld [vmem:[#allocation5 + $0x15d0] sm:$0xf]  ;;  %v15211_v47 = vor.u32 %v19703_v27, %v15210_v24  ;;  %7290 = vmatpush.bf16.msra.mxu0 %v14955_v46  ;;  %v7052_v46 = vpop.f32.mrf.mxu1 }
 0x42b   :  { %v19767_v37 = vld [vmem:[#allocation5 + $0x15ec] sm:$0xf0]  ;;  %7285 = vmatmul.bf16.vlgmr.msrb.gmra.mxu3 %v20983_v42 }
 0x42c   :  { %v15722_v43 = vld [vmem:[#allocation5 + $0x17d0] sm:$0xf]  ;;  %v15467_v48 = vor.u32 %v19767_v37, %v15466_v32  ;;  %7303 = vmatpush.bf16.msra.mxu1 %v15211_v47  ;;  %v7039_v32 = vpop.f32.mrf.mxu0 }
 0x42d   :  { %v19831_v45 = vld [vmem:[#allocation5 + $0x17ec] sm:$0xf0]  ;;  %v7040_v39 = vadd.f32 %v7039_v32, %v21100_v51 }
 0x42e   :  { %v14922_v49 = vld [vmem:[#allocation5 + $0x1190] sm:$0xf]  ;;  %v15723_v53 = vor.u32 %v19831_v45, %v15722_v43  ;;  %7316 = vmatpush.bf16.msra.mxu2 %v15467_v48 }
 0x42f   :  { %v19631_v50 = vld [vmem:[#allocation5 + $0x11ac] sm:$0xf0] }
 0x430   :  { %v15178_v52 = vld [vmem:[#allocation5 + $0x1390] sm:$0xf]  ;;  %v14923_v62 = vor.u32 %v19631_v50, %v14922_v49  ;;  %7329 = vmatpush.bf16.msra.mxu3 %v15723_v53 }
 0x431   :  { %v19695_v16 = vld [vmem:[#allocation5 + $0x13ac] sm:$0xf0] }
 0x432   :  { %v15434_v54 = vld [vmem:[#allocation5 + $0x1590] sm:$0xf]  ;;  %v15179_v60 = vor.u32 %v19695_v16, %v15178_v52  ;;  %7291 = vmatpush.bf16.msra.mxu0 %v14923_v62  ;;  %v7053_v16 = vadd.f32 %v7052_v46, %v7040_v39 }
 0x433   :  { %v19759_v55 = vld [vmem:[#allocation5 + $0x15ac] sm:$0xf0] }
 0x434   :  { %v15690_v58 = vld [vmem:[#allocation5 + $0x1790] sm:$0xf]  ;;  %v15435_v61 = vor.u32 %v19759_v55, %v15434_v54  ;;  %7304 = vmatpush.bf16.msra.mxu1 %v15179_v60 }
 0x435   :  { %v19823_v59 = vld [vmem:[#allocation5 + $0x17ac] sm:$0xf0] }
 0x436   :  { %v14890_v56 = vld [vmem:[#allocation5 + $0x1150] sm:$0xf]  ;;  %v15691_v1 = vor.u32 %v19823_v59, %v15690_v58  ;;  %7317 = vmatpush.bf16.msra.mxu2 %v15435_v61  ;;  %v7065_v61 = vpop.f32.mrf.mxu2 }
 0x437   :  { %v19623_v63 = vld [vmem:[#allocation5 + $0x116c] sm:$0xf0] }
 0x438   :  { %v15146_v0 = vld [vmem:[#allocation5 + $0x1350] sm:$0xf]  ;;  %v14891_v7 = vor.u32 %v19623_v63, %v14890_v56  ;;  %7330 = vmatpush.bf16.msra.mxu3 %v15691_v1  ;;  %v7066_v1 = vadd.f32 %v7065_v61, %v7053_v16 }
 0x439   :  { %v19687_v2 = vld [vmem:[#allocation5 + $0x136c] sm:$0xf0] }
 0x43a   :  { %v15402_v3 = vld [vmem:[#allocation5 + $0x1550] sm:$0xf]  ;;  %v15147_v13 = vor.u32 %v19687_v2, %v15146_v0  ;;  %7292 = vmatpush.bf16.msra.mxu0 %v14891_v7  ;;  %v7078_v2 = vpop.f32.mrf.mxu3  ;;  %v7041_v7 = vpop.f32.mrf.mxu0 }
 0x43b   :  { %v19751_v4 = vld [vmem:[#allocation5 + $0x156c] sm:$0xf0] }
 0x43c   :  { %v15658_v5 = vld [vmem:[#allocation5 + $0x1750] sm:$0xf]  ;;  %v15403_v9 = vor.u32 %v19751_v4, %v15402_v3  ;;  %7305 = vmatpush.bf16.msra.mxu1 %v15147_v13 }
 0x43d   :  { %v19815_v6 = vld [vmem:[#allocation5 + $0x176c] sm:$0xf0] }
 0x43e   :  { %v14858_v10 = vld [vmem:[#allocation5 + $0x1110] sm:$0xf]  ;;  %v15659_v14 = vor.u32 %v19815_v6, %v15658_v5  ;;  %7318 = vmatpush.bf16.msra.mxu2 %v15403_v9  ;;  %v21107_v6 = vadd.f32 %v7078_v2, %v7066_v1 }
 0x43f   :  { %v19615_v11 = vld [vmem:[#allocation5 + $0x112c] sm:$0xf0] }
 0x440   :  { %v15114_v12 = vld [vmem:[#allocation5 + $0x1310] sm:$0xf]  ;;  %v14859_v27 = vor.u32 %v19615_v11, %v14858_v10  ;;  %7331 = vmatpush.bf16.msra.mxu3 %v15659_v14  ;;  %v7054_v14 = vpop.f32.mrf.mxu1 }
 0x441   :  { %v19679_v15 = vld [vmem:[#allocation5 + $0x132c] sm:$0xf0] }
 0x442   :  { %v15370_v8 = vld [vmem:[#allocation5 + $0x1510] sm:$0xf]  ;;  %v15115_v37 = vor.u32 %v19679_v15, %v15114_v12  ;;  %7293 = vmatpush.bf16.msra.mxu0 %v14859_v27 }
 0x443   :  { %v19743_v21 = vld [vmem:[#allocation5 + $0x152c] sm:$0xf0] }
 0x444   :  { %v15626_v24 = vld [vmem:[#allocation5 + $0x1710] sm:$0xf]  ;;  %v15371_v34 = vor.u32 %v19743_v21, %v15370_v8  ;;  %7306 = vmatpush.bf16.msra.mxu1 %v15115_v37 }
 0x445   :  { %v19807_v26 = vld [vmem:[#allocation5 + $0x172c] sm:$0xf0] }
 0x446   :  { %v14826_v36 = vld [vmem:[#allocation5 + $0x10d0] sm:$0xf]  ;;  %v15627_v47 = vor.u32 %v19807_v26, %v15626_v24  ;;  %7319 = vmatpush.bf16.msra.mxu2 %v15371_v34 }
 0x447   :  { %v19607_v43 = vld [vmem:[#allocation5 + $0x10ec] sm:$0xf0] }
 0x448   :  { %v15082_v45 = vld [vmem:[#allocation5 + $0x12d0] sm:$0xf]  ;;  %v14827_v54 = vor.u32 %v19607_v43, %v14826_v36  ;;  %7332 = vmatpush.bf16.msra.mxu3 %v15627_v47  ;;  %v7067_v47 = vpop.f32.mrf.mxu2 }
 0x449   :  { %v19671_v48 = vld [vmem:[#allocation5 + $0x12ec] sm:$0xf0] }
 0x44a   :  { %v15338_v49 = vld [vmem:[#allocation5 + $0x14d0] sm:$0xf]  ;;  %v15083_v55 = vor.u32 %v19671_v48, %v15082_v45  ;;  %7294 = vmatpush.bf16.msra.mxu0 %v14827_v54 }
 0x44b   :  { %v19735_v50 = vld [vmem:[#allocation5 + $0x14ec] sm:$0xf0] }
 0x44c   :  { %v15594_v52 = vld [vmem:[#allocation5 + $0x16d0] sm:$0xf]  ;;  %v15339_v58 = vor.u32 %v19735_v50, %v15338_v49  ;;  %7307 = vmatpush.bf16.msra.mxu1 %v15083_v55 }
 0x44d   :  { %v19799_v53 = vld [vmem:[#allocation5 + $0x16ec] sm:$0xf0] }
 0x44e   :  { %v14794_v59 = vld [vmem:[#allocation5 + $0x1090] sm:$0xf]  ;;  %v15595_v51 = vor.u32 %v19799_v53, %v15594_v52  ;;  %7320 = vmatpush.bf16.msra.mxu2 %v15339_v58  ;;  %v7080_v53 = vpop.f32.mrf.mxu3 }
 0x44f   :  { %v19599_v62 = vld [vmem:[#allocation5 + $0x10ac] sm:$0xf0] }
 0x450   :  { %v15050_v60 = vld [vmem:[#allocation5 + $0x1290] sm:$0xf]  ;;  %v14795_v5 = vor.u32 %v19599_v62, %v14794_v59  ;;  %7333 = vmatpush.bf16.msra.mxu3 %v15595_v51 }
 0x451   :  { %v19663_v56 = vld [vmem:[#allocation5 + $0x12ac] sm:$0xf0] }
 0x452   :  { %v15306_v63 = vld [vmem:[#allocation5 + $0x1490] sm:$0xf]  ;;  %v15051_v13 = vor.u32 %v19663_v56, %v15050_v60  ;;  %7295 = vmatpush.bf16.msra.mxu0 %v14795_v5 }
 0x453   :  { %v19727_v0 = vld [vmem:[#allocation5 + $0x14ac] sm:$0xf0] }
 0x454   :  { %v15562_v3 = vld [vmem:[#allocation5 + $0x1690] sm:$0xf]  ;;  %v15307_v9 = vor.u32 %v19727_v0, %v15306_v63  ;;  %7308 = vmatpush.bf16.msra.mxu1 %v15051_v13 }
 0x455   :  { %v19791_v4 = vld [vmem:[#allocation5 + $0x16ac] sm:$0xf0] }
 0x456   :  { %v14762_v10 = vld [vmem:[#allocation5 + $0x1050] sm:$0xf]  ;;  %v15563_v15 = vor.u32 %v19791_v4, %v15562_v3  ;;  %7321 = vmatpush.bf16.msra.mxu2 %v15307_v9 }
 0x457   :  { %v19591_v11 = vld [vmem:[#allocation5 + $0x106c] sm:$0xf0] }
 0x458   :  { %v15018_v12 = vld [vmem:[#allocation5 + $0x1250] sm:$0xf]  ;;  %v14763_v32 = vor.u32 %v19591_v11, %v14762_v10  ;;  %7334 = vmatpush.bf16.msra.mxu3 %v15563_v15 }
 0x459   :  { %v19655_v8 = vld [vmem:[#allocation5 + $0x126c] sm:$0xf0] }
 0x45a   :  { %v15274_v21 = vld [vmem:[#allocation5 + $0x1450] sm:$0xf]  ;;  %v15019_v36 = vor.u32 %v19655_v8, %v15018_v12  ;;  %7296 = vmatpush.bf16.msra.mxu0 %v14763_v32 }
 0x45b   :  { %v19719_v24 = vld [vmem:[#allocation5 + $0x146c] sm:$0xf0] }
 0x45c   :  { %v15530_v26 = vld [vmem:[#allocation5 + $0x1650] sm:$0xf]  ;;  %v15275_v43 = vor.u32 %v19719_v24, %v15274_v21  ;;  %7309 = vmatpush.bf16.msra.mxu1 %v15019_v36 }
 0x45d   :  { %v19783_v27 = vld [vmem:[#allocation5 + $0x166c] sm:$0xf0] }
 0x45e   :  { %v14730_v37 = vld [vmem:[#allocation5 + $0x1010] sm:$0xf]  ;;  %v15531_v48 = vor.u32 %v19783_v27, %v15530_v26  ;;  %7322 = vmatpush.bf16.msra.mxu2 %v15275_v43 }
 0x45f   :  { %v19583_v34 = vld [vmem:[#allocation5 + $0x102c] sm:$0xf0] }
 0x460   :  { %v14986_v45 = vld [vmem:[#allocation5 + $0x1210] sm:$0xf]  ;;  %v14731_v58 = vor.u32 %v19583_v34, %v14730_v37  ;;  %7335 = vmatpush.bf16.msra.mxu3 %v15531_v48 }
 0x461   :  { %v19647_v39 = vld [vmem:[#allocation5 + $0x122c] sm:$0xf0] }
 0x462   :  { %v15242_v46 = vld [vmem:[#allocation5 + $0x1410] sm:$0xf]  ;;  %v14987_v61 = vor.u32 %v19647_v39, %v14986_v45  ;;  %7297 = vmatpush.bf16.msra.mxu0 %v14731_v58 }
 0x463   :  { %v19711_v49 = vld [vmem:[#allocation5 + $0x142c] sm:$0xf0] }
 0x464   :  { %v15498_v50 = vld [vmem:[#allocation5 + $0x1610] sm:$0xf]  ;;  %v15243_v51 = vor.u32 %v19711_v49, %v15242_v46  ;;  %7310 = vmatpush.bf16.msra.mxu1 %v14987_v61  ;;  %v7104_v61 = vpop.f32.mrf.mxu1 }
 0x465   :  { %v19775_v52 = vld [vmem:[#allocation5 + $0x162c] sm:$0xf0]  ;;  %7298 = vmatmul.bf16.vlgmr.msra.gmra.mxu0 %v20991_v25 }
 0x466   :  { %v15978_v16 = vld [vmem:[#allocation5 + $0x19d0] sm:$0xf]  ;;  %v15499_v0 = vor.u32 %v19775_v52, %v15498_v50  ;;  %7323 = vmatpush.bf16.msra.mxu2 %v15243_v51 }
 0x467   :  { %v19895_v54 = vld [vmem:[#allocation5 + $0x19ec] sm:$0xf0]  ;;  %7311 = vmatmul.bf16.vlgmr.msra.gmra.mxu1 %v20995_v30 }
 0x468   :  { %v16234_v55 = vld [vmem:[#allocation5 + $0x1bd0] sm:$0xf]  ;;  %v15979_v1 = vor.u32 %v19895_v54, %v15978_v16  ;;  %7336 = vmatpush.bf16.msra.mxu3 %v15499_v0 }
 0x469   :  { %v19959_v59 = vld [vmem:[#allocation5 + $0x1bec] sm:$0xf0]  ;;  %7324 = vmatmul.bf16.vlgmr.msra.gmra.mxu2 %v20993_v29 }
 0x46a   :  { %v16490_v62 = vld [vmem:[#allocation5 + $0x1dd0] sm:$0xf]  ;;  %v16235_v2 = vor.u32 %v19959_v59, %v16234_v55  ;;  %7342 = vmatpush.bf16.msrb.mxu0 %v15979_v1  ;;  %v7091_v55 = vpop.f32.mrf.mxu0 }
 0x46b   :  { %v20023_v60 = vld [vmem:[#allocation5 + $0x1dec] sm:$0xf0]  ;;  %7337 = vmatmul.bf16.vlgmr.msra.gmra.mxu3 %v20997_v33 }
 0x46c   :  { %v16746_v56 = vld [vmem:[#allocation5 + $0x1fd0] sm:$0xf]  ;;  %v16491_v3 = vor.u32 %v20023_v60, %v16490_v62  ;;  %7355 = vmatpush.bf16.msrb.mxu1 %v16235_v2  ;;  %v7092_v62 = vadd.f32 %v7091_v55, %v21107_v6 }
 0x46d   :  { %v20087_v63 = vld [vmem:[#allocation5 + $0x1fec] sm:$0xf0] }
 0x46e   :  { %v15946_v4 = vld [vmem:[#allocation5 + $0x1990] sm:$0xf]  ;;  %v16747_v13 = vor.u32 %v20087_v63, %v16746_v56  ;;  %7368 = vmatpush.bf16.msrb.mxu2 %v16491_v3  ;;  %v7105_v3 = vadd.f32 %v7104_v61, %v7092_v62 }
 0x46f   :  { %v19887_v5 = vld [vmem:[#allocation5 + $0x19ac] sm:$0xf0] }
 0x470   :  { %v16202_v7 = vld [vmem:[#allocation5 + $0x1b90] sm:$0xf]  ;;  %v15947_v15 = vor.u32 %v19887_v5, %v15946_v4  ;;  %7381 = vmatpush.bf16.msrb.mxu3 %v16747_v13 }
 0x471   :  { %v19951_v9 = vld [vmem:[#allocation5 + $0x1bac] sm:$0xf0] }
 0x472   :  { %v16458_v10 = vld [vmem:[#allocation5 + $0x1d90] sm:$0xf]  ;;  %v16203_v8 = vor.u32 %v19951_v9, %v16202_v7  ;;  %7343 = vmatpush.bf16.msrb.mxu0 %v15947_v15 }
 0x473   :  { %v20015_v11 = vld [vmem:[#allocation5 + $0x1dac] sm:$0xf0] }
 0x474   :  { %v16714_v12 = vld [vmem:[#allocation5 + $0x1f90] sm:$0xf]  ;;  %v16459_v21 = vor.u32 %v20015_v11, %v16458_v10  ;;  %7356 = vmatpush.bf16.msrb.mxu1 %v16203_v8 }
 0x475   :  { %v20079_v14 = vld [vmem:[#allocation5 + $0x1fac] sm:$0xf0] }
 0x476   :  { %v15914_v24 = vld [vmem:[#allocation5 + $0x1950] sm:$0xf]  ;;  %v16715_v32 = vor.u32 %v20079_v14, %v16714_v12  ;;  %7369 = vmatpush.bf16.msrb.mxu2 %v16459_v21  ;;  %v7117_v21 = vpop.f32.mrf.mxu2 }
 0x477   :  { %v19879_v26 = vld [vmem:[#allocation5 + $0x196c] sm:$0xf0] }
 0x478   :  { %v16170_v27 = vld [vmem:[#allocation5 + $0x1b50] sm:$0xf]  ;;  %v15915_v39 = vor.u32 %v19879_v26, %v15914_v24  ;;  %7382 = vmatpush.bf16.msrb.mxu3 %v16715_v32  ;;  %v7118_v32 = vadd.f32 %v7117_v21, %v7105_v3 }
 0x479   :  { %v19943_v37 = vld [vmem:[#allocation5 + $0x1b6c] sm:$0xf0] }
 0x47a   :  { %v16426_v34 = vld [vmem:[#allocation5 + $0x1d50] sm:$0xf]  ;;  %v16171_v46 = vor.u32 %v19943_v37, %v16170_v27  ;;  %7344 = vmatpush.bf16.msrb.mxu0 %v15915_v39  ;;  %v7130_v37 = vpop.f32.mrf.mxu3  ;;  %v7106_v39 = vpop.f32.mrf.mxu1 }
 0x47b   :  { %v20007_v36 = vld [vmem:[#allocation5 + $0x1d6c] sm:$0xf0] }
 0x47c   :  { %v16682_v43 = vld [vmem:[#allocation5 + $0x1f50] sm:$0xf]  ;;  %v16427_v47 = vor.u32 %v20007_v36, %v16426_v34  ;;  %7357 = vmatpush.bf16.msrb.mxu1 %v16171_v46  ;;  %v21114_v46 = vadd.f32 %v7130_v37, %v7118_v32 }
 0x47d   :  { %v20071_v45 = vld [vmem:[#allocation5 + $0x1f6c] sm:$0xf0] }
 0x47e   :  { %v15882_v48 = vld [vmem:[#allocation5 + $0x1910] sm:$0xf]  ;;  %v16683_v52 = vor.u32 %v20071_v45, %v16682_v43  ;;  %7370 = vmatpush.bf16.msrb.mxu2 %v16427_v47  ;;  %v7093_v43 = vpop.f32.mrf.mxu0 }
 0x47f   :  { %v19871_v49 = vld [vmem:[#allocation5 + $0x192c] sm:$0xf0]  ;;  %v12876_v43 = vld [vmem:[#allocation5 + $0x1b0] sm:$0xf0] }
 0x480   :  { %v16138_v50 = vld [vmem:[#allocation5 + $0x1b10] sm:$0xf]  ;;  %v15883_v60 = vor.u32 %v19871_v49, %v15882_v48  ;;  %7383 = vmatpush.bf16.msrb.mxu3 %v16683_v52 }
 0x481   :  { %v19935_v53 = vld [vmem:[#allocation5 + $0x1b2c] sm:$0xf0] }
 0x482   :  { %v16394_v16 = vld [vmem:[#allocation5 + $0x1d10] sm:$0xf]  ;;  %v16139_v51 = vor.u32 %v19935_v53, %v16138_v50  ;;  %7345 = vmatpush.bf16.msrb.mxu0 %v15883_v60 }
 0x483   :  { %v19999_v54 = vld [vmem:[#allocation5 + $0x1d2c] sm:$0xf0] }
 0x484   :  { %v16650_v58 = vld [vmem:[#allocation5 + $0x1f10] sm:$0xf]  ;;  %v16395_v56 = vor.u32 %v19999_v54, %v16394_v16  ;;  %7358 = vmatpush.bf16.msrb.mxu1 %v16139_v51 }
 0x485   :  { %v20063_v59 = vld [vmem:[#allocation5 + $0x1f2c] sm:$0xf0] }
 0x486   :  { %v15850_v63 = vld [vmem:[#allocation5 + $0x18d0] sm:$0xf]  ;;  %v16651_v2 = vor.u32 %v20063_v59, %v16650_v58  ;;  %7371 = vmatpush.bf16.msrb.mxu2 %v16395_v56 }
 0x487   :  { %v19863_v0 = vld [vmem:[#allocation5 + $0x18ec] sm:$0xf0] }
 0x488   :  { %v16106_v1 = vld [vmem:[#allocation5 + $0x1ad0] sm:$0xf]  ;;  %v15851_v10 = vor.u32 %v19863_v0, %v15850_v63  ;;  %7384 = vmatpush.bf16.msrb.mxu3 %v16651_v2 }
 0x489   :  { %v19927_v4 = vld [vmem:[#allocation5 + $0x1aec] sm:$0xf0] }
 0x48a   :  { %v16362_v5 = vld [vmem:[#allocation5 + $0x1cd0] sm:$0xf]  ;;  %v16107_v6 = vor.u32 %v19927_v4, %v16106_v1  ;;  %7346 = vmatpush.bf16.msrb.mxu0 %v15851_v10  ;;  %v19187_v10 = vld [vmem:[#allocation5 + $0x3d4] sm:$0xf] }
 0x48b   :  { %v19991_v7 = vld [vmem:[#allocation5 + $0x1cec] sm:$0xf0] }
 0x48c   :  { %v16618_v13 = vld [vmem:[#allocation5 + $0x1ed0] sm:$0xf]  ;;  %v16363_v11 = vor.u32 %v19991_v7, %v16362_v5  ;;  %7359 = vmatpush.bf16.msrb.mxu1 %v16107_v6  ;;  %v7119_v7 = vpop.f32.mrf.mxu2  ;;  %v7132_v6 = vpop.f32.mrf.mxu3 }
 0x48d   :  { %v20055_v9 = vld [vmem:[#allocation5 + $0x1eec] sm:$0xf0]  ;;  %v7143_v6 = vpop.f32.mrf.mxu0 }
 0x48e   :  { %v15818_v12 = vld [vmem:[#allocation5 + $0x1890] sm:$0xf]  ;;  %v16619_v8 = vor.u32 %v20055_v9, %v16618_v13  ;;  %7372 = vmatpush.bf16.msrb.mxu2 %v16363_v11  ;;  %v19123_v13 = vld [vmem:[#allocation5 + $0x1d4] sm:$0xf] }
 0x48f   :  { %v19855_v14 = vld [vmem:[#allocation5 + $0x18ac] sm:$0xf0]  ;;  %v12908_v9 = vld [vmem:[#allocation5 + $0x1f0] sm:$0xf0] }
 0x490   :  { %v16074_v15 = vld [vmem:[#allocation5 + $0x1a90] sm:$0xf]  ;;  %v15819_v45 = vor.u32 %v19855_v14, %v15818_v12  ;;  %7385 = vmatpush.bf16.msrb.mxu3 %v16619_v8  ;;  %v13164_v12 = vld [vmem:[#allocation5 + $0x3f0] sm:$0xf0]  ;;  %v12911_v32 = vor.u32 %v19123_v13, %v12908_v9 }
 0x491   :  { %v19919_v24 = vld [vmem:[#allocation5 + $0x1aac] sm:$0xf0]  ;;  %v19251_v14 = vld [vmem:[#allocation5 + $0x5d4] sm:$0xf]  ;;  %v13167_v37 = vor.u32 %v19187_v10, %v13164_v12 }
 0x492   :  { %v16330_v26 = vld [vmem:[#allocation5 + $0x1c90] sm:$0xf]  ;;  %v16075_v47 = vor.u32 %v19919_v24, %v16074_v15  ;;  %7347 = vmatpush.bf16.msrb.mxu0 %v15819_v45  ;;  %v13420_v15 = vld [vmem:[#allocation5 + $0x5f0] sm:$0xf0] }
 0x493   :  { %v19983_v27 = vld [vmem:[#allocation5 + $0x1cac] sm:$0xf0]  ;;  %v19315_v24 = vld [vmem:[#allocation5 + $0x7d4] sm:$0xf] }
 0x494   :  { %v16586_v34 = vld [vmem:[#allocation5 + $0x1e90] sm:$0xf]  ;;  %v16331_v48 = vor.u32 %v19983_v27, %v16330_v26  ;;  %7360 = vmatpush.bf16.msrb.mxu1 %v16075_v47  ;;  %v13676_v26 = vld [vmem:[#allocation5 + $0x7f0] sm:$0xf0] }
 0x495   :  { %v20047_v36 = vld [vmem:[#allocation5 + $0x1eac] sm:$0xf0]  ;;  %v19179_v45 = vld [vmem:[#allocation5 + $0x394] sm:$0xf]  ;;  %v13679_v39 = vor.u32 %v19315_v24, %v13676_v26 }
 0x496   :  { %v15786_v49 = vld [vmem:[#allocation5 + $0x1850] sm:$0xf]  ;;  %v16587_v53 = vor.u32 %v20047_v36, %v16586_v34  ;;  %7373 = vmatpush.bf16.msrb.mxu2 %v16331_v48  ;;  %v13423_v34 = vor.u32 %v19251_v14, %v13420_v15  ;;  %v19115_v36 = vld [vmem:[#allocation5 + $0x194] sm:$0xf]  ;;  %v7144_v14 = vadd.f32 %v7143_v6, %v21114_v46 }
 0x497   :  { %v19847_v50 = vld [vmem:[#allocation5 + $0x186c] sm:$0xf0]  ;;  %v13132_v47 = vld [vmem:[#allocation5 + $0x3b0] sm:$0xf0] }
 0x498   :  { %v16042_v52 = vld [vmem:[#allocation5 + $0x1a50] sm:$0xf]  ;;  %v15787_v62 = vor.u32 %v19847_v50, %v15786_v49  ;;  %7386 = vmatpush.bf16.msrb.mxu3 %v16587_v53  ;;  %v19243_v48 = vld [vmem:[#allocation5 + $0x594] sm:$0xf]  ;;  %v12879_v53 = vor.u32 %v19115_v36, %v12876_v43 }
 0x499   :  { %v19911_v16 = vld [vmem:[#allocation5 + $0x1a6c] sm:$0xf0]  ;;  %v13388_v49 = vld [vmem:[#allocation5 + $0x5b0] sm:$0xf0] }
 0x49a   :  { %v16298_v54 = vld [vmem:[#allocation5 + $0x1c50] sm:$0xf]  ;;  %v16043_v51 = vor.u32 %v19911_v16, %v16042_v52  ;;  %7348 = vmatpush.bf16.msrb.mxu0 %v15787_v62  ;;  %v19307_v50 = vld [vmem:[#allocation5 + $0x794] sm:$0xf]  ;;  %v13135_v16 = vor.u32 %v19179_v45, %v13132_v47 }
 0x49b   :  { %v19975_v55 = vld [vmem:[#allocation5 + $0x1c6c] sm:$0xf0]  ;;  %v13644_v52 = vld [vmem:[#allocation5 + $0x7b0] sm:$0xf0] }
 0x49c   :  { %v16554_v58 = vld [vmem:[#allocation5 + $0x1e50] sm:$0xf]  ;;  %v16299_v56 = vor.u32 %v19975_v55, %v16298_v54  ;;  %7361 = vmatpush.bf16.msrb.mxu1 %v16043_v51  ;;  %v13391_v54 = vor.u32 %v19243_v48, %v13388_v49  ;;  %v19107_v55 = vld [vmem:[#allocation5 + $0x154] sm:$0xf]  ;;  %v13647_v62 = vor.u32 %v19307_v50, %v13644_v52 }
 0x49d   :  { %v20039_v59 = vld [vmem:[#allocation5 + $0x1e6c] sm:$0xf0]  ;;  %v13356_v51 = vld [vmem:[#allocation5 + $0x570] sm:$0xf0] }
 0x49e   :  { %v15754_v60 = vld [vmem:[#allocation5 + $0x1810] sm:$0xf]  ;;  %v16555_v2 = vor.u32 %v20039_v59, %v16554_v58  ;;  %7374 = vmatpush.bf16.msrb.mxu2 %v16299_v56  ;;  %v12844_v58 = vld [vmem:[#allocation5 + $0x170] sm:$0xf0] }
 0x49f   :  { %v19839_v61 = vld [vmem:[#allocation5 + $0x182c] sm:$0xf0]  ;;  %v19171_v59 = vld [vmem:[#allocation5 + $0x354] sm:$0xf] }
 0x4a0   :  { %v16010_v63 = vld [vmem:[#allocation5 + $0x1a10] sm:$0xf]  ;;  %v15755_v11 = vor.u32 %v19839_v61, %v15754_v60  ;;  %7387 = vmatpush.bf16.msrb.mxu3 %v16555_v2  ;;  %v13100_v60 = vld [vmem:[#allocation5 + $0x370] sm:$0xf0] }
 0x4a1   :  { %v19903_v0 = vld [vmem:[#allocation5 + $0x1a2c] sm:$0xf0]  ;;  %v19235_v61 = vld [vmem:[#allocation5 + $0x554] sm:$0xf] }
 0x4a2   :  { %v16266_v1 = vld [vmem:[#allocation5 + $0x1c10] sm:$0xf]  ;;  %v16011_v8 = vor.u32 %v19903_v0, %v16010_v63  ;;  %7349 = vmatpush.bf16.msrb.mxu0 %v15755_v11  ;;  %v19299_v56 = vld [vmem:[#allocation5 + $0x754] sm:$0xf]  ;;  %v12847_v0 = vor.u32 %v19107_v55, %v12844_v58  ;;  %v13359_v2 = vor.u32 %v19235_v61, %v13356_v51 }
 0x4a3   :  { %v19967_v3 = vld [vmem:[#allocation5 + $0x1c2c] sm:$0xf0]  ;;  %v13612_v63 = vld [vmem:[#allocation5 + $0x770] sm:$0xf0] }
 0x4a4   :  { %v16522_v4 = vld [vmem:[#allocation5 + $0x1e10] sm:$0xf]  ;;  %v16267_v21 = vor.u32 %v19967_v3, %v16266_v1  ;;  %7362 = vmatpush.bf16.msrb.mxu1 %v16011_v8  ;;  %v13103_v1 = vor.u32 %v19171_v59, %v13100_v60  ;;  %v19099_v3 = vld [vmem:[#allocation5 + $0x114] sm:$0xf]  ;;  %v13615_v7 = vor.u32 %v19299_v56, %v13612_v63  ;;  %v7156_v8 = vpop.f32.mrf.mxu1  ;;  %v7182_v60 = vpop.f32.mrf.mxu3 }
 0x4a5   :  { %v20031_v5 = vld [vmem:[#allocation5 + $0x1e2c] sm:$0xf0]  ;;  %7350 = vmatmul.bf16.vlgmr.msrb.gmra.mxu0 %v21003_v23  ;;  %v13068_v13 = vld [vmem:[#allocation5 + $0x330] sm:$0xf0]  ;;  %v7145_v56 = vpop.f32.mrf.mxu0 }
 0x4a6   :  { %v16523_v27 = vor.u32 %v20031_v5, %v16522_v4  ;;  %7375 = vmatpush.bf16.msrb.mxu2 %v16267_v21  ;;  %7394 = vmatpush.bf16.msra.mxu0 %v12911_v32  ;;  %v12812_v4 = vld [vmem:[#allocation5 + $0x130] sm:$0xf0] }
 0x4a7   :  { %7363 = vmatmul.bf16.vlgmr.msrb.gmra.mxu1 %v21007_v31  ;;  %v19163_v5 = vld [vmem:[#allocation5 + $0x314] sm:$0xf]  ;;  %v12815_v15 = vor.u32 %v19099_v3, %v12812_v4 }
 0x4a8   :  { %7388 = vmatpush.bf16.msrb.mxu3 %v16523_v27  ;;  %7407 = vmatpush.bf16.msra.mxu1 %v13167_v37  ;;  %v19227_v9 = vld [vmem:[#allocation5 + $0x514] sm:$0xf]  ;;  %v13071_v21 = vor.u32 %v19163_v5, %v13068_v13 }
 0x4a9   :  { %7376 = vmatmul.bf16.vlgmr.msrb.gmra.mxu2 %v21005_v28  ;;  %v13324_v10 = vld [vmem:[#allocation5 + $0x530] sm:$0xf0] }
 0x4aa   :  { %7420 = vmatpush.bf16.msra.mxu2 %v13423_v34  ;;  %7395 = vmatpush.bf16.msra.mxu0 %v12879_v53  ;;  %v19291_v11 = vld [vmem:[#allocation5 + $0x714] sm:$0xf]  ;;  %v13327_v24 = vor.u32 %v19227_v9, %v13324_v10  ;;  %v7157_v34 = vadd.f32 %v7156_v8, %v7144_v14 }
 0x4ab   :  { %7389 = vmatmul.bf16.vlgmr.msrb.gmra.mxu3 %v21009_v35  ;;  %v13580_v12 = vld [vmem:[#allocation5 + $0x730] sm:$0xf0] }
 0x4ac   :  { %7433 = vmatpush.bf16.msra.mxu3 %v13679_v39  ;;  %7408 = vmatpush.bf16.msra.mxu1 %v13135_v16  ;;  %v19091_v26 = vld [vmem:[#allocation5 + $0xd4] sm:$0xf]  ;;  %v13583_v37 = vor.u32 %v19291_v11, %v13580_v12 }
 0x4ad   :  { %v12780_v27 = vld [vmem:[#allocation5 + $0xf0] sm:$0xf0] }
 0x4ae   :  { %7421 = vmatpush.bf16.msra.mxu2 %v13391_v54  ;;  %7396 = vmatpush.bf16.msra.mxu0 %v12847_v0  ;;  %v19155_v32 = vld [vmem:[#allocation5 + $0x2d4] sm:$0xf]  ;;  %v12783_v48 = vor.u32 %v19091_v26, %v12780_v27  ;;  %v7169_v54 = vpop.f32.mrf.mxu2  ;;  %v7158_v0 = vpop.f32.mrf.mxu1 }
 0x4af   :  { %v13036_v36 = vld [vmem:[#allocation5 + $0x2f0] sm:$0xf0] }
 0x4b0   :  { %7434 = vmatpush.bf16.msra.mxu3 %v13647_v62  ;;  %7409 = vmatpush.bf16.msra.mxu1 %v13103_v1  ;;  %v19219_v43 = vld [vmem:[#allocation5 + $0x4d4] sm:$0xf]  ;;  %v13039_v46 = vor.u32 %v19155_v32, %v13036_v36  ;;  %v7170_v62 = vadd.f32 %v7169_v54, %v7157_v34 }
 0x4b1   :  { %v13292_v45 = vld [vmem:[#allocation5 + $0x4f0] sm:$0xf0] }
 0x4b2   :  { %7422 = vmatpush.bf16.msra.mxu2 %v13359_v2  ;;  %v19283_v39 = vld [vmem:[#allocation5 + $0x6d4] sm:$0xf]  ;;  %7397 = vmatpush.bf16.msra.mxu0 %v12815_v15  ;;  %v13295_v49 = vor.u32 %v19219_v43, %v13292_v45  ;;  %v21121_v1 = vadd.f32 %v7182_v60, %v7170_v62 }
 0x4b3   :  { %v13548_v47 = vld [vmem:[#allocation5 + $0x6f0] sm:$0xf0] }
 0x4b4   :  { %7435 = vmatpush.bf16.msra.mxu3 %v13615_v7  ;;  %7410 = vmatpush.bf16.msra.mxu1 %v13071_v21  ;;  %v19083_v50 = vld [vmem:[#allocation5 + $0x94] sm:$0xf]  ;;  %v13551_v16 = vor.u32 %v19283_v39, %v13548_v47  ;;  %vm8021_vm3 = vcmp.gt.f32.partialorder %v21121_v1, 0.0 }
 0x4b5   :  { %v12748_v52 = vld [vmem:[#allocation5 + $0xb0] sm:$0xf0] }
 0x4b6   :  { %7423 = vmatpush.bf16.msra.mxu2 %v13327_v24  ;;  %v19147_v53 = vld [vmem:[#allocation5 + $0x294] sm:$0xf]  ;;  %7398 = vmatpush.bf16.msra.mxu0 %v12783_v48  ;;  %v12751_v63 = vor.u32 %v19083_v50, %v12748_v52  ;;  %v7171_v45 = vpop.f32.mrf.mxu2 }
 0x4b7   :  { %v13004_v55 = vld [vmem:[#allocation5 + $0x2b0] sm:$0xf0]  ;;  %v20685_v45 = vld [vmem:[#allocation7] sm:$0xff] }
 0x4b8   :  { %7436 = vmatpush.bf16.msra.mxu3 %v13583_v37  ;;  %v19211_v58 = vld [vmem:[#allocation5 + $0x494] sm:$0xf]  ;;  %7411 = vmatpush.bf16.msra.mxu1 %v13039_v46  ;;  %v13007_v2 = vor.u32 %v19147_v53, %v13004_v55  ;;  %v7184_v46 = vpop.f32.mrf.mxu3 }
 0x4b9   :  { %v13260_v59 = vld [vmem:[#allocation5 + $0x4b0] sm:$0xf0] }
 0x4ba   :  { %v19275_v61 = vld [vmem:[#allocation5 + $0x694] sm:$0xf]  ;;  %7424 = vmatpush.bf16.msra.mxu2 %v13295_v49  ;;  %v13263_v3 = vor.u32 %v19211_v58, %v13260_v59  ;;  %7399 = vmatpush.bf16.msra.mxu0 %v12751_v63 }
 0x4bb   :  { %v13516_v51 = vld [vmem:[#allocation5 + $0x6b0] sm:$0xf0] }
 0x4bc   :  { %v19075_v4 = vld [vmem:[#allocation5 + $0x54] sm:$0xf]  ;;  %7437 = vmatpush.bf16.msra.mxu3 %v13551_v16  ;;  %v13519_v13 = vor.u32 %v19275_v61, %v13516_v51  ;;  %7412 = vmatpush.bf16.msra.mxu1 %v13007_v2 }
 0x4bd   :  { %v12716_v5 = vld [vmem:[#allocation5 + $0x70] sm:$0xf0] }
 0x4be   :  { %v19139_v7 = vld [vmem:[#allocation5 + $0x254] sm:$0xf]  ;;  %v12719_v14 = vor.u32 %v19075_v4, %v12716_v5  ;;  %7425 = vmatpush.bf16.msra.mxu2 %v13263_v3 }
 0x4bf   :  { %v12972_v9 = vld [vmem:[#allocation5 + $0x270] sm:$0xf0] }
 0x4c0   :  { %v19203_v10 = vld [vmem:[#allocation5 + $0x454] sm:$0xf]  ;;  %v12975_v21 = vor.u32 %v19139_v7, %v12972_v9  ;;  %7438 = vmatpush.bf16.msra.mxu3 %v13519_v13  ;;  %7400 = vmatpush.bf16.msra.mxu0 %v12719_v14 }
 0x4c1   :  { %v13228_v6 = vld [vmem:[#allocation5 + $0x470] sm:$0xf0] }
 0x4c2   :  { %v19267_v11 = vld [vmem:[#allocation5 + $0x654] sm:$0xf]  ;;  %v13231_v24 = vor.u32 %v19203_v10, %v13228_v6  ;;  %7413 = vmatpush.bf16.msra.mxu1 %v12975_v21 }
 0x4c3   :  { %v13484_v12 = vld [vmem:[#allocation5 + $0x670] sm:$0xf0] }
 0x4c4   :  { %v19067_v15 = vld [vmem:[#allocation5 + $0x14] sm:$0xf]  ;;  %v13487_v37 = vor.u32 %v19267_v11, %v13484_v12  ;;  %7426 = vmatpush.bf16.msra.mxu2 %v13231_v24 }
 0x4c5   :  { %v12684_v8 = vld [vmem:[#allocation5 + $0x30] sm:$0xf0] }
 0x4c6   :  { %v19131_v26 = vld [vmem:[#allocation5 + $0x214] sm:$0xf]  ;;  %v12687_v49 = vor.u32 %v19067_v15, %v12684_v8  ;;  %7439 = vmatpush.bf16.msra.mxu3 %v13487_v37 }
 0x4c7   :  { %v12940_v27 = vld [vmem:[#allocation5 + $0x230] sm:$0xf0] }
 0x4c8   :  { %v19195_v32 = vld [vmem:[#allocation5 + $0x414] sm:$0xf]  ;;  %v12943_v16 = vor.u32 %v19131_v26, %v12940_v27  ;;  %7401 = vmatpush.bf16.msra.mxu0 %v12687_v49 }
 0x4c9   :  { %v13196_v34 = vld [vmem:[#allocation5 + $0x430] sm:$0xf0] }
 0x4ca   :  { %v19259_v36 = vld [vmem:[#allocation5 + $0x614] sm:$0xf]  ;;  %v13199_v54 = vor.u32 %v19195_v32, %v13196_v34  ;;  %7414 = vmatpush.bf16.msra.mxu1 %v12943_v16  ;;  %v7195_v16 = vpop.f32.mrf.mxu0 }
 0x4cb   :  { %v13452_v43 = vld [vmem:[#allocation5 + $0x630] sm:$0xf0]  ;;  %7402 = vmatmul.bf16.vlgmr.msra.gmra.mxu0 %v20969_v19 }
 0x4cc   :  { %v19379_v39 = vld [vmem:[#allocation5 + $0x9d4] sm:$0xf]  ;;  %v13455_v59 = vor.u32 %v19259_v36, %v13452_v43  ;;  %7427 = vmatpush.bf16.msra.mxu2 %v13199_v54 }
 0x4cd   :  { %v13932_v47 = vld [vmem:[#allocation5 + $0x9f0] sm:$0xf0]  ;;  %7415 = vmatmul.bf16.vlgmr.msra.gmra.mxu1 %v20973_v22 }
 0x4ce   :  { %v19443_v48 = vld [vmem:[#allocation5 + $0xbd4] sm:$0xf]  ;;  %v13935_v62 = vor.u32 %v19379_v39, %v13932_v47  ;;  %7440 = vmatpush.bf16.msra.mxu3 %v13455_v59  ;;  %v1166_v39 = vperm.slane %v20685_v45, 4 }
 0x4cf   :  { %v14188_v50 = vld [vmem:[#allocation5 + $0xbf0] sm:$0xf0]  ;;  %7428 = vmatmul.bf16.vlgmr.msra.gmra.mxu2 %v20967_v18 }
 0x4d0   :  { %v19507_v52 = vld [vmem:[#allocation5 + $0xdd4] sm:$0xf]  ;;  %v14191_v60 = vor.u32 %v19443_v48, %v14188_v50  ;;  %7446 = vmatpush.bf16.msrb.mxu0 %v13935_v62 }
 0x4d1   :  { %v14444_v53 = vld [vmem:[#allocation5 + $0xdf0] sm:$0xf0]  ;;  %7441 = vmatmul.bf16.vlgmr.msra.gmra.mxu3 %v20971_v20 }
 0x4d2   :  { %v19571_v55 = vld [vmem:[#allocation5 + $0xfd4] sm:$0xf]  ;;  %v14447_v61 = vor.u32 %v19507_v52, %v14444_v53  ;;  %7459 = vmatpush.bf16.msrb.mxu1 %v14191_v60  ;;  %v7196_v60 = vadd.f32 %v7195_v16, %v1166_v39 }
 0x4d3   :  { %v14700_v58 = vld [vmem:[#allocation5 + $0xff0] sm:$0xf0] }
 0x4d4   :  { %v19371_v51 = vld [vmem:[#allocation5 + $0x994] sm:$0xf]  ;;  %v14703_v0 = vor.u32 %v19571_v55, %v14700_v58  ;;  %7472 = vmatpush.bf16.msrb.mxu2 %v14447_v61  ;;  %v7208_v61 = vpop.f32.mrf.mxu1 }
 0x4d5   :  { %v13900_v56 = vld [vmem:[#allocation5 + $0x9b0] sm:$0xf0] }
 0x4d6   :  { %v19435_v63 = vld [vmem:[#allocation5 + $0xb94] sm:$0xf]  ;;  %v13903_v13 = vor.u32 %v19371_v51, %v13900_v56  ;;  %7485 = vmatpush.bf16.msrb.mxu3 %v14703_v0 }
 0x4d7   :  { %v14156_v2 = vld [vmem:[#allocation5 + $0xbb0] sm:$0xf0] }
 0x4d8   :  { %v19499_v3 = vld [vmem:[#allocation5 + $0xd94] sm:$0xf]  ;;  %v14159_v9 = vor.u32 %v19435_v63, %v14156_v2  ;;  %7447 = vmatpush.bf16.msrb.mxu0 %v13903_v13 }
 0x4d9   :  { %v14412_v4 = vld [vmem:[#allocation5 + $0xdb0] sm:$0xf0] }
 0x4da   :  { %v19563_v5 = vld [vmem:[#allocation5 + $0xf94] sm:$0xf]  ;;  %v14415_v10 = vor.u32 %v19499_v3, %v14412_v4  ;;  %7460 = vmatpush.bf16.msrb.mxu1 %v14159_v9  ;;  %v7209_v4 = vadd.f32 %v7208_v61, %v7196_v60 }
 0x4db   :  { %v14668_v7 = vld [vmem:[#allocation5 + $0xfb0] sm:$0xf0] }
 0x4dc   :  { %v19363_v6 = vld [vmem:[#allocation5 + $0x954] sm:$0xf]  ;;  %v14671_v14 = vor.u32 %v19563_v5, %v14668_v7  ;;  %7473 = vmatpush.bf16.msrb.mxu2 %v14415_v10 }
 0x4dd   :  { %v13868_v11 = vld [vmem:[#allocation5 + $0x970] sm:$0xf0] }
 0x4de   :  { %v19427_v12 = vld [vmem:[#allocation5 + $0xb54] sm:$0xf]  ;;  %v13871_v27 = vor.u32 %v19363_v6, %v13868_v11  ;;  %7486 = vmatpush.bf16.msrb.mxu3 %v14671_v14  ;;  %v7221_v11 = vpop.f32.mrf.mxu2 }
 0x4df   :  { %v14124_v15 = vld [vmem:[#allocation5 + $0xb70] sm:$0xf0] }
 0x4e0   :  { %v19491_v8 = vld [vmem:[#allocation5 + $0xd54] sm:$0xf]  ;;  %v14127_v37 = vor.u32 %v19427_v12, %v14124_v15  ;;  %7448 = vmatpush.bf16.msrb.mxu0 %v13871_v27 }
 0x4e1   :  { %v14380_v21 = vld [vmem:[#allocation5 + $0xd70] sm:$0xf0] }
 0x4e2   :  { %v19555_v24 = vld [vmem:[#allocation5 + $0xf54] sm:$0xf]  ;;  %v14383_v34 = vor.u32 %v19491_v8, %v14380_v21  ;;  %7461 = vmatpush.bf16.msrb.mxu1 %v14127_v37  ;;  %v7222_v21 = vadd.f32 %v7221_v11, %v7209_v4 }
 0x4e3   :  { %v14636_v26 = vld [vmem:[#allocation5 + $0xf70] sm:$0xf0] }
 0x4e4   :  { %v19355_v32 = vld [vmem:[#allocation5 + $0x914] sm:$0xf]  ;;  %v14639_v47 = vor.u32 %v19555_v24, %v14636_v26  ;;  %7474 = vmatpush.bf16.msrb.mxu2 %v14383_v34  ;;  %v7234_v24 = vpop.f32.mrf.mxu3  ;;  %v7197_v34 = vpop.f32.mrf.mxu0 }
 0x4e5   :  { %v13836_v36 = vld [vmem:[#allocation5 + $0x930] sm:$0xf0]  ;;  %v21127_v37 = vadd.f32 %v7234_v24, %v7222_v21 }
 0x4e6   :  { %v19419_v43 = vld [vmem:[#allocation5 + $0xb14] sm:$0xf]  ;;  %v13839_v53 = vor.u32 %v19355_v32, %v13836_v36  ;;  %7487 = vmatpush.bf16.msrb.mxu3 %v14639_v47 }
 0x4e7   :  { %v14092_v48 = vld [vmem:[#allocation5 + $0xb30] sm:$0xf0] }
 0x4e8   :  { %v19483_v46 = vld [vmem:[#allocation5 + $0xd14] sm:$0xf]  ;;  %v14095_v54 = vor.u32 %v19419_v43, %v14092_v48  ;;  %7449 = vmatpush.bf16.msrb.mxu0 %v13839_v53  ;;  %v7210_v48 = vpop.f32.mrf.mxu1 }
 0x4e9   :  { %v14348_v49 = vld [vmem:[#allocation5 + $0xd30] sm:$0xf0] }
 0x4ea   :  { %v19547_v50 = vld [vmem:[#allocation5 + $0xf14] sm:$0xf]  ;;  %v14351_v55 = vor.u32 %v19483_v46, %v14348_v49  ;;  %7462 = vmatpush.bf16.msrb.mxu1 %v14095_v54 }
 0x4eb   :  { %v14604_v52 = vld [vmem:[#allocation5 + $0xf30] sm:$0xf0] }
 0x4ec   :  { %v19347_v58 = vld [vmem:[#allocation5 + $0x8d4] sm:$0xf]  ;;  %v14607_v51 = vor.u32 %v19547_v50, %v14604_v52  ;;  %7475 = vmatpush.bf16.msrb.mxu2 %v14351_v55  ;;  %v7236_v4 = vpop.f32.mrf.mxu3 }
 0x4ed   :  { %v13804_v59 = vld [vmem:[#allocation5 + $0x8f0] sm:$0xf0] }
 0x4ee   :  { %v19411_v62 = vld [vmem:[#allocation5 + $0xad4] sm:$0xf]  ;;  %v13807_v5 = vor.u32 %v19347_v58, %v13804_v59  ;;  %7488 = vmatpush.bf16.msrb.mxu3 %v14607_v51 }
 0x4ef   :  { %v14060_v56 = vld [vmem:[#allocation5 + $0xaf0] sm:$0xf0] }
 0x4f0   :  { %v19475_v63 = vld [vmem:[#allocation5 + $0xcd4] sm:$0xf]  ;;  %v14063_v7 = vor.u32 %v19411_v62, %v14060_v56  ;;  %7450 = vmatpush.bf16.msrb.mxu0 %v13807_v5  ;;  %v7223_v56 = vpop.f32.mrf.mxu2 }
 0x4f1   :  { %v14316_v0 = vld [vmem:[#allocation5 + $0xcf0] sm:$0xf0] }
 0x4f2   :  { %v19539_v2 = vld [vmem:[#allocation5 + $0xed4] sm:$0xf]  ;;  %v14319_v13 = vor.u32 %v19475_v63, %v14316_v0  ;;  %7463 = vmatpush.bf16.msrb.mxu1 %v14063_v7 }
 0x4f3   :  { %v14572_v3 = vld [vmem:[#allocation5 + $0xef0] sm:$0xf0] }
 0x4f4   :  { %v19339_v9 = vld [vmem:[#allocation5 + $0x894] sm:$0xf]  ;;  %v14575_v12 = vor.u32 %v19539_v2, %v14572_v3  ;;  %7476 = vmatpush.bf16.msrb.mxu2 %v14319_v13 }
 0x4f5   :  { %v13772_v10 = vld [vmem:[#allocation5 + $0x8b0] sm:$0xf0] }
 0x4f6   :  { %v19403_v6 = vld [vmem:[#allocation5 + $0xa94] sm:$0xf]  ;;  %v13775_v32 = vor.u32 %v19339_v9, %v13772_v10  ;;  %7489 = vmatpush.bf16.msrb.mxu3 %v14575_v12 }
 0x4f7   :  { %v14028_v14 = vld [vmem:[#allocation5 + $0xab0] sm:$0xf0] }
 0x4f8   :  { %v19467_v15 = vld [vmem:[#allocation5 + $0xc94] sm:$0xf]  ;;  %v14031_v36 = vor.u32 %v19403_v6, %v14028_v14  ;;  %7451 = vmatpush.bf16.msrb.mxu0 %v13775_v32 }
 0x4f9   :  { %v14284_v8 = vld [vmem:[#allocation5 + $0xcb0] sm:$0xf0] }
 0x4fa   :  { %v19531_v26 = vld [vmem:[#allocation5 + $0xe94] sm:$0xf]  ;;  %v14287_v43 = vor.u32 %v19467_v15, %v14284_v8  ;;  %7464 = vmatpush.bf16.msrb.mxu1 %v14031_v36 }
 0x4fb   :  { %v14540_v27 = vld [vmem:[#allocation5 + $0xeb0] sm:$0xf0] }
 0x4fc   :  { %v19331_v45 = vld [vmem:[#allocation5 + $0x854] sm:$0xf]  ;;  %v14543_v46 = vor.u32 %v19531_v26, %v14540_v27  ;;  %7477 = vmatpush.bf16.msrb.mxu2 %v14287_v43 }
 0x4fd   :  { %v13740_v39 = vld [vmem:[#allocation5 + $0x870] sm:$0xf0] }
 0x4fe   :  { %v19395_v47 = vld [vmem:[#allocation5 + $0xa54] sm:$0xf]  ;;  %v13743_v54 = vor.u32 %v19331_v45, %v13740_v39  ;;  %7490 = vmatpush.bf16.msrb.mxu3 %v14543_v46 }
 0x4ff   :  { %v13996_v49 = vld [vmem:[#allocation5 + $0xa70] sm:$0xf0] }
 0x500   :  { %v19459_v50 = vld [vmem:[#allocation5 + $0xc54] sm:$0xf]  ;;  %v13999_v59 = vor.u32 %v19395_v47, %v13996_v49  ;;  %7452 = vmatpush.bf16.msrb.mxu0 %v13743_v54 }
 0x501   :  { %v14252_v52 = vld [vmem:[#allocation5 + $0xc70] sm:$0xf0] }
 0x502   :  { %v19523_v53 = vld [vmem:[#allocation5 + $0xe54] sm:$0xf]  ;;  %v14255_v62 = vor.u32 %v19459_v50, %v14252_v52  ;;  %7465 = vmatpush.bf16.msrb.mxu1 %v13999_v59 }
 0x503   :  { %v14508_v16 = vld [vmem:[#allocation5 + $0xe70] sm:$0xf0] }
 0x504   :  { %v19323_v55 = vld [vmem:[#allocation5 + $0x814] sm:$0xf]  ;;  %v14511_v63 = vor.u32 %v19523_v53, %v14508_v16  ;;  %7478 = vmatpush.bf16.msrb.mxu2 %v14255_v62 }
 0x505   :  { %v13708_v58 = vld [vmem:[#allocation5 + $0x830] sm:$0xf0] }
 0x506   :  { %v19387_v60 = vld [vmem:[#allocation5 + $0xa14] sm:$0xf]  ;;  %v13711_v9 = vor.u32 %v19323_v55, %v13708_v58  ;;  %7491 = vmatpush.bf16.msrb.mxu3 %v14511_v63 }
 0x507   :  { %v13964_v61 = vld [vmem:[#allocation5 + $0xa30] sm:$0xf0] }
 0x508   :  { %v19451_v51 = vld [vmem:[#allocation5 + $0xc14] sm:$0xf]  ;;  %v13967_v12 = vor.u32 %v19387_v60, %v13964_v61  ;;  %7453 = vmatpush.bf16.msrb.mxu0 %v13711_v9 }
 0x509   :  { %v14220_v0 = vld [vmem:[#allocation5 + $0xc30] sm:$0xf0] }
 0x50a   :  { %v19515_v2 = vld [vmem:[#allocation5 + $0xe14] sm:$0xf]  ;;  %v14223_v14 = vor.u32 %v19451_v51, %v14220_v0  ;;  %7466 = vmatpush.bf16.msrb.mxu1 %v13967_v12 }
 0x50b   :  { %v14476_v3 = vld [vmem:[#allocation5 + $0xe30] sm:$0xf0]  ;;  %7454 = vmatmul.bf16.vlgmr.msrb.gmra.mxu0 %v20981_v41 }
 0x50c   :  { %v19635_v5 = vld [vmem:[#allocation5 + $0x11d4] sm:$0xf]  ;;  %v14479_v21 = vor.u32 %v19515_v2, %v14476_v3  ;;  %7479 = vmatpush.bf16.msrb.mxu2 %v14223_v14 }
 0x50d   :  { %v14956_v7 = vld [vmem:[#allocation5 + $0x11f0] sm:$0xf0]  ;;  %7467 = vmatmul.bf16.vlgmr.msrb.gmra.mxu1 %v20985_v44 }
 0x50e   :  { %v19699_v13 = vld [vmem:[#allocation5 + $0x13d4] sm:$0xf]  ;;  %v14959_v24 = vor.u32 %v19635_v5, %v14956_v7  ;;  %7492 = vmatpush.bf16.msrb.mxu3 %v14479_v21 }
 0x50f   :  { %v15212_v10 = vld [vmem:[#allocation5 + $0x13f0] sm:$0xf0]  ;;  %7480 = vmatmul.bf16.vlgmr.msrb.gmra.mxu2 %v20979_v38 }
 0x510   :  { %v19763_v6 = vld [vmem:[#allocation5 + $0x15d4] sm:$0xf]  ;;  %v15215_v26 = vor.u32 %v19699_v13, %v15212_v10  ;;  %7498 = vmatpush.bf16.msra.mxu0 %v14959_v24 }
 0x511   :  { %v15468_v11 = vld [vmem:[#allocation5 + $0x15f0] sm:$0xf0]  ;;  %7493 = vmatmul.bf16.vlgmr.msrb.gmra.mxu3 %v20983_v42 }
 0x512   :  { %v19827_v15 = vld [vmem:[#allocation5 + $0x17d4] sm:$0xf]  ;;  %v15471_v27 = vor.u32 %v19763_v6, %v15468_v11  ;;  %7511 = vmatpush.bf16.msra.mxu1 %v15215_v26  ;;  %v7247_v11 = vpop.f32.mrf.mxu0  ;;  %v7260_v26 = vpop.f32.mrf.mxu1 }
 0x513   :  { %v15724_v8 = vld [vmem:[#allocation5 + $0x17f0] sm:$0xf0]  ;;  %v7248_v24 = vadd.f32 %v7247_v11, %v21127_v37 }
 0x514   :  { %v19627_v32 = vld [vmem:[#allocation5 + $0x1194] sm:$0xf]  ;;  %v15727_v43 = vor.u32 %v19827_v15, %v15724_v8  ;;  %7524 = vmatpush.bf16.msra.mxu2 %v15471_v27 }
 0x515   :  { %v14924_v34 = vld [vmem:[#allocation5 + $0x11b0] sm:$0xf0] }
 0x516   :  { %v19691_v36 = vld [vmem:[#allocation5 + $0x1394] sm:$0xf]  ;;  %v14927_v49 = vor.u32 %v19627_v32, %v14924_v34  ;;  %7537 = vmatpush.bf16.msra.mxu3 %v15727_v43 }
 0x517   :  { %v15180_v45 = vld [vmem:[#allocation5 + $0x13b0] sm:$0xf0] }
 0x518   :  { %v19755_v39 = vld [vmem:[#allocation5 + $0x1594] sm:$0xf]  ;;  %v15183_v50 = vor.u32 %v19691_v36, %v15180_v45  ;;  %7499 = vmatpush.bf16.msra.mxu0 %v14927_v49 }
 0x519   :  { %v15436_v47 = vld [vmem:[#allocation5 + $0x15b0] sm:$0xf0] }
 0x51a   :  { %v19819_v48 = vld [vmem:[#allocation5 + $0x1794] sm:$0xf]  ;;  %v15439_v52 = vor.u32 %v19755_v39, %v15436_v47  ;;  %7512 = vmatpush.bf16.msra.mxu1 %v15183_v50  ;;  %v7261_v39 = vadd.f32 %v7260_v26, %v7248_v24 }
 0x51b   :  { %v15692_v46 = vld [vmem:[#allocation5 + $0x17b0] sm:$0xf0] }
 0x51c   :  { %v19619_v53 = vld [vmem:[#allocation5 + $0x1154] sm:$0xf]  ;;  %v15695_v55 = vor.u32 %v19819_v48, %v15692_v46  ;;  %7525 = vmatpush.bf16.msra.mxu2 %v15439_v52 }
 0x51d   :  { %v14892_v16 = vld [vmem:[#allocation5 + $0x1170] sm:$0xf0] }
 0x51e   :  { %v19683_v54 = vld [vmem:[#allocation5 + $0x1354] sm:$0xf]  ;;  %v14895_v51 = vor.u32 %v19619_v53, %v14892_v16  ;;  %7538 = vmatpush.bf16.msra.mxu3 %v15695_v55  ;;  %v7273_v53 = vpop.f32.mrf.mxu2 }
 0x51f   :  { %v15148_v58 = vld [vmem:[#allocation5 + $0x1370] sm:$0xf0] }
 0x520   :  { %v19747_v59 = vld [vmem:[#allocation5 + $0x1554] sm:$0xf]  ;;  %v15151_v56 = vor.u32 %v19683_v54, %v15148_v58  ;;  %7500 = vmatpush.bf16.msra.mxu0 %v14895_v51  ;;  %v7274_v58 = vadd.f32 %v7273_v53, %v7261_v39 }
 0x521   :  { %v15404_v62 = vld [vmem:[#allocation5 + $0x1570] sm:$0xf0] }
 0x522   :  { %v19811_v60 = vld [vmem:[#allocation5 + $0x1754] sm:$0xf]  ;;  %v15407_v63 = vor.u32 %v19747_v59, %v15404_v62  ;;  %7513 = vmatpush.bf16.msra.mxu1 %v15151_v56  ;;  %v7286_v59 = vpop.f32.mrf.mxu3  ;;  %v7249_v56 = vpop.f32.mrf.mxu0 }
 0x523   :  { %v15660_v61 = vld [vmem:[#allocation5 + $0x1770] sm:$0xf0]  ;;  %v21134_v51 = vadd.f32 %v7286_v59, %v7274_v58 }
 0x524   :  { %v19611_v0 = vld [vmem:[#allocation5 + $0x1114] sm:$0xf]  ;;  %v15663_v4 = vor.u32 %v19811_v60, %v15660_v61  ;;  %7526 = vmatpush.bf16.msra.mxu2 %v15407_v63 }
 0x525   :  { %v14860_v2 = vld [vmem:[#allocation5 + $0x1130] sm:$0xf0] }
 0x526   :  { %v19675_v3 = vld [vmem:[#allocation5 + $0x1314] sm:$0xf]  ;;  %v14863_v6 = vor.u32 %v19611_v0, %v14860_v2  ;;  %7539 = vmatpush.bf16.msra.mxu3 %v15663_v4 }
 0x527   :  { %v15116_v5 = vld [vmem:[#allocation5 + $0x1330] sm:$0xf0] }
 0x528   :  { %v19739_v7 = vld [vmem:[#allocation5 + $0x1514] sm:$0xf]  ;;  %v15119_v12 = vor.u32 %v19675_v3, %v15116_v5  ;;  %7501 = vmatpush.bf16.msra.mxu0 %v14863_v6  ;;  %v7262_v5 = vpop.f32.mrf.mxu1 }
 0x529   :  { %v15372_v13 = vld [vmem:[#allocation5 + $0x1530] sm:$0xf0] }
 0x52a   :  { %v19803_v9 = vld [vmem:[#allocation5 + $0x1714] sm:$0xf]  ;;  %v15375_v14 = vor.u32 %v19739_v7, %v15372_v13  ;;  %7514 = vmatpush.bf16.msra.mxu1 %v15119_v12  ;;  %v7288_v39 = vpop.f32.mrf.mxu3 }
 0x52b   :  { %v15628_v10 = vld [vmem:[#allocation5 + $0x1730] sm:$0xf0] }
 0x52c   :  { %v19603_v15 = vld [vmem:[#allocation5 + $0x10d4] sm:$0xf]  ;;  %v15631_v27 = vor.u32 %v19803_v9, %v15628_v10  ;;  %7527 = vmatpush.bf16.msra.mxu2 %v15375_v14 }
 0x52d   :  { %v14828_v8 = vld [vmem:[#allocation5 + $0x10f0] sm:$0xf0] }
 0x52e   :  { %v19667_v21 = vld [vmem:[#allocation5 + $0x12d4] sm:$0xf]  ;;  %v14831_v47 = vor.u32 %v19603_v15, %v14828_v8  ;;  %7540 = vmatpush.bf16.msra.mxu3 %v15631_v27 }
 0x52f   :  { %v15084_v32 = vld [vmem:[#allocation5 + $0x12f0] sm:$0xf0] }
 0x530   :  { %v19731_v34 = vld [vmem:[#allocation5 + $0x14d4] sm:$0xf]  ;;  %v15087_v48 = vor.u32 %v19667_v21, %v15084_v32  ;;  %7502 = vmatpush.bf16.msra.mxu0 %v14831_v47  ;;  %v7275_v32 = vpop.f32.mrf.mxu2 }
 0x531   :  { %v15340_v36 = vld [vmem:[#allocation5 + $0x14f0] sm:$0xf0] }
 0x532   :  { %v19795_v43 = vld [vmem:[#allocation5 + $0x16d4] sm:$0xf]  ;;  %v15343_v46 = vor.u32 %v19731_v34, %v15340_v36  ;;  %7515 = vmatpush.bf16.msra.mxu1 %v15087_v48 }
 0x533   :  { %v15596_v45 = vld [vmem:[#allocation5 + $0x16f0] sm:$0xf0] }
 0x534   :  { %v19595_v49 = vld [vmem:[#allocation5 + $0x1094] sm:$0xf]  ;;  %v15599_v37 = vor.u32 %v19795_v43, %v15596_v45  ;;  %7528 = vmatpush.bf16.msra.mxu2 %v15343_v46 }
 0x535   :  { %v14796_v50 = vld [vmem:[#allocation5 + $0x10b0] sm:$0xf0] }
 0x536   :  { %v19659_v52 = vld [vmem:[#allocation5 + $0x1294] sm:$0xf]  ;;  %v14799_v61 = vor.u32 %v19595_v49, %v14796_v50  ;;  %7541 = vmatpush.bf16.msra.mxu3 %v15599_v37 }
 0x537   :  { %v15052_v16 = vld [vmem:[#allocation5 + $0x12b0] sm:$0xf0] }
 0x538   :  { %v19723_v54 = vld [vmem:[#allocation5 + $0x1494] sm:$0xf]  ;;  %v15055_v63 = vor.u32 %v19659_v52, %v15052_v16  ;;  %7503 = vmatpush.bf16.msra.mxu0 %v14799_v61 }
 0x539   :  { %v15308_v55 = vld [vmem:[#allocation5 + $0x14b0] sm:$0xf0] }
 0x53a   :  { %v19787_v62 = vld [vmem:[#allocation5 + $0x1694] sm:$0xf]  ;;  %v15311_v0 = vor.u32 %v19723_v54, %v15308_v55  ;;  %7516 = vmatpush.bf16.msra.mxu1 %v15055_v63 }
 0x53b   :  { %v15564_v60 = vld [vmem:[#allocation5 + $0x16b0] sm:$0xf0] }
 0x53c   :  { %v19587_v2 = vld [vmem:[#allocation5 + $0x1054] sm:$0xf]  ;;  %v15567_v7 = vor.u32 %v19787_v62, %v15564_v60  ;;  %7529 = vmatpush.bf16.msra.mxu2 %v15311_v0 }
 0x53d   :  { %v14764_v3 = vld [vmem:[#allocation5 + $0x1070] sm:$0xf0] }
 0x53e   :  { %v19651_v4 = vld [vmem:[#allocation5 + $0x1254] sm:$0xf]  ;;  %v14767_v12 = vor.u32 %v19587_v2, %v14764_v3  ;;  %7542 = vmatpush.bf16.msra.mxu3 %v15567_v7 }
 0x53f   :  { %v15020_v13 = vld [vmem:[#allocation5 + $0x1270] sm:$0xf0] }
 0x540   :  { %v19715_v9 = vld [vmem:[#allocation5 + $0x1454] sm:$0xf]  ;;  %v15023_v8 = vor.u32 %v19651_v4, %v15020_v13  ;;  %7504 = vmatpush.bf16.msra.mxu0 %v14767_v12 }
 0x541   :  { %v15276_v10 = vld [vmem:[#allocation5 + $0x1470] sm:$0xf0] }
 0x542   :  { %v19779_v6 = vld [vmem:[#allocation5 + $0x1654] sm:$0xf]  ;;  %v15279_v21 = vor.u32 %v19715_v9, %v15276_v10  ;;  %7517 = vmatpush.bf16.msra.mxu1 %v15023_v8 }
 0x543   :  { %v15532_v11 = vld [vmem:[#allocation5 + $0x1670] sm:$0xf0] }
 0x544   :  { %v19579_v14 = vld [vmem:[#allocation5 + $0x1014] sm:$0xf]  ;;  %v15535_v34 = vor.u32 %v19779_v6, %v15532_v11  ;;  %7530 = vmatpush.bf16.msra.mxu2 %v15279_v21 }
 0x545   :  { %v14732_v15 = vld [vmem:[#allocation5 + $0x1030] sm:$0xf0] }
 0x546   :  { %v19643_v24 = vld [vmem:[#allocation5 + $0x1214] sm:$0xf]  ;;  %v14735_v49 = vor.u32 %v19579_v14, %v14732_v15  ;;  %7543 = vmatpush.bf16.msra.mxu3 %v15535_v34 }
 0x547   :  { %v14988_v26 = vld [vmem:[#allocation5 + $0x1230] sm:$0xf0] }
 0x548   :  { %v19707_v27 = vld [vmem:[#allocation5 + $0x1414] sm:$0xf]  ;;  %v14991_v37 = vor.u32 %v19643_v24, %v14988_v26  ;;  %7505 = vmatpush.bf16.msra.mxu0 %v14735_v49  ;;  %v7299_v49 = vpop.f32.mrf.mxu0 }
 0x549   :  { %v15244_v36 = vld [vmem:[#allocation5 + $0x1430] sm:$0xf0] }
 0x54a   :  { %v19771_v43 = vld [vmem:[#allocation5 + $0x1614] sm:$0xf]  ;;  %v15247_v16 = vor.u32 %v19707_v27, %v15244_v36  ;;  %7518 = vmatpush.bf16.msra.mxu1 %v14991_v37 }
 0x54b   :  { %v15500_v45 = vld [vmem:[#allocation5 + $0x1630] sm:$0xf0]  ;;  %7506 = vmatmul.bf16.vlgmr.msra.gmra.mxu0 %v20991_v25 }
 0x54c   :  { %v19891_v47 = vld [vmem:[#allocation5 + $0x19d4] sm:$0xf]  ;;  %v15503_v58 = vor.u32 %v19771_v43, %v15500_v45  ;;  %7531 = vmatpush.bf16.msra.mxu2 %v15247_v16  ;;  %v7312_v16 = vpop.f32.mrf.mxu1 }
 0x54d   :  { %v15980_v48 = vld [vmem:[#allocation5 + $0x19f0] sm:$0xf0]  ;;  %7519 = vmatmul.bf16.vlgmr.msra.gmra.mxu1 %v20995_v30 }
 0x54e   :  { %v19955_v46 = vld [vmem:[#allocation5 + $0x1bd4] sm:$0xf]  ;;  %v15983_v59 = vor.u32 %v19891_v47, %v15980_v48  ;;  %7544 = vmatpush.bf16.msra.mxu3 %v15503_v58 }
 0x54f   :  { %v16236_v50 = vld [vmem:[#allocation5 + $0x1bf0] sm:$0xf0]  ;;  %7532 = vmatmul.bf16.vlgmr.msra.gmra.mxu2 %v20993_v29 }
 0x550   :  { %v20019_v52 = vld [vmem:[#allocation5 + $0x1dd4] sm:$0xf]  ;;  %v16239_v62 = vor.u32 %v19955_v46, %v16236_v50  ;;  %7550 = vmatpush.bf16.msrb.mxu0 %v15983_v59 }
 0x551   :  { %v16492_v53 = vld [vmem:[#allocation5 + $0x1df0] sm:$0xf0]  ;;  %7545 = vmatmul.bf16.vlgmr.msra.gmra.mxu3 %v20997_v33 }
 0x552   :  { %v20083_v54 = vld [vmem:[#allocation5 + $0x1fd4] sm:$0xf]  ;;  %v16495_v60 = vor.u32 %v20019_v52, %v16492_v53  ;;  %7563 = vmatpush.bf16.msrb.mxu1 %v16239_v62  ;;  %v7300_v53 = vadd.f32 %v7299_v49, %v21134_v51 }
 0x553   :  { %v16748_v55 = vld [vmem:[#allocation5 + $0x1ff0] sm:$0xf0] }
 0x554   :  { %v19883_v61 = vld [vmem:[#allocation5 + $0x1994] sm:$0xf]  ;;  %v16751_v0 = vor.u32 %v20083_v54, %v16748_v55  ;;  %7576 = vmatpush.bf16.msrb.mxu2 %v16495_v60 }
 0x555   :  { %v15948_v56 = vld [vmem:[#allocation5 + $0x19b0] sm:$0xf0] }
 0x556   :  { %v19947_v63 = vld [vmem:[#allocation5 + $0x1b94] sm:$0xf]  ;;  %v15951_v13 = vor.u32 %v19883_v61, %v15948_v56  ;;  %7589 = vmatpush.bf16.msrb.mxu3 %v16751_v0  ;;  %v7313_v61 = vadd.f32 %v7312_v16, %v7300_v53 }
 0x557   :  { %v16204_v2 = vld [vmem:[#allocation5 + $0x1bb0] sm:$0xf0] }
 0x558   :  { %v20011_v3 = vld [vmem:[#allocation5 + $0x1d94] sm:$0xf]  ;;  %v16207_v9 = vor.u32 %v19947_v63, %v16204_v2  ;;  %7551 = vmatpush.bf16.msrb.mxu0 %v15951_v13 }
 0x559   :  { %v16460_v4 = vld [vmem:[#allocation5 + $0x1db0] sm:$0xf0] }
 0x55a   :  { %v20075_v5 = vld [vmem:[#allocation5 + $0x1f94] sm:$0xf]  ;;  %v16463_v10 = vor.u32 %v20011_v3, %v16460_v4  ;;  %7564 = vmatpush.bf16.msrb.mxu1 %v16207_v9 }
 0x55b   :  { %v16716_v7 = vld [vmem:[#allocation5 + $0x1fb0] sm:$0xf0] }
 0x55c   :  { %v19875_v6 = vld [vmem:[#allocation5 + $0x1954] sm:$0xf]  ;;  %v16719_v14 = vor.u32 %v20075_v5, %v16716_v7  ;;  %7577 = vmatpush.bf16.msrb.mxu2 %v16463_v10 }
 0x55d   :  { %v15916_v11 = vld [vmem:[#allocation5 + $0x1970] sm:$0xf0] }
 0x55e   :  { %v19939_v12 = vld [vmem:[#allocation5 + $0x1b54] sm:$0xf]  ;;  %v15919_v27 = vor.u32 %v19875_v6, %v15916_v11  ;;  %7590 = vmatpush.bf16.msrb.mxu3 %v16719_v14  ;;  %v7325_v6 = vpop.f32.mrf.mxu2 }
 0x55f   :  { %v16172_v15 = vld [vmem:[#allocation5 + $0x1b70] sm:$0xf0] }
 0x560   :  { %v20003_v8 = vld [vmem:[#allocation5 + $0x1d54] sm:$0xf]  ;;  %v16175_v32 = vor.u32 %v19939_v12, %v16172_v15  ;;  %7552 = vmatpush.bf16.msrb.mxu0 %v15919_v27  ;;  %v7326_v15 = vadd.f32 %v7325_v6, %v7313_v61 }
 0x561   :  { %v16428_v21 = vld [vmem:[#allocation5 + $0x1d70] sm:$0xf0] }
 0x562   :  { %v20067_v24 = vld [vmem:[#allocation5 + $0x1f54] sm:$0xf]  ;;  %v16431_v34 = vor.u32 %v20003_v8, %v16428_v21  ;;  %7565 = vmatpush.bf16.msrb.mxu1 %v16175_v32  ;;  %v7338_v8 = vpop.f32.mrf.mxu3  ;;  %v7314_v32 = vpop.f32.mrf.mxu1 }
 0x563   :  { %v16684_v26 = vld [vmem:[#allocation5 + $0x1f70] sm:$0xf0]  ;;  %v13138_v32 = vld [vmem:[#allocation5 + $0x398] sm:$0xf] }
 0x564   :  { %v19867_v36 = vld [vmem:[#allocation5 + $0x1914] sm:$0xf]  ;;  %v16687_v39 = vor.u32 %v20067_v24, %v16684_v26  ;;  %7578 = vmatpush.bf16.msrb.mxu2 %v16431_v34  ;;  %v7301_v26 = vpop.f32.mrf.mxu0  ;;  %v21141_v34 = vadd.f32 %v7338_v8, %v7326_v15 }
 0x565   :  { %v15884_v43 = vld [vmem:[#allocation5 + $0x1930] sm:$0xf0]  ;;  %v12882_v26 = vld [vmem:[#allocation5 + $0x198] sm:$0xf] }
 0x566   :  { %v19931_v45 = vld [vmem:[#allocation5 + $0x1b14] sm:$0xf]  ;;  %v15887_v37 = vor.u32 %v19867_v36, %v15884_v43  ;;  %7591 = vmatpush.bf16.msrb.mxu3 %v16687_v39 }
 0x567   :  { %v16140_v47 = vld [vmem:[#allocation5 + $0x1b30] sm:$0xf0] }
 0x568   :  { %v19995_v48 = vld [vmem:[#allocation5 + $0x1d14] sm:$0xf]  ;;  %v16143_v54 = vor.u32 %v19931_v45, %v16140_v47  ;;  %7553 = vmatpush.bf16.msrb.mxu0 %v15887_v37 }
 0x569   :  { %v16396_v46 = vld [vmem:[#allocation5 + $0x1d30] sm:$0xf0] }
 0x56a   :  { %v20059_v50 = vld [vmem:[#allocation5 + $0x1f14] sm:$0xf]  ;;  %v16399_v55 = vor.u32 %v19995_v48, %v16396_v46  ;;  %7566 = vmatpush.bf16.msrb.mxu1 %v16143_v54 }
 0x56b   :  { %v16652_v52 = vld [vmem:[#allocation5 + $0x1f30] sm:$0xf0] }
 0x56c   :  { %v19859_v58 = vld [vmem:[#allocation5 + $0x18d4] sm:$0xf]  ;;  %v16655_v60 = vor.u32 %v20059_v50, %v16652_v52  ;;  %7579 = vmatpush.bf16.msrb.mxu2 %v16399_v55 }
 0x56d   :  { %v15852_v59 = vld [vmem:[#allocation5 + $0x18f0] sm:$0xf0] }
 0x56e   :  { %v19923_v62 = vld [vmem:[#allocation5 + $0x1ad4] sm:$0xf]  ;;  %v15855_v4 = vor.u32 %v19859_v58, %v15852_v59  ;;  %7592 = vmatpush.bf16.msrb.mxu3 %v16655_v60 }
 0x56f   :  { %v16108_v56 = vld [vmem:[#allocation5 + $0x1af0] sm:$0xf0] }
 0x570   :  { %v19987_v63 = vld [vmem:[#allocation5 + $0x1cd4] sm:$0xf]  ;;  %v16111_v51 = vor.u32 %v19923_v62, %v16108_v56  ;;  %7554 = vmatpush.bf16.msrb.mxu0 %v15855_v4  ;;  %v19128_v4 = vld [vmem:[#allocation5 + $0x1f4] sm:$0xf0] }
 0x571   :  { %v16364_v0 = vld [vmem:[#allocation5 + $0x1cf0] sm:$0xf0] }
 0x572   :  { %v20051_v2 = vld [vmem:[#allocation5 + $0x1ed4] sm:$0xf]  ;;  %v16367_v5 = vor.u32 %v19987_v63, %v16364_v0  ;;  %7567 = vmatpush.bf16.msrb.mxu1 %v16111_v51  ;;  %v13170_v51 = vld [vmem:[#allocation5 + $0x3d8] sm:$0xf] }
 0x573   :  { %v16620_v3 = vld [vmem:[#allocation5 + $0x1ef0] sm:$0xf0] }
 0x574   :  { %v19851_v7 = vld [vmem:[#allocation5 + $0x1894] sm:$0xf]  ;;  %v16623_v10 = vor.u32 %v20051_v2, %v16620_v3  ;;  %7580 = vmatpush.bf16.msrb.mxu2 %v16367_v5  ;;  %v7327_v2 = vpop.f32.mrf.mxu2  ;;  %v12914_v3 = vld [vmem:[#allocation5 + $0x1d8] sm:$0xf]  ;;  %v7340_v5 = vpop.f32.mrf.mxu3 }
 0x575   :  { %v15820_v13 = vld [vmem:[#allocation5 + $0x18b0] sm:$0xf0]  ;;  %v12915_v8 = vor.u32 %v19128_v4, %v12914_v3  ;;  %v13074_v2 = vld [vmem:[#allocation5 + $0x318] sm:$0xf] }
 0x576   :  { %v19915_v9 = vld [vmem:[#allocation5 + $0x1a94] sm:$0xf]  ;;  %v15823_v27 = vor.u32 %v19851_v7, %v15820_v13  ;;  %7593 = vmatpush.bf16.msrb.mxu3 %v16623_v10  ;;  %v19192_v13 = vld [vmem:[#allocation5 + $0x3f4] sm:$0xf0] }
 0x577   :  { %v16076_v11 = vld [vmem:[#allocation5 + $0x1ab0] sm:$0xf0]  ;;  %v19256_v10 = vld [vmem:[#allocation5 + $0x5f4] sm:$0xf0] }
 0x578   :  { %v19979_v12 = vld [vmem:[#allocation5 + $0x1c94] sm:$0xf]  ;;  %v16079_v36 = vor.u32 %v19915_v9, %v16076_v11  ;;  %7555 = vmatpush.bf16.msrb.mxu0 %v15823_v27  ;;  %v13426_v9 = vld [vmem:[#allocation5 + $0x5d8] sm:$0xf] }
 0x579   :  { %v16332_v14 = vld [vmem:[#allocation5 + $0x1cb0] sm:$0xf0]  ;;  %v19120_v27 = vld [vmem:[#allocation5 + $0x1b4] sm:$0xf0] }
 0x57a   :  { %v20043_v21 = vld [vmem:[#allocation5 + $0x1e94] sm:$0xf]  ;;  %v16335_v43 = vor.u32 %v19979_v12, %v16332_v14  ;;  %7568 = vmatpush.bf16.msrb.mxu1 %v16079_v36  ;;  %v13682_v12 = vld [vmem:[#allocation5 + $0x7d8] sm:$0xf] }
 0x57b   :  { %v16588_v24 = vld [vmem:[#allocation5 + $0x1eb0] sm:$0xf0]  ;;  %v19320_v14 = vld [vmem:[#allocation5 + $0x7f4] sm:$0xf0] }
 0x57c   :  { %v19843_v45 = vld [vmem:[#allocation5 + $0x1854] sm:$0xf]  ;;  %v16591_v48 = vor.u32 %v20043_v21, %v16588_v24  ;;  %7581 = vmatpush.bf16.msrb.mxu2 %v16335_v43  ;;  %v13171_v21 = vor.u32 %v19192_v13, %v13170_v51  ;;  %v13427_v24 = vor.u32 %v19256_v10, %v13426_v9  ;;  %v13683_v36 = vor.u32 %v19320_v14, %v13682_v12  ;;  %v19184_v43 = vld [vmem:[#allocation5 + $0x3b4] sm:$0xf0] }
 0x57d   :  { %v15788_v39 = vld [vmem:[#allocation5 + $0x1870] sm:$0xf0]  ;;  %v19168_v4 = vld [vmem:[#allocation5 + $0x334] sm:$0xf0] }
 0x57e   :  { %v19907_v47 = vld [vmem:[#allocation5 + $0x1a54] sm:$0xf]  ;;  %v15791_v37 = vor.u32 %v19843_v45, %v15788_v39  ;;  %7594 = vmatpush.bf16.msrb.mxu3 %v16591_v48  ;;  %v13394_v45 = vld [vmem:[#allocation5 + $0x598] sm:$0xf]  ;;  %v13075_v12 = vor.u32 %v19168_v4, %v13074_v2 }
 0x57f   :  { %v16044_v46 = vld [vmem:[#allocation5 + $0x1a70] sm:$0xf0]  ;;  %v19248_v39 = vld [vmem:[#allocation5 + $0x5b4] sm:$0xf0] }
 0x580   :  { %v19971_v49 = vld [vmem:[#allocation5 + $0x1c54] sm:$0xf]  ;;  %v16047_v55 = vor.u32 %v19907_v47, %v16044_v46  ;;  %7556 = vmatpush.bf16.msrb.mxu0 %v15791_v37  ;;  %v13650_v47 = vld [vmem:[#allocation5 + $0x798] sm:$0xf]  ;;  %v12883_v46 = vor.u32 %v19120_v27, %v12882_v26 }
 0x581   :  { %v16300_v50 = vld [vmem:[#allocation5 + $0x1c70] sm:$0xf0]  ;;  %v19312_v48 = vld [vmem:[#allocation5 + $0x7b4] sm:$0xf0] }
 0x582   :  { %v20035_v52 = vld [vmem:[#allocation5 + $0x1e54] sm:$0xf]  ;;  %v16303_v58 = vor.u32 %v19971_v49, %v16300_v50  ;;  %7569 = vmatpush.bf16.msrb.mxu1 %v16047_v55  ;;  %v13139_v49 = vor.u32 %v19184_v43, %v13138_v32  ;;  %v13395_v50 = vor.u32 %v19248_v39, %v13394_v45  ;;  %v13106_v37 = vld [vmem:[#allocation5 + $0x358] sm:$0xf] }
 0x583   :  { %v16556_v53 = vld [vmem:[#allocation5 + $0x1e70] sm:$0xf0]  ;;  %v13362_v55 = vld [vmem:[#allocation5 + $0x558] sm:$0xf] }
 0x584   :  { %v19835_v16 = vld [vmem:[#allocation5 + $0x1814] sm:$0xf]  ;;  %v16559_v61 = vor.u32 %v20035_v52, %v16556_v53  ;;  %7582 = vmatpush.bf16.msrb.mxu2 %v16303_v58  ;;  %v12850_v52 = vld [vmem:[#allocation5 + $0x158] sm:$0xf] }
 0x585   :  { %v15756_v54 = vld [vmem:[#allocation5 + $0x1830] sm:$0xf0]  ;;  %v19112_v53 = vld [vmem:[#allocation5 + $0x174] sm:$0xf0] }
 0x586   :  { %v19899_v59 = vld [vmem:[#allocation5 + $0x1a14] sm:$0xf]  ;;  %v15759_v7 = vor.u32 %v19835_v16, %v15756_v54  ;;  %7595 = vmatpush.bf16.msrb.mxu3 %v16559_v61  ;;  %v13651_v16 = vor.u32 %v19312_v48, %v13650_v47  ;;  %v19176_v54 = vld [vmem:[#allocation5 + $0x374] sm:$0xf0] }
 0x587   :  { %v16012_v62 = vld [vmem:[#allocation5 + $0x1a30] sm:$0xf0]  ;;  %v19240_v58 = vld [vmem:[#allocation5 + $0x574] sm:$0xf0]  ;;  %v13107_v61 = vor.u32 %v19176_v54, %v13106_v37 }
 0x588   :  { %v19963_v60 = vld [vmem:[#allocation5 + $0x1c14] sm:$0xf]  ;;  %v16015_v6 = vor.u32 %v19899_v59, %v16012_v62  ;;  %7557 = vmatpush.bf16.msrb.mxu0 %v15759_v7  ;;  %v13618_v59 = vld [vmem:[#allocation5 + $0x758] sm:$0xf]  ;;  %v7351_v7 = vpop.f32.mrf.mxu0 }
 0x589   :  { %v16268_v56 = vld [vmem:[#allocation5 + $0x1c30] sm:$0xf0]  ;;  %v19304_v62 = vld [vmem:[#allocation5 + $0x774] sm:$0xf0]  ;;  %v7352_v10 = vadd.f32 %v7351_v7, %v21141_v34 }
 0x58a   :  { %v20027_v63 = vld [vmem:[#allocation5 + $0x1e14] sm:$0xf]  ;;  %v16271_v11 = vor.u32 %v19963_v60, %v16268_v56  ;;  %7570 = vmatpush.bf16.msrb.mxu1 %v16015_v6  ;;  %v12851_v60 = vor.u32 %v19112_v53, %v12850_v52  ;;  %v13363_v56 = vor.u32 %v19240_v58, %v13362_v55  ;;  %v13619_v3 = vor.u32 %v19304_v62, %v13618_v59  ;;  %v13330_v51 = vld [vmem:[#allocation5 + $0x518] sm:$0xf]  ;;  %v7377_v52 = vpop.f32.mrf.mxu2  ;;  %v7390_v55 = vpop.f32.mrf.mxu3 }
 0x58b   :  { %v16524_v0 = vld [vmem:[#allocation5 + $0x1e30] sm:$0xf0]  ;;  %7558 = vmatmul.bf16.vlgmr.msrb.gmra.mxu0 %v21003_v23  ;;  %v19232_v5 = vld [vmem:[#allocation5 + $0x534] sm:$0xf0] }
 0x58c   :  { %v16527_v15 = vor.u32 %v20027_v63, %v16524_v0  ;;  %7583 = vmatpush.bf16.msrb.mxu2 %v16271_v11  ;;  %7602 = vmatpush.bf16.msra.mxu0 %v12915_v8  ;;  %v12818_v63 = vld [vmem:[#allocation5 + $0x118] sm:$0xf]  ;;  %v7364_v11 = vpop.f32.mrf.mxu1  ;;  %v13331_v14 = vor.u32 %v19232_v5, %v13330_v51 }
 0x58d   :  { %7571 = vmatmul.bf16.vlgmr.msrb.gmra.mxu1 %v21007_v31  ;;  %v19104_v0 = vld [vmem:[#allocation5 + $0x134] sm:$0xf0]  ;;  %v7365_v26 = vadd.f32 %v7364_v11, %v7352_v10 }
 0x58e   :  { %7596 = vmatpush.bf16.msrb.mxu3 %v16527_v15  ;;  %7615 = vmatpush.bf16.msra.mxu1 %v13171_v21  ;;  %v13586_v13 = vld [vmem:[#allocation5 + $0x718] sm:$0xf]  ;;  %v12819_v6 = vor.u32 %v19104_v0, %v12818_v63 }
 0x58f   :  { %7584 = vmatmul.bf16.vlgmr.msrb.gmra.mxu2 %v21005_v28  ;;  %v19296_v9 = vld [vmem:[#allocation5 + $0x734] sm:$0xf0]  ;;  %v7378_v54 = vadd.f32 %v7377_v52, %v7365_v26 }
 0x590   :  { %7628 = vmatpush.bf16.msra.mxu2 %v13427_v24  ;;  %7603 = vmatpush.bf16.msra.mxu0 %v12883_v46  ;;  %v12786_v15 = vld [vmem:[#allocation5 + $0xd8] sm:$0xf]  ;;  %v13587_v24 = vor.u32 %v19296_v9, %v13586_v13  ;;  %v7353_v62 = vpop.f32.mrf.mxu0 }
 0x591   :  { %7597 = vmatmul.bf16.vlgmr.msrb.gmra.mxu3 %v21009_v35  ;;  %v19096_v8 = vld [vmem:[#allocation5 + $0xf4] sm:$0xf0] }
 0x592   :  { %7641 = vmatpush.bf16.msra.mxu3 %v13683_v36  ;;  %7616 = vmatpush.bf16.msra.mxu1 %v13139_v49  ;;  %v13042_v21 = vld [vmem:[#allocation5 + $0x2d8] sm:$0xf]  ;;  %v12787_v39 = vor.u32 %v19096_v8, %v12786_v15 }
 0x593   :  { %v19160_v27 = vld [vmem:[#allocation5 + $0x2f4] sm:$0xf0] }
 0x594   :  { %7629 = vmatpush.bf16.msra.mxu2 %v13395_v50  ;;  %7604 = vmatpush.bf16.msra.mxu0 %v12851_v60  ;;  %v13298_v32 = vld [vmem:[#allocation5 + $0x4d8] sm:$0xf]  ;;  %v13043_v34 = vor.u32 %v19160_v27, %v13042_v21 }
 0x595   :  { %v19224_v36 = vld [vmem:[#allocation5 + $0x4f4] sm:$0xf0] }
 0x596   :  { %7642 = vmatpush.bf16.msra.mxu3 %v13651_v16  ;;  %7617 = vmatpush.bf16.msra.mxu1 %v13107_v61  ;;  %v13554_v43 = vld [vmem:[#allocation5 + $0x6d8] sm:$0xf]  ;;  %v13299_v47 = vor.u32 %v19224_v36, %v13298_v32  ;;  %v7366_v61 = vpop.f32.mrf.mxu1 }
 0x597   :  { %v19288_v45 = vld [vmem:[#allocation5 + $0x6f4] sm:$0xf0] }
 0x598   :  { %7630 = vmatpush.bf16.msra.mxu2 %v13363_v56  ;;  %7605 = vmatpush.bf16.msra.mxu0 %v12819_v6  ;;  %v12754_v48 = vld [vmem:[#allocation5 + $0x98] sm:$0xf]  ;;  %v13555_v50 = vor.u32 %v19288_v45, %v13554_v43  ;;  %v21148_v56 = vadd.f32 %v7390_v55, %v7378_v54  ;;  %v7379_v43 = vpop.f32.mrf.mxu2 }
 0x599   :  { %v19088_v46 = vld [vmem:[#allocation5 + $0xb4] sm:$0xf0] }
 0x59a   :  { %7643 = vmatpush.bf16.msra.mxu3 %v13619_v3  ;;  %7618 = vmatpush.bf16.msra.mxu1 %v13075_v12  ;;  %v13010_v49 = vld [vmem:[#allocation5 + $0x298] sm:$0xf]  ;;  %v12755_v60 = vor.u32 %v19088_v46, %v12754_v48  ;;  %vm8022_vm4 = vcmp.gt.f32.partialorder %v21148_v56, 0.0 }
 0x59b   :  { %v19152_v53 = vld [vmem:[#allocation5 + $0x2b4] sm:$0xf0] }
 0x59c   :  { %7631 = vmatpush.bf16.msra.mxu2 %v13331_v14  ;;  %v13266_v37 = vld [vmem:[#allocation5 + $0x498] sm:$0xf]  ;;  %7606 = vmatpush.bf16.msra.mxu0 %v12787_v39  ;;  %v13011_v63 = vor.u32 %v19152_v53, %v13010_v49 }
 0x59d   :  { %v19216_v16 = vld [vmem:[#allocation5 + $0x4b4] sm:$0xf0] }
 0x59e   :  { %7644 = vmatpush.bf16.msra.mxu3 %v13587_v24  ;;  %v13522_v58 = vld [vmem:[#allocation5 + $0x698] sm:$0xf]  ;;  %7619 = vmatpush.bf16.msra.mxu1 %v13043_v34  ;;  %v13267_v0 = vor.u32 %v19216_v16, %v13266_v37 }
 0x59f   :  { %v19280_v59 = vld [vmem:[#allocation5 + $0x6b4] sm:$0xf0] }
 0x5a0   :  { %7632 = vmatpush.bf16.msra.mxu2 %v13299_v47  ;;  %v12722_v2 = vld [vmem:[#allocation5 + $0x58] sm:$0xf]  ;;  %v13523_v51 = vor.u32 %v19280_v59, %v13522_v58  ;;  %7607 = vmatpush.bf16.msra.mxu0 %v12755_v60  ;;  %v7392_v47 = vpop.f32.mrf.mxu3 }
 0x5a1   :  { %v19080_v3 = vld [vmem:[#allocation5 + $0x74] sm:$0xf0] }
 0x5a2   :  { %v12978_v4 = vld [vmem:[#allocation5 + $0x258] sm:$0xf]  ;;  %7645 = vmatpush.bf16.msra.mxu3 %v13555_v50  ;;  %v12723_v6 = vor.u32 %v19080_v3, %v12722_v2  ;;  %7620 = vmatpush.bf16.msra.mxu1 %v13011_v63 }
 0x5a3   :  { %v19144_v5 = vld [vmem:[#allocation5 + $0x274] sm:$0xf0] }
 0x5a4   :  { %v13234_v7 = vld [vmem:[#allocation5 + $0x458] sm:$0xf]  ;;  %7633 = vmatpush.bf16.msra.mxu2 %v13267_v0  ;;  %v12979_v14 = vor.u32 %v19144_v5, %v12978_v4  ;;  %7608 = vmatpush.bf16.msra.mxu0 %v12723_v6 }
 0x5a5   :  { %v19208_v13 = vld [vmem:[#allocation5 + $0x474] sm:$0xf0] }
 0x5a6   :  { %v13490_v9 = vld [vmem:[#allocation5 + $0x658] sm:$0xf]  ;;  %v13235_v15 = vor.u32 %v19208_v13, %v13234_v7  ;;  %7646 = vmatpush.bf16.msra.mxu3 %v13523_v51  ;;  %7621 = vmatpush.bf16.msra.mxu1 %v12979_v14 }
 0x5a7   :  { %v19272_v10 = vld [vmem:[#allocation5 + $0x674] sm:$0xf0] }
 0x5a8   :  { %v12690_v11 = vld [vmem:[#allocation5 + $0x18] sm:$0xf]  ;;  %v13491_v26 = vor.u32 %v19272_v10, %v13490_v9  ;;  %7634 = vmatpush.bf16.msra.mxu2 %v13235_v15 }
 0x5a9   :  { %v19072_v12 = vld [vmem:[#allocation5 + $0x34] sm:$0xf0] }
 0x5aa   :  { %v12946_v8 = vld [vmem:[#allocation5 + $0x218] sm:$0xf]  ;;  %v12691_v48 = vor.u32 %v19072_v12, %v12690_v11  ;;  %7647 = vmatpush.bf16.msra.mxu3 %v13491_v26 }
 0x5ab   :  { %v19136_v21 = vld [vmem:[#allocation5 + $0x234] sm:$0xf0] }
 0x5ac   :  { %v13202_v24 = vld [vmem:[#allocation5 + $0x418] sm:$0xf]  ;;  %v12947_v52 = vor.u32 %v19136_v21, %v12946_v8  ;;  %7609 = vmatpush.bf16.msra.mxu0 %v12691_v48 }
 0x5ad   :  { %v19200_v27 = vld [vmem:[#allocation5 + $0x434] sm:$0xf0] }
 0x5ae   :  { %v13458_v32 = vld [vmem:[#allocation5 + $0x618] sm:$0xf]  ;;  %v13203_v53 = vor.u32 %v19200_v27, %v13202_v24  ;;  %7622 = vmatpush.bf16.msra.mxu1 %v12947_v52 }
 0x5af   :  { %v19264_v36 = vld [vmem:[#allocation5 + $0x634] sm:$0xf0]  ;;  %7610 = vmatmul.bf16.vlgmr.msra.gmra.mxu0 %v20969_v19 }
 0x5b0   :  { %v13938_v45 = vld [vmem:[#allocation5 + $0x9d8] sm:$0xf]  ;;  %v13459_v54 = vor.u32 %v19264_v36, %v13458_v32  ;;  %7635 = vmatpush.bf16.msra.mxu2 %v13203_v53  ;;  %v7403_v53 = vpop.f32.mrf.mxu0 }
 0x5b1   :  { %v19384_v39 = vld [vmem:[#allocation5 + $0x9f4] sm:$0xf0]  ;;  %7623 = vmatmul.bf16.vlgmr.msra.gmra.mxu1 %v20973_v22 }
 0x5b2   :  { %v14194_v34 = vld [vmem:[#allocation5 + $0xbd8] sm:$0xf]  ;;  %v13939_v55 = vor.u32 %v19384_v39, %v13938_v45  ;;  %7648 = vmatpush.bf16.msra.mxu3 %v13459_v54  ;;  %v20686_v45 = vld [vmem:[#allocation7] sm:$0xff] }
 0x5b3   :  { %v19448_v46 = vld [vmem:[#allocation5 + $0xbf4] sm:$0xf0]  ;;  %7636 = vmatmul.bf16.vlgmr.msra.gmra.mxu2 %v20967_v18  ;;  %v1167_v39 = vperm.slane %v20686_v45, 5 }
 0x5b4   :  { %v14450_v49 = vld [vmem:[#allocation5 + $0xdd8] sm:$0xf]  ;;  %v14195_v58 = vor.u32 %v19448_v46, %v14194_v34  ;;  %7654 = vmatpush.bf16.msrb.mxu0 %v13939_v55 }
 0x5b5   :  { %v19512_v50 = vld [vmem:[#allocation5 + $0xdf4] sm:$0xf0]  ;;  %7649 = vmatmul.bf16.vlgmr.msra.gmra.mxu3 %v20971_v20 }
 0x5b6   :  { %v14706_v37 = vld [vmem:[#allocation5 + $0xfd8] sm:$0xf]  ;;  %v14451_v59 = vor.u32 %v19512_v50, %v14450_v49  ;;  %7667 = vmatpush.bf16.msrb.mxu1 %v14195_v58 }
 0x5b7   :  { %v19576_v16 = vld [vmem:[#allocation5 + $0xff4] sm:$0xf0] }
 0x5b8   :  { %v13906_v62 = vld [vmem:[#allocation5 + $0x998] sm:$0xf]  ;;  %v14707_v63 = vor.u32 %v19576_v16, %v14706_v37  ;;  %7680 = vmatpush.bf16.msrb.mxu2 %v14451_v59  ;;  %v7404_v59 = vadd.f32 %v7403_v53, %v1167_v39 }
 0x5b9   :  { %v19376_v60 = vld [vmem:[#allocation5 + $0x9b4] sm:$0xf0] }
 0x5ba   :  { %v14162_v61 = vld [vmem:[#allocation5 + $0xb98] sm:$0xf]  ;;  %v13907_v5 = vor.u32 %v19376_v60, %v13906_v62  ;;  %7693 = vmatpush.bf16.msrb.mxu3 %v14707_v63  ;;  %v7416_v62 = vpop.f32.mrf.mxu1 }
 0x5bb   :  { %v19440_v0 = vld [vmem:[#allocation5 + $0xbb4] sm:$0xf0] }
 0x5bc   :  { %v14418_v2 = vld [vmem:[#allocation5 + $0xd98] sm:$0xf]  ;;  %v14163_v7 = vor.u32 %v19440_v0, %v14162_v61  ;;  %7655 = vmatpush.bf16.msrb.mxu0 %v13907_v5 }
 0x5bd   :  { %v19504_v3 = vld [vmem:[#allocation5 + $0xdb4] sm:$0xf0] }
 0x5be   :  { %v14674_v4 = vld [vmem:[#allocation5 + $0xf98] sm:$0xf]  ;;  %v14419_v13 = vor.u32 %v19504_v3, %v14418_v2  ;;  %7668 = vmatpush.bf16.msrb.mxu1 %v14163_v7 }
 0x5bf   :  { %v19568_v51 = vld [vmem:[#allocation5 + $0xfb4] sm:$0xf0] }
 0x5c0   :  { %v13874_v9 = vld [vmem:[#allocation5 + $0x958] sm:$0xf]  ;;  %v14675_v11 = vor.u32 %v19568_v51, %v14674_v4  ;;  %7681 = vmatpush.bf16.msrb.mxu2 %v14419_v13  ;;  %v7417_v4 = vadd.f32 %v7416_v62, %v7404_v59 }
 0x5c1   :  { %v19368_v10 = vld [vmem:[#allocation5 + $0x974] sm:$0xf0] }
 0x5c2   :  { %v14130_v6 = vld [vmem:[#allocation5 + $0xb58] sm:$0xf]  ;;  %v13875_v24 = vor.u32 %v19368_v10, %v13874_v9  ;;  %7694 = vmatpush.bf16.msrb.mxu3 %v14675_v11 }
 0x5c3   :  { %v19432_v12 = vld [vmem:[#allocation5 + $0xb74] sm:$0xf0] }
 0x5c4   :  { %v14386_v14 = vld [vmem:[#allocation5 + $0xd58] sm:$0xf]  ;;  %v14131_v27 = vor.u32 %v19432_v12, %v14130_v6  ;;  %7656 = vmatpush.bf16.msrb.mxu0 %v13875_v24  ;;  %v7429_v6 = vpop.f32.mrf.mxu2 }
 0x5c5   :  { %v19496_v15 = vld [vmem:[#allocation5 + $0xd74] sm:$0xf0] }
 0x5c6   :  { %v14642_v8 = vld [vmem:[#allocation5 + $0xf58] sm:$0xf]  ;;  %v14387_v32 = vor.u32 %v19496_v15, %v14386_v14  ;;  %7669 = vmatpush.bf16.msrb.mxu1 %v14131_v27 }
 0x5c7   :  { %v19560_v21 = vld [vmem:[#allocation5 + $0xf74] sm:$0xf0] }
 0x5c8   :  { %v13842_v26 = vld [vmem:[#allocation5 + $0x918] sm:$0xf]  ;;  %v14643_v34 = vor.u32 %v19560_v21, %v14642_v8  ;;  %7682 = vmatpush.bf16.msrb.mxu2 %v14387_v32  ;;  %v7430_v8 = vadd.f32 %v7429_v6, %v7417_v4  ;;  %v7442_v21 = vpop.f32.mrf.mxu3 }
 0x5c9   :  { %v19360_v36 = vld [vmem:[#allocation5 + $0x934] sm:$0xf0] }
 0x5ca   :  { %v14098_v43 = vld [vmem:[#allocation5 + $0xb18] sm:$0xf]  ;;  %v13843_v52 = vor.u32 %v19360_v36, %v13842_v26  ;;  %7695 = vmatpush.bf16.msrb.mxu3 %v14643_v34  ;;  %v21154_v32 = vadd.f32 %v7442_v21, %v7430_v8  ;;  %v7405_v36 = vpop.f32.mrf.mxu0 }
 0x5cb   :  { %v19424_v47 = vld [vmem:[#allocation5 + $0xb34] sm:$0xf0] }
 0x5cc   :  { %v14354_v48 = vld [vmem:[#allocation5 + $0xd18] sm:$0xf]  ;;  %v14099_v37 = vor.u32 %v19424_v47, %v14098_v43  ;;  %7657 = vmatpush.bf16.msrb.mxu0 %v13843_v52 }
 0x5cd   :  { %v19488_v46 = vld [vmem:[#allocation5 + $0xd34] sm:$0xf0] }
 0x5ce   :  { %v14610_v49 = vld [vmem:[#allocation5 + $0xf18] sm:$0xf]  ;;  %v14355_v16 = vor.u32 %v19488_v46, %v14354_v48  ;;  %7670 = vmatpush.bf16.msrb.mxu1 %v14099_v37  ;;  %v7418_v48 = vpop.f32.mrf.mxu1 }
 0x5cf   :  { %v19552_v50 = vld [vmem:[#allocation5 + $0xf34] sm:$0xf0] }
 0x5d0   :  { %v13810_v54 = vld [vmem:[#allocation5 + $0x8d8] sm:$0xf]  ;;  %v14611_v60 = vor.u32 %v19552_v50, %v14610_v49  ;;  %7683 = vmatpush.bf16.msrb.mxu2 %v14355_v16 }
 0x5d1   :  { %v19352_v55 = vld [vmem:[#allocation5 + $0x8f4] sm:$0xf0] }
 0x5d2   :  { %v14066_v58 = vld [vmem:[#allocation5 + $0xad8] sm:$0xf]  ;;  %v13811_v51 = vor.u32 %v19352_v55, %v13810_v54  ;;  %7696 = vmatpush.bf16.msrb.mxu3 %v14611_v60 }
 0x5d3   :  { %v19416_v61 = vld [vmem:[#allocation5 + $0xaf4] sm:$0xf0] }
 0x5d4   :  { %v14322_v63 = vld [vmem:[#allocation5 + $0xcd8] sm:$0xf]  ;;  %v14067_v5 = vor.u32 %v19416_v61, %v14066_v58  ;;  %7658 = vmatpush.bf16.msrb.mxu0 %v13811_v51  ;;  %v7444_v51 = vpop.f32.mrf.mxu3 }
 0x5d5   :  { %v19480_v0 = vld [vmem:[#allocation5 + $0xcf4] sm:$0xf0] }
 0x5d6   :  { %v14578_v2 = vld [vmem:[#allocation5 + $0xed8] sm:$0xf]  ;;  %v14323_v7 = vor.u32 %v19480_v0, %v14322_v63  ;;  %7671 = vmatpush.bf16.msrb.mxu1 %v14067_v5  ;;  %v7431_v63 = vpop.f32.mrf.mxu2 }
 0x5d7   :  { %v19544_v3 = vld [vmem:[#allocation5 + $0xef4] sm:$0xf0] }
 0x5d8   :  { %v13778_v13 = vld [vmem:[#allocation5 + $0x898] sm:$0xf]  ;;  %v14579_v11 = vor.u32 %v19544_v3, %v14578_v2  ;;  %7684 = vmatpush.bf16.msrb.mxu2 %v14323_v7 }
 0x5d9   :  { %v19344_v9 = vld [vmem:[#allocation5 + $0x8b4] sm:$0xf0] }
 0x5da   :  { %v14034_v10 = vld [vmem:[#allocation5 + $0xa98] sm:$0xf]  ;;  %v13779_v27 = vor.u32 %v19344_v9, %v13778_v13  ;;  %7697 = vmatpush.bf16.msrb.mxu3 %v14579_v11 }
 0x5db   :  { %v19408_v12 = vld [vmem:[#allocation5 + $0xab4] sm:$0xf0] }
 0x5dc   :  { %v14290_v14 = vld [vmem:[#allocation5 + $0xc98] sm:$0xf]  ;;  %v14035_v43 = vor.u32 %v19408_v12, %v14034_v10  ;;  %7659 = vmatpush.bf16.msrb.mxu0 %v13779_v27 }
 0x5dd   :  { %v19472_v15 = vld [vmem:[#allocation5 + $0xcb4] sm:$0xf0] }
 0x5de   :  { %v14546_v24 = vld [vmem:[#allocation5 + $0xe98] sm:$0xf]  ;;  %v14291_v45 = vor.u32 %v19472_v15, %v14290_v14  ;;  %7672 = vmatpush.bf16.msrb.mxu1 %v14035_v43 }
 0x5df   :  { %v19536_v26 = vld [vmem:[#allocation5 + $0xeb4] sm:$0xf0] }
 0x5e0   :  { %v13746_v39 = vld [vmem:[#allocation5 + $0x858] sm:$0xf]  ;;  %v14547_v46 = vor.u32 %v19536_v26, %v14546_v24  ;;  %7685 = vmatpush.bf16.msrb.mxu2 %v14291_v45 }
 0x5e1   :  { %v19336_v34 = vld [vmem:[#allocation5 + $0x874] sm:$0xf0] }
 0x5e2   :  { %v14002_v47 = vld [vmem:[#allocation5 + $0xa58] sm:$0xf]  ;;  %v13747_v16 = vor.u32 %v19336_v34, %v13746_v39  ;;  %7698 = vmatpush.bf16.msrb.mxu3 %v14547_v46 }
 0x5e3   :  { %v19400_v49 = vld [vmem:[#allocation5 + $0xa74] sm:$0xf0] }
 0x5e4   :  { %v14258_v50 = vld [vmem:[#allocation5 + $0xc58] sm:$0xf]  ;;  %v14003_v58 = vor.u32 %v19400_v49, %v14002_v47  ;;  %7660 = vmatpush.bf16.msrb.mxu0 %v13747_v16 }
 0x5e5   :  { %v19464_v52 = vld [vmem:[#allocation5 + $0xc74] sm:$0xf0] }
 0x5e6   :  { %v14514_v53 = vld [vmem:[#allocation5 + $0xe58] sm:$0xf]  ;;  %v14259_v59 = vor.u32 %v19464_v52, %v14258_v50  ;;  %7673 = vmatpush.bf16.msrb.mxu1 %v14003_v58 }
 0x5e7   :  { %v19528_v37 = vld [vmem:[#allocation5 + $0xe74] sm:$0xf0] }
 0x5e8   :  { %v13714_v54 = vld [vmem:[#allocation5 + $0x818] sm:$0xf]  ;;  %v14515_v0 = vor.u32 %v19528_v37, %v14514_v53  ;;  %7686 = vmatpush.bf16.msrb.mxu2 %v14259_v59 }
 0x5e9   :  { %v19328_v55 = vld [vmem:[#allocation5 + $0x834] sm:$0xf0] }
 0x5ea   :  { %v13970_v62 = vld [vmem:[#allocation5 + $0xa18] sm:$0xf]  ;;  %v13715_v9 = vor.u32 %v19328_v55, %v13714_v54  ;;  %7699 = vmatpush.bf16.msrb.mxu3 %v14515_v0 }
 0x5eb   :  { %v19392_v60 = vld [vmem:[#allocation5 + $0xa34] sm:$0xf0] }
 0x5ec   :  { %v14226_v61 = vld [vmem:[#allocation5 + $0xc18] sm:$0xf]  ;;  %v13971_v12 = vor.u32 %v19392_v60, %v13970_v62  ;;  %7661 = vmatpush.bf16.msrb.mxu0 %v13715_v9 }
 0x5ed   :  { %v19456_v2 = vld [vmem:[#allocation5 + $0xc34] sm:$0xf0] }
 0x5ee   :  { %v14482_v3 = vld [vmem:[#allocation5 + $0xe18] sm:$0xf]  ;;  %v14227_v14 = vor.u32 %v19456_v2, %v14226_v61  ;;  %7674 = vmatpush.bf16.msrb.mxu1 %v13971_v12  ;;  %v7455_v12 = vpop.f32.mrf.mxu0 }
 0x5ef   :  { %v19520_v4 = vld [vmem:[#allocation5 + $0xe34] sm:$0xf0]  ;;  %7662 = vmatmul.bf16.vlgmr.msrb.gmra.mxu0 %v20981_v41 }
 0x5f0   :  { %v14962_v5 = vld [vmem:[#allocation5 + $0x11d8] sm:$0xf]  ;;  %v14483_v21 = vor.u32 %v19520_v4, %v14482_v3  ;;  %7687 = vmatpush.bf16.msrb.mxu2 %v14227_v14 }
 0x5f1   :  { %v19640_v7 = vld [vmem:[#allocation5 + $0x11f4] sm:$0xf0]  ;;  %7675 = vmatmul.bf16.vlgmr.msrb.gmra.mxu1 %v20985_v44 }
 0x5f2   :  { %v15218_v13 = vld [vmem:[#allocation5 + $0x13d8] sm:$0xf]  ;;  %v14963_v24 = vor.u32 %v19640_v7, %v14962_v5  ;;  %7700 = vmatpush.bf16.msrb.mxu3 %v14483_v21 }
 0x5f3   :  { %v19704_v10 = vld [vmem:[#allocation5 + $0x13f4] sm:$0xf0]  ;;  %7688 = vmatmul.bf16.vlgmr.msrb.gmra.mxu2 %v20979_v38 }
 0x5f4   :  { %v15474_v6 = vld [vmem:[#allocation5 + $0x15d8] sm:$0xf]  ;;  %v15219_v26 = vor.u32 %v19704_v10, %v15218_v13  ;;  %7706 = vmatpush.bf16.msra.mxu0 %v14963_v24 }
 0x5f5   :  { %v19768_v11 = vld [vmem:[#allocation5 + $0x15f4] sm:$0xf0]  ;;  %7701 = vmatmul.bf16.vlgmr.msrb.gmra.mxu3 %v20983_v42 }
 0x5f6   :  { %v15730_v15 = vld [vmem:[#allocation5 + $0x17d8] sm:$0xf]  ;;  %v15475_v27 = vor.u32 %v19768_v11, %v15474_v6  ;;  %7719 = vmatpush.bf16.msra.mxu1 %v15219_v26  ;;  %v7456_v26 = vadd.f32 %v7455_v12, %v21154_v32 }
 0x5f7   :  { %v19832_v8 = vld [vmem:[#allocation5 + $0x17f4] sm:$0xf0] }
 0x5f8   :  { %v14930_v36 = vld [vmem:[#allocation5 + $0x1198] sm:$0xf]  ;;  %v15731_v39 = vor.u32 %v19832_v8, %v15730_v15  ;;  %7732 = vmatpush.bf16.msra.mxu2 %v15475_v27  ;;  %v7468_v27 = vpop.f32.mrf.mxu1 }
 0x5f9   :  { %v19632_v43 = vld [vmem:[#allocation5 + $0x11b4] sm:$0xf0] }
 0x5fa   :  { %v15186_v45 = vld [vmem:[#allocation5 + $0x1398] sm:$0xf]  ;;  %v14931_v50 = vor.u32 %v19632_v43, %v14930_v36  ;;  %7745 = vmatpush.bf16.msra.mxu3 %v15731_v39 }
 0x5fb   :  { %v19696_v34 = vld [vmem:[#allocation5 + $0x13b4] sm:$0xf0] }
 0x5fc   :  { %v15442_v47 = vld [vmem:[#allocation5 + $0x1598] sm:$0xf]  ;;  %v15187_v52 = vor.u32 %v19696_v34, %v15186_v45  ;;  %7707 = vmatpush.bf16.msra.mxu0 %v14931_v50 }
 0x5fd   :  { %v19760_v48 = vld [vmem:[#allocation5 + $0x15b4] sm:$0xf0] }
 0x5fe   :  { %v15698_v46 = vld [vmem:[#allocation5 + $0x1798] sm:$0xf]  ;;  %v15443_v53 = vor.u32 %v19760_v48, %v15442_v47  ;;  %7720 = vmatpush.bf16.msra.mxu1 %v15187_v52  ;;  %v7469_v48 = vadd.f32 %v7468_v27, %v7456_v26 }
 0x5ff   :  { %v19824_v49 = vld [vmem:[#allocation5 + $0x17b4] sm:$0xf0] }
 0x600   :  { %v14898_v37 = vld [vmem:[#allocation5 + $0x1158] sm:$0xf]  ;;  %v15699_v55 = vor.u32 %v19824_v49, %v15698_v46  ;;  %7733 = vmatpush.bf16.msra.mxu2 %v15443_v53 }
 0x601   :  { %v19624_v16 = vld [vmem:[#allocation5 + $0x1174] sm:$0xf0] }
 0x602   :  { %v15154_v54 = vld [vmem:[#allocation5 + $0x1358] sm:$0xf]  ;;  %v14899_v63 = vor.u32 %v19624_v16, %v14898_v37  ;;  %7746 = vmatpush.bf16.msra.mxu3 %v15699_v55  ;;  %v7481_v16 = vpop.f32.mrf.mxu2 }
 0x603   :  { %v19688_v58 = vld [vmem:[#allocation5 + $0x1374] sm:$0xf0] }
 0x604   :  { %v15410_v59 = vld [vmem:[#allocation5 + $0x1558] sm:$0xf]  ;;  %v15155_v0 = vor.u32 %v19688_v58, %v15154_v54  ;;  %7708 = vmatpush.bf16.msra.mxu0 %v14899_v63 }
 0x605   :  { %v19752_v62 = vld [vmem:[#allocation5 + $0x1574] sm:$0xf0] }
 0x606   :  { %v15666_v60 = vld [vmem:[#allocation5 + $0x1758] sm:$0xf]  ;;  %v15411_v2 = vor.u32 %v19752_v62, %v15410_v59  ;;  %7721 = vmatpush.bf16.msra.mxu1 %v15155_v0  ;;  %v7482_v59 = vadd.f32 %v7481_v16, %v7469_v48  ;;  %v7494_v62 = vpop.f32.mrf.mxu3 }
 0x607   :  { %v19816_v61 = vld [vmem:[#allocation5 + $0x1774] sm:$0xf0] }
 0x608   :  { %v14866_v3 = vld [vmem:[#allocation5 + $0x1118] sm:$0xf]  ;;  %v15667_v5 = vor.u32 %v19816_v61, %v15666_v60  ;;  %7734 = vmatpush.bf16.msra.mxu2 %v15411_v2  ;;  %v21161_v0 = vadd.f32 %v7494_v62, %v7482_v59  ;;  %v7457_v2 = vpop.f32.mrf.mxu0 }
 0x609   :  { %v19616_v4 = vld [vmem:[#allocation5 + $0x1134] sm:$0xf0] }
 0x60a   :  { %v15122_v51 = vld [vmem:[#allocation5 + $0x1318] sm:$0xf]  ;;  %v14867_v11 = vor.u32 %v19616_v4, %v14866_v3  ;;  %7747 = vmatpush.bf16.msra.mxu3 %v15667_v5 }
 0x60b   :  { %v19680_v7 = vld [vmem:[#allocation5 + $0x1334] sm:$0xf0] }
 0x60c   :  { %v15378_v13 = vld [vmem:[#allocation5 + $0x1518] sm:$0xf]  ;;  %v15123_v14 = vor.u32 %v19680_v7, %v15122_v51  ;;  %7709 = vmatpush.bf16.msra.mxu0 %v14867_v11 }
 0x60d   :  { %v19744_v9 = vld [vmem:[#allocation5 + $0x1534] sm:$0xf0] }
 0x60e   :  { %v15634_v10 = vld [vmem:[#allocation5 + $0x1718] sm:$0xf]  ;;  %v15379_v15 = vor.u32 %v19744_v9, %v15378_v13  ;;  %7722 = vmatpush.bf16.msra.mxu1 %v15123_v14  ;;  %v7470_v13 = vpop.f32.mrf.mxu1 }
 0x60f   :  { %v19808_v6 = vld [vmem:[#allocation5 + $0x1734] sm:$0xf0] }
 0x610   :  { %v14834_v8 = vld [vmem:[#allocation5 + $0x10d8] sm:$0xf]  ;;  %v15635_v36 = vor.u32 %v19808_v6, %v15634_v10  ;;  %7735 = vmatpush.bf16.msra.mxu2 %v15379_v15 }
 0x611   :  { %v19608_v21 = vld [vmem:[#allocation5 + $0x10f4] sm:$0xf0] }
 0x612   :  { %v15090_v24 = vld [vmem:[#allocation5 + $0x12d8] sm:$0xf]  ;;  %v14835_v46 = vor.u32 %v19608_v21, %v14834_v8  ;;  %7748 = vmatpush.bf16.msra.mxu3 %v15635_v36 }
 0x613   :  { %v19672_v43 = vld [vmem:[#allocation5 + $0x12f4] sm:$0xf0] }
 0x614   :  { %v15346_v45 = vld [vmem:[#allocation5 + $0x14d8] sm:$0xf]  ;;  %v15091_v49 = vor.u32 %v19672_v43, %v15090_v24  ;;  %7710 = vmatpush.bf16.msra.mxu0 %v14835_v46  ;;  %v7496_v46 = vpop.f32.mrf.mxu3 }
 0x615   :  { %v19736_v39 = vld [vmem:[#allocation5 + $0x14f4] sm:$0xf0] }
 0x616   :  { %v15602_v34 = vld [vmem:[#allocation5 + $0x16d8] sm:$0xf]  ;;  %v15347_v50 = vor.u32 %v19736_v39, %v15346_v45  ;;  %7723 = vmatpush.bf16.msra.mxu1 %v15091_v49  ;;  %v7483_v45 = vpop.f32.mrf.mxu2 }
 0x617   :  { %v19800_v47 = vld [vmem:[#allocation5 + $0x16f4] sm:$0xf0] }
 0x618   :  { %v14802_v52 = vld [vmem:[#allocation5 + $0x1098] sm:$0xf]  ;;  %v15603_v32 = vor.u32 %v19800_v47, %v15602_v34  ;;  %7736 = vmatpush.bf16.msra.mxu2 %v15347_v50 }
 0x619   :  { %v19600_v53 = vld [vmem:[#allocation5 + $0x10b4] sm:$0xf0] }
 0x61a   :  { %v15058_v37 = vld [vmem:[#allocation5 + $0x1298] sm:$0xf]  ;;  %v14803_v63 = vor.u32 %v19600_v53, %v14802_v52  ;;  %7749 = vmatpush.bf16.msra.mxu3 %v15603_v32 }
 0x61b   :  { %v19664_v54 = vld [vmem:[#allocation5 + $0x12b4] sm:$0xf0] }
 0x61c   :  { %v15314_v55 = vld [vmem:[#allocation5 + $0x1498] sm:$0xf]  ;;  %v15059_v3 = vor.u32 %v19664_v54, %v15058_v37  ;;  %7711 = vmatpush.bf16.msra.mxu0 %v14803_v63 }
 0x61d   :  { %v19728_v58 = vld [vmem:[#allocation5 + $0x14b4] sm:$0xf0] }
 0x61e   :  { %v15570_v60 = vld [vmem:[#allocation5 + $0x1698] sm:$0xf]  ;;  %v15315_v4 = vor.u32 %v19728_v58, %v15314_v55  ;;  %7724 = vmatpush.bf16.msra.mxu1 %v15059_v3 }
 0x61f   :  { %v19792_v61 = vld [vmem:[#allocation5 + $0x16b4] sm:$0xf0] }
 0x620   :  { %v14770_v51 = vld [vmem:[#allocation5 + $0x1058] sm:$0xf]  ;;  %v15571_v9 = vor.u32 %v19792_v61, %v15570_v60  ;;  %7737 = vmatpush.bf16.msra.mxu2 %v15315_v4 }
 0x621   :  { %v19592_v5 = vld [vmem:[#allocation5 + $0x1074] sm:$0xf0] }
 0x622   :  { %v15026_v7 = vld [vmem:[#allocation5 + $0x1258] sm:$0xf]  ;;  %v14771_v15 = vor.u32 %v19592_v5, %v14770_v51  ;;  %7750 = vmatpush.bf16.msra.mxu3 %v15571_v9 }
 0x623   :  { %v19656_v10 = vld [vmem:[#allocation5 + $0x1274] sm:$0xf0] }
 0x624   :  { %v15282_v6 = vld [vmem:[#allocation5 + $0x1458] sm:$0xf]  ;;  %v15027_v24 = vor.u32 %v19656_v10, %v15026_v7  ;;  %7712 = vmatpush.bf16.msra.mxu0 %v14771_v15 }
 0x625   :  { %v19720_v11 = vld [vmem:[#allocation5 + $0x1474] sm:$0xf0] }
 0x626   :  { %v15538_v12 = vld [vmem:[#allocation5 + $0x1658] sm:$0xf]  ;;  %v15283_v26 = vor.u32 %v19720_v11, %v15282_v6  ;;  %7725 = vmatpush.bf16.msra.mxu1 %v15027_v24 }
 0x627   :  { %v19784_v14 = vld [vmem:[#allocation5 + $0x1674] sm:$0xf0] }
 0x628   :  { %v14738_v8 = vld [vmem:[#allocation5 + $0x1018] sm:$0xf]  ;;  %v15539_v39 = vor.u32 %v19784_v14, %v15538_v12  ;;  %7738 = vmatpush.bf16.msra.mxu2 %v15283_v26 }
 0x629   :  { %v19584_v21 = vld [vmem:[#allocation5 + $0x1034] sm:$0xf0] }
 0x62a   :  { %v14994_v27 = vld [vmem:[#allocation5 + $0x1218] sm:$0xf]  ;;  %v14739_v53 = vor.u32 %v19584_v21, %v14738_v8  ;;  %7751 = vmatpush.bf16.msra.mxu3 %v15539_v39 }
 0x62b   :  { %v19648_v36 = vld [vmem:[#allocation5 + $0x1234] sm:$0xf0] }
 0x62c   :  { %v15250_v43 = vld [vmem:[#allocation5 + $0x1418] sm:$0xf]  ;;  %v14995_v54 = vor.u32 %v19648_v36, %v14994_v27  ;;  %7713 = vmatpush.bf16.msra.mxu0 %v14739_v53 }
 0x62d   :  { %v19712_v34 = vld [vmem:[#allocation5 + $0x1434] sm:$0xf0] }
 0x62e   :  { %v15506_v47 = vld [vmem:[#allocation5 + $0x1618] sm:$0xf]  ;;  %v15251_v55 = vor.u32 %v19712_v34, %v15250_v43  ;;  %7726 = vmatpush.bf16.msra.mxu1 %v14995_v54 }
 0x62f   :  { %v19776_v48 = vld [vmem:[#allocation5 + $0x1634] sm:$0xf0]  ;;  %7714 = vmatmul.bf16.vlgmr.msra.gmra.mxu0 %v20991_v25 }
 0x630   :  { %v15986_v49 = vld [vmem:[#allocation5 + $0x19d8] sm:$0xf]  ;;  %v15507_v62 = vor.u32 %v19776_v48, %v15506_v47  ;;  %7739 = vmatpush.bf16.msra.mxu2 %v15251_v55 }
 0x631   :  { %v19896_v50 = vld [vmem:[#allocation5 + $0x19f4] sm:$0xf0]  ;;  %7727 = vmatmul.bf16.vlgmr.msra.gmra.mxu1 %v20995_v30 }
 0x632   :  { %v16242_v52 = vld [vmem:[#allocation5 + $0x1bd8] sm:$0xf]  ;;  %v15987_v60 = vor.u32 %v19896_v50, %v15986_v49  ;;  %7752 = vmatpush.bf16.msra.mxu3 %v15507_v62 }
 0x633   :  { %v19960_v37 = vld [vmem:[#allocation5 + $0x1bf4] sm:$0xf0]  ;;  %7740 = vmatmul.bf16.vlgmr.msra.gmra.mxu2 %v20993_v29 }
 0x634   :  { %v16498_v16 = vld [vmem:[#allocation5 + $0x1dd8] sm:$0xf]  ;;  %v16243_v61 = vor.u32 %v19960_v37, %v16242_v52  ;;  %7758 = vmatpush.bf16.msrb.mxu0 %v15987_v60  ;;  %v7507_v37 = vpop.f32.mrf.mxu0 }
 0x635   :  { %v20024_v32 = vld [vmem:[#allocation5 + $0x1df4] sm:$0xf0]  ;;  %7753 = vmatmul.bf16.vlgmr.msra.gmra.mxu3 %v20997_v33  ;;  %v7508_v54 = vadd.f32 %v7507_v37, %v21161_v0 }
 0x636   :  { %v16754_v58 = vld [vmem:[#allocation5 + $0x1fd8] sm:$0xf]  ;;  %v16499_v63 = vor.u32 %v20024_v32, %v16498_v16  ;;  %7771 = vmatpush.bf16.msrb.mxu1 %v16243_v61 }
 0x637   :  { %v20088_v59 = vld [vmem:[#allocation5 + $0x1ff4] sm:$0xf0] }
 0x638   :  { %v15954_v2 = vld [vmem:[#allocation5 + $0x1998] sm:$0xf]  ;;  %v16755_v51 = vor.u32 %v20088_v59, %v16754_v58  ;;  %7784 = vmatpush.bf16.msrb.mxu2 %v16499_v63  ;;  %v7520_v58 = vpop.f32.mrf.mxu1 }
 0x639   :  { %v19888_v3 = vld [vmem:[#allocation5 + $0x19b4] sm:$0xf0] }
 0x63a   :  { %v16210_v4 = vld [vmem:[#allocation5 + $0x1b98] sm:$0xf]  ;;  %v15955_v6 = vor.u32 %v19888_v3, %v15954_v2  ;;  %7797 = vmatpush.bf16.msrb.mxu3 %v16755_v51  ;;  %v7521_v3 = vadd.f32 %v7520_v58, %v7508_v54 }
 0x63b   :  { %v19952_v5 = vld [vmem:[#allocation5 + $0x1bb4] sm:$0xf0] }
 0x63c   :  { %v16466_v7 = vld [vmem:[#allocation5 + $0x1d98] sm:$0xf]  ;;  %v16211_v11 = vor.u32 %v19952_v5, %v16210_v4  ;;  %7759 = vmatpush.bf16.msrb.mxu0 %v15955_v6 }
 0x63d   :  { %v20016_v13 = vld [vmem:[#allocation5 + $0x1db4] sm:$0xf0] }
 0x63e   :  { %v16722_v9 = vld [vmem:[#allocation5 + $0x1f98] sm:$0xf]  ;;  %v16467_v12 = vor.u32 %v20016_v13, %v16466_v7  ;;  %7772 = vmatpush.bf16.msrb.mxu1 %v16211_v11 }
 0x63f   :  { %v20080_v10 = vld [vmem:[#allocation5 + $0x1fb4] sm:$0xf0] }
 0x640   :  { %v15922_v14 = vld [vmem:[#allocation5 + $0x1958] sm:$0xf]  ;;  %v16723_v21 = vor.u32 %v20080_v10, %v16722_v9  ;;  %7785 = vmatpush.bf16.msrb.mxu2 %v16467_v12 }
 0x641   :  { %v19880_v15 = vld [vmem:[#allocation5 + $0x1974] sm:$0xf0] }
 0x642   :  { %v16178_v8 = vld [vmem:[#allocation5 + $0x1b58] sm:$0xf]  ;;  %v15923_v45 = vor.u32 %v19880_v15, %v15922_v14  ;;  %7798 = vmatpush.bf16.msrb.mxu3 %v16723_v21  ;;  %v7533_v15 = vpop.f32.mrf.mxu2 }
 0x643   :  { %v19944_v24 = vld [vmem:[#allocation5 + $0x1b74] sm:$0xf0] }
 0x644   :  { %v16434_v26 = vld [vmem:[#allocation5 + $0x1d58] sm:$0xf]  ;;  %v16179_v39 = vor.u32 %v19944_v24, %v16178_v8  ;;  %7760 = vmatpush.bf16.msrb.mxu0 %v15923_v45  ;;  %v7509_v45 = vpop.f32.mrf.mxu0 }
 0x645   :  { %v20008_v27 = vld [vmem:[#allocation5 + $0x1d74] sm:$0xf0] }
 0x646   :  { %v16690_v36 = vld [vmem:[#allocation5 + $0x1f58] sm:$0xf]  ;;  %v16435_v34 = vor.u32 %v20008_v27, %v16434_v26  ;;  %7773 = vmatpush.bf16.msrb.mxu1 %v16179_v39  ;;  %v7534_v26 = vadd.f32 %v7533_v15, %v7521_v3  ;;  %v7546_v27 = vpop.f32.mrf.mxu3  ;;  %v13428_v15 = vld [vmem:[#allocation5 + $0x5f8] sm:$0xf0] }
 0x647   :  { %v20072_v43 = vld [vmem:[#allocation5 + $0x1f74] sm:$0xf0] }
 0x648   :  { %v15890_v47 = vld [vmem:[#allocation5 + $0x1918] sm:$0xf]  ;;  %v16691_v49 = vor.u32 %v20072_v43, %v16690_v36  ;;  %7786 = vmatpush.bf16.msrb.mxu2 %v16435_v34  ;;  %v7522_v34 = vpop.f32.mrf.mxu1 }
 0x649   :  { %v19872_v48 = vld [vmem:[#allocation5 + $0x1934] sm:$0xf0]  ;;  %v12884_v34 = vld [vmem:[#allocation5 + $0x1b8] sm:$0xf0] }
 0x64a   :  { %v16146_v46 = vld [vmem:[#allocation5 + $0x1b18] sm:$0xf]  ;;  %v15891_v55 = vor.u32 %v19872_v48, %v15890_v47  ;;  %7799 = vmatpush.bf16.msrb.mxu3 %v16691_v49  ;;  %v21168_v47 = vadd.f32 %v7546_v27, %v7534_v26  ;;  %v13684_v26 = vld [vmem:[#allocation5 + $0x7f8] sm:$0xf0] }
 0x64b   :  { %v19936_v50 = vld [vmem:[#allocation5 + $0x1b34] sm:$0xf0] }
 0x64c   :  { %v16402_v52 = vld [vmem:[#allocation5 + $0x1d18] sm:$0xf]  ;;  %v16147_v59 = vor.u32 %v19936_v50, %v16146_v46  ;;  %7761 = vmatpush.bf16.msrb.mxu0 %v15891_v55 }
 0x64d   :  { %v20000_v53 = vld [vmem:[#allocation5 + $0x1d34] sm:$0xf0] }
 0x64e   :  { %v16658_v16 = vld [vmem:[#allocation5 + $0x1f18] sm:$0xf]  ;;  %v16403_v62 = vor.u32 %v20000_v53, %v16402_v52  ;;  %7774 = vmatpush.bf16.msrb.mxu1 %v16147_v59 }
 0x64f   :  { %v20064_v32 = vld [vmem:[#allocation5 + $0x1f34] sm:$0xf0] }
 0x650   :  { %v15858_v60 = vld [vmem:[#allocation5 + $0x18d8] sm:$0xf]  ;;  %v16659_v2 = vor.u32 %v20064_v32, %v16658_v16  ;;  %7787 = vmatpush.bf16.msrb.mxu2 %v16403_v62 }
 0x651   :  { %v19864_v61 = vld [vmem:[#allocation5 + $0x18f4] sm:$0xf0] }
 0x652   :  { %v16114_v63 = vld [vmem:[#allocation5 + $0x1ad8] sm:$0xf]  ;;  %v15859_v9 = vor.u32 %v19864_v61, %v15858_v60  ;;  %7800 = vmatpush.bf16.msrb.mxu3 %v16659_v2 }
 0x653   :  { %v19928_v4 = vld [vmem:[#allocation5 + $0x1af4] sm:$0xf0] }
 0x654   :  { %v16370_v51 = vld [vmem:[#allocation5 + $0x1cd8] sm:$0xf]  ;;  %v16115_v0 = vor.u32 %v19928_v4, %v16114_v63  ;;  %7762 = vmatpush.bf16.msrb.mxu0 %v15859_v9  ;;  %v19124_v9 = vld [vmem:[#allocation5 + $0x1dc] sm:$0xf] }
 0x655   :  { %v19992_v5 = vld [vmem:[#allocation5 + $0x1cf4] sm:$0xf0] }
 0x656   :  { %v16626_v7 = vld [vmem:[#allocation5 + $0x1ed8] sm:$0xf]  ;;  %v16371_v10 = vor.u32 %v19992_v5, %v16370_v51  ;;  %7775 = vmatpush.bf16.msrb.mxu1 %v16115_v0  ;;  %v12916_v0 = vld [vmem:[#allocation5 + $0x1f8] sm:$0xf0] }
 0x657   :  { %v20056_v13 = vld [vmem:[#allocation5 + $0x1ef4] sm:$0xf0] }
 0x658   :  { %v15826_v6 = vld [vmem:[#allocation5 + $0x1898] sm:$0xf]  ;;  %v16627_v14 = vor.u32 %v20056_v13, %v16626_v7  ;;  %7788 = vmatpush.bf16.msrb.mxu2 %v16371_v10  ;;  %v7535_v13 = vpop.f32.mrf.mxu2  ;;  %v19188_v10 = vld [vmem:[#allocation5 + $0x3dc] sm:$0xf] }
 0x659   :  { %v19856_v11 = vld [vmem:[#allocation5 + $0x18b4] sm:$0xf0]  ;;  %v12820_v13 = vld [vmem:[#allocation5 + $0x138] sm:$0xf0] }
 0x65a   :  { %v16082_v12 = vld [vmem:[#allocation5 + $0x1a98] sm:$0xf]  ;;  %v15827_v39 = vor.u32 %v19856_v11, %v15826_v6  ;;  %7801 = vmatpush.bf16.msrb.mxu3 %v16627_v14  ;;  %v7548_v6 = vpop.f32.mrf.mxu3  ;;  %v19252_v14 = vld [vmem:[#allocation5 + $0x5dc] sm:$0xf] }
 0x65b   :  { %v19920_v8 = vld [vmem:[#allocation5 + $0x1ab4] sm:$0xf0]  ;;  %v13431_v45 = vor.u32 %v19252_v14, %v13428_v15  ;;  %v19228_v6 = vld [vmem:[#allocation5 + $0x51c] sm:$0xf] }
 0x65c   :  { %v16338_v21 = vld [vmem:[#allocation5 + $0x1c98] sm:$0xf]  ;;  %v16083_v48 = vor.u32 %v19920_v8, %v16082_v12  ;;  %7763 = vmatpush.bf16.msrb.mxu0 %v15827_v39  ;;  %v13172_v12 = vld [vmem:[#allocation5 + $0x3f8] sm:$0xf0] }
 0x65d   :  { %v19984_v24 = vld [vmem:[#allocation5 + $0x1cb4] sm:$0xf0]  ;;  %v19116_v39 = vld [vmem:[#allocation5 + $0x19c] sm:$0xf] }
 0x65e   :  { %v16594_v36 = vld [vmem:[#allocation5 + $0x1e98] sm:$0xf]  ;;  %v16339_v46 = vor.u32 %v19984_v24, %v16338_v21  ;;  %7776 = vmatpush.bf16.msrb.mxu1 %v16083_v48  ;;  %v19316_v24 = vld [vmem:[#allocation5 + $0x7dc] sm:$0xf] }
 0x65f   :  { %v20048_v43 = vld [vmem:[#allocation5 + $0x1eb4] sm:$0xf0]  ;;  %v19180_v48 = vld [vmem:[#allocation5 + $0x39c] sm:$0xf] }
 0x660   :  { %v15794_v49 = vld [vmem:[#allocation5 + $0x1858] sm:$0xf]  ;;  %v16595_v53 = vor.u32 %v20048_v43, %v16594_v36  ;;  %7789 = vmatpush.bf16.msrb.mxu2 %v16339_v46  ;;  %v12919_v36 = vor.u32 %v19124_v9, %v12916_v0  ;;  %v13175_v43 = vor.u32 %v19188_v10, %v13172_v12  ;;  %v13687_v46 = vor.u32 %v19316_v24, %v13684_v26  ;;  %v19164_v9 = vld [vmem:[#allocation5 + $0x31c] sm:$0xf]  ;;  %v7559_v12 = vpop.f32.mrf.mxu0  ;;  %v7572_v24 = vpop.f32.mrf.mxu1 }
 0x661   :  { %v19848_v50 = vld [vmem:[#allocation5 + $0x1874] sm:$0xf0]  ;;  %v13076_v10 = vld [vmem:[#allocation5 + $0x338] sm:$0xf0] }
 0x662   :  { %v16050_v52 = vld [vmem:[#allocation5 + $0x1a58] sm:$0xf]  ;;  %v15795_v58 = vor.u32 %v19848_v50, %v15794_v49  ;;  %7802 = vmatpush.bf16.msrb.mxu3 %v16595_v53  ;;  %v13140_v49 = vld [vmem:[#allocation5 + $0x3b8] sm:$0xf0]  ;;  %v13079_v26 = vor.u32 %v19164_v9, %v13076_v10 }
 0x663   :  { %v19912_v37 = vld [vmem:[#allocation5 + $0x1a74] sm:$0xf0]  ;;  %v19244_v50 = vld [vmem:[#allocation5 + $0x59c] sm:$0xf] }
 0x664   :  { %v16306_v16 = vld [vmem:[#allocation5 + $0x1c58] sm:$0xf]  ;;  %v16051_v60 = vor.u32 %v19912_v37, %v16050_v52  ;;  %7764 = vmatpush.bf16.msrb.mxu0 %v15795_v58  ;;  %v13396_v52 = vld [vmem:[#allocation5 + $0x5b8] sm:$0xf0] }
 0x665   :  { %v19976_v32 = vld [vmem:[#allocation5 + $0x1c74] sm:$0xf0]  ;;  %v19308_v53 = vld [vmem:[#allocation5 + $0x79c] sm:$0xf] }
 0x666   :  { %v16562_v54 = vld [vmem:[#allocation5 + $0x1e58] sm:$0xf]  ;;  %v16307_v61 = vor.u32 %v19976_v32, %v16306_v16  ;;  %7777 = vmatpush.bf16.msrb.mxu1 %v16051_v60  ;;  %v13652_v37 = vld [vmem:[#allocation5 + $0x7b8] sm:$0xf0]  ;;  %v12887_v16 = vor.u32 %v19116_v39, %v12884_v34  ;;  %v13143_v32 = vor.u32 %v19180_v48, %v13140_v49 }
 0x667   :  { %v20040_v55 = vld [vmem:[#allocation5 + $0x1e74] sm:$0xf0]  ;;  %v12852_v58 = vld [vmem:[#allocation5 + $0x178] sm:$0xf0] }
 0x668   :  { %v15762_v59 = vld [vmem:[#allocation5 + $0x1818] sm:$0xf]  ;;  %v16563_v4 = vor.u32 %v20040_v55, %v16562_v54  ;;  %7790 = vmatpush.bf16.msrb.mxu2 %v16307_v61  ;;  %v13399_v54 = vor.u32 %v19244_v50, %v13396_v52  ;;  %v19108_v55 = vld [vmem:[#allocation5 + $0x15c] sm:$0xf] }
 0x669   :  { %v19840_v62 = vld [vmem:[#allocation5 + $0x1834] sm:$0xf0]  ;;  %v13108_v60 = vld [vmem:[#allocation5 + $0x378] sm:$0xf0] }
 0x66a   :  { %v16018_v63 = vld [vmem:[#allocation5 + $0x1a18] sm:$0xf]  ;;  %v15763_v11 = vor.u32 %v19840_v62, %v15762_v59  ;;  %7803 = vmatpush.bf16.msrb.mxu3 %v16563_v4  ;;  %v19172_v59 = vld [vmem:[#allocation5 + $0x35c] sm:$0xf]  ;;  %v13655_v62 = vor.u32 %v19308_v53, %v13652_v37  ;;  %v12855_v4 = vor.u32 %v19108_v55, %v12852_v58  ;;  %v7585_v58 = vpop.f32.mrf.mxu2 }
 0x66b   :  { %v19904_v2 = vld [vmem:[#allocation5 + $0x1a34] sm:$0xf0]  ;;  %v19236_v61 = vld [vmem:[#allocation5 + $0x55c] sm:$0xf] }
 0x66c   :  { %v16274_v3 = vld [vmem:[#allocation5 + $0x1c18] sm:$0xf]  ;;  %v16019_v8 = vor.u32 %v19904_v2, %v16018_v63  ;;  %7765 = vmatpush.bf16.msrb.mxu0 %v15763_v11  ;;  %v13364_v63 = vld [vmem:[#allocation5 + $0x578] sm:$0xf0] }
 0x66d   :  { %v19968_v51 = vld [vmem:[#allocation5 + $0x1c34] sm:$0xf0]  ;;  %v19300_v2 = vld [vmem:[#allocation5 + $0x75c] sm:$0xf] }
 0x66e   :  { %v16530_v5 = vld [vmem:[#allocation5 + $0x1e18] sm:$0xf]  ;;  %v16275_v21 = vor.u32 %v19968_v51, %v16274_v3  ;;  %7778 = vmatpush.bf16.msrb.mxu1 %v16019_v8  ;;  %v13620_v3 = vld [vmem:[#allocation5 + $0x778] sm:$0xf0]  ;;  %v13111_v51 = vor.u32 %v19172_v59, %v13108_v60  ;;  %v7560_v8 = vadd.f32 %v7559_v12, %v21168_v47 }
 0x66f   :  { %v20032_v7 = vld [vmem:[#allocation5 + $0x1e34] sm:$0xf0]  ;;  %7766 = vmatmul.bf16.vlgmr.msrb.gmra.mxu0 %v21003_v23  ;;  %v13623_v0 = vor.u32 %v19300_v2, %v13620_v3  ;;  %v13332_v11 = vld [vmem:[#allocation5 + $0x538] sm:$0xf0] }
 0x670   :  { %v16531_v27 = vor.u32 %v20032_v7, %v16530_v5  ;;  %7791 = vmatpush.bf16.msrb.mxu2 %v16275_v21  ;;  %7810 = vmatpush.bf16.msra.mxu0 %v12919_v36  ;;  %v13367_v5 = vor.u32 %v19236_v61, %v13364_v63  ;;  %v19100_v7 = vld [vmem:[#allocation5 + $0x11c] sm:$0xf]  ;;  %v7573_v34 = vadd.f32 %v7572_v24, %v7560_v8  ;;  %v7598_v63 = vpop.f32.mrf.mxu3 }
 0x671   :  { %7779 = vmatmul.bf16.vlgmr.msrb.gmra.mxu1 %v21007_v31  ;;  %v19292_v14 = vld [vmem:[#allocation5 + $0x71c] sm:$0xf]  ;;  %v12823_v21 = vor.u32 %v19100_v7, %v12820_v13 }
 0x672   :  { %7804 = vmatpush.bf16.msrb.mxu3 %v16531_v27  ;;  %7823 = vmatpush.bf16.msra.mxu1 %v13175_v43  ;;  %v13588_v15 = vld [vmem:[#allocation5 + $0x738] sm:$0xf0]  ;;  %v13335_v27 = vor.u32 %v19228_v6, %v13332_v11  ;;  %v7586_v61 = vadd.f32 %v7585_v58, %v7573_v34 }
 0x673   :  { %7792 = vmatmul.bf16.vlgmr.msrb.gmra.mxu2 %v21005_v28  ;;  %v19092_v36 = vld [vmem:[#allocation5 + $0xdc] sm:$0xf]  ;;  %v13591_v39 = vor.u32 %v19292_v14, %v13588_v15 }
 0x674   :  { %7836 = vmatpush.bf16.msra.mxu2 %v13431_v45  ;;  %7811 = vmatpush.bf16.msra.mxu0 %v12887_v16  ;;  %v12788_v43 = vld [vmem:[#allocation5 + $0xf8] sm:$0xf0]  ;;  %v21175_v7 = vadd.f32 %v7598_v63, %v7586_v61 }
 0x675   :  { %7805 = vmatmul.bf16.vlgmr.msrb.gmra.mxu3 %v21009_v35  ;;  %v19156_v45 = vld [vmem:[#allocation5 + $0x2dc] sm:$0xf]  ;;  %v12791_v53 = vor.u32 %v19092_v36, %v12788_v43 }
 0x676   :  { %7849 = vmatpush.bf16.msra.mxu3 %v13687_v46  ;;  %7824 = vmatpush.bf16.msra.mxu1 %v13143_v32  ;;  %v13044_v48 = vld [vmem:[#allocation5 + $0x2f8] sm:$0xf0]  ;;  %vm8023_vm5 = vcmp.gt.f32.partialorder %v21175_v7, 0.0 }
 0x677   :  { %v19220_v46 = vld [vmem:[#allocation5 + $0x4dc] sm:$0xf]  ;;  %v13047_v47 = vor.u32 %v19156_v45, %v13044_v48 }
 0x678   :  { %7837 = vmatpush.bf16.msra.mxu2 %v13399_v54  ;;  %7812 = vmatpush.bf16.msra.mxu0 %v12855_v4  ;;  %v13300_v49 = vld [vmem:[#allocation5 + $0x4f8] sm:$0xf0]  ;;  %v7561_v4 = vpop.f32.mrf.mxu0 }
 0x679   :  { %v19284_v50 = vld [vmem:[#allocation5 + $0x6dc] sm:$0xf]  ;;  %v13303_v37 = vor.u32 %v19220_v46, %v13300_v49 }
 0x67a   :  { %7850 = vmatpush.bf16.msra.mxu3 %v13655_v62  ;;  %7825 = vmatpush.bf16.msra.mxu1 %v13111_v51  ;;  %v13556_v52 = vld [vmem:[#allocation5 + $0x6f8] sm:$0xf0] }
 0x67b   :  { %v19084_v16 = vld [vmem:[#allocation5 + $0x9c] sm:$0xf]  ;;  %v13559_v55 = vor.u32 %v19284_v50, %v13556_v52  ;;  %v7587_v52 = vpop.f32.mrf.mxu2 }
 0x67c   :  { %7838 = vmatpush.bf16.msra.mxu2 %v13367_v5  ;;  %7813 = vmatpush.bf16.msra.mxu0 %v12823_v21  ;;  %v12756_v32 = vld [vmem:[#allocation5 + $0xb8] sm:$0xf0]  ;;  %v7574_v5 = vpop.f32.mrf.mxu1 }
 0x67d   :  { %v19148_v54 = vld [vmem:[#allocation5 + $0x29c] sm:$0xf]  ;;  %v12759_v51 = vor.u32 %v19084_v16, %v12756_v32  ;;  %v7600_v16 = vpop.f32.mrf.mxu3 }
 0x67e   :  { %7851 = vmatpush.bf16.msra.mxu3 %v13623_v0  ;;  %7826 = vmatpush.bf16.msra.mxu1 %v13079_v26  ;;  %v13012_v59 = vld [vmem:[#allocation5 + $0x2b8] sm:$0xf0] }
 0x67f   :  { %v19212_v62 = vld [vmem:[#allocation5 + $0x49c] sm:$0xf]  ;;  %v13015_v13 = vor.u32 %v19148_v54, %v13012_v59 }
 0x680   :  { %7839 = vmatpush.bf16.msra.mxu2 %v13335_v27  ;;  %v13268_v60 = vld [vmem:[#allocation5 + $0x4b8] sm:$0xf0]  ;;  %7814 = vmatpush.bf16.msra.mxu0 %v12791_v53 }
 0x681   :  { %v19276_v2 = vld [vmem:[#allocation5 + $0x69c] sm:$0xf]  ;;  %v13271_v9 = vor.u32 %v19212_v62, %v13268_v60 }
 0x682   :  { %7852 = vmatpush.bf16.msra.mxu3 %v13591_v39  ;;  %v13524_v3 = vld [vmem:[#allocation5 + $0x6b8] sm:$0xf0]  ;;  %7827 = vmatpush.bf16.msra.mxu1 %v13047_v47 }
 0x683   :  { %v19076_v0 = vld [vmem:[#allocation5 + $0x5c] sm:$0xf]  ;;  %v13527_v11 = vor.u32 %v19276_v2, %v13524_v3 }
 0x684   :  { %7840 = vmatpush.bf16.msra.mxu2 %v13303_v37  ;;  %v12724_v10 = vld [vmem:[#allocation5 + $0x78] sm:$0xf0]  ;;  %7815 = vmatpush.bf16.msra.mxu0 %v12759_v51 }
 0x685   :  { %v19140_v6 = vld [vmem:[#allocation5 + $0x25c] sm:$0xf]  ;;  %v12727_v24 = vor.u32 %v19076_v0, %v12724_v10 }
 0x686   :  { %7853 = vmatpush.bf16.msra.mxu3 %v13559_v55  ;;  %v12980_v12 = vld [vmem:[#allocation5 + $0x278] sm:$0xf0]  ;;  %7828 = vmatpush.bf16.msra.mxu1 %v13015_v13 }
 0x687   :  { %v19204_v14 = vld [vmem:[#allocation5 + $0x45c] sm:$0xf]  ;;  %v12983_v36 = vor.u32 %v19140_v6, %v12980_v12 }
 0x688   :  { %v13236_v15 = vld [vmem:[#allocation5 + $0x478] sm:$0xf0]  ;;  %7841 = vmatpush.bf16.msra.mxu2 %v13271_v9  ;;  %7816 = vmatpush.bf16.msra.mxu0 %v12727_v24 }
 0x689   :  { %v19268_v8 = vld [vmem:[#allocation5 + $0x65c] sm:$0xf]  ;;  %v13239_v43 = vor.u32 %v19204_v14, %v13236_v15 }
 0x68a   :  { %v13492_v21 = vld [vmem:[#allocation5 + $0x678] sm:$0xf0]  ;;  %7854 = vmatpush.bf16.msra.mxu3 %v13527_v11  ;;  %7829 = vmatpush.bf16.msra.mxu1 %v12983_v36 }
 0x68b   :  { %v19068_v26 = vld [vmem:[#allocation5 + $0x1c] sm:$0xf]  ;;  %v13495_v48 = vor.u32 %v19268_v8, %v13492_v21 }
 0x68c   :  { %v12692_v27 = vld [vmem:[#allocation5 + $0x38] sm:$0xf0]  ;;  %7842 = vmatpush.bf16.msra.mxu2 %v13239_v43 }
 0x68d   :  { %v19132_v45 = vld [vmem:[#allocation5 + $0x21c] sm:$0xf]  ;;  %v12695_v32 = vor.u32 %v19068_v26, %v12692_v27 }
 0x68e   :  { %v12948_v39 = vld [vmem:[#allocation5 + $0x238] sm:$0xf0]  ;;  %7855 = vmatpush.bf16.msra.mxu3 %v13495_v48 }
 0x68f   :  { %v19196_v34 = vld [vmem:[#allocation5 + $0x41c] sm:$0xf]  ;;  %v12951_v59 = vor.u32 %v19132_v45, %v12948_v39  ;;  %7817 = vmatpush.bf16.msra.mxu0 %v12695_v32 }
 0x690   :  { %v13204_v46 = vld [vmem:[#allocation5 + $0x438] sm:$0xf0] }
 0x691   :  { %v19260_v49 = vld [vmem:[#allocation5 + $0x61c] sm:$0xf]  ;;  %v13207_v62 = vor.u32 %v19196_v34, %v13204_v46  ;;  %7830 = vmatpush.bf16.msra.mxu1 %v12951_v59 }
 0x692   :  { %v13460_v50 = vld [vmem:[#allocation5 + $0x638] sm:$0xf0]  ;;  %7818 = vmatmul.bf16.vlgmr.msra.gmra.mxu0 %v20969_v19 }
 0x693   :  { %v19380_v53 = vld [vmem:[#allocation5 + $0x9dc] sm:$0xf]  ;;  %v13463_v63 = vor.u32 %v19260_v49, %v13460_v50  ;;  %7843 = vmatpush.bf16.msra.mxu2 %v13207_v62 }
 0x694   :  { %v13940_v47 = vld [vmem:[#allocation5 + $0x9f8] sm:$0xf0]  ;;  %7831 = vmatmul.bf16.vlgmr.msra.gmra.mxu1 %v20973_v22 }
 0x695   :  { %v19444_v37 = vld [vmem:[#allocation5 + $0xbdc] sm:$0xf]  ;;  %v13943_v2 = vor.u32 %v19380_v53, %v13940_v47  ;;  %7856 = vmatpush.bf16.msra.mxu3 %v13463_v63  ;;  %v20687_v47 = vld [vmem:[#allocation7] sm:$0xff] }
 0x696   :  { %v14196_v54 = vld [vmem:[#allocation5 + $0xbf8] sm:$0xf0]  ;;  %7844 = vmatmul.bf16.vlgmr.msra.gmra.mxu2 %v20967_v18 }
 0x697   :  { %v19508_v55 = vld [vmem:[#allocation5 + $0xddc] sm:$0xf]  ;;  %v14199_v3 = vor.u32 %v19444_v37, %v14196_v54  ;;  %7862 = vmatpush.bf16.msrb.mxu0 %v13943_v2  ;;  %v1168_v37 = vperm.slane %v20687_v47, 6  ;;  %v7624_v2 = vpop.f32.mrf.mxu1 }
 0x698   :  { %v14452_v58 = vld [vmem:[#allocation5 + $0xdf8] sm:$0xf0]  ;;  %7857 = vmatmul.bf16.vlgmr.msra.gmra.mxu3 %v20971_v20 }
 0x699   :  { %v19572_v60 = vld [vmem:[#allocation5 + $0xfdc] sm:$0xf]  ;;  %v14455_v4 = vor.u32 %v19508_v55, %v14452_v58  ;;  %7875 = vmatpush.bf16.msrb.mxu1 %v14199_v3  ;;  %v7611_v58 = vpop.f32.mrf.mxu0 }
 0x69a   :  { %v14708_v61 = vld [vmem:[#allocation5 + $0xff8] sm:$0xf0]  ;;  %v7612_v63 = vadd.f32 %v7611_v58, %v1168_v37 }
 0x69b   :  { %v19372_v51 = vld [vmem:[#allocation5 + $0x99c] sm:$0xf]  ;;  %v14711_v9 = vor.u32 %v19572_v60, %v14708_v61  ;;  %7888 = vmatpush.bf16.msrb.mxu2 %v14455_v4 }
 0x69c   :  { %v13908_v5 = vld [vmem:[#allocation5 + $0x9b8] sm:$0xf0] }
 0x69d   :  { %v19436_v13 = vld [vmem:[#allocation5 + $0xb9c] sm:$0xf]  ;;  %v13911_v14 = vor.u32 %v19372_v51, %v13908_v5  ;;  %7901 = vmatpush.bf16.msrb.mxu3 %v14711_v9 }
 0x69e   :  { %v14164_v0 = vld [vmem:[#allocation5 + $0xbb8] sm:$0xf0] }
 0x69f   :  { %v19500_v10 = vld [vmem:[#allocation5 + $0xd9c] sm:$0xf]  ;;  %v14167_v15 = vor.u32 %v19436_v13, %v14164_v0  ;;  %7863 = vmatpush.bf16.msrb.mxu0 %v13911_v14  ;;  %v7625_v0 = vadd.f32 %v7624_v2, %v7612_v63  ;;  %v7626_v37 = vpop.f32.mrf.mxu1 }
 0x6a0   :  { %v14420_v6 = vld [vmem:[#allocation5 + $0xdb8] sm:$0xf0] }
 0x6a1   :  { %v19564_v11 = vld [vmem:[#allocation5 + $0xf9c] sm:$0xf]  ;;  %v14423_v8 = vor.u32 %v19500_v10, %v14420_v6  ;;  %7876 = vmatpush.bf16.msrb.mxu1 %v14167_v15 }
 0x6a2   :  { %v14676_v12 = vld [vmem:[#allocation5 + $0xfb8] sm:$0xf0] }
 0x6a3   :  { %v19364_v21 = vld [vmem:[#allocation5 + $0x95c] sm:$0xf]  ;;  %v14679_v27 = vor.u32 %v19564_v11, %v14676_v12  ;;  %7889 = vmatpush.bf16.msrb.mxu2 %v14423_v8  ;;  %v7637_v8 = vpop.f32.mrf.mxu2 }
 0x6a4   :  { %v13876_v24 = vld [vmem:[#allocation5 + $0x978] sm:$0xf0] }
 0x6a5   :  { %v19428_v26 = vld [vmem:[#allocation5 + $0xb5c] sm:$0xf]  ;;  %v13879_v48 = vor.u32 %v19364_v21, %v13876_v24  ;;  %7902 = vmatpush.bf16.msrb.mxu3 %v14679_v27 }
 0x6a6   :  { %v14132_v36 = vld [vmem:[#allocation5 + $0xb78] sm:$0xf0] }
 0x6a7   :  { %v19492_v43 = vld [vmem:[#allocation5 + $0xd5c] sm:$0xf]  ;;  %v14135_v49 = vor.u32 %v19428_v26, %v14132_v36  ;;  %7864 = vmatpush.bf16.msrb.mxu0 %v13879_v48  ;;  %v7638_v36 = vadd.f32 %v7637_v8, %v7625_v0 }
 0x6a8   :  { %v14388_v45 = vld [vmem:[#allocation5 + $0xd78] sm:$0xf0] }
 0x6a9   :  { %v19556_v39 = vld [vmem:[#allocation5 + $0xf5c] sm:$0xf]  ;;  %v14391_v50 = vor.u32 %v19492_v43, %v14388_v45  ;;  %7877 = vmatpush.bf16.msrb.mxu1 %v14135_v49  ;;  %v7650_v43 = vpop.f32.mrf.mxu3 }
 0x6aa   :  { %v14644_v34 = vld [vmem:[#allocation5 + $0xf78] sm:$0xf0]  ;;  %v21181_v48 = vadd.f32 %v7650_v43, %v7638_v36 }
 0x6ab   :  { %v19356_v46 = vld [vmem:[#allocation5 + $0x91c] sm:$0xf]  ;;  %v14647_v18 = vor.u32 %v19556_v39, %v14644_v34  ;;  %7890 = vmatpush.bf16.msrb.mxu2 %v14391_v50  ;;  %v7639_v2 = vpop.f32.mrf.mxu2 }
 0x6ac   :  { %v13844_v52 = vld [vmem:[#allocation5 + $0x938] sm:$0xf0] }
 0x6ad   :  { %v19420_v53 = vld [vmem:[#allocation5 + $0xb1c] sm:$0xf]  ;;  %v13847_v55 = vor.u32 %v19356_v46, %v13844_v52  ;;  %7903 = vmatpush.bf16.msrb.mxu3 %v14647_v18  ;;  %v7613_v46 = vpop.f32.mrf.mxu0 }
 0x6ae   :  { %v14100_v16 = vld [vmem:[#allocation5 + $0xb38] sm:$0xf0] }
 0x6af   :  { %v19484_v32 = vld [vmem:[#allocation5 + $0xd1c] sm:$0xf]  ;;  %v14103_v22 = vor.u32 %v19420_v53, %v14100_v16  ;;  %7865 = vmatpush.bf16.msrb.mxu0 %v13847_v55 }
 0x6b0   :  { %v14356_v19 = vld [vmem:[#allocation5 + $0xd38] sm:$0xf0] }
 0x6b1   :  { %v19548_v54 = vld [vmem:[#allocation5 + $0xf1c] sm:$0xf]  ;;  %v14359_v59 = vor.u32 %v19484_v32, %v14356_v19  ;;  %7878 = vmatpush.bf16.msrb.mxu1 %v14103_v22 }
 0x6b2   :  { %v14612_v20 = vld [vmem:[#allocation5 + $0xf38] sm:$0xf0] }
 0x6b3   :  { %v19348_v62 = vld [vmem:[#allocation5 + $0x8dc] sm:$0xf]  ;;  %v14615_v3 = vor.u32 %v19548_v54, %v14612_v20  ;;  %7891 = vmatpush.bf16.msrb.mxu2 %v14359_v59 }
 0x6b4   :  { %v13812_v60 = vld [vmem:[#allocation5 + $0x8f8] sm:$0xf0] }
 0x6b5   :  { %v19412_v61 = vld [vmem:[#allocation5 + $0xadc] sm:$0xf]  ;;  %v13815_v10 = vor.u32 %v19348_v62, %v13812_v60  ;;  %7904 = vmatpush.bf16.msrb.mxu3 %v14615_v3 }
 0x6b6   :  { %v14068_v4 = vld [vmem:[#allocation5 + $0xaf8] sm:$0xf0] }
 0x6b7   :  { %v19476_v51 = vld [vmem:[#allocation5 + $0xcdc] sm:$0xf]  ;;  %v14071_v6 = vor.u32 %v19412_v61, %v14068_v4  ;;  %7866 = vmatpush.bf16.msrb.mxu0 %v13815_v10 }
 0x6b8   :  { %v14324_v5 = vld [vmem:[#allocation5 + $0xcf8] sm:$0xf0] }
 0x6b9   :  { %v19540_v13 = vld [vmem:[#allocation5 + $0xedc] sm:$0xf]  ;;  %v14327_v11 = vor.u32 %v19476_v51, %v14324_v5  ;;  %7879 = vmatpush.bf16.msrb.mxu1 %v14071_v6 }
 0x6ba   :  { %v14580_v9 = vld [vmem:[#allocation5 + $0xef8] sm:$0xf0] }
 0x6bb   :  { %v19340_v12 = vld [vmem:[#allocation5 + $0x89c] sm:$0xf]  ;;  %v14583_v21 = vor.u32 %v19540_v13, %v14580_v9  ;;  %7892 = vmatpush.bf16.msrb.mxu2 %v14327_v11  ;;  %v7652_v13 = vpop.f32.mrf.mxu3 }
 0x6bc   :  { %v13780_v14 = vld [vmem:[#allocation5 + $0x8b8] sm:$0xf0] }
 0x6bd   :  { %v19404_v15 = vld [vmem:[#allocation5 + $0xa9c] sm:$0xf]  ;;  %v13783_v34 = vor.u32 %v19340_v12, %v13780_v14  ;;  %7905 = vmatpush.bf16.msrb.mxu3 %v14583_v21 }
 0x6be   :  { %v14036_v24 = vld [vmem:[#allocation5 + $0xab8] sm:$0xf0] }
 0x6bf   :  { %v19468_v26 = vld [vmem:[#allocation5 + $0xc9c] sm:$0xf]  ;;  %v14039_v49 = vor.u32 %v19404_v15, %v14036_v24  ;;  %7867 = vmatpush.bf16.msrb.mxu0 %v13783_v34 }
 0x6c0   :  { %v14292_v27 = vld [vmem:[#allocation5 + $0xcb8] sm:$0xf0] }
 0x6c1   :  { %v19532_v45 = vld [vmem:[#allocation5 + $0xe9c] sm:$0xf]  ;;  %v14295_v50 = vor.u32 %v19468_v26, %v14292_v27  ;;  %7880 = vmatpush.bf16.msrb.mxu1 %v14039_v49 }
 0x6c2   :  { %v14548_v39 = vld [vmem:[#allocation5 + $0xeb8] sm:$0xf0] }
 0x6c3   :  { %v19332_v52 = vld [vmem:[#allocation5 + $0x85c] sm:$0xf]  ;;  %v14551_v18 = vor.u32 %v19532_v45, %v14548_v39  ;;  %7893 = vmatpush.bf16.msrb.mxu2 %v14295_v50 }
 0x6c4   :  { %v13748_v53 = vld [vmem:[#allocation5 + $0x878] sm:$0xf0] }
 0x6c5   :  { %v19396_v47 = vld [vmem:[#allocation5 + $0xa5c] sm:$0xf]  ;;  %v13751_v55 = vor.u32 %v19332_v52, %v13748_v53  ;;  %7906 = vmatpush.bf16.msrb.mxu3 %v14551_v18 }
 0x6c6   :  { %v14004_v16 = vld [vmem:[#allocation5 + $0xa78] sm:$0xf0] }
 0x6c7   :  { %v19460_v32 = vld [vmem:[#allocation5 + $0xc5c] sm:$0xf]  ;;  %v14007_v59 = vor.u32 %v19396_v47, %v14004_v16  ;;  %7868 = vmatpush.bf16.msrb.mxu0 %v13751_v55 }
 0x6c8   :  { %v14260_v19 = vld [vmem:[#allocation5 + $0xc78] sm:$0xf0] }
 0x6c9   :  { %v19524_v54 = vld [vmem:[#allocation5 + $0xe5c] sm:$0xf]  ;;  %v14263_v62 = vor.u32 %v19460_v32, %v14260_v19  ;;  %7881 = vmatpush.bf16.msrb.mxu1 %v14007_v59 }
 0x6ca   :  { %v14516_v20 = vld [vmem:[#allocation5 + $0xe78] sm:$0xf0] }
 0x6cb   :  { %v19324_v58 = vld [vmem:[#allocation5 + $0x81c] sm:$0xf]  ;;  %v14519_v3 = vor.u32 %v19524_v54, %v14516_v20  ;;  %7894 = vmatpush.bf16.msrb.mxu2 %v14263_v62 }
 0x6cc   :  { %v13716_v22 = vld [vmem:[#allocation5 + $0x838] sm:$0xf0] }
 0x6cd   :  { %v19388_v60 = vld [vmem:[#allocation5 + $0xa1c] sm:$0xf]  ;;  %v13719_v6 = vor.u32 %v19324_v58, %v13716_v22  ;;  %7907 = vmatpush.bf16.msrb.mxu3 %v14519_v3 }
 0x6ce   :  { %v13972_v61 = vld [vmem:[#allocation5 + $0xa38] sm:$0xf0] }
 0x6cf   :  { %v19452_v63 = vld [vmem:[#allocation5 + $0xc1c] sm:$0xf]  ;;  %v13975_v15 = vor.u32 %v19388_v60, %v13972_v61  ;;  %7869 = vmatpush.bf16.msrb.mxu0 %v13719_v6 }
 0x6d0   :  { %v14228_v4 = vld [vmem:[#allocation5 + $0xc38] sm:$0xf0] }
 0x6d1   :  { %v19516_v51 = vld [vmem:[#allocation5 + $0xe1c] sm:$0xf]  ;;  %v14231_v8 = vor.u32 %v19452_v63, %v14228_v4  ;;  %7882 = vmatpush.bf16.msrb.mxu1 %v13975_v15  ;;  %v7676_v15 = vpop.f32.mrf.mxu1 }
 0x6d2   :  { %v14484_v5 = vld [vmem:[#allocation5 + $0xe38] sm:$0xf0]  ;;  %7870 = vmatmul.bf16.vlgmr.msrb.gmra.mxu0 %v20981_v41 }
 0x6d3   :  { %v19636_v9 = vld [vmem:[#allocation5 + $0x11dc] sm:$0xf]  ;;  %v14487_v26 = vor.u32 %v19516_v51, %v14484_v5  ;;  %7895 = vmatpush.bf16.msrb.mxu2 %v14231_v8 }
 0x6d4   :  { %v14964_v0 = vld [vmem:[#allocation5 + $0x11f8] sm:$0xf0]  ;;  %7883 = vmatmul.bf16.vlgmr.msrb.gmra.mxu1 %v20985_v44 }
 0x6d5   :  { %v19700_v10 = vld [vmem:[#allocation5 + $0x13dc] sm:$0xf]  ;;  %v14967_v27 = vor.u32 %v19636_v9, %v14964_v0  ;;  %7908 = vmatpush.bf16.msrb.mxu3 %v14487_v26  ;;  %v7663_v0 = vpop.f32.mrf.mxu0 }
 0x6d6   :  { %v15220_v11 = vld [vmem:[#allocation5 + $0x13f8] sm:$0xf0]  ;;  %7896 = vmatmul.bf16.vlgmr.msrb.gmra.mxu2 %v20979_v38 }
 0x6d7   :  { %v19764_v12 = vld [vmem:[#allocation5 + $0x15dc] sm:$0xf]  ;;  %v15223_v36 = vor.u32 %v19700_v10, %v15220_v11  ;;  %7914 = vmatpush.bf16.msra.mxu0 %v14967_v27 }
 0x6d8   :  { %v15476_v14 = vld [vmem:[#allocation5 + $0x15f8] sm:$0xf0]  ;;  %7909 = vmatmul.bf16.vlgmr.msrb.gmra.mxu3 %v20983_v42 }
 0x6d9   :  { %v19828_v21 = vld [vmem:[#allocation5 + $0x17dc] sm:$0xf]  ;;  %v15479_v43 = vor.u32 %v19764_v12, %v15476_v14  ;;  %7927 = vmatpush.bf16.msra.mxu1 %v15223_v36  ;;  %v7664_v14 = vadd.f32 %v7663_v0, %v21181_v48 }
 0x6da   :  { %v15732_v24 = vld [vmem:[#allocation5 + $0x17f8] sm:$0xf0] }
 0x6db   :  { %v19628_v45 = vld [vmem:[#allocation5 + $0x119c] sm:$0xf]  ;;  %v15735_v46 = vor.u32 %v19828_v21, %v15732_v24  ;;  %7940 = vmatpush.bf16.msra.mxu2 %v15479_v43  ;;  %v7677_v43 = vadd.f32 %v7676_v15, %v7664_v14 }
 0x6dc   :  { %v14932_v39 = vld [vmem:[#allocation5 + $0x11b8] sm:$0xf0] }
 0x6dd   :  { %v19692_v34 = vld [vmem:[#allocation5 + $0x139c] sm:$0xf]  ;;  %v14935_v37 = vor.u32 %v19628_v45, %v14932_v39  ;;  %7953 = vmatpush.bf16.msra.mxu3 %v15735_v46 }
 0x6de   :  { %v15188_v49 = vld [vmem:[#allocation5 + $0x13b8] sm:$0xf0] }
 0x6df   :  { %v19756_v50 = vld [vmem:[#allocation5 + $0x159c] sm:$0xf]  ;;  %v15191_v18 = vor.u32 %v19692_v34, %v15188_v49  ;;  %7915 = vmatpush.bf16.msra.mxu0 %v14935_v37 }
 0x6e0   :  { %v15444_v52 = vld [vmem:[#allocation5 + $0x15b8] sm:$0xf0] }
 0x6e1   :  { %v19820_v53 = vld [vmem:[#allocation5 + $0x179c] sm:$0xf]  ;;  %v15447_v16 = vor.u32 %v19756_v50, %v15444_v52  ;;  %7928 = vmatpush.bf16.msra.mxu1 %v15191_v18  ;;  %v7689_v52 = vpop.f32.mrf.mxu2 }
 0x6e2   :  { %v15700_v47 = vld [vmem:[#allocation5 + $0x17b8] sm:$0xf0]  ;;  %v7690_v18 = vadd.f32 %v7689_v52, %v7677_v43 }
 0x6e3   :  { %v19620_v32 = vld [vmem:[#allocation5 + $0x115c] sm:$0xf]  ;;  %v15703_v20 = vor.u32 %v19820_v53, %v15700_v47  ;;  %7941 = vmatpush.bf16.msra.mxu2 %v15447_v16  ;;  %v7702_v16 = vpop.f32.mrf.mxu3 }
 0x6e4   :  { %v14900_v19 = vld [vmem:[#allocation5 + $0x1178] sm:$0xf0] }
 0x6e5   :  { %v19684_v54 = vld [vmem:[#allocation5 + $0x135c] sm:$0xf]  ;;  %v14903_v60 = vor.u32 %v19620_v32, %v14900_v19  ;;  %7954 = vmatpush.bf16.msra.mxu3 %v15703_v20  ;;  %v21188_v20 = vadd.f32 %v7702_v16, %v7690_v18 }
 0x6e6   :  { %v15156_v55 = vld [vmem:[#allocation5 + $0x1378] sm:$0xf0] }
 0x6e7   :  { %v19748_v58 = vld [vmem:[#allocation5 + $0x155c] sm:$0xf]  ;;  %v15159_v61 = vor.u32 %v19684_v54, %v15156_v55  ;;  %7916 = vmatpush.bf16.msra.mxu0 %v14903_v60  ;;  %v7665_v55 = vpop.f32.mrf.mxu0 }
 0x6e8   :  { %v15412_v22 = vld [vmem:[#allocation5 + $0x1578] sm:$0xf0] }
 0x6e9   :  { %v19812_v59 = vld [vmem:[#allocation5 + $0x175c] sm:$0xf]  ;;  %v15415_v63 = vor.u32 %v19748_v58, %v15412_v22  ;;  %7929 = vmatpush.bf16.msra.mxu1 %v15159_v61  ;;  %v7678_v61 = vpop.f32.mrf.mxu1 }
 0x6ea   :  { %v15668_v62 = vld [vmem:[#allocation5 + $0x1778] sm:$0xf0] }
 0x6eb   :  { %v19612_v2 = vld [vmem:[#allocation5 + $0x111c] sm:$0xf]  ;;  %v15671_v4 = vor.u32 %v19812_v59, %v15668_v62  ;;  %7942 = vmatpush.bf16.msra.mxu2 %v15415_v63 }
 0x6ec   :  { %v14868_v3 = vld [vmem:[#allocation5 + $0x1138] sm:$0xf0] }
 0x6ed   :  { %v19676_v38 = vld [vmem:[#allocation5 + $0x131c] sm:$0xf]  ;;  %v14871_v42 = vor.u32 %v19612_v2, %v14868_v3  ;;  %7955 = vmatpush.bf16.msra.mxu3 %v15671_v4 }
 0x6ee   :  { %v15124_v51 = vld [vmem:[#allocation5 + $0x1338] sm:$0xf0] }
 0x6ef   :  { %v19740_v5 = vld [vmem:[#allocation5 + $0x151c] sm:$0xf]  ;;  %v15127_v44 = vor.u32 %v19676_v38, %v15124_v51  ;;  %7917 = vmatpush.bf16.msra.mxu0 %v14871_v42 }
 0x6f0   :  { %v15380_v13 = vld [vmem:[#allocation5 + $0x1538] sm:$0xf0] }
 0x6f1   :  { %v19804_v9 = vld [vmem:[#allocation5 + $0x171c] sm:$0xf]  ;;  %v15383_v10 = vor.u32 %v19740_v5, %v15380_v13  ;;  %7930 = vmatpush.bf16.msra.mxu1 %v15127_v44 }
 0x6f2   :  { %v15636_v41 = vld [vmem:[#allocation5 + $0x1738] sm:$0xf0] }
 0x6f3   :  { %v19604_v6 = vld [vmem:[#allocation5 + $0x10dc] sm:$0xf]  ;;  %v15639_v8 = vor.u32 %v19804_v9, %v15636_v41  ;;  %7943 = vmatpush.bf16.msra.mxu2 %v15383_v10 }
 0x6f4   :  { %v14836_v11 = vld [vmem:[#allocation5 + $0x10f8] sm:$0xf0] }
 0x6f5   :  { %v19668_v12 = vld [vmem:[#allocation5 + $0x12dc] sm:$0xf]  ;;  %v14839_v45 = vor.u32 %v19604_v6, %v14836_v11  ;;  %7956 = vmatpush.bf16.msra.mxu3 %v15639_v8  ;;  %v7691_v6 = vpop.f32.mrf.mxu2  ;;  %v7704_v8 = vpop.f32.mrf.mxu3 }
 0x6f6   :  { %v15092_v21 = vld [vmem:[#allocation5 + $0x12f8] sm:$0xf0] }
 0x6f7   :  { %v19732_v24 = vld [vmem:[#allocation5 + $0x14dc] sm:$0xf]  ;;  %v15095_v39 = vor.u32 %v19668_v12, %v15092_v21  ;;  %7918 = vmatpush.bf16.msra.mxu0 %v14839_v45 }
 0x6f8   :  { %v15348_v26 = vld [vmem:[#allocation5 + $0x14f8] sm:$0xf0] }
 0x6f9   :  { %v19796_v27 = vld [vmem:[#allocation5 + $0x16dc] sm:$0xf]  ;;  %v15351_v34 = vor.u32 %v19732_v24, %v15348_v26  ;;  %7931 = vmatpush.bf16.msra.mxu1 %v15095_v39 }
 0x6fa   :  { %v15604_v36 = vld [vmem:[#allocation5 + $0x16f8] sm:$0xf0] }
 0x6fb   :  { %v19596_v46 = vld [vmem:[#allocation5 + $0x109c] sm:$0xf]  ;;  %v15607_v48 = vor.u32 %v19796_v27, %v15604_v36  ;;  %7944 = vmatpush.bf16.msra.mxu2 %v15351_v34 }
 0x6fc   :  { %v14804_v49 = vld [vmem:[#allocation5 + $0x10b8] sm:$0xf0] }
 0x6fd   :  { %v19660_v50 = vld [vmem:[#allocation5 + $0x129c] sm:$0xf]  ;;  %v14807_v54 = vor.u32 %v19596_v46, %v14804_v49  ;;  %7957 = vmatpush.bf16.msra.mxu3 %v15607_v48 }
 0x6fe   :  { %v15060_v53 = vld [vmem:[#allocation5 + $0x12b8] sm:$0xf0] }
 0x6ff   :  { %v19724_v47 = vld [vmem:[#allocation5 + $0x149c] sm:$0xf]  ;;  %v15063_v58 = vor.u32 %v19660_v50, %v15060_v53  ;;  %7919 = vmatpush.bf16.msra.mxu0 %v14807_v54 }
 0x700   :  { %v15316_v37 = vld [vmem:[#allocation5 + $0x14b8] sm:$0xf0] }
 0x701   :  { %v19788_v32 = vld [vmem:[#allocation5 + $0x169c] sm:$0xf]  ;;  %v15319_v22 = vor.u32 %v19724_v47, %v15316_v37  ;;  %7932 = vmatpush.bf16.msra.mxu1 %v15063_v58 }
 0x702   :  { %v15572_v19 = vld [vmem:[#allocation5 + $0x16b8] sm:$0xf0] }
 0x703   :  { %v19588_v59 = vld [vmem:[#allocation5 + $0x105c] sm:$0xf]  ;;  %v15575_v63 = vor.u32 %v19788_v32, %v15572_v19  ;;  %7945 = vmatpush.bf16.msra.mxu2 %v15319_v22 }
 0x704   :  { %v14772_v62 = vld [vmem:[#allocation5 + $0x1078] sm:$0xf0] }
 0x705   :  { %v19652_v60 = vld [vmem:[#allocation5 + $0x125c] sm:$0xf]  ;;  %v14775_v5 = vor.u32 %v19588_v59, %v14772_v62  ;;  %7958 = vmatpush.bf16.msra.mxu3 %v15575_v63 }
 0x706   :  { %v15028_v2 = vld [vmem:[#allocation5 + $0x1278] sm:$0xf0] }
 0x707   :  { %v19716_v3 = vld [vmem:[#allocation5 + $0x145c] sm:$0xf]  ;;  %v15031_v41 = vor.u32 %v19652_v60, %v15028_v2  ;;  %7920 = vmatpush.bf16.msra.mxu0 %v14775_v5 }
 0x708   :  { %v15284_v38 = vld [vmem:[#allocation5 + $0x1478] sm:$0xf0] }
 0x709   :  { %v19780_v4 = vld [vmem:[#allocation5 + $0x165c] sm:$0xf]  ;;  %v15287_v42 = vor.u32 %v19716_v3, %v15284_v38  ;;  %7933 = vmatpush.bf16.msra.mxu1 %v15031_v41 }
 0x70a   :  { %v15540_v51 = vld [vmem:[#allocation5 + $0x1678] sm:$0xf0] }
 0x70b   :  { %v19580_v13 = vld [vmem:[#allocation5 + $0x101c] sm:$0xf]  ;;  %v15543_v11 = vor.u32 %v19780_v4, %v15540_v51  ;;  %7946 = vmatpush.bf16.msra.mxu2 %v15287_v42 }
 0x70c   :  { %v14740_v9 = vld [vmem:[#allocation5 + $0x1038] sm:$0xf0] }
 0x70d   :  { %v19644_v0 = vld [vmem:[#allocation5 + $0x121c] sm:$0xf]  ;;  %v14743_v27 = vor.u32 %v19580_v13, %v14740_v9  ;;  %7959 = vmatpush.bf16.msra.mxu3 %v15543_v11  ;;  %v7715_v11 = vpop.f32.mrf.mxu0 }
 0x70e   :  { %v14996_v44 = vld [vmem:[#allocation5 + $0x1238] sm:$0xf0] }
 0x70f   :  { %v19708_v10 = vld [vmem:[#allocation5 + $0x141c] sm:$0xf]  ;;  %v14999_v39 = vor.u32 %v19644_v0, %v14996_v44  ;;  %7921 = vmatpush.bf16.msra.mxu0 %v14743_v27 }
 0x710   :  { %v15252_v12 = vld [vmem:[#allocation5 + $0x1438] sm:$0xf0] }
 0x711   :  { %v19772_v14 = vld [vmem:[#allocation5 + $0x161c] sm:$0xf]  ;;  %v15255_v34 = vor.u32 %v19708_v10, %v15252_v12  ;;  %7934 = vmatpush.bf16.msra.mxu1 %v14999_v39 }
 0x712   :  { %v15508_v15 = vld [vmem:[#allocation5 + $0x1638] sm:$0xf0]  ;;  %7922 = vmatmul.bf16.vlgmr.msra.gmra.mxu0 %v20991_v25 }
 0x713   :  { %v19892_v21 = vld [vmem:[#allocation5 + $0x19dc] sm:$0xf]  ;;  %v15511_v50 = vor.u32 %v19772_v14, %v15508_v15  ;;  %7947 = vmatpush.bf16.msra.mxu2 %v15255_v34  ;;  %v7728_v15 = vpop.f32.mrf.mxu1 }
 0x714   :  { %v15988_v24 = vld [vmem:[#allocation5 + $0x19f8] sm:$0xf0]  ;;  %7935 = vmatmul.bf16.vlgmr.msra.gmra.mxu1 %v20995_v30 }
 0x715   :  { %v19956_v26 = vld [vmem:[#allocation5 + $0x1bdc] sm:$0xf]  ;;  %v15991_v52 = vor.u32 %v19892_v21, %v15988_v24  ;;  %7960 = vmatpush.bf16.msra.mxu3 %v15511_v50 }
 0x716   :  { %v16244_v36 = vld [vmem:[#allocation5 + $0x1bf8] sm:$0xf0]  ;;  %7948 = vmatmul.bf16.vlgmr.msra.gmra.mxu2 %v20993_v29 }
 0x717   :  { %v20020_v43 = vld [vmem:[#allocation5 + $0x1ddc] sm:$0xf]  ;;  %v16247_v48 = vor.u32 %v19956_v26, %v16244_v36  ;;  %7966 = vmatpush.bf16.msrb.mxu0 %v15991_v52 }
 0x718   :  { %v16500_v45 = vld [vmem:[#allocation5 + $0x1df8] sm:$0xf0]  ;;  %7961 = vmatmul.bf16.vlgmr.msra.gmra.mxu3 %v20997_v33  ;;  %v7716_v33 = vadd.f32 %v7715_v11, %v21188_v20 }
 0x719   :  { %v20084_v46 = vld [vmem:[#allocation5 + $0x1fdc] sm:$0xf]  ;;  %v16503_v53 = vor.u32 %v20020_v43, %v16500_v45  ;;  %7979 = vmatpush.bf16.msrb.mxu1 %v16247_v48 }
 0x71a   :  { %v16756_v49 = vld [vmem:[#allocation5 + $0x1ff8] sm:$0xf0]  ;;  %v21195_v43 = vadd.f32 %v7728_v15, %v7716_v33  ;;  %v16986_v15 = vld [vmem:[#allocation8 + $0x1c0] sm:$0xf] }
 0x71b   :  { %v19884_v47 = vld [vmem:[#allocation5 + $0x199c] sm:$0xf]  ;;  %v16759_v16 = vor.u32 %v20084_v46, %v16756_v49  ;;  %7992 = vmatpush.bf16.msrb.mxu2 %v16503_v53 }
 0x71c   :  { %v15956_v37 = vld [vmem:[#allocation5 + $0x19b8] sm:$0xf0] }
 0x71d   :  { %v19948_v18 = vld [vmem:[#allocation5 + $0x1b9c] sm:$0xf]  ;;  %v15959_v22 = vor.u32 %v19884_v47, %v15956_v37  ;;  %8005 = vmatpush.bf16.msrb.mxu3 %v16759_v16 }
 0x71e   :  { %v16212_v32 = vld [vmem:[#allocation5 + $0x1bb8] sm:$0xf0] }
 0x71f   :  { %v20012_v19 = vld [vmem:[#allocation5 + $0x1d9c] sm:$0xf]  ;;  %v16215_v59 = vor.u32 %v19948_v18, %v16212_v32  ;;  %7967 = vmatpush.bf16.msrb.mxu0 %v15959_v22  ;;  %v21197_v18 = vpop.f32.mrf.mxu2  ;;  %v7717_v22 = vpop.f32.mrf.mxu0 }
 0x720   :  { %v16468_v54 = vld [vmem:[#allocation5 + $0x1db8] sm:$0xf0]  ;;  %v20333_v22 = vld [vmem:[#allocation8 + $0x79c] sm:$0xf0] }
 0x721   :  { %v20076_v55 = vld [vmem:[#allocation5 + $0x1f9c] sm:$0xf]  ;;  %v16471_v62 = vor.u32 %v20012_v19, %v16468_v54  ;;  %7980 = vmatpush.bf16.msrb.mxu1 %v16215_v59  ;;  %v21199_v54 = vpop.f32.mrf.mxu3 }
 0x722   :  { %v16724_v58 = vld [vmem:[#allocation5 + $0x1fb8] sm:$0xf0] }
 0x723   :  { %v19876_v60 = vld [vmem:[#allocation5 + $0x195c] sm:$0xf]  ;;  %v16727_v2 = vor.u32 %v20076_v55, %v16724_v58  ;;  %7993 = vmatpush.bf16.msrb.mxu2 %v16471_v62  ;;  %v7730_v62 = vpop.f32.mrf.mxu1 }
 0x724   :  { %v15924_v61 = vld [vmem:[#allocation5 + $0x1978] sm:$0xf0] }
 0x725   :  { %v19940_v63 = vld [vmem:[#allocation5 + $0x1b5c] sm:$0xf]  ;;  %v15927_v13 = vor.u32 %v19876_v60, %v15924_v61  ;;  %8006 = vmatpush.bf16.msrb.mxu3 %v16727_v2 }
 0x726   :  { %v16180_v3 = vld [vmem:[#allocation5 + $0x1b78] sm:$0xf0] }
 0x727   :  { %v20004_v38 = vld [vmem:[#allocation5 + $0x1d5c] sm:$0xf]  ;;  %v16183_v9 = vor.u32 %v19940_v63, %v16180_v3  ;;  %7968 = vmatpush.bf16.msrb.mxu0 %v15927_v13 }
 0x728   :  { %v16436_v4 = vld [vmem:[#allocation5 + $0x1d78] sm:$0xf0] }
 0x729   :  { %v20068_v51 = vld [vmem:[#allocation5 + $0x1f5c] sm:$0xf]  ;;  %v16439_v41 = vor.u32 %v20004_v38, %v16436_v4  ;;  %7981 = vmatpush.bf16.msrb.mxu1 %v16183_v9 }
 0x72a   :  { %v16692_v5 = vld [vmem:[#allocation5 + $0x1f78] sm:$0xf0] }
 0x72b   :  { %v19868_v42 = vld [vmem:[#allocation5 + $0x191c] sm:$0xf]  ;;  %v16695_v44 = vor.u32 %v20068_v51, %v16692_v5  ;;  %7994 = vmatpush.bf16.msrb.mxu2 %v16439_v41 }
 0x72c   :  { %v15892_v25 = vld [vmem:[#allocation5 + $0x1938] sm:$0xf0] }
 0x72d   :  { %v19932_v0 = vld [vmem:[#allocation5 + $0x1b1c] sm:$0xf]  ;;  %v15895_v14 = vor.u32 %v19868_v42, %v15892_v25  ;;  %8007 = vmatpush.bf16.msrb.mxu3 %v16695_v44 }
 0x72e   :  { %v16148_v10 = vld [vmem:[#allocation5 + $0x1b38] sm:$0xf0] }
 0x72f   :  { %v19996_v6 = vld [vmem:[#allocation5 + $0x1d1c] sm:$0xf]  ;;  %v16151_v8 = vor.u32 %v19932_v0, %v16148_v10  ;;  %7969 = vmatpush.bf16.msrb.mxu0 %v15895_v14  ;;  %v7743_v14 = vpop.f32.mrf.mxu2 }
 0x730   :  { %v16404_v29 = vld [vmem:[#allocation5 + $0x1d38] sm:$0xf0]  ;;  %v16858_v14 = vld [vmem:[#allocation8 + $0xc0] sm:$0xf] }
 0x731   :  { %v20060_v30 = vld [vmem:[#allocation5 + $0x1f1c] sm:$0xf]  ;;  %v16407_v21 = vor.u32 %v19996_v6, %v16404_v29  ;;  %7982 = vmatpush.bf16.msrb.mxu1 %v16151_v8  ;;  %v20149_v8 = vld [vmem:[#allocation8 + $0x1dc] sm:$0xf0] }
 0x732   :  { %v16660_v12 = vld [vmem:[#allocation5 + $0x1f38] sm:$0xf0] }
 0x733   :  { %v19860_v24 = vld [vmem:[#allocation5 + $0x18dc] sm:$0xf]  ;;  %v16663_v36 = vor.u32 %v20060_v30, %v16660_v12  ;;  %7995 = vmatpush.bf16.msrb.mxu2 %v16407_v21  ;;  %v17242_v21 = vld [vmem:[#allocation8 + $0x3c0] sm:$0xf] }
 0x734   :  { %v15860_v26 = vld [vmem:[#allocation5 + $0x18f8] sm:$0xf0] }
 0x735   :  { %v19924_v27 = vld [vmem:[#allocation5 + $0x1adc] sm:$0xf]  ;;  %v15863_v20 = vor.u32 %v19860_v24, %v15860_v26  ;;  %8008 = vmatpush.bf16.msrb.mxu3 %v16663_v36  ;;  %v7756_v24 = vpop.f32.mrf.mxu3  ;;  %v17498_v36 = vld [vmem:[#allocation8 + $0x5c0] sm:$0xf] }
 0x736   :  { %v16116_v45 = vld [vmem:[#allocation5 + $0x1af8] sm:$0xf0]  ;;  %v20181_v24 = vld [vmem:[#allocation8 + $0x2dc] sm:$0xf0] }
 0x737   :  { %v19988_v39 = vld [vmem:[#allocation5 + $0x1cdc] sm:$0xf]  ;;  %v16119_v50 = vor.u32 %v19924_v27, %v16116_v45  ;;  %7970 = vmatpush.bf16.msrb.mxu0 %v15863_v20  ;;  %v20213_v27 = vld [vmem:[#allocation8 + $0x3dc] sm:$0xf0] }
 0x738   :  { %v16372_v34 = vld [vmem:[#allocation5 + $0x1cf8] sm:$0xf0]  ;;  %v20277_v45 = vld [vmem:[#allocation8 + $0x5dc] sm:$0xf0] }
 0x739   :  { %v20052_v46 = vld [vmem:[#allocation5 + $0x1edc] sm:$0xf]  ;;  %v16375_v52 = vor.u32 %v19988_v39, %v16372_v34  ;;  %7983 = vmatpush.bf16.msrb.mxu1 %v16119_v50  ;;  %v16987_v50 = vor.u32 %v20149_v8, %v16986_v15  ;;  %v20117_v15 = vld [vmem:[#allocation8 + $0xdc] sm:$0xf0] }
 0x73a   :  { %v16628_v49 = vld [vmem:[#allocation5 + $0x1ef8] sm:$0xf0]  ;;  %v17114_v8 = vld [vmem:[#allocation8 + $0x2c0] sm:$0xf] }
 0x73b   :  { %v19852_v48 = vld [vmem:[#allocation5 + $0x189c] sm:$0xf]  ;;  %v16631_v37 = vor.u32 %v20052_v46, %v16628_v49  ;;  %7996 = vmatpush.bf16.msrb.mxu2 %v16375_v52  ;;  %v17754_v46 = vld [vmem:[#allocation8 + $0x7c0] sm:$0xf]  ;;  %v17243_v52 = vor.u32 %v20213_v27, %v17242_v21 }
 0x73c   :  { %v15828_v53 = vld [vmem:[#allocation5 + $0x18b8] sm:$0xf0]  ;;  %v20341_v49 = vld [vmem:[#allocation8 + $0x7dc] sm:$0xf0] }
 0x73d   :  { %v19916_v47 = vld [vmem:[#allocation5 + $0x1a9c] sm:$0xf]  ;;  %v15831_v59 = vor.u32 %v19852_v48, %v15828_v53  ;;  %8009 = vmatpush.bf16.msrb.mxu3 %v16631_v37  ;;  %v17499_v48 = vor.u32 %v20277_v45, %v17498_v36  ;;  %v16954_v53 = vld [vmem:[#allocation8 + $0x180] sm:$0xf] }
 0x73e   :  { %v16084_v16 = vld [vmem:[#allocation5 + $0x1ab8] sm:$0xf0]  ;;  %v17210_v37 = vld [vmem:[#allocation8 + $0x380] sm:$0xf] }
 0x73f   :  { %v19980_v32 = vld [vmem:[#allocation5 + $0x1c9c] sm:$0xf]  ;;  %v16087_v60 = vor.u32 %v19916_v47, %v16084_v16  ;;  %7971 = vmatpush.bf16.msrb.mxu0 %v15831_v59  ;;  %v20141_v47 = vld [vmem:[#allocation8 + $0x19c] sm:$0xf0]  ;;  %v17755_v16 = vor.u32 %v20341_v49, %v17754_v46 }
 0x740   :  { %v16340_v19 = vld [vmem:[#allocation5 + $0x1cb8] sm:$0xf0]  ;;  %v16955_v59 = vor.u32 %v20141_v47, %v16954_v53  ;;  %v20245_v27 = vld [vmem:[#allocation8 + $0x4dc] sm:$0xf0] }
 0x741   :  { %v20044_v55 = vld [vmem:[#allocation5 + $0x1e9c] sm:$0xf]  ;;  %v16343_v61 = vor.u32 %v19980_v32, %v16340_v19  ;;  %7984 = vmatpush.bf16.msrb.mxu1 %v16087_v60  ;;  %v20205_v32 = vld [vmem:[#allocation8 + $0x39c] sm:$0xf0] }
 0x742   :  { %v16596_v58 = vld [vmem:[#allocation5 + $0x1eb8] sm:$0xf0]  ;;  %v17466_v19 = vld [vmem:[#allocation8 + $0x580] sm:$0xf]  ;;  %v17211_v62 = vor.u32 %v20205_v32, %v17210_v37  ;;  %v21213_v32 = vpop.f32.mrf.mxu3 }
 0x743   :  { %v19844_v63 = vld [vmem:[#allocation5 + $0x185c] sm:$0xf]  ;;  %v16599_v38 = vor.u32 %v20044_v55, %v16596_v58  ;;  %7997 = vmatpush.bf16.msrb.mxu2 %v16343_v61  ;;  %v20269_v55 = vld [vmem:[#allocation8 + $0x59c] sm:$0xf0] }
 0x744   :  { %v15796_v2 = vld [vmem:[#allocation5 + $0x1878] sm:$0xf0]  ;;  %v17722_v58 = vld [vmem:[#allocation8 + $0x780] sm:$0xf]  ;;  %v17467_v60 = vor.u32 %v20269_v55, %v17466_v19 }
 0x745   :  { %v19908_v3 = vld [vmem:[#allocation5 + $0x1a5c] sm:$0xf]  ;;  %v15799_v41 = vor.u32 %v19844_v63, %v15796_v2  ;;  %8010 = vmatpush.bf16.msrb.mxu3 %v16599_v38  ;;  %v16922_v61 = vld [vmem:[#allocation8 + $0x140] sm:$0xf] }
 0x746   :  { %v16052_v4 = vld [vmem:[#allocation5 + $0x1a78] sm:$0xf0]  ;;  %v20133_v63 = vld [vmem:[#allocation8 + $0x15c] sm:$0xf0] }
 0x747   :  { %v19972_v51 = vld [vmem:[#allocation5 + $0x1c5c] sm:$0xf]  ;;  %v16055_v0 = vor.u32 %v19908_v3, %v16052_v4  ;;  %7972 = vmatpush.bf16.msrb.mxu0 %v15799_v41  ;;  %v17178_v2 = vld [vmem:[#allocation8 + $0x340] sm:$0xf]  ;;  %v17723_v3 = vor.u32 %v20333_v22, %v17722_v58  ;;  %v8027_v22 = vmul.f32 0.2, %v21067_v57 }
 0x748   :  { %v16308_v5 = vld [vmem:[#allocation5 + $0x1c78] sm:$0xf0]  ;;  %v20197_v38 = vld [vmem:[#allocation8 + $0x35c] sm:$0xf0] }
 0x749   :  { %v20036_v13 = vld [vmem:[#allocation5 + $0x1e5c] sm:$0xf]  ;;  %v16311_v44 = vor.u32 %v19972_v51, %v16308_v5  ;;  %7985 = vmatpush.bf16.msrb.mxu1 %v16055_v0  ;;  %v17434_v4 = vld [vmem:[#allocation8 + $0x540] sm:$0xf]  ;;  %v17179_v41 = vor.u32 %v20197_v38, %v17178_v2 }
 0x74a   :  { %v16564_v9 = vld [vmem:[#allocation5 + $0x1e78] sm:$0xf0]  ;;  %v20261_v51 = vld [vmem:[#allocation8 + $0x55c] sm:$0xf0] }
 0x74b   :  { %v19836_v42 = vld [vmem:[#allocation5 + $0x181c] sm:$0xf]  ;;  %v16567_v11 = vor.u32 %v20036_v13, %v16564_v9  ;;  %7998 = vmatpush.bf16.msrb.mxu2 %v16311_v44  ;;  %v17690_v5 = vld [vmem:[#allocation8 + $0x740] sm:$0xf]  ;;  %v16923_v9 = vor.u32 %v20133_v63, %v16922_v61 }
 0x74c   :  { %v15764_v25 = vld [vmem:[#allocation5 + $0x1838] sm:$0xf0]  ;;  %v20325_v13 = vld [vmem:[#allocation8 + $0x75c] sm:$0xf0] }
 0x74d   :  { %v19900_v10 = vld [vmem:[#allocation5 + $0x1a1c] sm:$0xf]  ;;  %v15767_v26 = vor.u32 %v19836_v42, %v15764_v25  ;;  %8011 = vmatpush.bf16.msrb.mxu3 %v16567_v11  ;;  %v17435_v42 = vor.u32 %v20261_v51, %v17434_v4  ;;  %v16890_v25 = vld [vmem:[#allocation8 + $0x100] sm:$0xf]  ;;  %v17691_v44 = vor.u32 %v20325_v13, %v17690_v5  ;;  %v8028_v13 = vmul.f32 0.2, %v21094_v17 }
 0x74e   :  { %v16020_v6 = vld [vmem:[#allocation5 + $0x1a38] sm:$0xf0]  ;;  %v17146_v0 = vld [vmem:[#allocation8 + $0x300] sm:$0xf] }
 0x74f   :  { %v19964_v29 = vld [vmem:[#allocation5 + $0x1c1c] sm:$0xf]  ;;  %v16023_v39 = vor.u32 %v19900_v10, %v16020_v6  ;;  %7973 = vmatpush.bf16.msrb.mxu0 %v15767_v26  ;;  %v20189_v10 = vld [vmem:[#allocation8 + $0x31c] sm:$0xf0] }
 0x750   :  { %v16276_v30 = vld [vmem:[#allocation5 + $0x1c38] sm:$0xf0]  ;;  %v17402_v6 = vld [vmem:[#allocation8 + $0x500] sm:$0xf] }
 0x751   :  { %v20028_v12 = vld [vmem:[#allocation5 + $0x1e1c] sm:$0xf]  ;;  %v16279_v34 = vor.u32 %v19964_v29, %v16276_v30  ;;  %7986 = vmatpush.bf16.msrb.mxu1 %v16023_v39  ;;  %v21205_v29 = vpop.f32.mrf.mxu0  ;;  %v20317_v11 = vld [vmem:[#allocation8 + $0x71c] sm:$0xf0]  ;;  %v21207_v30 = vpop.f32.mrf.mxu1  ;;  %v16859_v39 = vor.u32 %v20117_v15, %v16858_v14 }
 0x752   :  { %v16532_v33 = vld [vmem:[#allocation5 + $0x1e38] sm:$0xf0]  ;;  %7974 = vmatmul.bf16.vlgmr.msrb.gmra.mxu0 %v21003_v23  ;;  %v20125_v23 = vld [vmem:[#allocation8 + $0x11c] sm:$0xf0] }
 0x753   :  { %v16535_v20 = vor.u32 %v20028_v12, %v16532_v33  ;;  %7999 = vmatpush.bf16.msrb.mxu2 %v16279_v34  ;;  %11140 = vmatpush.bf16.msra.mxu0 %v16987_v50  ;;  %v17147_v12 = vor.u32 %v20189_v10, %v17146_v0  ;;  %v17370_v26 = vld [vmem:[#allocation8 + $0x4c0] sm:$0xf]  ;;  %v17115_v34 = vor.u32 %v20181_v24, %v17114_v8  ;;  %v7808_v24 = vpop.f32.mrf.mxu3 }
 0x754   :  { %7987 = vmatmul.bf16.vlgmr.msrb.gmra.mxu1 %v21007_v31  ;;  %v20253_v31 = vld [vmem:[#allocation8 + $0x51c] sm:$0xf0]  ;;  %v17371_v46 = vor.u32 %v20245_v27, %v17370_v26 }
 0x755   :  { %8012 = vmatpush.bf16.msrb.mxu3 %v16535_v20  ;;  %11153 = vmatpush.bf16.msra.mxu1 %v17243_v52  ;;  %v17403_v33 = vor.u32 %v20253_v31, %v17402_v6  ;;  %v17626_v36 = vld [vmem:[#allocation8 + $0x6c0] sm:$0xf] }
 0x756   :  { %8000 = vmatmul.bf16.vlgmr.msrb.gmra.mxu2 %v21005_v28  ;;  %v17658_v28 = vld [vmem:[#allocation8 + $0x700] sm:$0xf] }
 0x757   :  { %11166 = vmatpush.bf16.msra.mxu2 %v17499_v48  ;;  %11141 = vmatpush.bf16.msra.mxu0 %v16955_v59  ;;  %v17659_v21 = vor.u32 %v20317_v11, %v17658_v28  ;;  %v20309_v45 = vld [vmem:[#allocation8 + $0x6dc] sm:$0xf0]  ;;  %v21209_v48 = vpop.f32.mrf.mxu2 }
 0x758   :  { %8013 = vmatmul.bf16.vlgmr.msrb.gmra.mxu3 %v21009_v35  ;;  %v16891_v35 = vor.u32 %v20125_v23, %v16890_v25  ;;  %v16826_v49 = vld [vmem:[#allocation8 + $0x80] sm:$0xf]  ;;  %v17627_v52 = vor.u32 %v20309_v45, %v17626_v36 }
 0x759   :  { %11179 = vmatpush.bf16.msra.mxu3 %v17755_v16  ;;  %11154 = vmatpush.bf16.msra.mxu1 %v17211_v62  ;;  %v20109_v20 = vld [vmem:[#allocation8 + $0x9c] sm:$0xf0]  ;;  %v8026_v16 = vmul.f32 0.2, %v21040_v40  ;;  %v7769_v58 = vpop.f32.mrf.mxu0  ;;  %v7782_v62 = vpop.f32.mrf.mxu1 }
 0x75a   :  { %v17082_v50 = vld [vmem:[#allocation8 + $0x280] sm:$0xf]  ;;  %v16827_v59 = vor.u32 %v20109_v20, %v16826_v49 }
 0x75b   :  { %11167 = vmatpush.bf16.msra.mxu2 %v17467_v60  ;;  %11142 = vmatpush.bf16.msra.mxu0 %v16923_v9  ;;  %v20173_v53 = vld [vmem:[#allocation8 + $0x29c] sm:$0xf0] }
 0x75c   :  { %v17338_v47 = vld [vmem:[#allocation8 + $0x480] sm:$0xf]  ;;  %v17083_v60 = vor.u32 %v20173_v53, %v17082_v50  ;;  %v8035_v50 = vsel %vm8019_vm1, %v21067_v57, %v8027_v22  ;;  %v7742_v57 = vadd.f32 %v21197_v18, %v21195_v43 }
 0x75d   :  { %11180 = vmatpush.bf16.msra.mxu3 %v17723_v3  ;;  %11155 = vmatpush.bf16.msra.mxu1 %v17179_v41  ;;  %v20237_v37 = vld [vmem:[#allocation8 + $0x49c] sm:$0xf0] }
 0x75e   :  { %v17594_v19 = vld [vmem:[#allocation8 + $0x680] sm:$0xf]  ;;  %v17339_v61 = vor.u32 %v20237_v37, %v17338_v47 }
 0x75f   :  { %11168 = vmatpush.bf16.msra.mxu2 %v17435_v42  ;;  %11143 = vmatpush.bf16.msra.mxu0 %v16891_v35  ;;  %v20301_v55 = vld [vmem:[#allocation8 + $0x69c] sm:$0xf0]  ;;  %v8029_v42 = vmul.f32 0.2, %v21121_v1  ;;  %v7795_v14 = vpop.f32.mrf.mxu2 }
 0x760   :  { %v16794_v63 = vld [vmem:[#allocation8 + $0x40] sm:$0xf]  ;;  %v17595_v38 = vor.u32 %v20301_v55, %v17594_v19 }
 0x761   :  { %11181 = vmatpush.bf16.msra.mxu3 %v17691_v44  ;;  %11156 = vmatpush.bf16.msra.mxu1 %v17147_v12  ;;  %v20101_v2 = vld [vmem:[#allocation8 + $0x5c] sm:$0xf0] }
 0x762   :  { %v17050_v3 = vld [vmem:[#allocation8 + $0x240] sm:$0xf]  ;;  %v16795_v25 = vor.u32 %v20101_v2, %v16794_v63 }
 0x763   :  { %11169 = vmatpush.bf16.msra.mxu2 %v17403_v33  ;;  %11144 = vmatpush.bf16.msra.mxu0 %v16859_v39  ;;  %v20165_v4 = vld [vmem:[#allocation8 + $0x25c] sm:$0xf0] }
 0x764   :  { %v17306_v51 = vld [vmem:[#allocation8 + $0x440] sm:$0xf]  ;;  %v17051_v44 = vor.u32 %v20165_v4, %v17050_v3 }
 0x765   :  { %11182 = vmatpush.bf16.msra.mxu3 %v17659_v21  ;;  %11157 = vmatpush.bf16.msra.mxu1 %v17115_v34  ;;  %v20229_v5 = vld [vmem:[#allocation8 + $0x45c] sm:$0xf0] }
 0x766   :  { %v17562_v9 = vld [vmem:[#allocation8 + $0x640] sm:$0xf]  ;;  %v17307_v10 = vor.u32 %v20229_v5, %v17306_v51  ;;  %v7755_v51 = vadd.f32 %v21199_v54, %v7742_v57 }
 0x767   :  { %11170 = vmatpush.bf16.msra.mxu2 %v17371_v46  ;;  %v20293_v41 = vld [vmem:[#allocation8 + $0x65c] sm:$0xf0]  ;;  %11145 = vmatpush.bf16.msra.mxu0 %v16827_v59  ;;  %v8034_v46 = vsel %vm8018_vm0, %v21040_v40, %v8026_v16  ;;  %v8037_v40 = vsel %vm8021_vm3, %v21121_v1, %v8029_v42 }
 0x768   :  { %v16762_v23 = vld [vmem:[#allocation8] sm:$0xf]  ;;  %v17563_v11 = vor.u32 %v20293_v41, %v17562_v9  ;;  %v21233_v62 = vpack.c.bf16 %v8034_v46, %v8034_v46  ;;  %v7768_v41 = vadd.f32 %v21205_v29, %v7755_v51 }
 0x769   :  { %11183 = vmatpush.bf16.msra.mxu3 %v17627_v52  ;;  %v20093_v0 = vld [vmem:[#allocation8 + $0x1c] sm:$0xf0]  ;;  %11158 = vmatpush.bf16.msra.mxu1 %v17083_v60  ;;  %v8036_v52 = vsel %vm8020_vm2, %v21094_v17, %v8028_v13  ;;  %v21237_v17 = vpack.c.bf16 %v8035_v50, %v8035_v50 }
 0x76a   :  { %v17018_v6 = vld [vmem:[#allocation8 + $0x200] sm:$0xf]  ;;  %v16763_v26 = vor.u32 %v20093_v0, %v16762_v23  ;;  %v21239_v22 = vpack.c.bf16 %v8036_v52, %v8036_v52 }
 0x76b   :  { %11171 = vmatpush.bf16.msra.mxu2 %v17339_v61  ;;  %v20157_v31 = vld [vmem:[#allocation8 + $0x21c] sm:$0xf0]  ;;  %11146 = vmatpush.bf16.msra.mxu0 %v16795_v25  ;;  %v21241_v61 = vpack.c.bf16 %v8037_v40, %v8037_v40 }
 0x76c   :  { %v17274_v28 = vld [vmem:[#allocation8 + $0x400] sm:$0xf]  ;;  %v17019_v39 = vor.u32 %v20157_v31, %v17018_v6 }
 0x76d   :  { %11184 = vmatpush.bf16.msra.mxu3 %v17595_v38  ;;  %v20221_v35 = vld [vmem:[#allocation8 + $0x41c] sm:$0xf0]  ;;  %11159 = vmatpush.bf16.msra.mxu1 %v17051_v44  ;;  %v20688_v44 = vld [vmem:[#allocation7] sm:$0xff] }
 0x76e   :  { %v17530_v12 = vld [vmem:[#allocation8 + $0x600] sm:$0xf]  ;;  %v17275_v34 = vor.u32 %v20221_v35, %v17274_v28  ;;  %v7781_v35 = vadd.f32 %v21207_v30, %v7768_v41 }
 0x76f   :  { %v20285_v33 = vld [vmem:[#allocation8 + $0x61c] sm:$0xf0]  ;;  %11172 = vmatpush.bf16.msra.mxu2 %v17307_v10  ;;  %11147 = vmatpush.bf16.msra.mxu0 %v16763_v26  ;;  %v1169_v10 = vperm.slane %v20688_v44, 7  ;;  %v16988_v44 = vld [vmem:[#allocation8 + $0x1e0] sm:$0xf0] }
 0x770   :  { %v18010_v15 = vld [vmem:[#allocation8 + $0x9c0] sm:$0xf]  ;;  %v17531_v49 = vor.u32 %v20285_v33, %v17530_v12 }
 0x771   :  { %v20405_v8 = vld [vmem:[#allocation8 + $0x9dc] sm:$0xf0]  ;;  %11185 = vmatpush.bf16.msra.mxu3 %v17563_v11  ;;  %11160 = vmatpush.bf16.msra.mxu1 %v17019_v39  ;;  %v7819_v11 = vpop.f32.mrf.mxu0 }
 0x772   :  { %v18266_v21 = vld [vmem:[#allocation8 + $0xbc0] sm:$0xf]  ;;  %v18011_v20 = vor.u32 %v20405_v8, %v18010_v15  ;;  %11148 = vmatmul.bf16.vlgmr.msra.gmra.mxu0 %v21233_v62  ;;  %v7820_v15 = vadd.f32 %v7819_v11, %v1169_v10  ;;  %v7832_v8 = vpop.f32.mrf.mxu1  ;;  %v20209_v10 = vld [vmem:[#allocation8 + $0x3c4] sm:$0xf] }
 0x773   :  { %v20469_v27 = vld [vmem:[#allocation8 + $0xbdc] sm:$0xf0]  ;;  %11173 = vmatpush.bf16.msra.mxu2 %v17275_v34 }
 0x774   :  { %v18522_v36 = vld [vmem:[#allocation8 + $0xdc0] sm:$0xf]  ;;  %v18267_v53 = vor.u32 %v20469_v27, %v18266_v21  ;;  %11192 = vmatpush.bf16.msrb.mxu0 %v18011_v20  ;;  %11161 = vmatmul.bf16.vlgmr.msra.gmra.mxu1 %v21237_v17  ;;  %v7794_v27 = vadd.f32 %v21209_v48, %v7781_v35  ;;  %v7845_v20 = vpop.f32.mrf.mxu2  ;;  %v8030_v48 = vmul.f32 0.2, %v21148_v56  ;;  %v20273_v35 = vld [vmem:[#allocation8 + $0x5c4] sm:$0xf] }
 0x775   :  { %v20533_v45 = vld [vmem:[#allocation8 + $0xddc] sm:$0xf0]  ;;  %11186 = vmatpush.bf16.msra.mxu3 %v17531_v49 }
 0x776   :  { %v18523_v47 = vor.u32 %v20533_v45, %v18522_v36  ;;  %v17978_v37 = vld [vmem:[#allocation8 + $0x980] sm:$0xf]  ;;  %11205 = vmatpush.bf16.msrb.mxu1 %v18267_v53  ;;  %11174 = vmatmul.bf16.vlgmr.msra.gmra.mxu2 %v21239_v22  ;;  %v7833_v36 = vadd.f32 %v7832_v8, %v7820_v15  ;;  %v8038_v15 = vsel %vm8022_vm4, %v21148_v56, %v8030_v48  ;;  %v20193_v48 = vld [vmem:[#allocation8 + $0x344] sm:$0xf] }
 0x777   :  { %v20397_v19 = vld [vmem:[#allocation8 + $0x99c] sm:$0xf0]  ;;  %v21265_v56 = vpack.c.bf16 %v8038_v15, %v8038_v15  ;;  %v16828_v15 = vld [vmem:[#allocation8 + $0xa0] sm:$0xf0] }
 0x778   :  { %v18234_v55 = vld [vmem:[#allocation8 + $0xb80] sm:$0xf]  ;;  %v17979_v60 = vor.u32 %v20397_v19, %v17978_v37  ;;  %11218 = vmatpush.bf16.msrb.mxu2 %v18523_v47  ;;  %11187 = vmatmul.bf16.vlgmr.msra.gmra.mxu3 %v21241_v61  ;;  %v7846_v47 = vadd.f32 %v7845_v20, %v7833_v36  ;;  %v7858_v37 = vpop.f32.mrf.mxu3  ;;  %v7807_v19 = vadd.f32 %v21213_v32, %v7794_v27  ;;  %v8031_v32 = vmul.f32 0.2, %v21175_v7  ;;  %v16956_v27 = vld [vmem:[#allocation8 + $0x1a0] sm:$0xf0] }
 0x779   :  { %v20461_v16 = vld [vmem:[#allocation8 + $0xb9c] sm:$0xf0] }
 0x77a   :  { %v18490_v58 = vld [vmem:[#allocation8 + $0xd80] sm:$0xf]  ;;  %v18235_v1 = vor.u32 %v20461_v16, %v18234_v55  ;;  %11193 = vmatpush.bf16.msrb.mxu0 %v17979_v60  ;;  %v21253_v40 = vadd.f32 %v7858_v37, %v7846_v47  ;;  %v7821_v16 = vpop.f32.mrf.mxu0  ;;  %vm8024_vm6 = vcmp.gt.f32.partialorder %v7807_v19, 0.0  ;;  %v8039_v8 = vsel %vm8023_vm5, %v21175_v7, %v8031_v32  ;;  %v20129_v37 = vld [vmem:[#allocation8 + $0x144] sm:$0xf] }
 0x77b   :  { %v20525_v59 = vld [vmem:[#allocation8 + $0xd9c] sm:$0xf0]  ;;  %v17180_v16 = vld [vmem:[#allocation8 + $0x360] sm:$0xf0] }
 0x77c   :  { %v18491_v63 = vor.u32 %v20525_v59, %v18490_v58  ;;  %v17946_v2 = vld [vmem:[#allocation8 + $0x940] sm:$0xf]  ;;  %11206 = vmatpush.bf16.msrb.mxu1 %v18235_v1  ;;  %v20185_v32 = vld [vmem:[#allocation8 + $0x304] sm:$0xf] }
 0x77d   :  { %v20389_v3 = vld [vmem:[#allocation8 + $0x95c] sm:$0xf0] }
 0x77e   :  { %v18202_v38 = vld [vmem:[#allocation8 + $0xb40] sm:$0xf]  ;;  %v17947_v5 = vor.u32 %v20389_v3, %v17946_v2  ;;  %11219 = vmatpush.bf16.msrb.mxu2 %v18491_v63  ;;  %v7834_v63 = vpop.f32.mrf.mxu1 }
 0x77f   :  { %v20453_v43 = vld [vmem:[#allocation8 + $0xb5c] sm:$0xf0] }
 0x780   :  { %v18458_v18 = vld [vmem:[#allocation8 + $0xd40] sm:$0xf]  ;;  %v18203_v42 = vor.u32 %v20453_v43, %v18202_v38  ;;  %11194 = vmatpush.bf16.msrb.mxu0 %v17947_v5  ;;  %v8032_v43 = vmul.f32 0.2, %v7807_v19 }
 0x781   :  { %v20517_v4 = vld [vmem:[#allocation8 + $0xd5c] sm:$0xf0] }
 0x782   :  { %v17914_v13 = vld [vmem:[#allocation8 + $0x900] sm:$0xf]  ;;  %v18459_v25 = vor.u32 %v20517_v4, %v18458_v18  ;;  %11207 = vmatpush.bf16.msrb.mxu1 %v18203_v42  ;;  %v8040_v36 = vsel %vm8024_vm6, %v7807_v19, %v8032_v43  ;;  %v16924_v19 = vld [vmem:[#allocation8 + $0x160] sm:$0xf0] }
 0x783   :  { %v20381_v9 = vld [vmem:[#allocation8 + $0x91c] sm:$0xf0]  ;;  %v16927_v63 = vor.u32 %v20129_v37, %v16924_v19  ;;  %v17052_v19 = vld [vmem:[#allocation8 + $0x260] sm:$0xf0] }
 0x784   :  { %v18170_v23 = vld [vmem:[#allocation8 + $0xb00] sm:$0xf]  ;;  %v17915_v31 = vor.u32 %v20381_v9, %v17914_v13  ;;  %11220 = vmatpush.bf16.msrb.mxu2 %v18459_v25 }
 0x785   :  { %v20445_v0 = vld [vmem:[#allocation8 + $0xb1c] sm:$0xf0] }
 0x786   :  { %v18426_v6 = vld [vmem:[#allocation8 + $0xd00] sm:$0xf]  ;;  %v18171_v28 = vor.u32 %v20445_v0, %v18170_v23  ;;  %11195 = vmatpush.bf16.msrb.mxu0 %v17915_v31  ;;  %v7847_v23 = vpop.f32.mrf.mxu2  ;;  %v20145_v0 = vld [vmem:[#allocation8 + $0x1c4] sm:$0xf] }
 0x787   :  { %v20509_v54 = vld [vmem:[#allocation8 + $0xd1c] sm:$0xf0]  ;;  %v16860_v23 = vld [vmem:[#allocation8 + $0xe0] sm:$0xf0] }
 0x788   :  { %v18427_v12 = vor.u32 %v20509_v54, %v18426_v6  ;;  %v17882_v29 = vld [vmem:[#allocation8 + $0x8c0] sm:$0xf]  ;;  %11208 = vmatpush.bf16.msrb.mxu1 %v18171_v28  ;;  %v7860_v6 = vpop.f32.mrf.mxu3  ;;  %v17244_v54 = vld [vmem:[#allocation8 + $0x3e0] sm:$0xf0] }
 0x789   :  { %v20373_v33 = vld [vmem:[#allocation8 + $0x8dc] sm:$0xf0]  ;;  %v17116_v6 = vld [vmem:[#allocation8 + $0x2e0] sm:$0xf0] }
 0x78a   :  { %v18138_v14 = vld [vmem:[#allocation8 + $0xac0] sm:$0xf]  ;;  %v17883_v45 = vor.u32 %v20373_v33, %v17882_v29  ;;  %11221 = vmatpush.bf16.msrb.mxu2 %v18427_v12  ;;  %v17500_v12 = vld [vmem:[#allocation8 + $0x5e0] sm:$0xf0] }
 0x78b   :  { %v20437_v21 = vld [vmem:[#allocation8 + $0xadc] sm:$0xf0] }
 0x78c   :  { %v18394_v24 = vld [vmem:[#allocation8 + $0xcc0] sm:$0xf]  ;;  %v18139_v39 = vor.u32 %v20437_v21, %v18138_v14  ;;  %11196 = vmatpush.bf16.msrb.mxu0 %v17883_v45  ;;  %v16991_v21 = vor.u32 %v20145_v0, %v16988_v44  ;;  %v17503_v45 = vor.u32 %v20273_v35, %v17500_v12  ;;  %v20177_v0 = vld [vmem:[#allocation8 + $0x2c4] sm:$0xf]  ;;  %v21274_v44 = vpop.f32.mrf.mxu0 }
 0x78d   :  { %v20501_v26 = vld [vmem:[#allocation8 + $0xcdc] sm:$0xf0]  ;;  %v17372_v35 = vld [vmem:[#allocation8 + $0x4e0] sm:$0xf0] }
 0x78e   :  { %v18395_v30 = vor.u32 %v20501_v26, %v18394_v24  ;;  %v17850_v34 = vld [vmem:[#allocation8 + $0x880] sm:$0xf]  ;;  %11209 = vmatpush.bf16.msrb.mxu1 %v18139_v39  ;;  %v17247_v24 = vor.u32 %v20209_v10, %v17244_v54  ;;  %v20137_v26 = vld [vmem:[#allocation8 + $0x184] sm:$0xf]  ;;  %v21276_v54 = vpop.f32.mrf.mxu1 }
 0x78f   :  { %v20365_v46 = vld [vmem:[#allocation8 + $0x89c] sm:$0xf0]  ;;  %v20201_v39 = vld [vmem:[#allocation8 + $0x384] sm:$0xf] }
 0x790   :  { %v18106_v49 = vld [vmem:[#allocation8 + $0xa80] sm:$0xf]  ;;  %v17851_v55 = vor.u32 %v20365_v46, %v17850_v34  ;;  %11222 = vmatpush.bf16.msrb.mxu2 %v18395_v30  ;;  %v17212_v30 = vld [vmem:[#allocation8 + $0x3a0] sm:$0xf0] }
 0x791   :  { %v20429_v50 = vld [vmem:[#allocation8 + $0xa9c] sm:$0xf0]  ;;  %v20265_v46 = vld [vmem:[#allocation8 + $0x584] sm:$0xf]  ;;  %v17215_v47 = vor.u32 %v20201_v39, %v17212_v30  ;;  %v21280_v30 = vpop.f32.mrf.mxu3 }
 0x792   :  { %v18362_v52 = vld [vmem:[#allocation8 + $0xc80] sm:$0xf]  ;;  %v18107_v58 = vor.u32 %v20429_v50, %v18106_v49  ;;  %11197 = vmatpush.bf16.msrb.mxu0 %v17851_v55  ;;  %v17468_v49 = vld [vmem:[#allocation8 + $0x5a0] sm:$0xf0]  ;;  %v21267_v50 = vpack.c.bf16 %v8039_v8, %v8039_v8 }
 0x793   :  { %v20493_v53 = vld [vmem:[#allocation8 + $0xc9c] sm:$0xf0]  ;;  %v17471_v55 = vor.u32 %v20265_v46, %v17468_v49  ;;  %v20169_v8 = vld [vmem:[#allocation8 + $0x284] sm:$0xf] }
 0x794   :  { %v18363_v59 = vor.u32 %v20493_v53, %v18362_v52  ;;  %v17818_v57 = vld [vmem:[#allocation8 + $0x840] sm:$0xf]  ;;  %11210 = vmatpush.bf16.msrb.mxu1 %v18107_v58  ;;  %v21269_v52 = vpack.c.bf16 %v8040_v36, %v8040_v36  ;;  %v16959_v53 = vor.u32 %v20137_v26, %v16956_v27  ;;  %v21278_v26 = vpop.f32.mrf.mxu2  ;;  %v17340_v39 = vld [vmem:[#allocation8 + $0x4a0] sm:$0xf0] }
 0x795   :  { %v20357_v60 = vld [vmem:[#allocation8 + $0x85c] sm:$0xf0] }
 0x796   :  { %v18074_v1 = vld [vmem:[#allocation8 + $0xa40] sm:$0xf]  ;;  %v17819_v18 = vor.u32 %v20357_v60, %v17818_v57  ;;  %11223 = vmatpush.bf16.msrb.mxu2 %v18363_v59  ;;  %v20257_v57 = vld [vmem:[#allocation8 + $0x544] sm:$0xf] }
 0x797   :  { %v20421_v2 = vld [vmem:[#allocation8 + $0xa5c] sm:$0xf0]  ;;  %v17436_v60 = vld [vmem:[#allocation8 + $0x560] sm:$0xf0] }
 0x798   :  { %v18330_v3 = vld [vmem:[#allocation8 + $0xc40] sm:$0xf]  ;;  %v18075_v13 = vor.u32 %v20421_v2, %v18074_v1  ;;  %11198 = vmatpush.bf16.msrb.mxu0 %v17819_v18  ;;  %v17183_v2 = vor.u32 %v20193_v48, %v17180_v16  ;;  %v17439_v43 = vor.u32 %v20257_v57, %v17436_v60  ;;  %v17148_v18 = vld [vmem:[#allocation8 + $0x320] sm:$0xf0]  ;;  %v7886_v48 = vpop.f32.mrf.mxu1 }
 0x799   :  { %v20485_v38 = vld [vmem:[#allocation8 + $0xc5c] sm:$0xf0]  ;;  %v20089_v57 = vld [vmem:[#allocation8 + $0x4] sm:$0xf] }
 0x79a   :  { %v17786_v4 = vld [vmem:[#allocation8 + $0x800] sm:$0xf]  ;;  %v18331_v9 = vor.u32 %v20485_v38, %v18330_v3  ;;  %11211 = vmatpush.bf16.msrb.mxu1 %v18075_v13  ;;  %v20121_v3 = vld [vmem:[#allocation8 + $0x104] sm:$0xf] }
 0x79b   :  { %v20349_v51 = vld [vmem:[#allocation8 + $0x81c] sm:$0xf0]  ;;  %v16892_v38 = vld [vmem:[#allocation8 + $0x120] sm:$0xf0] }
 0x79c   :  { %v18042_v5 = vld [vmem:[#allocation8 + $0xa00] sm:$0xf]  ;;  %v17787_v11 = vor.u32 %v20349_v51, %v17786_v4  ;;  %11224 = vmatpush.bf16.msrb.mxu2 %v18331_v9  ;;  %v17404_v13 = vld [vmem:[#allocation8 + $0x520] sm:$0xf0] }
 0x79d   :  { %v20413_v41 = vld [vmem:[#allocation8 + $0xa1c] sm:$0xf0]  ;;  %v16764_v60 = vld [vmem:[#allocation8 + $0x20] sm:$0xf0] }
 0x79e   :  { %v18298_v42 = vld [vmem:[#allocation8 + $0xc00] sm:$0xf]  ;;  %v18043_v33 = vor.u32 %v20413_v41, %v18042_v5  ;;  %11199 = vmatpush.bf16.msrb.mxu0 %v17787_v11  ;;  %v20249_v5 = vld [vmem:[#allocation8 + $0x504] sm:$0xf]  ;;  %v16895_v41 = vor.u32 %v20121_v3, %v16892_v38 }
 0x79f   :  { %v20477_v25 = vld [vmem:[#allocation8 + $0xc1c] sm:$0xf0]  ;;  %v17407_v10 = vor.u32 %v20249_v5, %v17404_v13  ;;  %v20241_v11 = vld [vmem:[#allocation8 + $0x4c4] sm:$0xf] }
 0x7a0   :  { %v18778_v31 = vld [vmem:[#allocation8 + $0xfc0] sm:$0xf]  ;;  %v18299_v14 = vor.u32 %v20477_v25, %v18298_v42  ;;  %11212 = vmatpush.bf16.msrb.mxu1 %v18043_v33  ;;  %v17151_v42 = vor.u32 %v20185_v32, %v17148_v18  ;;  %v20113_v25 = vld [vmem:[#allocation8 + $0xc4] sm:$0xf]  ;;  %v17119_v33 = vor.u32 %v20177_v0, %v17116_v6  ;;  %v16767_v6 = vor.u32 %v20089_v57, %v16764_v60 }
 0x7a1   :  { %v20597_v28 = vld [vmem:[#allocation8 + $0xfdc] sm:$0xf0]  ;;  %11200 = vmatmul.bf16.vlgmr.msrb.gmra.mxu0 %v21265_v56  ;;  %v20153_v3 = vld [vmem:[#allocation8 + $0x204] sm:$0xf] }
 0x7a2   :  { %v18779_v29 = vor.u32 %v20597_v28, %v18778_v31  ;;  %v18746_v34 = vld [vmem:[#allocation8 + $0xf80] sm:$0xf]  ;;  %11225 = vmatpush.bf16.msrb.mxu2 %v18299_v14  ;;  %11244 = vmatpush.bf16.msra.mxu0 %v16991_v21  ;;  %v20105_v14 = vld [vmem:[#allocation8 + $0x84] sm:$0xf]  ;;  %v17375_v21 = vor.u32 %v20241_v11, %v17372_v35 }
 0x7a3   :  { %v20589_v20 = vld [vmem:[#allocation8 + $0xf9c] sm:$0xf0]  ;;  %11213 = vmatmul.bf16.vlgmr.msrb.gmra.mxu1 %v21267_v50  ;;  %v16831_v46 = vor.u32 %v20105_v14, %v16828_v15  ;;  %v17020_v38 = vld [vmem:[#allocation8 + $0x220] sm:$0xf0] }
 0x7a4   :  { %11231 = vmatpush.bf16.msrb.mxu3 %v18779_v29  ;;  %v18747_v7 = vor.u32 %v20589_v20, %v18746_v34  ;;  %11257 = vmatpush.bf16.msra.mxu1 %v17247_v24  ;;  %v18714_v58 = vld [vmem:[#allocation8 + $0xf40] sm:$0xf]  ;;  %v16863_v29 = vor.u32 %v20113_v25, %v16860_v23  ;;  %v17084_v24 = vld [vmem:[#allocation8 + $0x2a0] sm:$0xf0] }
 0x7a5   :  { %v20581_v59 = vld [vmem:[#allocation8 + $0xf5c] sm:$0xf0]  ;;  %11226 = vmatmul.bf16.vlgmr.msrb.gmra.mxu2 %v21269_v52  ;;  %v17087_v49 = vor.u32 %v20169_v8, %v17084_v24  ;;  %v20097_v20 = vld [vmem:[#allocation8 + $0x44] sm:$0xf] }
 0x7a6   :  { %11270 = vmatpush.bf16.msra.mxu2 %v17503_v45  ;;  %v18715_v1 = vor.u32 %v20581_v59, %v18714_v58  ;;  %11245 = vmatpush.bf16.msra.mxu0 %v16959_v53  ;;  %v18682_v4 = vld [vmem:[#allocation8 + $0xf00] sm:$0xf]  ;;  %v20233_v45 = vld [vmem:[#allocation8 + $0x484] sm:$0xf] }
 0x7a7   :  { %v20573_v51 = vld [vmem:[#allocation8 + $0xf1c] sm:$0xf0]  ;;  %v20161_v53 = vld [vmem:[#allocation8 + $0x244] sm:$0xf]  ;;  %v17343_v37 = vor.u32 %v20233_v45, %v17340_v39 }
 0x7a8   :  { %11232 = vmatpush.bf16.msrb.mxu3 %v18747_v7  ;;  %11258 = vmatpush.bf16.msra.mxu1 %v17215_v47  ;;  %v18683_v9 = vor.u32 %v20573_v51, %v18682_v4  ;;  %v18650_v31 = vld [vmem:[#allocation8 + $0xec0] sm:$0xf]  ;;  %v16796_v7 = vld [vmem:[#allocation8 + $0x60] sm:$0xf0]  ;;  %v7873_v47 = vpop.f32.mrf.mxu0  ;;  %v7899_v4 = vpop.f32.mrf.mxu2 }
 0x7a9   :  { %v20565_v28 = vld [vmem:[#allocation8 + $0xedc] sm:$0xf0]  ;;  %v20225_v58 = vld [vmem:[#allocation8 + $0x444] sm:$0xf] }
 0x7aa   :  { %11271 = vmatpush.bf16.msra.mxu2 %v17471_v55  ;;  %11246 = vmatpush.bf16.msra.mxu0 %v16927_v63  ;;  %v18651_v12 = vor.u32 %v20565_v28, %v18650_v31  ;;  %v18618_v27 = vld [vmem:[#allocation8 + $0xe80] sm:$0xf]  ;;  %v17308_v59 = vld [vmem:[#allocation8 + $0x460] sm:$0xf0]  ;;  %v16799_v63 = vor.u32 %v20097_v20, %v16796_v7  ;;  %v17023_v31 = vor.u32 %v20153_v3, %v17020_v38 }
 0x7ab   :  { %v20557_v36 = vld [vmem:[#allocation8 + $0xe9c] sm:$0xf0]  ;;  %v20217_v32 = vld [vmem:[#allocation8 + $0x404] sm:$0xf] }
 0x7ac   :  { %11233 = vmatpush.bf16.msrb.mxu3 %v18715_v1  ;;  %11259 = vmatpush.bf16.msra.mxu1 %v17183_v2  ;;  %v18619_v34 = vor.u32 %v20557_v36, %v18618_v27  ;;  %v18586_v55 = vld [vmem:[#allocation8 + $0xe40] sm:$0xf]  ;;  %v17055_v2 = vor.u32 %v20161_v53, %v17052_v19  ;;  %v17276_v18 = vld [vmem:[#allocation8 + $0x420] sm:$0xf0] }
 0x7ad   :  { %v20549_v16 = vld [vmem:[#allocation8 + $0xe5c] sm:$0xf0]  ;;  %v20401_v13 = vld [vmem:[#allocation8 + $0x9c4] sm:$0xf]  ;;  %v17279_v28 = vor.u32 %v20217_v32, %v17276_v18 }
 0x7ae   :  { %11272 = vmatpush.bf16.msra.mxu2 %v17439_v43  ;;  %11247 = vmatpush.bf16.msra.mxu0 %v16895_v41  ;;  %v18587_v1 = vor.u32 %v20549_v16, %v18586_v55  ;;  %v17311_v43 = vor.u32 %v20225_v58, %v17308_v59  ;;  %v18554_v51 = vld [vmem:[#allocation8 + $0xe00] sm:$0xf]  ;;  %v20465_v41 = vld [vmem:[#allocation8 + $0xbc4] sm:$0xf] }
 0x7af   :  { %v20541_v5 = vld [vmem:[#allocation8 + $0xe1c] sm:$0xf0]  ;;  %v18268_v25 = vld [vmem:[#allocation8 + $0xbe0] sm:$0xf0] }
 0x7b0   :  { %11234 = vmatpush.bf16.msrb.mxu3 %v18683_v9  ;;  %11260 = vmatpush.bf16.msra.mxu1 %v17151_v42  ;;  %v18012_v9 = vld [vmem:[#allocation8 + $0x9e0] sm:$0xf0]  ;;  %v7912_v42 = vpop.f32.mrf.mxu3 }
 0x7b1   :  { %v20529_v23 = vld [vmem:[#allocation8 + $0xdc4] sm:$0xf]  ;;  %v18015_v11 = vor.u32 %v20401_v13, %v18012_v9  ;;  %v21287_v9 = vpop.f32.mrf.mxu1 }
 0x7b2   :  { %11273 = vmatpush.bf16.msra.mxu2 %v17407_v10  ;;  %11248 = vmatpush.bf16.msra.mxu0 %v16863_v29  ;;  %v18524_v0 = vld [vmem:[#allocation8 + $0xde0] sm:$0xf0]  ;;  %v18555_v10 = vor.u32 %v20541_v5, %v18554_v51  ;;  %v18271_v29 = vor.u32 %v20465_v41, %v18268_v25 }
 0x7b3   :  { %v20337_v35 = vld [vmem:[#allocation8 + $0x7c4] sm:$0xf] }
 0x7b4   :  { %11235 = vmatpush.bf16.msrb.mxu3 %v18651_v12  ;;  %11261 = vmatpush.bf16.msra.mxu1 %v17119_v33  ;;  %v17756_v12 = vld [vmem:[#allocation8 + $0x7e0] sm:$0xf0]  ;;  %v18527_v33 = vor.u32 %v20529_v23, %v18524_v0 }
 0x7b5   :  { %v20393_v14 = vld [vmem:[#allocation8 + $0x984] sm:$0xf]  ;;  %v17759_v36 = vor.u32 %v20337_v35, %v17756_v12 }
 0x7b6   :  { %11274 = vmatpush.bf16.msra.mxu2 %v17375_v21  ;;  %11249 = vmatpush.bf16.msra.mxu0 %v16831_v46  ;;  %v17980_v15 = vld [vmem:[#allocation8 + $0x9a0] sm:$0xf0] }
 0x7b7   :  { %v20457_v8 = vld [vmem:[#allocation8 + $0xb84] sm:$0xf]  ;;  %v17983_v45 = vor.u32 %v20393_v14, %v17980_v15  ;;  %v7872_v15 = vadd.f32 %v21274_v44, %v21253_v40 }
 0x7b8   :  { %11236 = vmatpush.bf16.msrb.mxu3 %v18619_v34  ;;  %11262 = vmatpush.bf16.msra.mxu1 %v17087_v49  ;;  %v18236_v21 = vld [vmem:[#allocation8 + $0xba0] sm:$0xf0] }
 0x7b9   :  { %v20521_v24 = vld [vmem:[#allocation8 + $0xd84] sm:$0xf]  ;;  %v18239_v46 = vor.u32 %v20457_v8, %v18236_v21 }
 0x7ba   :  { %11275 = vmatpush.bf16.msra.mxu2 %v17343_v37  ;;  %11250 = vmatpush.bf16.msra.mxu0 %v16799_v63  ;;  %v18492_v27 = vld [vmem:[#allocation8 + $0xda0] sm:$0xf0] }
 0x7bb   :  { %v20329_v39 = vld [vmem:[#allocation8 + $0x784] sm:$0xf]  ;;  %v18495_v49 = vor.u32 %v20521_v24, %v18492_v27  ;;  %v21291_v27 = vpop.f32.mrf.mxu2 }
 0x7bc   :  { %11237 = vmatpush.bf16.msrb.mxu3 %v18587_v1  ;;  %11263 = vmatpush.bf16.msra.mxu1 %v17055_v2  ;;  %v17724_v34 = vld [vmem:[#allocation8 + $0x7a0] sm:$0xf0] }
 0x7bd   :  { %v20385_v20 = vld [vmem:[#allocation8 + $0x944] sm:$0xf]  ;;  %v17727_v48 = vor.u32 %v20329_v39, %v17724_v34 }
 0x7be   :  { %11276 = vmatpush.bf16.msra.mxu2 %v17311_v43  ;;  %11251 = vmatpush.bf16.msra.mxu0 %v16767_v6  ;;  %v17948_v7 = vld [vmem:[#allocation8 + $0x960] sm:$0xf0]  ;;  %v21285_v43 = vpop.f32.mrf.mxu0 }
 0x7bf   :  { %v20449_v53 = vld [vmem:[#allocation8 + $0xb44] sm:$0xf]  ;;  %v17951_v55 = vor.u32 %v20385_v20, %v17948_v7 }
 0x7c0   :  { %11238 = vmatpush.bf16.msrb.mxu3 %v18555_v10  ;;  %11264 = vmatpush.bf16.msra.mxu1 %v17023_v31  ;;  %v18204_v47 = vld [vmem:[#allocation8 + $0xb60] sm:$0xf0] }
 0x7c1   :  { %11252 = vmatmul.bf16.vlgmr.msra.gmra.mxu0 %v21233_v62  ;;  %v20513_v37 = vld [vmem:[#allocation8 + $0xd44] sm:$0xf]  ;;  %v18207_v59 = vor.u32 %v20449_v53, %v18204_v47  ;;  %v7938_v47 = vpop.f32.mrf.mxu1 }
 0x7c2   :  { %11277 = vmatpush.bf16.msra.mxu2 %v17279_v28  ;;  %11296 = vmatpush.bf16.msrb.mxu0 %v18015_v11  ;;  %v18460_v19 = vld [vmem:[#allocation8 + $0xd60] sm:$0xf0] }
 0x7c3   :  { %11265 = vmatmul.bf16.vlgmr.msra.gmra.mxu1 %v21237_v17  ;;  %v20321_v16 = vld [vmem:[#allocation8 + $0x744] sm:$0xf]  ;;  %v18463_v57 = vor.u32 %v20513_v37, %v18460_v19  ;;  %v7885_v37 = vadd.f32 %v21276_v54, %v7872_v15  ;;  %v17218_v15 = vld [vmem:[#allocation8 + $0x388] sm:$0xf] }
 0x7c4   :  { %11309 = vmatpush.bf16.msrb.mxu1 %v18271_v29  ;;  %11283 = vmatpush.bf16.msra.mxu3 %v17759_v36  ;;  %v17692_v58 = vld [vmem:[#allocation8 + $0x760] sm:$0xf0] }
 0x7c5   :  { %11278 = vmatmul.bf16.vlgmr.msra.gmra.mxu2 %v21239_v22  ;;  %v20377_v60 = vld [vmem:[#allocation8 + $0x904] sm:$0xf]  ;;  %v17695_v32 = vor.u32 %v20321_v16, %v17692_v58 }
 0x7c6   :  { %11322 = vmatpush.bf16.msrb.mxu2 %v18527_v33  ;;  %11297 = vmatpush.bf16.msrb.mxu0 %v17983_v45  ;;  %v17916_v1 = vld [vmem:[#allocation8 + $0x920] sm:$0xf0]  ;;  %v21293_v45 = vpop.f32.mrf.mxu3  ;;  %v7925_v34 = vpop.f32.mrf.mxu0 }
 0x7c7   :  { %v20441_v63 = vld [vmem:[#allocation8 + $0xb04] sm:$0xf]  ;;  %v17919_v18 = vor.u32 %v20377_v60, %v17916_v1 }
 0x7c8   :  { %11310 = vmatpush.bf16.msrb.mxu1 %v18239_v46  ;;  %v18172_v2 = vld [vmem:[#allocation8 + $0xb20] sm:$0xf0]  ;;  %11284 = vmatpush.bf16.msra.mxu3 %v17727_v48 }
 0x7c9   :  { %v20505_v3 = vld [vmem:[#allocation8 + $0xd04] sm:$0xf]  ;;  %v18175_v5 = vor.u32 %v20441_v63, %v18172_v2 }
 0x7ca   :  { %11323 = vmatpush.bf16.msrb.mxu2 %v18495_v49  ;;  %v18428_v38 = vld [vmem:[#allocation8 + $0xd20] sm:$0xf0]  ;;  %11298 = vmatpush.bf16.msrb.mxu0 %v17951_v55 }
 0x7cb   :  { %v20313_v4 = vld [vmem:[#allocation8 + $0x704] sm:$0xf]  ;;  %v18431_v13 = vor.u32 %v20505_v3, %v18428_v38 }
 0x7cc   :  { %v17660_v51 = vld [vmem:[#allocation8 + $0x720] sm:$0xf0]  ;;  %11311 = vmatpush.bf16.msrb.mxu1 %v18207_v59  ;;  %11285 = vmatpush.bf16.msra.mxu3 %v17695_v32  ;;  %v7898_v32 = vadd.f32 %v21278_v26, %v7885_v37 }
 0x7cd   :  { %v20369_v41 = vld [vmem:[#allocation8 + $0x8c4] sm:$0xf]  ;;  %v17663_v6 = vor.u32 %v20313_v4, %v17660_v51  ;;  %v16994_v4 = vld [vmem:[#allocation8 + $0x1c8] sm:$0xf] }
 0x7ce   :  { %11324 = vmatpush.bf16.msrb.mxu2 %v18463_v57  ;;  %v17884_v42 = vld [vmem:[#allocation8 + $0x8e0] sm:$0xf0]  ;;  %11299 = vmatpush.bf16.msrb.mxu0 %v17919_v18  ;;  %v20150_v51 = vld [vmem:[#allocation8 + $0x1e4] sm:$0xf0]  ;;  %v7911_v26 = vadd.f32 %v21280_v30, %v7898_v32 }
 0x7cf   :  { %v20433_v25 = vld [vmem:[#allocation8 + $0xac4] sm:$0xf]  ;;  %v17887_v31 = vor.u32 %v20369_v41, %v17884_v42  ;;  %v7951_v41 = vpop.f32.mrf.mxu2  ;;  %v20118_v32 = vld [vmem:[#allocation8 + $0xe4] sm:$0xf0] }
 0x7d0   :  { %v18140_v23 = vld [vmem:[#allocation8 + $0xae0] sm:$0xf0]  ;;  %11312 = vmatpush.bf16.msrb.mxu1 %v18175_v5  ;;  %11286 = vmatpush.bf16.msra.mxu3 %v17663_v6  ;;  %v17250_v5 = vld [vmem:[#allocation8 + $0x3c8] sm:$0xf] }
 0x7d1   :  { %v20497_v0 = vld [vmem:[#allocation8 + $0xcc4] sm:$0xf]  ;;  %v18143_v35 = vor.u32 %v20433_v25, %v18140_v23  ;;  %v17506_v23 = vld [vmem:[#allocation8 + $0x5c8] sm:$0xf] }
 0x7d2   :  { %v18396_v10 = vld [vmem:[#allocation8 + $0xce0] sm:$0xf0]  ;;  %11325 = vmatpush.bf16.msrb.mxu2 %v18431_v13  ;;  %11300 = vmatpush.bf16.msrb.mxu0 %v17887_v31  ;;  %v20214_v13 = vld [vmem:[#allocation8 + $0x3e4] sm:$0xf0] }
 0x7d3   :  { %v20305_v28 = vld [vmem:[#allocation8 + $0x6c4] sm:$0xf]  ;;  %v18399_v12 = vor.u32 %v20497_v0, %v18396_v10  ;;  %v20278_v0 = vld [vmem:[#allocation8 + $0x5e4] sm:$0xf0]  ;;  %v7964_v10 = vpop.f32.mrf.mxu3 }
 0x7d4   :  { %v17628_v11 = vld [vmem:[#allocation8 + $0x6e0] sm:$0xf0]  ;;  %11313 = vmatpush.bf16.msrb.mxu1 %v18143_v35  ;;  %v16962_v35 = vld [vmem:[#allocation8 + $0x188] sm:$0xf] }
 0x7d5   :  { %v20361_v29 = vld [vmem:[#allocation8 + $0x884] sm:$0xf]  ;;  %v17631_v36 = vor.u32 %v20305_v28, %v17628_v11  ;;  %v16995_v28 = vor.u32 %v20150_v51, %v16994_v4  ;;  %v17251_v11 = vor.u32 %v20214_v13, %v17250_v5  ;;  %v17378_v51 = vld [vmem:[#allocation8 + $0x4c8] sm:$0xf] }
 0x7d6   :  { %v17852_v33 = vld [vmem:[#allocation8 + $0x8a0] sm:$0xf0]  ;;  %11326 = vmatpush.bf16.msrb.mxu2 %v18399_v12  ;;  %v20246_v5 = vld [vmem:[#allocation8 + $0x4e4] sm:$0xf0] }
 0x7d7   :  { %v20425_v14 = vld [vmem:[#allocation8 + $0xa84] sm:$0xf]  ;;  %v17855_v39 = vor.u32 %v20361_v29, %v17852_v33  ;;  %11287 = vmatpush.bf16.msra.mxu3 %v17631_v36  ;;  %v17507_v33 = vor.u32 %v20278_v0, %v17506_v23  ;;  %v20270_v36 = vld [vmem:[#allocation8 + $0x5a4] sm:$0xf0] }
 0x7d8   :  { %v18108_v8 = vld [vmem:[#allocation8 + $0xaa0] sm:$0xf0]  ;;  %v17090_v23 = vld [vmem:[#allocation8 + $0x288] sm:$0xf] }
 0x7d9   :  { %v20489_v21 = vld [vmem:[#allocation8 + $0xc84] sm:$0xf]  ;;  %v18111_v20 = vor.u32 %v20425_v14, %v18108_v8  ;;  %11301 = vmatpush.bf16.msrb.mxu0 %v17855_v39  ;;  %v20142_v14 = vld [vmem:[#allocation8 + $0x1a4] sm:$0xf0] }
 0x7da   :  { %v18364_v24 = vld [vmem:[#allocation8 + $0xca0] sm:$0xf0]  ;;  %v20206_v8 = vld [vmem:[#allocation8 + $0x3a4] sm:$0xf0]  ;;  %v16963_v30 = vor.u32 %v20142_v14, %v16962_v35 }
 0x7db   :  { %v20297_v46 = vld [vmem:[#allocation8 + $0x684] sm:$0xf]  ;;  %v18367_v7 = vor.u32 %v20489_v21, %v18364_v24  ;;  %11314 = vmatpush.bf16.msrb.mxu1 %v18111_v20  ;;  %v7924_v21 = vadd.f32 %v21285_v43, %v7911_v26  ;;  %v17474_v24 = vld [vmem:[#allocation8 + $0x588] sm:$0xf]  ;;  %v17219_v34 = vor.u32 %v20206_v8, %v17218_v15  ;;  %v8001_v26 = vpop.f32.mrf.mxu2 }
 0x7dc   :  { %v17596_v49 = vld [vmem:[#allocation8 + $0x6a0] sm:$0xf0]  ;;  %v20134_v20 = vld [vmem:[#allocation8 + $0x164] sm:$0xf0] }
 0x7dd   :  { %v20353_v53 = vld [vmem:[#allocation8 + $0x844] sm:$0xf]  ;;  %v17599_v16 = vor.u32 %v20297_v46, %v17596_v49  ;;  %11327 = vmatpush.bf16.msrb.mxu2 %v18367_v7  ;;  %v16930_v46 = vld [vmem:[#allocation8 + $0x148] sm:$0xf]  ;;  %v17475_v49 = vor.u32 %v20270_v36, %v17474_v24  ;;  %v7937_v43 = vadd.f32 %v21287_v9, %v7924_v21 }
 0x7de   :  { %v17820_v40 = vld [vmem:[#allocation8 + $0x860] sm:$0xf0]  ;;  %v17186_v7 = vld [vmem:[#allocation8 + $0x348] sm:$0xf]  ;;  %v16931_v37 = vor.u32 %v20134_v20, %v16930_v46 }
 0x7df   :  { %v20417_v44 = vld [vmem:[#allocation8 + $0xa44] sm:$0xf]  ;;  %v17823_v58 = vor.u32 %v20353_v53, %v17820_v40  ;;  %11288 = vmatpush.bf16.msra.mxu3 %v17599_v16  ;;  %v20198_v53 = vld [vmem:[#allocation8 + $0x364] sm:$0xf0]  ;;  %v7950_v47 = vadd.f32 %v21291_v27, %v7937_v43 }
 0x7e0   :  { %v18076_v19 = vld [vmem:[#allocation8 + $0xa60] sm:$0xf0]  ;;  %v17442_v40 = vld [vmem:[#allocation8 + $0x548] sm:$0xf] }
 0x7e1   :  { %v20481_v48 = vld [vmem:[#allocation8 + $0xc44] sm:$0xf]  ;;  %v18079_v1 = vor.u32 %v20417_v44, %v18076_v19  ;;  %11302 = vmatpush.bf16.msrb.mxu0 %v17823_v58  ;;  %v20262_v44 = vld [vmem:[#allocation8 + $0x564] sm:$0xf0]  ;;  %v17187_v19 = vor.u32 %v20198_v53, %v17186_v7 }
 0x7e2   :  { %v18332_v55 = vld [vmem:[#allocation8 + $0xc60] sm:$0xf0]  ;;  %v20126_v16 = vld [vmem:[#allocation8 + $0x124] sm:$0xf0] }
 0x7e3   :  { %v20345_v59 = vld [vmem:[#allocation8 + $0x804] sm:$0xf]  ;;  %v18335_v63 = vor.u32 %v20481_v48, %v18332_v55  ;;  %11315 = vmatpush.bf16.msrb.mxu1 %v18079_v1  ;;  %v16898_v48 = vld [vmem:[#allocation8 + $0x108] sm:$0xf]  ;;  %v17443_v55 = vor.u32 %v20262_v44, %v17442_v40  ;;  %v7975_v1 = vpop.f32.mrf.mxu0 }
 0x7e4   :  { %v20289_v57 = vld [vmem:[#allocation8 + $0x644] sm:$0xf]  ;;  %v17154_v58 = vld [vmem:[#allocation8 + $0x308] sm:$0xf] }
 0x7e5   :  { %v17564_v60 = vld [vmem:[#allocation8 + $0x660] sm:$0xf0]  ;;  %11328 = vmatpush.bf16.msrb.mxu2 %v18335_v63  ;;  %v17410_v9 = vld [vmem:[#allocation8 + $0x508] sm:$0xf]  ;;  %v16899_v63 = vor.u32 %v20126_v16, %v16898_v48 }
 0x7e6   :  { %v17788_v2 = vld [vmem:[#allocation8 + $0x820] sm:$0xf0]  ;;  %v17567_v42 = vor.u32 %v20289_v57, %v17564_v60  ;;  %v20254_v57 = vld [vmem:[#allocation8 + $0x524] sm:$0xf0]  ;;  %v7963_v60 = vadd.f32 %v21293_v45, %v7950_v47 }
 0x7e7   :  { %v20409_v3 = vld [vmem:[#allocation8 + $0xa04] sm:$0xf]  ;;  %v17791_v25 = vor.u32 %v20345_v59, %v17788_v2  ;;  %v20190_v59 = vld [vmem:[#allocation8 + $0x324] sm:$0xf0] }
 0x7e8   :  { %v18044_v38 = vld [vmem:[#allocation8 + $0xa20] sm:$0xf0]  ;;  %11289 = vmatpush.bf16.msra.mxu3 %v17567_v42  ;;  %v17155_v2 = vor.u32 %v20190_v59, %v17154_v58  ;;  %v16866_v27 = vld [vmem:[#allocation8 + $0xc8] sm:$0xf]  ;;  %v7976_v4 = vadd.f32 %v7975_v1, %v7963_v60  ;;  %v17379_v42 = vor.u32 %v20246_v5, %v17378_v51 }
 0x7e9   :  { %v20473_v54 = vld [vmem:[#allocation8 + $0xc04] sm:$0xf]  ;;  %v18047_v6 = vor.u32 %v20409_v3, %v18044_v38  ;;  %11303 = vmatpush.bf16.msrb.mxu0 %v17791_v25  ;;  %v7988_v3 = vpop.f32.mrf.mxu1  ;;  %v17411_v38 = vor.u32 %v20254_v57, %v17410_v9  ;;  %v16867_v13 = vor.u32 %v20118_v32, %v16866_v27  ;;  %v16834_v45 = vld [vmem:[#allocation8 + $0x88] sm:$0xf]  ;;  %v8003_v57 = vpop.f32.mrf.mxu2 }
 0x7ea   :  { %v18300_v18 = vld [vmem:[#allocation8 + $0xc20] sm:$0xf0]  ;;  %v20110_v25 = vld [vmem:[#allocation8 + $0xa4] sm:$0xf0]  ;;  %v7989_v10 = vadd.f32 %v7988_v3, %v7976_v4 }
 0x7eb   :  { %v18303_v31 = vor.u32 %v20473_v54, %v18300_v18  ;;  %v20281_v12 = vld [vmem:[#allocation8 + $0x604] sm:$0xf]  ;;  %11316 = vmatpush.bf16.msrb.mxu1 %v18047_v6  ;;  %v17122_v54 = vld [vmem:[#allocation8 + $0x2c8] sm:$0xf]  ;;  %v7977_v35 = vpop.f32.mrf.mxu0 }
 0x7ec   :  { %v17532_v29 = vld [vmem:[#allocation8 + $0x620] sm:$0xf0]  ;;  %11304 = vmatmul.bf16.vlgmr.msrb.gmra.mxu0 %v21265_v56  ;;  %v20182_v18 = vld [vmem:[#allocation8 + $0x2e4] sm:$0xf0] }
 0x7ed   :  { %11329 = vmatpush.bf16.msrb.mxu2 %v18303_v31  ;;  %v17535_v39 = vor.u32 %v20281_v12, %v17532_v29  ;;  %11348 = vmatpush.bf16.msra.mxu0 %v16995_v28  ;;  %v17123_v41 = vor.u32 %v20182_v18, %v17122_v54  ;;  %v20174_v0 = vld [vmem:[#allocation8 + $0x2a4] sm:$0xf0]  ;;  %v8002_v28 = vadd.f32 %v8001_v26, %v7989_v10  ;;  %v18780_v46 = vld [vmem:[#allocation8 + $0xfe0] sm:$0xf0] }
 0x7ee   :  { %11317 = vmatmul.bf16.vlgmr.msrb.gmra.mxu1 %v21267_v50  ;;  %v17346_v6 = vld [vmem:[#allocation8 + $0x488] sm:$0xf]  ;;  %v16835_v12 = vor.u32 %v20110_v25, %v16834_v45  ;;  %v17091_v29 = vor.u32 %v20174_v0, %v17090_v23  ;;  %v18748_v32 = vld [vmem:[#allocation8 + $0xfa0] sm:$0xf0] }
 0x7ef   :  { %11361 = vmatpush.bf16.msra.mxu1 %v17251_v11  ;;  %11290 = vmatpush.bf16.msra.mxu3 %v17535_v39  ;;  %v20238_v31 = vld [vmem:[#allocation8 + $0x4a4] sm:$0xf0]  ;;  %v8014_v11 = vpop.f32.mrf.mxu3  ;;  %v20577_v0 = vld [vmem:[#allocation8 + $0xf44] sm:$0xf] }
 0x7f0   :  { %11330 = vmatmul.bf16.vlgmr.msrb.gmra.mxu2 %v21269_v52  ;;  %v17347_v15 = vor.u32 %v20238_v31, %v17346_v6  ;;  %v20102_v8 = vld [vmem:[#allocation8 + $0x64] sm:$0xf0]  ;;  %v8015_v36 = vadd.f32 %v8014_v11, %v8002_v28  ;;  %v18716_v10 = vld [vmem:[#allocation8 + $0xf60] sm:$0xf0] }
 0x7f1   :  { %11374 = vmatpush.bf16.msra.mxu2 %v17507_v33  ;;  %11349 = vmatpush.bf16.msra.mxu0 %v16963_v30  ;;  %v16802_v33 = vld [vmem:[#allocation8 + $0x48] sm:$0xf]  ;;  %v7990_v14 = vpop.f32.mrf.mxu1 }
 0x7f2   :  { %v17058_v21 = vld [vmem:[#allocation8 + $0x248] sm:$0xf]  ;;  %vm8025_vm7 = vcmp.gt.f32.partialorder %v8015_v36, 0.0  ;;  %v8033_v7 = vmul.f32 0.2, %v8015_v36  ;;  %v16803_v53 = vor.u32 %v20102_v8, %v16802_v33 }
 0x7f3   :  { %11362 = vmatpush.bf16.msra.mxu1 %v17219_v34  ;;  %v20166_v24 = vld [vmem:[#allocation8 + $0x264] sm:$0xf0]  ;;  %v20593_v34 = vld [vmem:[#allocation8 + $0xfc4] sm:$0xf] }
 0x7f4   :  { %v17314_v39 = vld [vmem:[#allocation8 + $0x448] sm:$0xf]  ;;  %v17059_v43 = vor.u32 %v20166_v24, %v17058_v21  ;;  %v8041_v48 = vsel %vm8025_vm7, %v8015_v36, %v8033_v7  ;;  %v20569_v8 = vld [vmem:[#allocation8 + $0xf04] sm:$0xf] }
 0x7f5   :  { %11375 = vmatpush.bf16.msra.mxu2 %v17475_v49  ;;  %11350 = vmatpush.bf16.msra.mxu0 %v16931_v37  ;;  %v20230_v30 = vld [vmem:[#allocation8 + $0x464] sm:$0xf0]  ;;  %v21305_v9 = vpack.c.bf16 %v8041_v48, %v8041_v48  ;;  %v18684_v21 = vld [vmem:[#allocation8 + $0xf20] sm:$0xf0] }
 0x7f6   :  { %v16770_v49 = vld [vmem:[#allocation8 + $0x8] sm:$0xf]  ;;  %v17315_v44 = vor.u32 %v20230_v30, %v17314_v39 }
 0x7f7   :  { %11363 = vmatpush.bf16.msra.mxu1 %v17187_v19  ;;  %v20094_v20 = vld [vmem:[#allocation8 + $0x24] sm:$0xf0]  ;;  %11239 = vmatmul.bf16.vlgmr.msrb.gmra.mxu3 %v21305_v9 }
 0x7f8   :  { %v17026_v40 = vld [vmem:[#allocation8 + $0x208] sm:$0xf]  ;;  %v16771_v27 = vor.u32 %v20094_v20, %v16770_v49  ;;  %v18687_v20 = vor.u32 %v20569_v8, %v18684_v21 }
 0x7f9   :  { %11376 = vmatpush.bf16.msra.mxu2 %v17443_v55  ;;  %11351 = vmatpush.bf16.msra.mxu0 %v16899_v63  ;;  %v20158_v47 = vld [vmem:[#allocation8 + $0x224] sm:$0xf0]  ;;  %v18783_v55 = vor.u32 %v20593_v34, %v18780_v46 }
 0x7fa   :  { %v17282_v37 = vld [vmem:[#allocation8 + $0x408] sm:$0xf]  ;;  %v17027_v3 = vor.u32 %v20158_v47, %v17026_v40  ;;  %v20561_v40 = vld [vmem:[#allocation8 + $0xec4] sm:$0xf] }
 0x7fb   :  { %11364 = vmatpush.bf16.msra.mxu1 %v17155_v2  ;;  %v20222_v19 = vld [vmem:[#allocation8 + $0x424] sm:$0xf0]  ;;  %v8016_v2 = vpop.f32.mrf.mxu3  ;;  %11335 = vmatpush.bf16.msrb.mxu3 %v18783_v55 }
 0x7fc   :  { %v18018_v16 = vld [vmem:[#allocation8 + $0x9c8] sm:$0xf]  ;;  %v17283_v54 = vor.u32 %v20222_v19, %v17282_v37  ;;  %v11149_v37 = vpop.f32.mrf.mxu0  ;;  %v11162_v19 = vpop.f32.mrf.mxu1 }
 0x7fd   :  { %11377 = vmatpush.bf16.msra.mxu2 %v17411_v38  ;;  %11352 = vmatpush.bf16.msra.mxu0 %v16867_v13  ;;  %v20406_v58 = vld [vmem:[#allocation8 + $0x9e4] sm:$0xf0]  ;;  %v20585_v38 = vld [vmem:[#allocation8 + $0xf84] sm:$0xf] }
 0x7fe   :  { %v18274_v59 = vld [vmem:[#allocation8 + $0xbc8] sm:$0xf]  ;;  %v18019_v18 = vor.u32 %v20406_v58, %v18018_v16  ;;  %v18751_v45 = vor.u32 %v20585_v38, %v18748_v32 }
 0x7ff   :  { %11365 = vmatpush.bf16.msra.mxu1 %v17123_v41  ;;  %v20470_v60 = vld [vmem:[#allocation8 + $0xbe4] sm:$0xf0] }
 0x800   :  { %v18530_v1 = vld [vmem:[#allocation8 + $0xdc8] sm:$0xf]  ;;  %v18275_v4 = vor.u32 %v20470_v60, %v18274_v59  ;;  %11336 = vmatpush.bf16.msrb.mxu3 %v18751_v45 }
 0x801   :  { %11378 = vmatpush.bf16.msra.mxu2 %v17379_v42  ;;  %11353 = vmatpush.bf16.msra.mxu0 %v16835_v12  ;;  %v20534_v63 = vld [vmem:[#allocation8 + $0xde4] sm:$0xf0] }
 0x802   :  { %v18531_v51 = vor.u32 %v20534_v63, %v18530_v1  ;;  %v17986_v5 = vld [vmem:[#allocation8 + $0x988] sm:$0xf] }
 0x803   :  { %11366 = vmatpush.bf16.msra.mxu1 %v17091_v29  ;;  %v20398_v13 = vld [vmem:[#allocation8 + $0x9a4] sm:$0xf0]  ;;  %v18719_v29 = vor.u32 %v20577_v0, %v18716_v10  ;;  %v11175_v0 = vpop.f32.mrf.mxu2  ;;  %v11188_v10 = vpop.f32.mrf.mxu3 }
 0x804   :  { %v18242_v41 = vld [vmem:[#allocation8 + $0xb88] sm:$0xf]  ;;  %v17987_v6 = vor.u32 %v20398_v13, %v17986_v5 }
 0x805   :  { %11379 = vmatpush.bf16.msra.mxu2 %v17347_v15  ;;  %11354 = vmatpush.bf16.msra.mxu0 %v16803_v53  ;;  %v20462_v42 = vld [vmem:[#allocation8 + $0xba4] sm:$0xf0]  ;;  %v21309_v15 = vld [vmem:[#allocation10] sm:$0xff] }
 0x806   :  { %v18498_v25 = vld [vmem:[#allocation8 + $0xd88] sm:$0xf]  ;;  %v18243_v26 = vor.u32 %v20462_v42, %v18242_v41  ;;  %v8564_v34 = vperm.slane %v21309_v15, 0  ;;  %11337 = vmatpush.bf16.msrb.mxu3 %v18719_v29 }
 0x807   :  { %11367 = vmatpush.bf16.msra.mxu1 %v17059_v43  ;;  %v20526_v23 = vld [vmem:[#allocation8 + $0xda4] sm:$0xf0]  ;;  %11291 = vmatmul.bf16.vlgmr.msra.gmra.mxu3 %v21241_v61 }
 0x808   :  { %v17954_v31 = vld [vmem:[#allocation8 + $0x948] sm:$0xf]  ;;  %v18499_v28 = vor.u32 %v20526_v23, %v18498_v25  ;;  %v11150_v57 = vadd.f32 %v11149_v37, %v8564_v34  ;;  %v20545_v25 = vld [vmem:[#allocation8 + $0xe44] sm:$0xf] }
 0x809   :  { %11380 = vmatpush.bf16.msra.mxu2 %v17315_v44  ;;  %11355 = vmatpush.bf16.msra.mxu0 %v16771_v27  ;;  %v20390_v11 = vld [vmem:[#allocation8 + $0x964] sm:$0xf0]  ;;  %v18652_v44 = vld [vmem:[#allocation8 + $0xee0] sm:$0xf0] }
 0x80a   :  { %v18210_v35 = vld [vmem:[#allocation8 + $0xb48] sm:$0xf]  ;;  %v17955_v24 = vor.u32 %v20390_v11, %v17954_v31  ;;  %11338 = vmatpush.bf16.msrb.mxu3 %v18687_v20  ;;  %v18655_v60 = vor.u32 %v20561_v40, %v18652_v44  ;;  %v20553_v27 = vld [vmem:[#allocation8 + $0xe84] sm:$0xf]  ;;  %v11163_v38 = vadd.f32 %v11162_v19, %v11150_v57 }
 0x80b   :  { %11368 = vmatpush.bf16.msra.mxu1 %v17027_v3  ;;  %v20454_v12 = vld [vmem:[#allocation8 + $0xb64] sm:$0xf0]  ;;  %v18620_v3 = vld [vmem:[#allocation8 + $0xea0] sm:$0xf0]  ;;  %v11177_v57 = vpop.f32.mrf.mxu2 }
 0x80c   :  { %11356 = vmatmul.bf16.vlgmr.msra.gmra.mxu0 %v21233_v62  ;;  %v18466_v33 = vld [vmem:[#allocation8 + $0xd48] sm:$0xf]  ;;  %v18211_v39 = vor.u32 %v20454_v12, %v18210_v35  ;;  %v18623_v13 = vor.u32 %v20553_v27, %v18620_v3  ;;  %v18588_v23 = vld [vmem:[#allocation8 + $0xe60] sm:$0xf0]  ;;  %v11176_v31 = vadd.f32 %v11175_v0, %v11163_v38  ;;  %v17124_v57 = vld [vmem:[#allocation8 + $0x2e8] sm:$0xf0] }
 0x80d   :  { %11381 = vmatpush.bf16.msra.mxu2 %v17283_v54  ;;  %11400 = vmatpush.bf16.msrb.mxu0 %v18019_v18  ;;  %v20518_v14 = vld [vmem:[#allocation8 + $0xd64] sm:$0xf0] }
 0x80e   :  { %11369 = vmatmul.bf16.vlgmr.msra.gmra.mxu1 %v21237_v17  ;;  %v17922_v36 = vld [vmem:[#allocation8 + $0x908] sm:$0xf]  ;;  %v18467_v30 = vor.u32 %v20518_v14, %v18466_v33  ;;  %11339 = vmatpush.bf16.msrb.mxu3 %v18655_v60  ;;  %v18591_v14 = vor.u32 %v20545_v25, %v18588_v23  ;;  %v11190_v60 = vpop.f32.mrf.mxu3  ;;  %v17476_v25 = vld [vmem:[#allocation8 + $0x5a8] sm:$0xf0] }
 0x80f   :  { %11413 = vmatpush.bf16.msrb.mxu1 %v18275_v4  ;;  %v20382_v46 = vld [vmem:[#allocation8 + $0x924] sm:$0xf0] }
 0x810   :  { %11382 = vmatmul.bf16.vlgmr.msra.gmra.mxu2 %v21239_v22  ;;  %v18178_v49 = vld [vmem:[#allocation8 + $0xb08] sm:$0xf]  ;;  %v17923_v47 = vor.u32 %v20382_v46, %v17922_v36  ;;  %v21315_v36 = vadd.f32 %v11188_v10, %v11176_v31  ;;  %v20130_v31 = vld [vmem:[#allocation8 + $0x14c] sm:$0xf] }
 0x811   :  { %11426 = vmatpush.bf16.msrb.mxu2 %v18531_v51  ;;  %11401 = vmatpush.bf16.msrb.mxu0 %v17987_v6  ;;  %v20446_v7 = vld [vmem:[#allocation8 + $0xb24] sm:$0xf0] }
 0x812   :  { %v18434_v53 = vld [vmem:[#allocation8 + $0xd08] sm:$0xf]  ;;  %v18179_v48 = vor.u32 %v20446_v7, %v18178_v49  ;;  %11340 = vmatpush.bf16.msrb.mxu3 %v18623_v13  ;;  %v20202_v13 = vld [vmem:[#allocation8 + $0x38c] sm:$0xf] }
 0x813   :  { %11414 = vmatpush.bf16.msrb.mxu1 %v18243_v26  ;;  %v20510_v43 = vld [vmem:[#allocation8 + $0xd24] sm:$0xf0]  ;;  %v11151_v26 = vpop.f32.mrf.mxu0 }
 0x814   :  { %v18435_v55 = vor.u32 %v20510_v43, %v18434_v53  ;;  %v17890_v16 = vld [vmem:[#allocation8 + $0x8c8] sm:$0xf] }
 0x815   :  { %11427 = vmatpush.bf16.msrb.mxu2 %v18499_v28  ;;  %11402 = vmatpush.bf16.msrb.mxu0 %v17955_v24  ;;  %v20374_v58 = vld [vmem:[#allocation8 + $0x8e4] sm:$0xf0]  ;;  %v11164_v28 = vpop.f32.mrf.mxu1 }
 0x816   :  { %v18146_v59 = vld [vmem:[#allocation8 + $0xac8] sm:$0xf]  ;;  %v17891_v32 = vor.u32 %v20374_v58, %v17890_v16  ;;  %11341 = vmatpush.bf16.msrb.mxu3 %v18591_v14  ;;  %v16996_v16 = vld [vmem:[#allocation8 + $0x1e8] sm:$0xf0] }
 0x817   :  { %11415 = vmatpush.bf16.msrb.mxu1 %v18211_v39  ;;  %v20438_v1 = vld [vmem:[#allocation8 + $0xae4] sm:$0xf0]  ;;  %v20537_v39 = vld [vmem:[#allocation8 + $0xe04] sm:$0xf]  ;;  %v20210_v58 = vld [vmem:[#allocation8 + $0x3cc] sm:$0xf] }
 0x818   :  { %v18402_v63 = vld [vmem:[#allocation8 + $0xcc8] sm:$0xf]  ;;  %v18147_v54 = vor.u32 %v20438_v1, %v18146_v59  ;;  %v17252_v59 = vld [vmem:[#allocation8 + $0x3e8] sm:$0xf0] }
 0x819   :  { %11428 = vmatpush.bf16.msrb.mxu2 %v18467_v30  ;;  %v20502_v2 = vld [vmem:[#allocation8 + $0xce4] sm:$0xf0]  ;;  %11403 = vmatpush.bf16.msrb.mxu0 %v17923_v47  ;;  %v18556_v30 = vld [vmem:[#allocation8 + $0xe20] sm:$0xf0]  ;;  %v16932_v28 = vld [vmem:[#allocation8 + $0x168] sm:$0xf0] }
 0x81a   :  { %v18403_v18 = vor.u32 %v20502_v2, %v18402_v63  ;;  %v17858_v4 = vld [vmem:[#allocation8 + $0x888] sm:$0xf]  ;;  %v18559_v47 = vor.u32 %v20537_v39, %v18556_v30  ;;  %v20274_v63 = vld [vmem:[#allocation8 + $0x5cc] sm:$0xf] }
 0x81b   :  { %11416 = vmatpush.bf16.msrb.mxu1 %v18179_v48  ;;  %v20366_v51 = vld [vmem:[#allocation8 + $0x8a4] sm:$0xf0]  ;;  %v20146_v48 = vld [vmem:[#allocation8 + $0x1cc] sm:$0xf] }
 0x81c   :  { %v18114_v5 = vld [vmem:[#allocation8 + $0xa88] sm:$0xf]  ;;  %v17859_v6 = vor.u32 %v20366_v51, %v17858_v4  ;;  %v17508_v2 = vld [vmem:[#allocation8 + $0x5e8] sm:$0xf0]  ;;  %11342 = vmatpush.bf16.msrb.mxu3 %v18559_v47 }
 0x81d   :  { %11429 = vmatpush.bf16.msrb.mxu2 %v18435_v55  ;;  %v20430_v41 = vld [vmem:[#allocation8 + $0xaa4] sm:$0xf0]  ;;  %11404 = vmatpush.bf16.msrb.mxu0 %v17891_v32  ;;  %v20138_v4 = vld [vmem:[#allocation8 + $0x18c] sm:$0xf]  ;;  %v17511_v51 = vor.u32 %v20274_v63, %v17508_v2 }
 0x81e   :  { %v18370_v45 = vld [vmem:[#allocation8 + $0xc88] sm:$0xf]  ;;  %v18115_v11 = vor.u32 %v20430_v41, %v18114_v5  ;;  %v16964_v5 = vld [vmem:[#allocation8 + $0x1a8] sm:$0xf0] }
 0x81f   :  { %v20494_v42 = vld [vmem:[#allocation8 + $0xca4] sm:$0xf0]  ;;  %11417 = vmatpush.bf16.msrb.mxu1 %v18147_v54  ;;  %v16999_v54 = vor.u32 %v20146_v48, %v16996_v16  ;;  %v17220_v41 = vld [vmem:[#allocation8 + $0x3a8] sm:$0xf0]  ;;  %v16967_v10 = vor.u32 %v20138_v4, %v16964_v5  ;;  %11343 = vmatmul.bf16.vlgmr.msrb.gmra.mxu3 %v21305_v9 }
 0x820   :  { %v18371_v35 = vor.u32 %v20494_v42, %v18370_v45  ;;  %v17826_v12 = vld [vmem:[#allocation8 + $0x848] sm:$0xf]  ;;  %v20266_v42 = vld [vmem:[#allocation8 + $0x58c] sm:$0xf] }
 0x821   :  { %11430 = vmatpush.bf16.msrb.mxu2 %v18403_v18  ;;  %v20358_v29 = vld [vmem:[#allocation8 + $0x864] sm:$0xf0]  ;;  %11405 = vmatpush.bf16.msrb.mxu0 %v17859_v6  ;;  %v17255_v18 = vor.u32 %v20210_v58, %v17252_v59  ;;  %v17223_v6 = vor.u32 %v20202_v13, %v17220_v41  ;;  %v17479_v26 = vor.u32 %v20266_v42, %v17476_v25  ;;  %v20122_v39 = vld [vmem:[#allocation8 + $0x10c] sm:$0xf] }
 0x822   :  { %v18082_v33 = vld [vmem:[#allocation8 + $0xa48] sm:$0xf]  ;;  %v17827_v34 = vor.u32 %v20358_v29, %v17826_v12  ;;  %v20258_v29 = vld [vmem:[#allocation8 + $0x54c] sm:$0xf] }
 0x823   :  { %v20422_v8 = vld [vmem:[#allocation8 + $0xa64] sm:$0xf0]  ;;  %11418 = vmatpush.bf16.msrb.mxu1 %v18115_v11  ;;  %v20194_v11 = vld [vmem:[#allocation8 + $0x34c] sm:$0xf] }
 0x824   :  { %v18338_v21 = vld [vmem:[#allocation8 + $0xc48] sm:$0xf]  ;;  %v18083_v7 = vor.u32 %v20422_v8, %v18082_v33  ;;  %v17444_v33 = vld [vmem:[#allocation8 + $0x568] sm:$0xf0] }
 0x825   :  { %v20486_v24 = vld [vmem:[#allocation8 + $0xc64] sm:$0xf0]  ;;  %11431 = vmatpush.bf16.msrb.mxu2 %v18371_v35  ;;  %11406 = vmatpush.bf16.msrb.mxu0 %v17827_v34  ;;  %v17188_v35 = vld [vmem:[#allocation8 + $0x368] sm:$0xf0]  ;;  %v17447_v30 = vor.u32 %v20258_v29, %v17444_v33 }
 0x826   :  { %v17762_v46 = vld [vmem:[#allocation8 + $0x7c8] sm:$0xf]  ;;  %v18339_v53 = vor.u32 %v20486_v24, %v18338_v21  ;;  %v16935_v21 = vor.u32 %v20130_v31, %v16932_v28  ;;  %v17191_v24 = vor.u32 %v20194_v11, %v17188_v35  ;;  %v16900_v34 = vld [vmem:[#allocation8 + $0x128] sm:$0xf0] }
 0x827   :  { %v20342_v49 = vld [vmem:[#allocation8 + $0x7e4] sm:$0xf0]  ;;  %11419 = vmatpush.bf16.msrb.mxu1 %v18083_v7  ;;  %v20250_v7 = vld [vmem:[#allocation8 + $0x50c] sm:$0xf]  ;;  %v16903_v47 = vor.u32 %v20122_v39, %v16900_v34 }
 0x828   :  { %v17794_v20 = vld [vmem:[#allocation8 + $0x808] sm:$0xf]  ;;  %v17763_v55 = vor.u32 %v20342_v49, %v17762_v46  ;;  %v20186_v46 = vld [vmem:[#allocation8 + $0x30c] sm:$0xf] }
 0x829   :  { %v20350_v43 = vld [vmem:[#allocation8 + $0x824] sm:$0xf0]  ;;  %11432 = vmatpush.bf16.msrb.mxu2 %v18339_v53  ;;  %v17156_v49 = vld [vmem:[#allocation8 + $0x328] sm:$0xf0] }
 0x82a   :  { %v18050_v40 = vld [vmem:[#allocation8 + $0xa08] sm:$0xf]  ;;  %v17795_v1 = vor.u32 %v20350_v43, %v17794_v20  ;;  %11387 = vmatpush.bf16.msra.mxu3 %v17763_v55  ;;  %v17412_v53 = vld [vmem:[#allocation8 + $0x528] sm:$0xf0]  ;;  %v11214_v55 = vpop.f32.mrf.mxu1 }
 0x82b   :  { %v20414_v44 = vld [vmem:[#allocation8 + $0xa24] sm:$0xf0]  ;;  %v17415_v16 = vor.u32 %v20250_v7, %v17412_v53  ;;  %v16868_v58 = vld [vmem:[#allocation8 + $0xe8] sm:$0xf0] }
 0x82c   :  { %v18306_v37 = vld [vmem:[#allocation8 + $0xc08] sm:$0xf]  ;;  %v18051_v27 = vor.u32 %v20414_v44, %v18050_v40  ;;  %11407 = vmatpush.bf16.msrb.mxu0 %v17795_v1  ;;  %v11201_v44 = vpop.f32.mrf.mxu0  ;;  %v20178_v59 = vld [vmem:[#allocation8 + $0x2cc] sm:$0xf] }
 0x82d   :  { %v20478_v19 = vld [vmem:[#allocation8 + $0xc24] sm:$0xf0]  ;;  %v11202_v48 = vadd.f32 %v11201_v44, %v21315_v36  ;;  %v20242_v1 = vld [vmem:[#allocation8 + $0x4cc] sm:$0xf] }
 0x82e   :  { %v18307_v3 = vor.u32 %v20478_v19, %v18306_v37  ;;  %v17730_v38 = vld [vmem:[#allocation8 + $0x788] sm:$0xf]  ;;  %11420 = vmatpush.bf16.msrb.mxu1 %v18051_v27  ;;  %v17159_v37 = vor.u32 %v20186_v46, %v17156_v49  ;;  %v20114_v19 = vld [vmem:[#allocation8 + $0xcc] sm:$0xf] }
 0x82f   :  { %v20334_v32 = vld [vmem:[#allocation8 + $0x7a4] sm:$0xf0]  ;;  %11408 = vmatmul.bf16.vlgmr.msrb.gmra.mxu0 %v21265_v56  ;;  %v17380_v63 = vld [vmem:[#allocation8 + $0x4e8] sm:$0xf0]  ;;  %v11215_v2 = vadd.f32 %v11214_v55, %v11202_v48 }
 0x830   :  { %v17731_v45 = vor.u32 %v20334_v32, %v17730_v38  ;;  %11433 = vmatpush.bf16.msrb.mxu2 %v18307_v3  ;;  %v17698_v23 = vld [vmem:[#allocation8 + $0x748] sm:$0xf]  ;;  %11452 = vmatpush.bf16.msra.mxu0 %v16999_v54  ;;  %v16871_v38 = vor.u32 %v20114_v19, %v16868_v58  ;;  %v17127_v32 = vor.u32 %v20178_v59, %v17124_v57  ;;  %v20106_v54 = vld [vmem:[#allocation8 + $0x8c] sm:$0xf] }
 0x831   :  { %v20326_v0 = vld [vmem:[#allocation8 + $0x764] sm:$0xf0]  ;;  %11421 = vmatmul.bf16.vlgmr.msrb.gmra.mxu1 %v21267_v50  ;;  %v16836_v36 = vld [vmem:[#allocation8 + $0xa8] sm:$0xf0] }
 0x832   :  { %11465 = vmatpush.bf16.msra.mxu1 %v17255_v18  ;;  %11388 = vmatpush.bf16.msra.mxu3 %v17731_v45  ;;  %v17699_v12 = vor.u32 %v20326_v0, %v17698_v23  ;;  %v17666_v14 = vld [vmem:[#allocation8 + $0x708] sm:$0xf]  ;;  %v17383_v18 = vor.u32 %v20242_v1, %v17380_v63  ;;  %v20170_v4 = vld [vmem:[#allocation8 + $0x28c] sm:$0xf]  ;;  %v11227_v45 = vpop.f32.mrf.mxu2 }
 0x833   :  { %11434 = vmatmul.bf16.vlgmr.msrb.gmra.mxu2 %v21269_v52  ;;  %v20318_v8 = vld [vmem:[#allocation8 + $0x724] sm:$0xf0]  ;;  %v20234_v13 = vld [vmem:[#allocation8 + $0x48c] sm:$0xf]  ;;  %v21322_v23 = vadd.f32 %v11227_v45, %v11215_v2 }
 0x834   :  { %11478 = vmatpush.bf16.msra.mxu2 %v17511_v51  ;;  %11453 = vmatpush.bf16.msra.mxu0 %v16967_v10  ;;  %v17667_v20 = vor.u32 %v20318_v8, %v17666_v14  ;;  %v17634_v43 = vld [vmem:[#allocation8 + $0x6c8] sm:$0xf]  ;;  %v17092_v51 = vld [vmem:[#allocation8 + $0x2a8] sm:$0xf0]  ;;  %v11203_v0 = vpop.f32.mrf.mxu0  ;;  %v16839_v10 = vor.u32 %v20106_v54, %v16836_v36 }
 0x835   :  { %v20310_v40 = vld [vmem:[#allocation8 + $0x6e4] sm:$0xf0]  ;;  %v17348_v41 = vld [vmem:[#allocation8 + $0x4a8] sm:$0xf0] }
 0x836   :  { %11466 = vmatpush.bf16.msra.mxu1 %v17223_v6  ;;  %11389 = vmatpush.bf16.msra.mxu3 %v17699_v12  ;;  %v17635_v60 = vor.u32 %v20310_v40, %v17634_v43  ;;  %v17602_v27 = vld [vmem:[#allocation8 + $0x688] sm:$0xf]  ;;  %v17095_v6 = vor.u32 %v20170_v4, %v17092_v51  ;;  %v20098_v31 = vld [vmem:[#allocation8 + $0x4c] sm:$0xf]  ;;  %v17351_v28 = vor.u32 %v20234_v13, %v17348_v41 }
 0x837   :  { %v20302_v3 = vld [vmem:[#allocation8 + $0x6a4] sm:$0xf0]  ;;  %v16804_v11 = vld [vmem:[#allocation8 + $0x68] sm:$0xf0] }
 0x838   :  { %11479 = vmatpush.bf16.msra.mxu2 %v17479_v26  ;;  %11454 = vmatpush.bf16.msra.mxu0 %v16935_v21  ;;  %v17603_v5 = vor.u32 %v20302_v3, %v17602_v27  ;;  %v17570_v42 = vld [vmem:[#allocation8 + $0x648] sm:$0xf]  ;;  %v11216_v26 = vpop.f32.mrf.mxu1  ;;  %v20162_v35 = vld [vmem:[#allocation8 + $0x24c] sm:$0xf]  ;;  %v16807_v39 = vor.u32 %v20098_v31, %v16804_v11 }
 0x839   :  { %v20294_v25 = vld [vmem:[#allocation8 + $0x664] sm:$0xf0]  ;;  %v17060_v12 = vld [vmem:[#allocation8 + $0x268] sm:$0xf0] }
 0x83a   :  { %11467 = vmatpush.bf16.msra.mxu1 %v17191_v24  ;;  %11390 = vmatpush.bf16.msra.mxu3 %v17667_v20  ;;  %v17571_v29 = vor.u32 %v20294_v25, %v17570_v42  ;;  %v20226_v33 = vld [vmem:[#allocation8 + $0x44c] sm:$0xf]  ;;  %v17538_v8 = vld [vmem:[#allocation8 + $0x608] sm:$0xf]  ;;  %v11229_v19 = vpop.f32.mrf.mxu2 }
 0x83b   :  { %v17316_v14 = vld [vmem:[#allocation8 + $0x468] sm:$0xf0]  ;;  %v20286_v21 = vld [vmem:[#allocation8 + $0x624] sm:$0xf0] }
 0x83c   :  { %11480 = vmatpush.bf16.msra.mxu2 %v17447_v30  ;;  %11455 = vmatpush.bf16.msra.mxu0 %v16903_v47  ;;  %v18786_v24 = vld [vmem:[#allocation8 + $0xfc8] sm:$0xf]  ;;  %v17063_v30 = vor.u32 %v20162_v35, %v17060_v12  ;;  %v20090_v46 = vld [vmem:[#allocation8 + $0xc] sm:$0xf]  ;;  %v17319_v20 = vor.u32 %v20226_v33, %v17316_v14  ;;  %v17539_v40 = vor.u32 %v20286_v21, %v17538_v8  ;;  %v8565_v14 = vperm.slane %v21309_v15, 1 }
 0x83d   :  { %v20598_v34 = vld [vmem:[#allocation8 + $0xfe4] sm:$0xf0]  ;;  %v16772_v49 = vld [vmem:[#allocation8 + $0x28] sm:$0xf0] }
 0x83e   :  { %11468 = vmatpush.bf16.msra.mxu1 %v17159_v37  ;;  %11391 = vmatpush.bf16.msra.mxu3 %v17635_v60  ;;  %v20154_v7 = vld [vmem:[#allocation8 + $0x20c] sm:$0xf]  ;;  %v18787_v48 = vor.u32 %v20598_v34, %v18786_v24  ;;  %v16775_v59 = vor.u32 %v20090_v46, %v16772_v49  ;;  %v18754_v1 = vld [vmem:[#allocation8 + $0xf88] sm:$0xf] }
 0x83f   :  { %v17028_v53 = vld [vmem:[#allocation8 + $0x228] sm:$0xf0]  ;;  %v20590_v63 = vld [vmem:[#allocation8 + $0xfa4] sm:$0xf0] }
 0x840   :  { %11481 = vmatpush.bf16.msra.mxu2 %v17415_v16  ;;  %11456 = vmatpush.bf16.msra.mxu0 %v16871_v38  ;;  %v20218_v43 = vld [vmem:[#allocation8 + $0x40c] sm:$0xf]  ;;  %v17031_v57 = vor.u32 %v20154_v7, %v17028_v53  ;;  %v18722_v13 = vld [vmem:[#allocation8 + $0xf48] sm:$0xf]  ;;  %v11253_v53 = vpop.f32.mrf.mxu0 }
 0x841   :  { %v17284_v44 = vld [vmem:[#allocation8 + $0x428] sm:$0xf0]  ;;  %v20582_v41 = vld [vmem:[#allocation8 + $0xf64] sm:$0xf0] }
 0x842   :  { %11469 = vmatpush.bf16.msra.mxu1 %v17127_v32  ;;  %11392 = vmatpush.bf16.msra.mxu3 %v17603_v5  ;;  %v20402_v47 = vld [vmem:[#allocation8 + $0x9cc] sm:$0xf]  ;;  %v17287_v2 = vor.u32 %v20218_v43, %v17284_v44  ;;  %v18690_v35 = vld [vmem:[#allocation8 + $0xf08] sm:$0xf]  ;;  %v11266_v43 = vpop.f32.mrf.mxu1 }
 0x843   :  { %v18020_v37 = vld [vmem:[#allocation8 + $0x9e8] sm:$0xf0]  ;;  %v20574_v12 = vld [vmem:[#allocation8 + $0xf24] sm:$0xf0] }
 0x844   :  { %11482 = vmatpush.bf16.msra.mxu2 %v17383_v18  ;;  %11457 = vmatpush.bf16.msra.mxu0 %v16839_v10  ;;  %v20466_v55 = vld [vmem:[#allocation8 + $0xbcc] sm:$0xf]  ;;  %v18023_v27 = vor.u32 %v20402_v47, %v18020_v37  ;;  %v18755_v18 = vor.u32 %v20590_v63, %v18754_v1  ;;  %v20566_v7 = vld [vmem:[#allocation8 + $0xee4] sm:$0xf0]  ;;  %v11254_v37 = vadd.f32 %v11253_v53, %v8565_v14 }
 0x845   :  { %v18276_v16 = vld [vmem:[#allocation8 + $0xbe8] sm:$0xf0] }
 0x846   :  { %11470 = vmatpush.bf16.msra.mxu1 %v17095_v6  ;;  %11393 = vmatpush.bf16.msra.mxu3 %v17571_v29  ;;  %v20530_v58 = vld [vmem:[#allocation8 + $0xdcc] sm:$0xf]  ;;  %v18279_v3 = vor.u32 %v20466_v55, %v18276_v16  ;;  %v18723_v6 = vor.u32 %v20582_v41, %v18722_v13  ;;  %v11267_v1 = vadd.f32 %v11266_v43, %v11254_v37  ;;  %v20215_v37 = vld [vmem:[#allocation8 + $0x3ec] sm:$0xf0] }
 0x847   :  { %v18532_v60 = vld [vmem:[#allocation8 + $0xde8] sm:$0xf0] }
 0x848   :  { %11483 = vmatpush.bf16.msra.mxu2 %v17351_v28  ;;  %11458 = vmatpush.bf16.msra.mxu0 %v16807_v39  ;;  %v20394_v38 = vld [vmem:[#allocation8 + $0x98c] sm:$0xf]  ;;  %v18535_v54 = vor.u32 %v20530_v58, %v18532_v60  ;;  %v18691_v39 = vor.u32 %v20574_v12, %v18690_v35  ;;  %v20558_v60 = vld [vmem:[#allocation8 + $0xea4] sm:$0xf0]  ;;  %v11279_v13 = vpop.f32.mrf.mxu2 }
 0x849   :  { %v17988_v32 = vld [vmem:[#allocation8 + $0x9a8] sm:$0xf0]  ;;  %v21329_v41 = vadd.f32 %v11279_v13, %v11267_v1  ;;  %v16938_v13 = vld [vmem:[#allocation8 + $0x150] sm:$0xf] }
 0x84a   :  { %11471 = vmatpush.bf16.msra.mxu1 %v17063_v30  ;;  %11394 = vmatpush.bf16.msra.mxu3 %v17539_v40  ;;  %v20458_v36 = vld [vmem:[#allocation8 + $0xb8c] sm:$0xf]  ;;  %v17991_v45 = vor.u32 %v20394_v38, %v17988_v32 }
 0x84b   :  { %v18244_v4 = vld [vmem:[#allocation8 + $0xba8] sm:$0xf0] }
 0x84c   :  { %11484 = vmatpush.bf16.msra.mxu2 %v17319_v20  ;;  %v20522_v51 = vld [vmem:[#allocation8 + $0xd8c] sm:$0xf]  ;;  %11459 = vmatpush.bf16.msra.mxu0 %v16775_v59  ;;  %v18247_v42 = vor.u32 %v20458_v36, %v18244_v4  ;;  %v18658_v20 = vld [vmem:[#allocation8 + $0xec8] sm:$0xf] }
 0x84d   :  { %v18500_v5 = vld [vmem:[#allocation8 + $0xda8] sm:$0xf0]  ;;  %11395 = vmatmul.bf16.vlgmr.msra.gmra.mxu3 %v21241_v61 }
 0x84e   :  { %11439 = vmatpush.bf16.msrb.mxu3 %v18787_v48  ;;  %11472 = vmatpush.bf16.msra.mxu1 %v17031_v57  ;;  %v20386_v25 = vld [vmem:[#allocation8 + $0x94c] sm:$0xf]  ;;  %v18503_v10 = vor.u32 %v20522_v51, %v18500_v5  ;;  %v18659_v48 = vor.u32 %v20566_v7, %v18658_v20  ;;  %v18626_v57 = vld [vmem:[#allocation8 + $0xe88] sm:$0xf] }
 0x84f   :  { %v17956_v0 = vld [vmem:[#allocation8 + $0x968] sm:$0xf0]  ;;  %11460 = vmatmul.bf16.vlgmr.msra.gmra.mxu0 %v21233_v62  ;;  %v18627_v32 = vor.u32 %v20558_v60, %v18626_v57  ;;  %v18594_v51 = vld [vmem:[#allocation8 + $0xe48] sm:$0xf] }
 0x850   :  { %11485 = vmatpush.bf16.msra.mxu2 %v17287_v2  ;;  %11504 = vmatpush.bf16.msrb.mxu0 %v18023_v27  ;;  %v20450_v31 = vld [vmem:[#allocation8 + $0xb4c] sm:$0xf]  ;;  %v17959_v29 = vor.u32 %v20386_v25, %v17956_v0  ;;  %v20550_v5 = vld [vmem:[#allocation8 + $0xe64] sm:$0xf0] }
 0x851   :  { %v18212_v26 = vld [vmem:[#allocation8 + $0xb68] sm:$0xf0]  ;;  %11473 = vmatmul.bf16.vlgmr.msra.gmra.mxu1 %v21237_v17 }
 0x852   :  { %11517 = vmatpush.bf16.msrb.mxu1 %v18279_v3  ;;  %11440 = vmatpush.bf16.msrb.mxu3 %v18755_v18  ;;  %v20514_v28 = vld [vmem:[#allocation8 + $0xd4c] sm:$0xf]  ;;  %v18215_v33 = vor.u32 %v20450_v31, %v18212_v26  ;;  %v18595_v26 = vor.u32 %v20550_v5, %v18594_v51 }
 0x853   :  { %v18468_v11 = vld [vmem:[#allocation8 + $0xd68] sm:$0xf0]  ;;  %11486 = vmatmul.bf16.vlgmr.msra.gmra.mxu2 %v21239_v22 }
 0x854   :  { %11530 = vmatpush.bf16.msrb.mxu2 %v18535_v54  ;;  %11505 = vmatpush.bf16.msrb.mxu0 %v17991_v45  ;;  %v20378_v8 = vld [vmem:[#allocation8 + $0x90c] sm:$0xf]  ;;  %v18471_v24 = vor.u32 %v20514_v28, %v18468_v11  ;;  %v11255_v45 = vpop.f32.mrf.mxu0 }
 0x855   :  { %v17924_v21 = vld [vmem:[#allocation8 + $0x928] sm:$0xf0]  ;;  %v20135_v45 = vld [vmem:[#allocation8 + $0x16c] sm:$0xf0] }
 0x856   :  { %11518 = vmatpush.bf16.msrb.mxu1 %v18247_v42  ;;  %11441 = vmatpush.bf16.msrb.mxu3 %v18723_v6  ;;  %v20442_v30 = vld [vmem:[#allocation8 + $0xb0c] sm:$0xf]  ;;  %v17927_v40 = vor.u32 %v20378_v8, %v17924_v21  ;;  %v11268_v42 = vpop.f32.mrf.mxu1 }
 0x857   :  { %v18180_v34 = vld [vmem:[#allocation8 + $0xb28] sm:$0xf0] }
 0x858   :  { %11531 = vmatpush.bf16.msrb.mxu2 %v18503_v10  ;;  %v20506_v46 = vld [vmem:[#allocation8 + $0xd0c] sm:$0xf]  ;;  %11506 = vmatpush.bf16.msrb.mxu0 %v17959_v29  ;;  %v18183_v44 = vor.u32 %v20442_v30, %v18180_v34  ;;  %v18562_v29 = vld [vmem:[#allocation8 + $0xe08] sm:$0xf] }
 0x859   :  { %v18436_v49 = vld [vmem:[#allocation8 + $0xd28] sm:$0xf0] }
 0x85a   :  { %11519 = vmatpush.bf16.msrb.mxu1 %v18215_v33  ;;  %v20370_v47 = vld [vmem:[#allocation8 + $0x8cc] sm:$0xf]  ;;  %11442 = vmatpush.bf16.msrb.mxu3 %v18691_v39  ;;  %v18439_v19 = vor.u32 %v20506_v46, %v18436_v49  ;;  %v20542_v33 = vld [vmem:[#allocation8 + $0xe24] sm:$0xf0] }
 0x85b   :  { %v17892_v15 = vld [vmem:[#allocation8 + $0x8e8] sm:$0xf0]  ;;  %v18563_v46 = vor.u32 %v20542_v33, %v18562_v29  ;;  %v20127_v29 = vld [vmem:[#allocation8 + $0x12c] sm:$0xf0] }
 0x85c   :  { %11532 = vmatpush.bf16.msrb.mxu2 %v18471_v24  ;;  %v20434_v55 = vld [vmem:[#allocation8 + $0xacc] sm:$0xf]  ;;  %11507 = vmatpush.bf16.msrb.mxu0 %v17927_v40  ;;  %v17895_v63 = vor.u32 %v20370_v47, %v17892_v15  ;;  %v17002_v40 = vld [vmem:[#allocation8 + $0x1d0] sm:$0xf]  ;;  %v11281_v47 = vpop.f32.mrf.mxu2 }
 0x85d   :  { %v18148_v16 = vld [vmem:[#allocation8 + $0xae8] sm:$0xf0]  ;;  %v17258_v15 = vld [vmem:[#allocation8 + $0x3d0] sm:$0xf] }
 0x85e   :  { %v20498_v58 = vld [vmem:[#allocation8 + $0xccc] sm:$0xf]  ;;  %11520 = vmatpush.bf16.msrb.mxu1 %v18183_v44  ;;  %v18151_v2 = vor.u32 %v20434_v55, %v18148_v16  ;;  %11443 = vmatpush.bf16.msrb.mxu3 %v18659_v48  ;;  %v20151_v44 = vld [vmem:[#allocation8 + $0x1ec] sm:$0xf0]  ;;  %v17259_v1 = vor.u32 %v20215_v37, %v17258_v15 }
 0x85f   :  { %v18404_v59 = vld [vmem:[#allocation8 + $0xce8] sm:$0xf0]  ;;  %v20279_v16 = vld [vmem:[#allocation8 + $0x5ec] sm:$0xf0]  ;;  %v17003_v60 = vor.u32 %v20151_v44, %v17002_v40 }
 0x860   :  { %v20362_v27 = vld [vmem:[#allocation8 + $0x88c] sm:$0xf]  ;;  %11533 = vmatpush.bf16.msrb.mxu2 %v18439_v19  ;;  %v18407_v38 = vor.u32 %v20498_v58, %v18404_v59  ;;  %11508 = vmatpush.bf16.msrb.mxu0 %v17895_v63  ;;  %v17514_v19 = vld [vmem:[#allocation8 + $0x5d0] sm:$0xf] }
 0x861   :  { %v17860_v3 = vld [vmem:[#allocation8 + $0x8a8] sm:$0xf0]  ;;  %v16970_v63 = vld [vmem:[#allocation8 + $0x190] sm:$0xf] }
 0x862   :  { %v20426_v54 = vld [vmem:[#allocation8 + $0xa8c] sm:$0xf]  ;;  %11521 = vmatpush.bf16.msrb.mxu1 %v18151_v2  ;;  %v17863_v25 = vor.u32 %v20362_v27, %v17860_v3  ;;  %11444 = vmatpush.bf16.msrb.mxu3 %v18627_v32  ;;  %v20143_v2 = vld [vmem:[#allocation8 + $0x1ac] sm:$0xf0]  ;;  %v17515_v27 = vor.u32 %v20279_v16, %v17514_v19 }
 0x863   :  { %v18116_v18 = vld [vmem:[#allocation8 + $0xaa8] sm:$0xf0]  ;;  %v20207_v32 = vld [vmem:[#allocation8 + $0x3ac] sm:$0xf0]  ;;  %v16971_v51 = vor.u32 %v20143_v2, %v16970_v63 }
 0x864   :  { %v20490_v36 = vld [vmem:[#allocation8 + $0xc8c] sm:$0xf]  ;;  %v18119_v0 = vor.u32 %v20426_v54, %v18116_v18  ;;  %11534 = vmatpush.bf16.msrb.mxu2 %v18407_v38  ;;  %11509 = vmatpush.bf16.msrb.mxu0 %v17863_v25  ;;  %v17226_v38 = vld [vmem:[#allocation8 + $0x390] sm:$0xf] }
 0x865   :  { %v18372_v4 = vld [vmem:[#allocation8 + $0xca8] sm:$0xf0]  ;;  %v17482_v54 = vld [vmem:[#allocation8 + $0x590] sm:$0xf]  ;;  %v17227_v5 = vor.u32 %v20207_v32, %v17226_v38 }
 0x866   :  { %v20354_v10 = vld [vmem:[#allocation8 + $0x84c] sm:$0xf]  ;;  %v18375_v31 = vor.u32 %v20490_v36, %v18372_v4  ;;  %11522 = vmatpush.bf16.msrb.mxu1 %v18119_v0  ;;  %11445 = vmatpush.bf16.msrb.mxu3 %v18595_v26  ;;  %v20271_v18 = vld [vmem:[#allocation8 + $0x5ac] sm:$0xf0] }
 0x867   :  { %v17828_v6 = vld [vmem:[#allocation8 + $0x868] sm:$0xf0]  ;;  %v17483_v42 = vor.u32 %v20271_v18, %v17482_v54  ;;  %v17194_v0 = vld [vmem:[#allocation8 + $0x350] sm:$0xf] }
 0x868   :  { %v20418_v28 = vld [vmem:[#allocation8 + $0xa4c] sm:$0xf]  ;;  %v17831_v21 = vor.u32 %v20354_v10, %v17828_v6  ;;  %11535 = vmatpush.bf16.msrb.mxu2 %v18375_v31  ;;  %v20199_v10 = vld [vmem:[#allocation8 + $0x36c] sm:$0xf0] }
 0x869   :  { %v18084_v11 = vld [vmem:[#allocation8 + $0xa68] sm:$0xf0]  ;;  %v17450_v6 = vld [vmem:[#allocation8 + $0x550] sm:$0xf] }
 0x86a   :  { %v20482_v35 = vld [vmem:[#allocation8 + $0xc4c] sm:$0xf]  ;;  %v18087_v24 = vor.u32 %v20418_v28, %v18084_v11  ;;  %11510 = vmatpush.bf16.msrb.mxu0 %v17831_v21  ;;  %11446 = vmatpush.bf16.msrb.mxu3 %v18563_v46  ;;  %v20263_v31 = vld [vmem:[#allocation8 + $0x56c] sm:$0xf0]  ;;  %v16939_v11 = vor.u32 %v20135_v45, %v16938_v13  ;;  %v21335_v46 = vpop.f32.mrf.mxu0 }
 0x86b   :  { %v18340_v12 = vld [vmem:[#allocation8 + $0xc68] sm:$0xf0]  ;;  %v17451_v33 = vor.u32 %v20263_v31, %v17450_v6  ;;  %v20191_v21 = vld [vmem:[#allocation8 + $0x32c] sm:$0xf0] }
 0x86c   :  { %v20338_v14 = vld [vmem:[#allocation8 + $0x7cc] sm:$0xf]  ;;  %v18343_v34 = vor.u32 %v20482_v35, %v18340_v12  ;;  %11523 = vmatpush.bf16.msrb.mxu1 %v18087_v24  ;;  %v17195_v35 = vor.u32 %v20199_v10, %v17194_v0  ;;  %v16906_v12 = vld [vmem:[#allocation8 + $0x110] sm:$0xf] }
 0x86d   :  { %v17764_v8 = vld [vmem:[#allocation8 + $0x7e8] sm:$0xf0]  ;;  %11447 = vmatmul.bf16.vlgmr.msrb.gmra.mxu3 %v21305_v9  ;;  %v17418_v24 = vld [vmem:[#allocation8 + $0x510] sm:$0xf] }
 0x86e   :  { %v20346_v39 = vld [vmem:[#allocation8 + $0x80c] sm:$0xf]  ;;  %v17767_v53 = vor.u32 %v20338_v14, %v17764_v8  ;;  %11536 = vmatpush.bf16.msrb.mxu2 %v18343_v34  ;;  %v17162_v8 = vld [vmem:[#allocation8 + $0x310] sm:$0xf] }
 0x86f   :  { %v17796_v30 = vld [vmem:[#allocation8 + $0x828] sm:$0xf0]  ;;  %v17130_v47 = vld [vmem:[#allocation8 + $0x2d0] sm:$0xf] }
 0x870   :  { %v20410_v49 = vld [vmem:[#allocation8 + $0xa0c] sm:$0xf]  ;;  %v17799_v48 = vor.u32 %v20346_v39, %v17796_v30  ;;  %11491 = vmatpush.bf16.msra.mxu3 %v17767_v53  ;;  %v20255_v39 = vld [vmem:[#allocation8 + $0x52c] sm:$0xf0] }
 0x871   :  { %v18052_v20 = vld [vmem:[#allocation8 + $0xa28] sm:$0xf0]  ;;  %v16874_v53 = vld [vmem:[#allocation8 + $0xd0] sm:$0xf]  ;;  %v17419_v40 = vor.u32 %v20255_v39, %v17418_v24 }
 0x872   :  { %v20474_v7 = vld [vmem:[#allocation8 + $0xc0c] sm:$0xf]  ;;  %v18055_v55 = vor.u32 %v20410_v49, %v18052_v20  ;;  %11511 = vmatpush.bf16.msrb.mxu0 %v17799_v48  ;;  %v21337_v49 = vpop.f32.mrf.mxu1  ;;  %v16907_v20 = vor.u32 %v20127_v29, %v16906_v12  ;;  %v20183_v15 = vld [vmem:[#allocation8 + $0x2ec] sm:$0xf0]  ;;  %v11307_v18 = vpop.f32.mrf.mxu0 }
 0x873   :  { %v18308_v43 = vld [vmem:[#allocation8 + $0xc28] sm:$0xf0]  ;;  %v17386_v37 = vld [vmem:[#allocation8 + $0x4d0] sm:$0xf] }
 0x874   :  { %v20330_v58 = vld [vmem:[#allocation8 + $0x78c] sm:$0xf]  ;;  %v18311_v57 = vor.u32 %v20474_v7, %v18308_v43  ;;  %11524 = vmatpush.bf16.msrb.mxu1 %v18055_v55  ;;  %v17163_v7 = vor.u32 %v20191_v21, %v17162_v8  ;;  %v20119_v43 = vld [vmem:[#allocation8 + $0xec] sm:$0xf0] }
 0x875   :  { %v17732_v59 = vld [vmem:[#allocation8 + $0x7a8] sm:$0xf0]  ;;  %11512 = vmatmul.bf16.vlgmr.msrb.gmra.mxu0 %v21265_v56  ;;  %v20247_v19 = vld [vmem:[#allocation8 + $0x4ec] sm:$0xf0]  ;;  %v16875_v16 = vor.u32 %v20119_v43, %v16874_v53 }
 0x876   :  { %v17735_v3 = vor.u32 %v20330_v58, %v17732_v59  ;;  %v20322_v36 = vld [vmem:[#allocation8 + $0x74c] sm:$0xf]  ;;  %11537 = vmatpush.bf16.msrb.mxu2 %v18311_v57  ;;  %11556 = vmatpush.bf16.msra.mxu0 %v17003_v60  ;;  %v17131_v58 = vor.u32 %v20183_v15, %v17130_v47  ;;  %v16842_v59 = vld [vmem:[#allocation8 + $0x90] sm:$0xf]  ;;  %v17387_v60 = vor.u32 %v20247_v19, %v17386_v37 }
 0x877   :  { %v17700_v4 = vld [vmem:[#allocation8 + $0x768] sm:$0xf0]  ;;  %11525 = vmatmul.bf16.vlgmr.msrb.gmra.mxu1 %v21267_v50  ;;  %v20111_v57 = vld [vmem:[#allocation8 + $0xac] sm:$0xf0] }
 0x878   :  { %11569 = vmatpush.bf16.msra.mxu1 %v17259_v1  ;;  %11492 = vmatpush.bf16.msra.mxu3 %v17735_v3  ;;  %v17703_v25 = vor.u32 %v20322_v36, %v17700_v4  ;;  %v20314_v26 = vld [vmem:[#allocation8 + $0x70c] sm:$0xf]  ;;  %v17098_v63 = vld [vmem:[#allocation8 + $0x290] sm:$0xf]  ;;  %v21339_v3 = vpop.f32.mrf.mxu2  ;;  %v16843_v4 = vor.u32 %v20111_v57, %v16842_v59 }
 0x879   :  { %v17668_v28 = vld [vmem:[#allocation8 + $0x728] sm:$0xf0]  ;;  %11538 = vmatmul.bf16.vlgmr.msrb.gmra.mxu2 %v21269_v52  ;;  %v20175_v2 = vld [vmem:[#allocation8 + $0x2ac] sm:$0xf0] }
 0x87a   :  { %11582 = vmatpush.bf16.msra.mxu2 %v17515_v27  ;;  %11557 = vmatpush.bf16.msra.mxu0 %v16971_v51  ;;  %v17671_v14 = vor.u32 %v20314_v26, %v17668_v28  ;;  %v20306_v30 = vld [vmem:[#allocation8 + $0x6cc] sm:$0xf]  ;;  %v17354_v27 = vld [vmem:[#allocation8 + $0x490] sm:$0xf]  ;;  %v11320_v36 = vpop.f32.mrf.mxu1  ;;  %v17099_v51 = vor.u32 %v20175_v2, %v17098_v63 }
 0x87b   :  { %v17636_v34 = vld [vmem:[#allocation8 + $0x6e8] sm:$0xf0]  ;;  %v20239_v38 = vld [vmem:[#allocation8 + $0x4ac] sm:$0xf0] }
 0x87c   :  { %11570 = vmatpush.bf16.msra.mxu1 %v17227_v5  ;;  %11493 = vmatpush.bf16.msra.mxu3 %v17703_v25  ;;  %v17639_v44 = vor.u32 %v20306_v30, %v17636_v34  ;;  %v20298_v48 = vld [vmem:[#allocation8 + $0x68c] sm:$0xf]  ;;  %v16810_v5 = vld [vmem:[#allocation8 + $0x50] sm:$0xf]  ;;  %v17355_v45 = vor.u32 %v20239_v38, %v17354_v27 }
 0x87d   :  { %v17604_v55 = vld [vmem:[#allocation8 + $0x6a8] sm:$0xf0]  ;;  %v20103_v13 = vld [vmem:[#allocation8 + $0x6c] sm:$0xf0] }
 0x87e   :  { %11583 = vmatpush.bf16.msra.mxu2 %v17483_v42  ;;  %11558 = vmatpush.bf16.msra.mxu0 %v16939_v11  ;;  %v17607_v1 = vor.u32 %v20298_v48, %v17604_v55  ;;  %v20290_v32 = vld [vmem:[#allocation8 + $0x64c] sm:$0xf]  ;;  %v17066_v25 = vld [vmem:[#allocation8 + $0x250] sm:$0xf] }
 0x87f   :  { %v17572_v54 = vld [vmem:[#allocation8 + $0x668] sm:$0xf0]  ;;  %v20167_v0 = vld [vmem:[#allocation8 + $0x26c] sm:$0xf0] }
 0x880   :  { %11571 = vmatpush.bf16.msra.mxu1 %v17195_v35  ;;  %11494 = vmatpush.bf16.msra.mxu3 %v17671_v14  ;;  %v17575_v42 = vor.u32 %v20290_v32, %v17572_v54  ;;  %v17322_v10 = vld [vmem:[#allocation8 + $0x450] sm:$0xf]  ;;  %v20282_v31 = vld [vmem:[#allocation8 + $0x60c] sm:$0xf]  ;;  %v16811_v35 = vor.u32 %v20103_v13, %v16810_v5  ;;  %v17067_v12 = vor.u32 %v20167_v0, %v17066_v25  ;;  %v11333_v30 = vpop.f32.mrf.mxu2 }
 0x881   :  { %v20231_v6 = vld [vmem:[#allocation8 + $0x46c] sm:$0xf0]  ;;  %v17540_v26 = vld [vmem:[#allocation8 + $0x628] sm:$0xf0] }
 0x882   :  { %11584 = vmatpush.bf16.msra.mxu2 %v17451_v33  ;;  %11559 = vmatpush.bf16.msra.mxu0 %v16907_v20  ;;  %v20594_v28 = vld [vmem:[#allocation8 + $0xfcc] sm:$0xf]  ;;  %v16778_v29 = vld [vmem:[#allocation8 + $0x10] sm:$0xf]  ;;  %v17323_v14 = vor.u32 %v20231_v6, %v17322_v10  ;;  %v17543_v8 = vor.u32 %v20282_v31, %v17540_v26 }
 0x883   :  { %v18788_v11 = vld [vmem:[#allocation8 + $0xfe8] sm:$0xf0]  ;;  %v20095_v33 = vld [vmem:[#allocation8 + $0x2c] sm:$0xf0] }
 0x884   :  { %11572 = vmatpush.bf16.msra.mxu1 %v17163_v7  ;;  %11495 = vmatpush.bf16.msra.mxu3 %v17639_v44  ;;  %v17034_v21 = vld [vmem:[#allocation8 + $0x210] sm:$0xf]  ;;  %v18791_v34 = vor.u32 %v20594_v28, %v18788_v11  ;;  %v16779_v47 = vor.u32 %v20095_v33, %v16778_v29  ;;  %v20586_v19 = vld [vmem:[#allocation8 + $0xf8c] sm:$0xf]  ;;  %v21345_v28 = vld [vmem:[#allocation10] sm:$0xff] }
 0x885   :  { %v20159_v24 = vld [vmem:[#allocation8 + $0x22c] sm:$0xf0]  ;;  %v18756_v48 = vld [vmem:[#allocation8 + $0xfa8] sm:$0xf0]  ;;  %v8566_v11 = vperm.slane %v21345_v28, 2 }
 0x886   :  { %11585 = vmatpush.bf16.msra.mxu2 %v17419_v40  ;;  %11560 = vmatpush.bf16.msra.mxu0 %v16875_v16  ;;  %v17290_v39 = vld [vmem:[#allocation8 + $0x410] sm:$0xf]  ;;  %v17035_v15 = vor.u32 %v20159_v24, %v17034_v21  ;;  %v20578_v32 = vld [vmem:[#allocation8 + $0xf4c] sm:$0xf] }
 0x887   :  { %v20223_v20 = vld [vmem:[#allocation8 + $0x42c] sm:$0xf0]  ;;  %v18724_v54 = vld [vmem:[#allocation8 + $0xf68] sm:$0xf0] }
 0x888   :  { %11573 = vmatpush.bf16.msra.mxu1 %v17131_v58  ;;  %11496 = vmatpush.bf16.msra.mxu3 %v17607_v1  ;;  %v18026_v7 = vld [vmem:[#allocation8 + $0x9d0] sm:$0xf]  ;;  %v17291_v55 = vor.u32 %v20223_v20, %v17290_v39  ;;  %v18759_v1 = vor.u32 %v20586_v19, %v18756_v48  ;;  %v18727_v13 = vor.u32 %v20578_v32, %v18724_v54  ;;  %v20570_v10 = vld [vmem:[#allocation8 + $0xf0c] sm:$0xf] }
 0x889   :  { %v20407_v53 = vld [vmem:[#allocation8 + $0x9ec] sm:$0xf0]  ;;  %v18692_v6 = vld [vmem:[#allocation8 + $0xf28] sm:$0xf0] }
 0x88a   :  { %11586 = vmatpush.bf16.msra.mxu2 %v17387_v60  ;;  %11561 = vmatpush.bf16.msra.mxu0 %v16843_v4  ;;  %v18282_v43 = vld [vmem:[#allocation8 + $0xbd0] sm:$0xf]  ;;  %v18027_v16 = vor.u32 %v20407_v53, %v18026_v7  ;;  %v18695_v33 = vor.u32 %v20570_v10, %v18692_v6  ;;  %v20562_v39 = vld [vmem:[#allocation8 + $0xecc] sm:$0xf]  ;;  %v11240_v7 = vpop.f32.mrf.mxu3 }
 0x88b   :  { %v20471_v40 = vld [vmem:[#allocation8 + $0xbec] sm:$0xf0]  ;;  %v18660_v30 = vld [vmem:[#allocation8 + $0xee8] sm:$0xf0] }
 0x88c   :  { %11574 = vmatpush.bf16.msra.mxu1 %v17099_v51  ;;  %11497 = vmatpush.bf16.msra.mxu3 %v17575_v42  ;;  %v18538_v44 = vld [vmem:[#allocation8 + $0xdd0] sm:$0xf]  ;;  %v18283_v58 = vor.u32 %v20471_v40, %v18282_v43  ;;  %v11370_v43 = vpop.f32.mrf.mxu1  ;;  %v18663_v19 = vor.u32 %v20562_v39, %v18660_v30 }
 0x88d   :  { %v20535_v37 = vld [vmem:[#allocation8 + $0xdec] sm:$0xf0] }
 0x88e   :  { %11587 = vmatpush.bf16.msra.mxu2 %v17355_v45  ;;  %11562 = vmatpush.bf16.msra.mxu0 %v16811_v35  ;;  %v17994_v59 = vld [vmem:[#allocation8 + $0x990] sm:$0xf]  ;;  %v18539_v60 = vor.u32 %v20535_v37, %v18538_v44  ;;  %v21349_v44 = vadd.f32 %v11240_v7, %v21322_v23 }
 0x88f   :  { %v20399_v57 = vld [vmem:[#allocation8 + $0x9ac] sm:$0xf0] }
 0x890   :  { %11575 = vmatpush.bf16.msra.mxu1 %v17067_v12  ;;  %11498 = vmatpush.bf16.msra.mxu3 %v17543_v8  ;;  %v18250_v63 = vld [vmem:[#allocation8 + $0xb90] sm:$0xf]  ;;  %v17995_v18 = vor.u32 %v20399_v57, %v17994_v59  ;;  %v20554_v57 = vld [vmem:[#allocation8 + $0xe8c] sm:$0xf]  ;;  %vm11972_vm8 = vcmp.gt.f32.partialorder %v21349_v44, 0.0 }
 0x891   :  { %v20463_v2 = vld [vmem:[#allocation8 + $0xbac] sm:$0xf0] }
 0x892   :  { %11588 = vmatpush.bf16.msra.mxu2 %v17323_v14  ;;  %v18506_v27 = vld [vmem:[#allocation8 + $0xd90] sm:$0xf]  ;;  %11563 = vmatpush.bf16.msra.mxu0 %v16779_v47  ;;  %v18251_v36 = vor.u32 %v20463_v2, %v18250_v63 }
 0x893   :  { %v20527_v38 = vld [vmem:[#allocation8 + $0xdac] sm:$0xf0]  ;;  %11499 = vmatmul.bf16.vlgmr.msra.gmra.mxu3 %v21241_v61 }
 0x894   :  { %11543 = vmatpush.bf16.msrb.mxu3 %v18791_v34  ;;  %11576 = vmatpush.bf16.msra.mxu1 %v17035_v15  ;;  %v17962_v4 = vld [vmem:[#allocation8 + $0x950] sm:$0xf]  ;;  %v18507_v5 = vor.u32 %v20527_v38, %v18506_v27  ;;  %v11357_v34 = vpop.f32.mrf.mxu0 }
 0x895   :  { %v20391_v51 = vld [vmem:[#allocation8 + $0x96c] sm:$0xf0]  ;;  %11564 = vmatmul.bf16.vlgmr.msra.gmra.mxu0 %v21233_v62  ;;  %v11358_v53 = vadd.f32 %v11357_v34, %v8566_v11 }
 0x896   :  { %11589 = vmatpush.bf16.msra.mxu2 %v17291_v55  ;;  %11608 = vmatpush.bf16.msrb.mxu0 %v18027_v16  ;;  %v18218_v45 = vld [vmem:[#allocation8 + $0xb50] sm:$0xf]  ;;  %v17963_v31 = vor.u32 %v20391_v51, %v17962_v4  ;;  %v20546_v51 = vld [vmem:[#allocation8 + $0xe4c] sm:$0xf] }
 0x897   :  { %v20455_v42 = vld [vmem:[#allocation8 + $0xb6c] sm:$0xf0]  ;;  %11577 = vmatmul.bf16.vlgmr.msra.gmra.mxu1 %v21237_v17 }
 0x898   :  { %11621 = vmatpush.bf16.msrb.mxu1 %v18283_v58  ;;  %11544 = vmatpush.bf16.msrb.mxu3 %v18759_v1  ;;  %v18474_v25 = vld [vmem:[#allocation8 + $0xd50] sm:$0xf]  ;;  %v18219_v26 = vor.u32 %v20455_v42, %v18218_v45  ;;  %v11371_v58 = vadd.f32 %v11370_v43, %v11358_v53  ;;  %v11242_v42 = vpop.f32.mrf.mxu3 }
 0x899   :  { %v20519_v0 = vld [vmem:[#allocation8 + $0xd6c] sm:$0xf0]  ;;  %11590 = vmatmul.bf16.vlgmr.msra.gmra.mxu2 %v21239_v22  ;;  %v17228_v42 = vld [vmem:[#allocation8 + $0x3b0] sm:$0xf0] }
 0x89a   :  { %11634 = vmatpush.bf16.msrb.mxu2 %v18539_v60  ;;  %11609 = vmatpush.bf16.msrb.mxu0 %v17995_v18  ;;  %v17930_v35 = vld [vmem:[#allocation8 + $0x910] sm:$0xf]  ;;  %v18475_v29 = vor.u32 %v20519_v0, %v18474_v25  ;;  %v18628_v60 = vld [vmem:[#allocation8 + $0xea8] sm:$0xf0]  ;;  %v11372_v25 = vpop.f32.mrf.mxu1 }
 0x89b   :  { %v20383_v12 = vld [vmem:[#allocation8 + $0x92c] sm:$0xf0]  ;;  %v18631_v38 = vor.u32 %v20554_v57, %v18628_v60  ;;  %v20275_v57 = vld [vmem:[#allocation8 + $0x5d4] sm:$0xf] }
 0x89c   :  { %11622 = vmatpush.bf16.msrb.mxu1 %v18251_v36  ;;  %11545 = vmatpush.bf16.msrb.mxu3 %v18727_v13  ;;  %v18186_v14 = vld [vmem:[#allocation8 + $0xb10] sm:$0xf]  ;;  %v17931_v20 = vor.u32 %v20383_v12, %v17930_v35  ;;  %v11383_v36 = vpop.f32.mrf.mxu2  ;;  %v11359_v45 = vpop.f32.mrf.mxu0  ;;  %v20267_v25 = vld [vmem:[#allocation8 + $0x594] sm:$0xf] }
 0x89d   :  { %v20447_v8 = vld [vmem:[#allocation8 + $0xb2c] sm:$0xf0]  ;;  %v21351_v13 = vadd.f32 %v11383_v36, %v11371_v58  ;;  %v20211_v58 = vld [vmem:[#allocation8 + $0x3d4] sm:$0xf] }
 0x89e   :  { %11635 = vmatpush.bf16.msrb.mxu2 %v18507_v5  ;;  %v18442_v21 = vld [vmem:[#allocation8 + $0xd10] sm:$0xf]  ;;  %11610 = vmatpush.bf16.msrb.mxu0 %v17963_v31  ;;  %v18187_v40 = vor.u32 %v20447_v8, %v18186_v14  ;;  %v18596_v5 = vld [vmem:[#allocation8 + $0xe68] sm:$0xf0]  ;;  %v20139_v36 = vld [vmem:[#allocation8 + $0x194] sm:$0xf] }
 0x89f   :  { %v20511_v24 = vld [vmem:[#allocation8 + $0xd2c] sm:$0xf0]  ;;  %v18599_v11 = vor.u32 %v20546_v51, %v18596_v5  ;;  %v20538_v14 = vld [vmem:[#allocation8 + $0xe0c] sm:$0xf]  ;;  %v20203_v45 = vld [vmem:[#allocation8 + $0x394] sm:$0xf] }
 0x8a0   :  { %11623 = vmatpush.bf16.msrb.mxu1 %v18219_v26  ;;  %v17898_v47 = vld [vmem:[#allocation8 + $0x8d0] sm:$0xf]  ;;  %11546 = vmatpush.bf16.msrb.mxu3 %v18695_v33  ;;  %v18443_v37 = vor.u32 %v20511_v24, %v18442_v21  ;;  %v18564_v8 = vld [vmem:[#allocation8 + $0xe28] sm:$0xf0] }
 0x8a1   :  { %v20375_v15 = vld [vmem:[#allocation8 + $0x8ec] sm:$0xf0]  ;;  %v18567_v53 = vor.u32 %v20538_v14, %v18564_v8  ;;  %v20195_v14 = vld [vmem:[#allocation8 + $0x354] sm:$0xf] }
 0x8a2   :  { %11636 = vmatpush.bf16.msrb.mxu2 %v18475_v29  ;;  %v18154_v48 = vld [vmem:[#allocation8 + $0xad0] sm:$0xf]  ;;  %11611 = vmatpush.bf16.msrb.mxu0 %v17931_v20  ;;  %v17899_v1 = vor.u32 %v20375_v15, %v17898_v47  ;;  %v17196_v8 = vld [vmem:[#allocation8 + $0x370] sm:$0xf0] }
 0x8a3   :  { %v20439_v55 = vld [vmem:[#allocation8 + $0xaec] sm:$0xf0] }
 0x8a4   :  { %v18410_v16 = vld [vmem:[#allocation8 + $0xcd0] sm:$0xf]  ;;  %11624 = vmatpush.bf16.msrb.mxu1 %v18187_v40  ;;  %v18155_v63 = vor.u32 %v20439_v55, %v18154_v48  ;;  %11547 = vmatpush.bf16.msrb.mxu3 %v18663_v19  ;;  %v11385_v15 = vpop.f32.mrf.mxu2  ;;  %v20147_v48 = vld [vmem:[#allocation8 + $0x1d4] sm:$0xf] }
 0x8a5   :  { %v20503_v59 = vld [vmem:[#allocation8 + $0xcec] sm:$0xf0]  ;;  %v17004_v55 = vld [vmem:[#allocation8 + $0x1f0] sm:$0xf0] }
 0x8a6   :  { %v17866_v2 = vld [vmem:[#allocation8 + $0x890] sm:$0xf]  ;;  %11637 = vmatpush.bf16.msrb.mxu2 %v18443_v37  ;;  %v18411_v27 = vor.u32 %v20503_v59, %v18410_v16  ;;  %11612 = vmatpush.bf16.msrb.mxu0 %v17899_v1  ;;  %v11292_v16 = vpop.f32.mrf.mxu3  ;;  %v17260_v59 = vld [vmem:[#allocation8 + $0x3f0] sm:$0xf0] }
 0x8a7   :  { %v20367_v23 = vld [vmem:[#allocation8 + $0x8ac] sm:$0xf0]  ;;  %v17420_v15 = vld [vmem:[#allocation8 + $0x530] sm:$0xf0] }
 0x8a8   :  { %v18122_v32 = vld [vmem:[#allocation8 + $0xa90] sm:$0xf]  ;;  %11625 = vmatpush.bf16.msrb.mxu1 %v18155_v63  ;;  %v17867_v0 = vor.u32 %v20367_v23, %v17866_v2  ;;  %11548 = vmatpush.bf16.msrb.mxu3 %v18631_v38  ;;  %v11293_v63 = vadd.f32 %v11292_v16, %v21329_v41  ;;  %v17516_v2 = vld [vmem:[#allocation8 + $0x5f0] sm:$0xf0] }
 0x8a9   :  { %v20431_v54 = vld [vmem:[#allocation8 + $0xaac] sm:$0xf0]  ;;  %v17519_v51 = vor.u32 %v20275_v57, %v17516_v2  ;;  %v17484_v41 = vld [vmem:[#allocation8 + $0x5b0] sm:$0xf0] }
 0x8aa   :  { %v18378_v18 = vld [vmem:[#allocation8 + $0xc90] sm:$0xf]  ;;  %v18123_v10 = vor.u32 %v20431_v54, %v18122_v32  ;;  %11638 = vmatpush.bf16.msrb.mxu2 %v18411_v27  ;;  %11613 = vmatpush.bf16.msrb.mxu0 %v17867_v0  ;;  %v11306_v32 = vadd.f32 %v21335_v46, %v11293_v63  ;;  %v17007_v54 = vor.u32 %v20147_v48, %v17004_v55  ;;  %v16876_v57 = vld [vmem:[#allocation8 + $0xf0] sm:$0xf0] }
 0x8ab   :  { %v20495_v4 = vld [vmem:[#allocation8 + $0xcac] sm:$0xf0]  ;;  %v20179_v63 = vld [vmem:[#allocation8 + $0x2d4] sm:$0xf] }
 0x8ac   :  { %v17834_v6 = vld [vmem:[#allocation8 + $0x850] sm:$0xf]  ;;  %v18379_v26 = vor.u32 %v20495_v4, %v18378_v18  ;;  %11626 = vmatpush.bf16.msrb.mxu1 %v18123_v10  ;;  %11549 = vmatpush.bf16.msrb.mxu3 %v18599_v11  ;;  %v17263_v18 = vor.u32 %v20211_v58, %v17260_v59  ;;  %v16972_v4 = vld [vmem:[#allocation8 + $0x1b0] sm:$0xf0]  ;;  %v21361_v48 = vpop.f32.mrf.mxu0 }
 0x8ad   :  { %v20359_v31 = vld [vmem:[#allocation8 + $0x86c] sm:$0xf0]  ;;  %v16975_v46 = vor.u32 %v20139_v36, %v16972_v4  ;;  %v16940_v11 = vld [vmem:[#allocation8 + $0x170] sm:$0xf0] }
 0x8ae   :  { %v18090_v35 = vld [vmem:[#allocation8 + $0xa50] sm:$0xf]  ;;  %v17835_v39 = vor.u32 %v20359_v31, %v17834_v6  ;;  %11639 = vmatpush.bf16.msrb.mxu2 %v18379_v26  ;;  %v11319_v6 = vadd.f32 %v21337_v49, %v11306_v32  ;;  %v17231_v31 = vor.u32 %v20203_v45, %v17228_v42  ;;  %v20131_v26 = vld [vmem:[#allocation8 + $0x154] sm:$0xf]  ;;  %v21363_v55 = vpop.f32.mrf.mxu1 }
 0x8af   :  { %v20423_v12 = vld [vmem:[#allocation8 + $0xa6c] sm:$0xf0]  ;;  %v17452_v49 = vld [vmem:[#allocation8 + $0x570] sm:$0xf0] }
 0x8b0   :  { %v18346_v29 = vld [vmem:[#allocation8 + $0xc50] sm:$0xf]  ;;  %v18091_v30 = vor.u32 %v20423_v12, %v18090_v35  ;;  %11614 = vmatpush.bf16.msrb.mxu0 %v17835_v39  ;;  %11550 = vmatpush.bf16.msrb.mxu3 %v18567_v53  ;;  %v11332_v35 = vadd.f32 %v21339_v3, %v11319_v6  ;;  %v17487_v12 = vor.u32 %v20267_v25, %v17484_v41  ;;  %v20115_v59 = vld [vmem:[#allocation8 + $0xd4] sm:$0xf] }
 0x8b1   :  { %v20487_v33 = vld [vmem:[#allocation8 + $0xc6c] sm:$0xf0]  ;;  %v16943_v3 = vor.u32 %v20131_v26, %v16940_v11  ;;  %v17132_v2 = vld [vmem:[#allocation8 + $0x2f0] sm:$0xf0] }
 0x8b2   :  { %v17770_v21 = vld [vmem:[#allocation8 + $0x7d0] sm:$0xf]  ;;  %v18347_v7 = vor.u32 %v20487_v33, %v18346_v29  ;;  %11627 = vmatpush.bf16.msrb.mxu1 %v18091_v30  ;;  %v11294_v33 = vpop.f32.mrf.mxu3  ;;  %v17199_v30 = vor.u32 %v20195_v14, %v17196_v8  ;;  %v17135_v36 = vor.u32 %v20179_v63, %v17132_v2  ;;  %v20107_v4 = vld [vmem:[#allocation8 + $0x94] sm:$0xf] }
 0x8b3   :  { %v20343_v24 = vld [vmem:[#allocation8 + $0x7ec] sm:$0xf0]  ;;  %11551 = vmatmul.bf16.vlgmr.msrb.gmra.mxu3 %v21305_v9  ;;  %v20171_v25 = vld [vmem:[#allocation8 + $0x294] sm:$0xf] }
 0x8b4   :  { %v17802_v34 = vld [vmem:[#allocation8 + $0x810] sm:$0xf]  ;;  %v17771_v37 = vor.u32 %v20343_v24, %v17770_v21  ;;  %11640 = vmatpush.bf16.msrb.mxu2 %v18347_v7  ;;  %v20259_v21 = vld [vmem:[#allocation8 + $0x554] sm:$0xf]  ;;  %v11411_v26 = vpop.f32.mrf.mxu0 }
 0x8b5   :  { %v20351_v20 = vld [vmem:[#allocation8 + $0x82c] sm:$0xf0]  ;;  %v17455_v7 = vor.u32 %v20259_v21, %v17452_v49  ;;  %v17100_v41 = vld [vmem:[#allocation8 + $0x2b0] sm:$0xf0] }
 0x8b6   :  { %v18058_v43 = vld [vmem:[#allocation8 + $0xa10] sm:$0xf]  ;;  %v17803_v60 = vor.u32 %v20351_v20, %v17802_v34  ;;  %11595 = vmatpush.bf16.msra.mxu3 %v17771_v37  ;;  %v20123_v34 = vld [vmem:[#allocation8 + $0x114] sm:$0xf]  ;;  %v11424_v11 = vpop.f32.mrf.mxu1 }
 0x8b7   :  { %v20415_v40 = vld [vmem:[#allocation8 + $0xa2c] sm:$0xf0]  ;;  %v16908_v20 = vld [vmem:[#allocation8 + $0x130] sm:$0xf0] }
 0x8b8   :  { %v18314_v47 = vld [vmem:[#allocation8 + $0xc10] sm:$0xf]  ;;  %v18059_v1 = vor.u32 %v20415_v40, %v18058_v43  ;;  %11615 = vmatpush.bf16.msrb.mxu0 %v17803_v60  ;;  %v20187_v43 = vld [vmem:[#allocation8 + $0x314] sm:$0xf]  ;;  %v16911_v16 = vor.u32 %v20123_v34, %v16908_v20 }
 0x8b9   :  { %v20479_v19 = vld [vmem:[#allocation8 + $0xc2c] sm:$0xf0]  ;;  %v17164_v40 = vld [vmem:[#allocation8 + $0x330] sm:$0xf0] }
 0x8ba   :  { %v17738_v23 = vld [vmem:[#allocation8 + $0x790] sm:$0xf]  ;;  %v18315_v38 = vor.u32 %v20479_v19, %v18314_v47  ;;  %11628 = vmatpush.bf16.msrb.mxu1 %v18059_v1  ;;  %v20251_v47 = vld [vmem:[#allocation8 + $0x514] sm:$0xf]  ;;  %v17167_v58 = vor.u32 %v20187_v43, %v17164_v40 }
 0x8bb   :  { %v20335_v27 = vld [vmem:[#allocation8 + $0x7ac] sm:$0xf0]  ;;  %11616 = vmatmul.bf16.vlgmr.msrb.gmra.mxu0 %v21265_v56  ;;  %v17423_v60 = vor.u32 %v20251_v47, %v17420_v15  ;;  %v17356_v6 = vld [vmem:[#allocation8 + $0x4b0] sm:$0xf0] }
 0x8bc   :  { %v17739_v5 = vor.u32 %v20335_v27, %v17738_v23  ;;  %v17706_v0 = vld [vmem:[#allocation8 + $0x750] sm:$0xf]  ;;  %11641 = vmatpush.bf16.msrb.mxu2 %v18315_v38  ;;  %11660 = vmatpush.bf16.msra.mxu0 %v17007_v54  ;;  %v20243_v23 = vld [vmem:[#allocation8 + $0x4d4] sm:$0xf]  ;;  %v11344_v54 = vpop.f32.mrf.mxu3 }
 0x8bd   :  { %v20327_v10 = vld [vmem:[#allocation8 + $0x76c] sm:$0xf0]  ;;  %11629 = vmatmul.bf16.vlgmr.msrb.gmra.mxu1 %v21267_v50  ;;  %v17388_v27 = vld [vmem:[#allocation8 + $0x4f0] sm:$0xf0] }
 0x8be   :  { %11673 = vmatpush.bf16.msra.mxu1 %v17263_v18  ;;  %11596 = vmatpush.bf16.msra.mxu3 %v17739_v5  ;;  %v17707_v29 = vor.u32 %v20327_v10, %v17706_v0  ;;  %v17674_v24 = vld [vmem:[#allocation8 + $0x710] sm:$0xf]  ;;  %v16879_v18 = vor.u32 %v20115_v59, %v16876_v57  ;;  %v21365_v5 = vadd.f32 %v11344_v54, %v11332_v35  ;;  %v20235_v0 = vld [vmem:[#allocation8 + $0x494] sm:$0xf]  ;;  %v21367_v10 = vpop.f32.mrf.mxu2 }
 0x8bf   :  { %v20319_v39 = vld [vmem:[#allocation8 + $0x72c] sm:$0xf0]  ;;  %11642 = vmatmul.bf16.vlgmr.msrb.gmra.mxu2 %v21269_v52  ;;  %v17391_v45 = vor.u32 %v20243_v23, %v17388_v27  ;;  %v20099_v33 = vld [vmem:[#allocation8 + $0x54] sm:$0xf]  ;;  %v17359_v35 = vor.u32 %v20235_v0, %v17356_v6 }
 0x8c0   :  { %11686 = vmatpush.bf16.msra.mxu2 %v17519_v51  ;;  %11661 = vmatpush.bf16.msra.mxu0 %v16975_v46  ;;  %v17675_v53 = vor.u32 %v20319_v39, %v17674_v24  ;;  %v17642_v37 = vld [vmem:[#allocation8 + $0x6d0] sm:$0xf]  ;;  %v16844_v51 = vld [vmem:[#allocation8 + $0xb0] sm:$0xf0]  ;;  %vm11973_vm9 = vcmp.gt.f32.partialorder %v21365_v5, 0.0 }
 0x8c1   :  { %v20311_v19 = vld [vmem:[#allocation8 + $0x6ec] sm:$0xf0]  ;;  %v16812_v14 = vld [vmem:[#allocation8 + $0x70] sm:$0xf0] }
 0x8c2   :  { %11674 = vmatpush.bf16.msra.mxu1 %v17231_v31  ;;  %11597 = vmatpush.bf16.msra.mxu3 %v17707_v29  ;;  %v17643_v1 = vor.u32 %v20311_v19, %v17642_v37  ;;  %v17610_v38 = vld [vmem:[#allocation8 + $0x690] sm:$0xf]  ;;  %v17103_v29 = vor.u32 %v20171_v25, %v17100_v41  ;;  %v20163_v21 = vld [vmem:[#allocation8 + $0x254] sm:$0xf] }
 0x8c3   :  { %v20303_v32 = vld [vmem:[#allocation8 + $0x6ac] sm:$0xf0]  ;;  %v17068_v49 = vld [vmem:[#allocation8 + $0x270] sm:$0xf0] }
 0x8c4   :  { %11687 = vmatpush.bf16.msra.mxu2 %v17487_v12  ;;  %11662 = vmatpush.bf16.msra.mxu0 %v16943_v3  ;;  %v17611_v42 = vor.u32 %v20303_v32, %v17610_v38  ;;  %v17578_v46 = vld [vmem:[#allocation8 + $0x650] sm:$0xf]  ;;  %v16847_v12 = vor.u32 %v20107_v4, %v16844_v51  ;;  %v20227_v24 = vld [vmem:[#allocation8 + $0x454] sm:$0xf]  ;;  %v17071_v43 = vor.u32 %v20163_v21, %v17068_v49 }
 0x8c5   :  { %v20295_v31 = vld [vmem:[#allocation8 + $0x66c] sm:$0xf0]  ;;  %v17324_v39 = vld [vmem:[#allocation8 + $0x470] sm:$0xf0] }
 0x8c6   :  { %11675 = vmatpush.bf16.msra.mxu1 %v17199_v30  ;;  %11598 = vmatpush.bf16.msra.mxu3 %v17675_v53  ;;  %v17579_v8 = vor.u32 %v20295_v31, %v17578_v46  ;;  %v17546_v3 = vld [vmem:[#allocation8 + $0x610] sm:$0xf]  ;;  %v16815_v53 = vor.u32 %v20099_v33, %v16812_v14  ;;  %v20091_v40 = vld [vmem:[#allocation8 + $0x14] sm:$0xf]  ;;  %v17327_v15 = vor.u32 %v20227_v24, %v17324_v39  ;;  %v11437_v59 = vpop.f32.mrf.mxu2 }
 0x8c7   :  { %v20287_v30 = vld [vmem:[#allocation8 + $0x62c] sm:$0xf0]  ;;  %v16780_v47 = vld [vmem:[#allocation8 + $0x30] sm:$0xf0] }
 0x8c8   :  { %11688 = vmatpush.bf16.msra.mxu2 %v17455_v7  ;;  %11663 = vmatpush.bf16.msra.mxu0 %v16911_v16  ;;  %v18794_v34 = vld [vmem:[#allocation8 + $0xfd0] sm:$0xf]  ;;  %v11346_v7 = vpop.f32.mrf.mxu3  ;;  %v17547_v37 = vor.u32 %v20287_v30, %v17546_v3  ;;  %v20155_v19 = vld [vmem:[#allocation8 + $0x214] sm:$0xf]  ;;  %v16783_v38 = vor.u32 %v20091_v40, %v16780_v47 }
 0x8c9   :  { %v20599_v20 = vld [vmem:[#allocation8 + $0xfec] sm:$0xf0]  ;;  %v17036_v16 = vld [vmem:[#allocation8 + $0x230] sm:$0xf0] }
 0x8ca   :  { %11676 = vmatpush.bf16.msra.mxu1 %v17167_v58  ;;  %11599 = vmatpush.bf16.msra.mxu3 %v17643_v1  ;;  %v20219_v58 = vld [vmem:[#allocation8 + $0x414] sm:$0xf]  ;;  %v18795_v57 = vor.u32 %v20599_v20, %v18794_v34  ;;  %v17039_v32 = vor.u32 %v20155_v19, %v17036_v16  ;;  %v18730_v11 = vld [vmem:[#allocation8 + $0xf50] sm:$0xf] }
 0x8cb   :  { %v20403_v1 = vld [vmem:[#allocation8 + $0x9d4] sm:$0xf]  ;;  %v18698_v30 = vld [vmem:[#allocation8 + $0xf10] sm:$0xf] }
 0x8cc   :  { %11689 = vmatpush.bf16.msra.mxu2 %v17423_v60  ;;  %11664 = vmatpush.bf16.msra.mxu0 %v16879_v18  ;;  %v17292_v60 = vld [vmem:[#allocation8 + $0x430] sm:$0xf0]  ;;  %v18762_v18 = vld [vmem:[#allocation8 + $0xf90] sm:$0xf] }
 0x8cd   :  { %v18028_v63 = vld [vmem:[#allocation8 + $0x9f0] sm:$0xf0]  ;;  %v17295_v4 = vor.u32 %v20219_v58, %v17292_v60  ;;  %v20575_v34 = vld [vmem:[#allocation8 + $0xf2c] sm:$0xf0]  ;;  %v11461_v60 = vpop.f32.mrf.mxu0 }
 0x8ce   :  { %11677 = vmatpush.bf16.msra.mxu1 %v17135_v36  ;;  %11600 = vmatpush.bf16.msra.mxu3 %v17611_v42  ;;  %v20467_v2 = vld [vmem:[#allocation8 + $0xbd4] sm:$0xf]  ;;  %v20591_v36 = vld [vmem:[#allocation8 + $0xfac] sm:$0xf0]  ;;  %v18031_v51 = vor.u32 %v20403_v1, %v18028_v63  ;;  %v11474_v1 = vpop.f32.mrf.mxu1 }
 0x8cf   :  { %v18284_v23 = vld [vmem:[#allocation8 + $0xbf0] sm:$0xf0]  ;;  %v18763_v0 = vor.u32 %v20591_v36, %v18762_v18  ;;  %v18666_v59 = vld [vmem:[#allocation8 + $0xed0] sm:$0xf] }
 0x8d0   :  { %11690 = vmatpush.bf16.msra.mxu2 %v17391_v45  ;;  %11665 = vmatpush.bf16.msra.mxu0 %v16847_v12  ;;  %v20531_v27 = vld [vmem:[#allocation8 + $0xdd4] sm:$0xf]  ;;  %v18287_v45 = vor.u32 %v20467_v2, %v18284_v23  ;;  %v20583_v12 = vld [vmem:[#allocation8 + $0xf6c] sm:$0xf0] }
 0x8d1   :  { %v18540_v54 = vld [vmem:[#allocation8 + $0xdf0] sm:$0xf0]  ;;  %v18731_v21 = vor.u32 %v20583_v12, %v18730_v11 }
 0x8d2   :  { %11678 = vmatpush.bf16.msra.mxu1 %v17103_v29  ;;  %11601 = vmatpush.bf16.msra.mxu3 %v17579_v8  ;;  %v20395_v42 = vld [vmem:[#allocation8 + $0x994] sm:$0xf]  ;;  %v18543_v41 = vor.u32 %v20531_v27, %v18540_v54 }
 0x8d3   :  { %v17996_v25 = vld [vmem:[#allocation8 + $0x9b0] sm:$0xf0] }
 0x8d4   :  { %11691 = vmatpush.bf16.msra.mxu2 %v17359_v35  ;;  %11666 = vmatpush.bf16.msra.mxu0 %v16815_v53  ;;  %v20459_v6 = vld [vmem:[#allocation8 + $0xb94] sm:$0xf]  ;;  %v17999_v29 = vor.u32 %v20395_v42, %v17996_v25  ;;  %v8567_v53 = vperm.slane %v21345_v28, 3  ;;  %v18634_v42 = vld [vmem:[#allocation8 + $0xe90] sm:$0xf] }
 0x8d5   :  { %v18252_v46 = vld [vmem:[#allocation8 + $0xbb0] sm:$0xf0]  ;;  %v20559_v25 = vld [vmem:[#allocation8 + $0xeac] sm:$0xf0] }
 0x8d6   :  { %11679 = vmatpush.bf16.msra.mxu1 %v17071_v43  ;;  %11602 = vmatpush.bf16.msra.mxu3 %v17547_v37  ;;  %v20523_v31 = vld [vmem:[#allocation8 + $0xd94] sm:$0xf]  ;;  %v18255_v33 = vor.u32 %v20459_v6, %v18252_v46  ;;  %v11462_v63 = vadd.f32 %v11461_v60, %v8567_v53  ;;  %v18635_v12 = vor.u32 %v20559_v25, %v18634_v42 }
 0x8d7   :  { %v18508_v26 = vld [vmem:[#allocation8 + $0xdb0] sm:$0xf0] }
 0x8d8   :  { %11692 = vmatpush.bf16.msra.mxu2 %v17327_v15  ;;  %11667 = vmatpush.bf16.msra.mxu0 %v16783_v38  ;;  %v20387_v14 = vld [vmem:[#allocation8 + $0x954] sm:$0xf]  ;;  %v18511_v8 = vor.u32 %v20523_v31, %v18508_v26  ;;  %v18699_v15 = vor.u32 %v20575_v34, %v18698_v30 }
 0x8d9   :  { %11603 = vmatmul.bf16.vlgmr.msra.gmra.mxu3 %v21241_v61  ;;  %v17964_v35 = vld [vmem:[#allocation8 + $0x970] sm:$0xf0] }
 0x8da   :  { %11647 = vmatpush.bf16.msrb.mxu3 %v18795_v57  ;;  %11680 = vmatpush.bf16.msra.mxu1 %v17039_v32  ;;  %v20451_v49 = vld [vmem:[#allocation8 + $0xb54] sm:$0xf]  ;;  %v17967_v20 = vor.u32 %v20387_v14, %v17964_v35  ;;  %v20567_v57 = vld [vmem:[#allocation8 + $0xeec] sm:$0xf0]  ;;  %v11487_v35 = vpop.f32.mrf.mxu2 }
 0x8db   :  { %v18220_v24 = vld [vmem:[#allocation8 + $0xb70] sm:$0xf0]  ;;  %11668 = vmatmul.bf16.vlgmr.msra.gmra.mxu0 %v21233_v62  ;;  %v18667_v32 = vor.u32 %v20567_v57, %v18666_v59 }
 0x8dc   :  { %11693 = vmatpush.bf16.msra.mxu2 %v17295_v4  ;;  %11712 = vmatpush.bf16.msrb.mxu0 %v18031_v51  ;;  %v20515_v39 = vld [vmem:[#allocation8 + $0xd54] sm:$0xf]  ;;  %v18223_v7 = vor.u32 %v20451_v49, %v18220_v24  ;;  %v11475_v4 = vadd.f32 %v11474_v1, %v11462_v63  ;;  %v11396_v51 = vpop.f32.mrf.mxu3  ;;  %v20551_v49 = vld [vmem:[#allocation8 + $0xe6c] sm:$0xf0]  ;;  %v11463_v24 = vpop.f32.mrf.mxu0 }
 0x8dd   :  { %11681 = vmatmul.bf16.vlgmr.msra.gmra.mxu1 %v21237_v17  ;;  %v18476_v3 = vld [vmem:[#allocation8 + $0xd70] sm:$0xf0] }
 0x8de   :  { %11725 = vmatpush.bf16.msrb.mxu1 %v18287_v45  ;;  %11648 = vmatpush.bf16.msrb.mxu3 %v18763_v0  ;;  %v20379_v43 = vld [vmem:[#allocation8 + $0x914] sm:$0xf]  ;;  %v18479_v47 = vor.u32 %v20515_v39, %v18476_v3  ;;  %v11476_v39 = vpop.f32.mrf.mxu1 }
 0x8df   :  { %11694 = vmatmul.bf16.vlgmr.msra.gmra.mxu2 %v21239_v22  ;;  %v17932_v40 = vld [vmem:[#allocation8 + $0x930] sm:$0xf0] }
 0x8e0   :  { %11738 = vmatpush.bf16.msrb.mxu2 %v18543_v41  ;;  %11713 = vmatpush.bf16.msrb.mxu0 %v17999_v29  ;;  %v20443_v37 = vld [vmem:[#allocation8 + $0xb14] sm:$0xf]  ;;  %v17935_v2 = vor.u32 %v20379_v43, %v17932_v40  ;;  %v11397_v41 = vadd.f32 %v11396_v51, %v21351_v13  ;;  %v21376_v13 = vadd.f32 %v11487_v35, %v11475_v4  ;;  %v17266_v4 = vld [vmem:[#allocation8 + $0x3d8] sm:$0xf] }
 0x8e1   :  { %v18188_v19 = vld [vmem:[#allocation8 + $0xb30] sm:$0xf0]  ;;  %v20216_v51 = vld [vmem:[#allocation8 + $0x3f4] sm:$0xf0] }
 0x8e2   :  { %11726 = vmatpush.bf16.msrb.mxu1 %v18255_v33  ;;  %11649 = vmatpush.bf16.msrb.mxu3 %v18731_v21  ;;  %v20507_v16 = vld [vmem:[#allocation8 + $0xd14] sm:$0xf]  ;;  %v18191_v23 = vor.u32 %v20443_v37, %v18188_v19  ;;  %v11410_v26 = vadd.f32 %v21361_v48, %v11397_v41  ;;  %v18602_v21 = vld [vmem:[#allocation8 + $0xe50] sm:$0xf]  ;;  %v20280_v41 = vld [vmem:[#allocation8 + $0x5f4] sm:$0xf0] }
 0x8e3   :  { %v18444_v58 = vld [vmem:[#allocation8 + $0xd30] sm:$0xf0]  ;;  %v18603_v53 = vor.u32 %v20551_v49, %v18602_v21  ;;  %v20208_v35 = vld [vmem:[#allocation8 + $0x3b4] sm:$0xf0] }
 0x8e4   :  { %11739 = vmatpush.bf16.msrb.mxu2 %v18511_v8  ;;  %11714 = vmatpush.bf16.msrb.mxu0 %v17967_v20  ;;  %v20371_v28 = vld [vmem:[#allocation8 + $0x8d4] sm:$0xf]  ;;  %v18447_v38 = vor.u32 %v20507_v16, %v18444_v58  ;;  %v11423_v3 = vadd.f32 %v21363_v55, %v11410_v26  ;;  %v11398_v37 = vpop.f32.mrf.mxu3  ;;  %v18570_v16 = vld [vmem:[#allocation8 + $0xe10] sm:$0xf]  ;;  %v17267_v26 = vor.u32 %v20216_v51, %v17266_v4  ;;  %v20272_v21 = vld [vmem:[#allocation8 + $0x5b4] sm:$0xf0] }
 0x8e5   :  { %v17900_v27 = vld [vmem:[#allocation8 + $0x8f0] sm:$0xf0]  ;;  %v20543_v55 = vld [vmem:[#allocation8 + $0xe2c] sm:$0xf0]  ;;  %v17138_v51 = vld [vmem:[#allocation8 + $0x2d8] sm:$0xf] }
 0x8e6   :  { %11727 = vmatpush.bf16.msrb.mxu1 %v18223_v7  ;;  %11650 = vmatpush.bf16.msrb.mxu3 %v18699_v15  ;;  %v20435_v54 = vld [vmem:[#allocation8 + $0xad4] sm:$0xf]  ;;  %v17903_v0 = vor.u32 %v20371_v28, %v17900_v27  ;;  %v21380_v15 = vadd.f32 %v21367_v10, %v11423_v3 }
 0x8e7   :  { %v18156_v18 = vld [vmem:[#allocation8 + $0xaf0] sm:$0xf0] }
 0x8e8   :  { %11740 = vmatpush.bf16.msrb.mxu2 %v18479_v47  ;;  %v20499_v36 = vld [vmem:[#allocation8 + $0xcd4] sm:$0xf]  ;;  %11715 = vmatpush.bf16.msrb.mxu0 %v17935_v2  ;;  %v18159_v6 = vor.u32 %v20435_v54, %v18156_v18  ;;  %v17010_v18 = vld [vmem:[#allocation8 + $0x1d8] sm:$0xf] }
 0x8e9   :  { %v18412_v45 = vld [vmem:[#allocation8 + $0xcf0] sm:$0xf0] }
 0x8ea   :  { %11728 = vmatpush.bf16.msrb.mxu1 %v18191_v23  ;;  %v20363_v46 = vld [vmem:[#allocation8 + $0x894] sm:$0xf]  ;;  %11651 = vmatpush.bf16.msrb.mxu3 %v18667_v32  ;;  %v18415_v11 = vor.u32 %v20499_v36, %v18412_v45  ;;  %v18571_v23 = vor.u32 %v20543_v55, %v18570_v16  ;;  %v20152_v36 = vld [vmem:[#allocation8 + $0x1f4] sm:$0xf0] }
 0x8eb   :  { %v17868_v31 = vld [vmem:[#allocation8 + $0x8b0] sm:$0xf0]  ;;  %v17522_v45 = vld [vmem:[#allocation8 + $0x5d8] sm:$0xf] }
 0x8ec   :  { %11741 = vmatpush.bf16.msrb.mxu2 %v18447_v38  ;;  %v20427_v29 = vld [vmem:[#allocation8 + $0xa94] sm:$0xf]  ;;  %11716 = vmatpush.bf16.msrb.mxu0 %v17903_v0  ;;  %v17871_v30 = vor.u32 %v20363_v46, %v17868_v31  ;;  %v11489_v38 = vpop.f32.mrf.mxu2  ;;  %v17011_v31 = vor.u32 %v20152_v36, %v17010_v18  ;;  %v16914_v55 = vld [vmem:[#allocation8 + $0x118] sm:$0xf] }
 0x8ed   :  { %v18124_v33 = vld [vmem:[#allocation8 + $0xab0] sm:$0xf0]  ;;  %v20120_v18 = vld [vmem:[#allocation8 + $0xf4] sm:$0xf0] }
 0x8ee   :  { %v20491_v14 = vld [vmem:[#allocation8 + $0xc94] sm:$0xf]  ;;  %11729 = vmatpush.bf16.msrb.mxu1 %v18159_v6  ;;  %v18127_v34 = vor.u32 %v20427_v29, %v18124_v33  ;;  %11652 = vmatpush.bf16.msrb.mxu3 %v18635_v12  ;;  %v20144_v12 = vld [vmem:[#allocation8 + $0x1b4] sm:$0xf0]  ;;  %v17523_v29 = vor.u32 %v20280_v41, %v17522_v45 }
 0x8ef   :  { %v18380_v8 = vld [vmem:[#allocation8 + $0xcb0] sm:$0xf0]  ;;  %v20184_v45 = vld [vmem:[#allocation8 + $0x2f4] sm:$0xf0] }
 0x8f0   :  { %v20355_v48 = vld [vmem:[#allocation8 + $0x854] sm:$0xf]  ;;  %11742 = vmatpush.bf16.msrb.mxu2 %v18415_v11  ;;  %v18383_v7 = vor.u32 %v20491_v14, %v18380_v8  ;;  %11717 = vmatpush.bf16.msrb.mxu0 %v17871_v30  ;;  %v16978_v11 = vld [vmem:[#allocation8 + $0x198] sm:$0xf] }
 0x8f1   :  { %v17836_v20 = vld [vmem:[#allocation8 + $0x870] sm:$0xf0]  ;;  %v17234_v14 = vld [vmem:[#allocation8 + $0x398] sm:$0xf]  ;;  %v16979_v39 = vor.u32 %v20144_v12, %v16978_v11 }
 0x8f2   :  { %v20419_v43 = vld [vmem:[#allocation8 + $0xa54] sm:$0xf]  ;;  %11730 = vmatpush.bf16.msrb.mxu1 %v18127_v34  ;;  %v17839_v57 = vor.u32 %v20355_v48, %v17836_v20  ;;  %11653 = vmatpush.bf16.msrb.mxu3 %v18603_v53  ;;  %v17490_v8 = vld [vmem:[#allocation8 + $0x598] sm:$0xf]  ;;  %v17235_v3 = vor.u32 %v20208_v35, %v17234_v14 }
 0x8f3   :  { %v18092_v40 = vld [vmem:[#allocation8 + $0xa70] sm:$0xf0]  ;;  %v16946_v30 = vld [vmem:[#allocation8 + $0x158] sm:$0xf]  ;;  %v17491_v48 = vor.u32 %v20272_v21, %v17490_v8 }
 0x8f4   :  { %v20483_v47 = vld [vmem:[#allocation8 + $0xc54] sm:$0xf]  ;;  %v18095_v60 = vor.u32 %v20419_v43, %v18092_v40  ;;  %11743 = vmatpush.bf16.msrb.mxu2 %v18383_v7  ;;  %11718 = vmatpush.bf16.msrb.mxu0 %v17839_v57  ;;  %v20136_v34 = vld [vmem:[#allocation8 + $0x174] sm:$0xf0] }
 0x8f5   :  { %v18348_v19 = vld [vmem:[#allocation8 + $0xc70] sm:$0xf0]  ;;  %v17202_v7 = vld [vmem:[#allocation8 + $0x358] sm:$0xf] }
 0x8f6   :  { %v20339_v58 = vld [vmem:[#allocation8 + $0x7d4] sm:$0xf]  ;;  %v18351_v2 = vor.u32 %v20483_v47, %v18348_v19  ;;  %11731 = vmatpush.bf16.msrb.mxu1 %v18095_v60  ;;  %11654 = vmatpush.bf16.msrb.mxu3 %v18571_v23  ;;  %v20200_v53 = vld [vmem:[#allocation8 + $0x374] sm:$0xf0]  ;;  %v16947_v19 = vor.u32 %v20136_v34, %v16946_v30 }
 0x8f7   :  { %v17772_v59 = vld [vmem:[#allocation8 + $0x7f0] sm:$0xf0]  ;;  %v17458_v43 = vld [vmem:[#allocation8 + $0x558] sm:$0xf]  ;;  %v17203_v16 = vor.u32 %v20200_v53, %v17202_v7 }
 0x8f8   :  { %v20347_v1 = vld [vmem:[#allocation8 + $0x814] sm:$0xf]  ;;  %v17775_v32 = vor.u32 %v20339_v58, %v17772_v59  ;;  %11744 = vmatpush.bf16.msrb.mxu2 %v18351_v2  ;;  %v20264_v40 = vld [vmem:[#allocation8 + $0x574] sm:$0xf0] }
 0x8f9   :  { %v17804_v63 = vld [vmem:[#allocation8 + $0x830] sm:$0xf0]  ;;  %11655 = vmatmul.bf16.vlgmr.msrb.gmra.mxu3 %v21305_v9  ;;  %v20128_v58 = vld [vmem:[#allocation8 + $0x134] sm:$0xf0]  ;;  %v17459_v59 = vor.u32 %v20264_v40, %v17458_v43 }
 0x8fa   :  { %v20411_v28 = vld [vmem:[#allocation8 + $0xa14] sm:$0xf]  ;;  %v17807_v42 = vor.u32 %v20347_v1, %v17804_v63  ;;  %11699 = vmatpush.bf16.msra.mxu3 %v17775_v32  ;;  %v17170_v60 = vld [vmem:[#allocation8 + $0x318] sm:$0xf]  ;;  %v16915_v38 = vor.u32 %v20128_v58, %v16914_v55 }
 0x8fb   :  { %v18060_v27 = vld [vmem:[#allocation8 + $0xa30] sm:$0xf0]  ;;  %v20192_v1 = vld [vmem:[#allocation8 + $0x334] sm:$0xf0] }
 0x8fc   :  { %v20475_v10 = vld [vmem:[#allocation8 + $0xc14] sm:$0xf]  ;;  %v18063_v25 = vor.u32 %v20411_v28, %v18060_v27  ;;  %11719 = vmatpush.bf16.msrb.mxu0 %v17807_v42  ;;  %v17426_v63 = vld [vmem:[#allocation8 + $0x518] sm:$0xf]  ;;  %v21386_v27 = vpop.f32.mrf.mxu0  ;;  %v17171_v32 = vor.u32 %v20192_v1, %v17170_v60  ;;  %v21393_v21 = vpop.f32.mrf.mxu2 }
 0x8fd   :  { %v18316_v54 = vld [vmem:[#allocation8 + $0xc30] sm:$0xf0]  ;;  %v20256_v2 = vld [vmem:[#allocation8 + $0x534] sm:$0xf0] }
 0x8fe   :  { %v20331_v0 = vld [vmem:[#allocation8 + $0x794] sm:$0xf]  ;;  %v18319_v46 = vor.u32 %v20475_v10, %v18316_v54  ;;  %11732 = vmatpush.bf16.msrb.mxu1 %v18063_v25  ;;  %v21388_v10 = vpop.f32.mrf.mxu1  ;;  %v16882_v54 = vld [vmem:[#allocation8 + $0xd8] sm:$0xf]  ;;  %v17427_v36 = vor.u32 %v20256_v2, %v17426_v63  ;;  %v11448_v25 = vpop.f32.mrf.mxu3 }
 0x8ff   :  { %v17740_v6 = vld [vmem:[#allocation8 + $0x7b0] sm:$0xf0]  ;;  %11720 = vmatmul.bf16.vlgmr.msrb.gmra.mxu0 %v21265_v56  ;;  %v17394_v42 = vld [vmem:[#allocation8 + $0x4d8] sm:$0xf] }
 0x900   :  { %v17743_v33 = vor.u32 %v20331_v0, %v17740_v6  ;;  %v20323_v49 = vld [vmem:[#allocation8 + $0x754] sm:$0xf]  ;;  %11745 = vmatpush.bf16.msrb.mxu2 %v18319_v46  ;;  %11764 = vmatpush.bf16.msra.mxu0 %v17011_v31  ;;  %v20248_v41 = vld [vmem:[#allocation8 + $0x4f4] sm:$0xf0]  ;;  %v21391_v46 = vadd.f32 %v11448_v25, %v21380_v15  ;;  %v16883_v31 = vor.u32 %v20120_v18, %v16882_v54 }
 0x901   :  { %v17708_v24 = vld [vmem:[#allocation8 + $0x770] sm:$0xf0]  ;;  %11733 = vmatmul.bf16.vlgmr.msrb.gmra.mxu1 %v21267_v50  ;;  %v16850_v11 = vld [vmem:[#allocation8 + $0x98] sm:$0xf] }
 0x902   :  { %11777 = vmatpush.bf16.msra.mxu1 %v17267_v26  ;;  %11700 = vmatpush.bf16.msra.mxu3 %v17743_v33  ;;  %v17711_v20 = vor.u32 %v20323_v49, %v17708_v24  ;;  %v20315_v47 = vld [vmem:[#allocation8 + $0x714] sm:$0xf]  ;;  %v17139_v26 = vor.u32 %v20184_v45, %v17138_v51  ;;  %v20112_v12 = vld [vmem:[#allocation8 + $0xb4] sm:$0xf0]  ;;  %vm11974_vm10 = vcmp.gt.f32.partialorder %v21391_v46, 0.0 }
 0x903   :  { %v17676_v37 = vld [vmem:[#allocation8 + $0x730] sm:$0xf0]  ;;  %11746 = vmatmul.bf16.vlgmr.msrb.gmra.mxu2 %v21269_v52  ;;  %v17106_v14 = vld [vmem:[#allocation8 + $0x298] sm:$0xf]  ;;  %v16851_v30 = vor.u32 %v20112_v12, %v16850_v11 }
 0x904   :  { %11790 = vmatpush.bf16.msra.mxu2 %v17523_v29  ;;  %11765 = vmatpush.bf16.msra.mxu0 %v16979_v39  ;;  %v17679_v57 = vor.u32 %v20315_v47, %v17676_v37  ;;  %v20307_v23 = vld [vmem:[#allocation8 + $0x6d4] sm:$0xf]  ;;  %v17395_v29 = vor.u32 %v20248_v41, %v17394_v42  ;;  %v20176_v35 = vld [vmem:[#allocation8 + $0x2b4] sm:$0xf0]  ;;  %v11515_v15 = vpop.f32.mrf.mxu0  ;;  %v11541_v54 = vpop.f32.mrf.mxu2 }
 0x905   :  { %v17644_v28 = vld [vmem:[#allocation8 + $0x6f0] sm:$0xf0]  ;;  %v17362_v8 = vld [vmem:[#allocation8 + $0x498] sm:$0xf]  ;;  %v17107_v34 = vor.u32 %v20176_v35, %v17106_v14 }
 0x906   :  { %11778 = vmatpush.bf16.msra.mxu1 %v17235_v3  ;;  %11701 = vmatpush.bf16.msra.mxu3 %v17711_v20  ;;  %v17647_v4 = vor.u32 %v20307_v23, %v17644_v28  ;;  %v20299_v0 = vld [vmem:[#allocation8 + $0x694] sm:$0xf]  ;;  %v20240_v49 = vld [vmem:[#allocation8 + $0x4b4] sm:$0xf0]  ;;  %v11528_v3 = vpop.f32.mrf.mxu1  ;;  %v11450_v37 = vpop.f32.mrf.mxu3 }
 0x907   :  { %v17612_v6 = vld [vmem:[#allocation8 + $0x6b0] sm:$0xf0]  ;;  %v20104_v20 = vld [vmem:[#allocation8 + $0x74] sm:$0xf0]  ;;  %v17363_v7 = vor.u32 %v20240_v49, %v17362_v8 }
 0x908   :  { %11791 = vmatpush.bf16.msra.mxu2 %v17491_v48  ;;  %11766 = vmatpush.bf16.msra.mxu0 %v16947_v19  ;;  %v17615_v33 = vor.u32 %v20299_v0, %v17612_v6  ;;  %v20291_v24 = vld [vmem:[#allocation8 + $0x654] sm:$0xf]  ;;  %v16818_v48 = vld [vmem:[#allocation8 + $0x58] sm:$0xf] }
 0x909   :  { %v17580_v39 = vld [vmem:[#allocation8 + $0x670] sm:$0xf0]  ;;  %v17074_v43 = vld [vmem:[#allocation8 + $0x258] sm:$0xf] }
 0x90a   :  { %11779 = vmatpush.bf16.msra.mxu1 %v17203_v16  ;;  %11702 = vmatpush.bf16.msra.mxu3 %v17679_v57  ;;  %v17583_v53 = vor.u32 %v20291_v24, %v17580_v39  ;;  %v20168_v40 = vld [vmem:[#allocation8 + $0x274] sm:$0xf0]  ;;  %v20283_v16 = vld [vmem:[#allocation8 + $0x614] sm:$0xf]  ;;  %v16819_v57 = vor.u32 %v20104_v20, %v16818_v48 }
 0x90b   :  { %v17330_v47 = vld [vmem:[#allocation8 + $0x458] sm:$0xf]  ;;  %v17548_v55 = vld [vmem:[#allocation8 + $0x630] sm:$0xf0]  ;;  %v17075_v60 = vor.u32 %v20168_v40, %v17074_v43 }
 0x90c   :  { %11792 = vmatpush.bf16.msra.mxu2 %v17459_v59  ;;  %11767 = vmatpush.bf16.msra.mxu0 %v16915_v38  ;;  %v20232_v19 = vld [vmem:[#allocation8 + $0x474] sm:$0xf0]  ;;  %v20595_v58 = vld [vmem:[#allocation8 + $0xfd4] sm:$0xf]  ;;  %v17551_v23 = vor.u32 %v20283_v16, %v17548_v55 }
 0x90d   :  { %v18796_v59 = vld [vmem:[#allocation8 + $0xff0] sm:$0xf0]  ;;  %v16786_v1 = vld [vmem:[#allocation8 + $0x18] sm:$0xf]  ;;  %v17331_v2 = vor.u32 %v20232_v19, %v17330_v47 }
 0x90e   :  { %11780 = vmatpush.bf16.msra.mxu1 %v17171_v32  ;;  %11703 = vmatpush.bf16.msra.mxu3 %v17647_v4  ;;  %v20096_v63 = vld [vmem:[#allocation8 + $0x34] sm:$0xf0]  ;;  %v18799_v18 = vor.u32 %v20595_v58, %v18796_v59  ;;  %v20579_v3 = vld [vmem:[#allocation8 + $0xf54] sm:$0xf] }
 0x90f   :  { %v17042_v28 = vld [vmem:[#allocation8 + $0x218] sm:$0xf]  ;;  %v16787_v41 = vor.u32 %v20096_v63, %v16786_v1  ;;  %v20571_v16 = vld [vmem:[#allocation8 + $0xf14] sm:$0xf] }
 0x910   :  { %11793 = vmatpush.bf16.msra.mxu2 %v17427_v36  ;;  %11768 = vmatpush.bf16.msra.mxu0 %v16883_v31  ;;  %v20160_v38 = vld [vmem:[#allocation8 + $0x234] sm:$0xf0]  ;;  %v20587_v31 = vld [vmem:[#allocation8 + $0xf94] sm:$0xf] }
 0x911   :  { %v17298_v32 = vld [vmem:[#allocation8 + $0x418] sm:$0xf]  ;;  %v17043_v0 = vor.u32 %v20160_v38, %v17042_v28  ;;  %v18700_v55 = vld [vmem:[#allocation8 + $0xf30] sm:$0xf0] }
 0x912   :  { %11781 = vmatpush.bf16.msra.mxu1 %v17139_v26  ;;  %11704 = vmatpush.bf16.msra.mxu3 %v17615_v33  ;;  %v20224_v36 = vld [vmem:[#allocation8 + $0x434] sm:$0xf0]  ;;  %v18764_v26 = vld [vmem:[#allocation8 + $0xfb0] sm:$0xf0] }
 0x913   :  { %v18034_v4 = vld [vmem:[#allocation8 + $0x9d8] sm:$0xf]  ;;  %v17299_v11 = vor.u32 %v20224_v36, %v17298_v32  ;;  %v18767_v8 = vor.u32 %v20587_v31, %v18764_v26  ;;  %v18668_v36 = vld [vmem:[#allocation8 + $0xef0] sm:$0xf0] }
 0x914   :  { %11794 = vmatpush.bf16.msra.mxu2 %v17395_v29  ;;  %11769 = vmatpush.bf16.msra.mxu0 %v16851_v30  ;;  %v20408_v51 = vld [vmem:[#allocation8 + $0x9f4] sm:$0xf0]  ;;  %v18732_v30 = vld [vmem:[#allocation8 + $0xf70] sm:$0xf0] }
 0x915   :  { %v18290_v45 = vld [vmem:[#allocation8 + $0xbd8] sm:$0xf]  ;;  %v18035_v12 = vor.u32 %v20408_v51, %v18034_v4  ;;  %v18735_v43 = vor.u32 %v20579_v3, %v18732_v30  ;;  %v11565_v4 = vpop.f32.mrf.mxu0  ;;  %v11578_v51 = vpop.f32.mrf.mxu1 }
 0x916   :  { %11782 = vmatpush.bf16.msra.mxu1 %v17107_v34  ;;  %11705 = vmatpush.bf16.msra.mxu3 %v17583_v53  ;;  %v20472_v42 = vld [vmem:[#allocation8 + $0xbf4] sm:$0xf0] }
 0x917   :  { %v18546_v25 = vld [vmem:[#allocation8 + $0xdd8] sm:$0xf]  ;;  %v18291_v29 = vor.u32 %v20472_v42, %v18290_v45 }
 0x918   :  { %11795 = vmatpush.bf16.msra.mxu2 %v17363_v7  ;;  %11770 = vmatpush.bf16.msra.mxu0 %v16819_v57  ;;  %v20536_v6 = vld [vmem:[#allocation8 + $0xdf4] sm:$0xf0]  ;;  %v21399_v57 = vld [vmem:[#allocation10] sm:$0xff] }
 0x919   :  { %v18002_v33 = vld [vmem:[#allocation8 + $0x998] sm:$0xf]  ;;  %v18547_v35 = vor.u32 %v20536_v6, %v18546_v25 }
 0x91a   :  { %11783 = vmatpush.bf16.msra.mxu1 %v17075_v60  ;;  %11706 = vmatpush.bf16.msra.mxu3 %v17551_v23  ;;  %v20400_v14 = vld [vmem:[#allocation8 + $0x9b4] sm:$0xf0]  ;;  %v8568_v60 = vperm.slane %v21399_v57, 4  ;;  %v18703_v23 = vor.u32 %v20571_v16, %v18700_v55 }
 0x91b   :  { %v18258_v49 = vld [vmem:[#allocation8 + $0xb98] sm:$0xf]  ;;  %v18003_v34 = vor.u32 %v20400_v14, %v18002_v33  ;;  %v11500_v33 = vpop.f32.mrf.mxu3 }
 0x91c   :  { %11796 = vmatpush.bf16.msra.mxu2 %v17331_v2  ;;  %v20464_v24 = vld [vmem:[#allocation8 + $0xbb4] sm:$0xf0]  ;;  %11771 = vmatpush.bf16.msra.mxu0 %v16787_v41  ;;  %v11566_v45 = vadd.f32 %v11565_v4, %v8568_v60 }
 0x91d   :  { %v18514_v39 = vld [vmem:[#allocation8 + $0xd98] sm:$0xf]  ;;  %11707 = vmatmul.bf16.vlgmr.msra.gmra.mxu3 %v21241_v61  ;;  %v18259_v48 = vor.u32 %v20464_v24, %v18258_v49  ;;  %v11501_v49 = vadd.f32 %v11500_v33, %v21376_v13  ;;  %v11580_v16 = vpop.f32.mrf.mxu1  ;;  %v17012_v33 = vld [vmem:[#allocation8 + $0x1f8] sm:$0xf0] }
 0x91e   :  { %11751 = vmatpush.bf16.msrb.mxu3 %v18799_v18  ;;  %11784 = vmatpush.bf16.msra.mxu1 %v17043_v0  ;;  %v20528_v15 = vld [vmem:[#allocation8 + $0xdb4] sm:$0xf0]  ;;  %v20563_v18 = vld [vmem:[#allocation8 + $0xed4] sm:$0xf] }
 0x91f   :  { %v17970_v20 = vld [vmem:[#allocation8 + $0x958] sm:$0xf]  ;;  %v18515_v53 = vor.u32 %v20528_v15, %v18514_v39  ;;  %11772 = vmatmul.bf16.vlgmr.msra.gmra.mxu0 %v21233_v62  ;;  %v18671_v31 = vor.u32 %v20563_v18, %v18668_v36  ;;  %v11514_v30 = vadd.f32 %v21386_v27, %v11501_v49  ;;  %v20539_v18 = vld [vmem:[#allocation8 + $0xe14] sm:$0xf] }
 0x920   :  { %11797 = vmatpush.bf16.msra.mxu2 %v17299_v11  ;;  %11816 = vmatpush.bf16.msrb.mxu0 %v18035_v12  ;;  %v20392_v7 = vld [vmem:[#allocation8 + $0x974] sm:$0xf0] }
 0x921   :  { %v18226_v40 = vld [vmem:[#allocation8 + $0xb58] sm:$0xf]  ;;  %11785 = vmatmul.bf16.vlgmr.msra.gmra.mxu1 %v21237_v17  ;;  %v17971_v58 = vor.u32 %v20392_v7, %v17970_v20  ;;  %v11527_v55 = vadd.f32 %v21388_v10, %v11514_v30  ;;  %v18572_v10 = vld [vmem:[#allocation8 + $0xe30] sm:$0xf0] }
 0x922   :  { %11829 = vmatpush.bf16.msrb.mxu1 %v18291_v29  ;;  %11752 = vmatpush.bf16.msrb.mxu3 %v18767_v8  ;;  %v20456_v47 = vld [vmem:[#allocation8 + $0xb74] sm:$0xf0]  ;;  %v11579_v29 = vadd.f32 %v11578_v51, %v11566_v45  ;;  %v18636_v8 = vld [vmem:[#allocation8 + $0xeb0] sm:$0xf0] }
 0x923   :  { %v18482_v37 = vld [vmem:[#allocation8 + $0xd58] sm:$0xf]  ;;  %11798 = vmatmul.bf16.vlgmr.msra.gmra.mxu2 %v21239_v22  ;;  %v18227_v59 = vor.u32 %v20456_v47, %v18226_v40  ;;  %v20547_v47 = vld [vmem:[#allocation8 + $0xe54] sm:$0xf] }
 0x924   :  { %11842 = vmatpush.bf16.msrb.mxu2 %v18547_v35  ;;  %v20520_v19 = vld [vmem:[#allocation8 + $0xd74] sm:$0xf0]  ;;  %11817 = vmatpush.bf16.msrb.mxu0 %v18003_v34  ;;  %v20555_v35 = vld [vmem:[#allocation8 + $0xe94] sm:$0xf] }
 0x925   :  { %v17938_v1 = vld [vmem:[#allocation8 + $0x918] sm:$0xf]  ;;  %v18483_v2 = vor.u32 %v20520_v19, %v18482_v37  ;;  %v18604_v37 = vld [vmem:[#allocation8 + $0xe70] sm:$0xf0]  ;;  %v11567_v19 = vpop.f32.mrf.mxu0 }
 0x926   :  { %11830 = vmatpush.bf16.msrb.mxu1 %v18259_v48  ;;  %v20384_v63 = vld [vmem:[#allocation8 + $0x934] sm:$0xf0]  ;;  %11753 = vmatpush.bf16.msrb.mxu3 %v18735_v43  ;;  %v18639_v48 = vor.u32 %v20555_v35, %v18636_v8  ;;  %v11591_v43 = vpop.f32.mrf.mxu2  ;;  %v17268_v35 = vld [vmem:[#allocation8 + $0x3f8] sm:$0xf0] }
 0x927   :  { %v18194_v28 = vld [vmem:[#allocation8 + $0xb18] sm:$0xf]  ;;  %v17939_v42 = vor.u32 %v20384_v63, %v17938_v1  ;;  %v21404_v13 = vadd.f32 %v11591_v43, %v11579_v29  ;;  %v18607_v63 = vor.u32 %v20547_v47, %v18604_v37  ;;  %v20148_v29 = vld [vmem:[#allocation8 + $0x1dc] sm:$0xf] }
 0x928   :  { %11843 = vmatpush.bf16.msrb.mxu2 %v18515_v53  ;;  %v20448_v38 = vld [vmem:[#allocation8 + $0xb34] sm:$0xf0]  ;;  %11818 = vmatpush.bf16.msrb.mxu0 %v17971_v58  ;;  %v20276_v8 = vld [vmem:[#allocation8 + $0x5dc] sm:$0xf] }
 0x929   :  { %v18450_v32 = vld [vmem:[#allocation8 + $0xd18] sm:$0xf]  ;;  %v18195_v25 = vor.u32 %v20448_v38, %v18194_v28  ;;  %v21408_v38 = vadd.f32 %v21393_v21, %v11527_v55  ;;  %v17236_v47 = vld [vmem:[#allocation8 + $0x3b8] sm:$0xf0] }
 0x92a   :  { %v20512_v54 = vld [vmem:[#allocation8 + $0xd34] sm:$0xf0]  ;;  %11831 = vmatpush.bf16.msrb.mxu1 %v18227_v59  ;;  %11754 = vmatpush.bf16.msrb.mxu3 %v18703_v23  ;;  %v20268_v37 = vld [vmem:[#allocation8 + $0x59c] sm:$0xf] }
 0x92b   :  { %v17906_v41 = vld [vmem:[#allocation8 + $0x8d8] sm:$0xf]  ;;  %v18451_v6 = vor.u32 %v20512_v54, %v18450_v32  ;;  %v11502_v32 = vpop.f32.mrf.mxu3  ;;  %v17492_v19 = vld [vmem:[#allocation8 + $0x5b8] sm:$0xf0] }
 0x92c   :  { %v20376_v0 = vld [vmem:[#allocation8 + $0x8f4] sm:$0xf0]  ;;  %11844 = vmatpush.bf16.msrb.mxu2 %v18483_v2  ;;  %11819 = vmatpush.bf16.msrb.mxu0 %v17939_v42  ;;  %v17460_v32 = vld [vmem:[#allocation8 + $0x578] sm:$0xf0] }
 0x92d   :  { %v18162_v26 = vld [vmem:[#allocation8 + $0xad8] sm:$0xf]  ;;  %v17907_v24 = vor.u32 %v20376_v0, %v17906_v41  ;;  %v18575_v0 = vor.u32 %v20539_v18, %v18572_v10 }
 0x92e   :  { %v20440_v11 = vld [vmem:[#allocation8 + $0xaf4] sm:$0xf0]  ;;  %11832 = vmatpush.bf16.msrb.mxu1 %v18195_v25  ;;  %11755 = vmatpush.bf16.msrb.mxu3 %v18671_v31 }
 0x92f   :  { %v18418_v12 = vld [vmem:[#allocation8 + $0xcd8] sm:$0xf]  ;;  %v18163_v39 = vor.u32 %v20440_v11, %v18162_v26  ;;  %v11593_v26 = vpop.f32.mrf.mxu2 }
 0x930   :  { %v20504_v14 = vld [vmem:[#allocation8 + $0xcf4] sm:$0xf0]  ;;  %11845 = vmatpush.bf16.msrb.mxu2 %v18451_v6  ;;  %11820 = vmatpush.bf16.msrb.mxu0 %v17907_v24 }
 0x931   :  { %v17874_v15 = vld [vmem:[#allocation8 + $0x898] sm:$0xf]  ;;  %v18419_v34 = vor.u32 %v20504_v14, %v18418_v12  ;;  %v20212_v14 = vld [vmem:[#allocation8 + $0x3dc] sm:$0xf] }
 0x932   :  { %v20368_v3 = vld [vmem:[#allocation8 + $0x8b4] sm:$0xf0]  ;;  %11833 = vmatpush.bf16.msrb.mxu1 %v18163_v39  ;;  %11756 = vmatpush.bf16.msrb.mxu3 %v18639_v48  ;;  %v17524_v39 = vld [vmem:[#allocation8 + $0x5f8] sm:$0xf0]  ;;  %v17271_v48 = vor.u32 %v20212_v14, %v17268_v35 }
 0x933   :  { %v18130_v20 = vld [vmem:[#allocation8 + $0xa98] sm:$0xf]  ;;  %v17875_v58 = vor.u32 %v20368_v3, %v17874_v15  ;;  %v16884_v14 = vld [vmem:[#allocation8 + $0xf8] sm:$0xf0] }
 0x934   :  { %v20432_v7 = vld [vmem:[#allocation8 + $0xab4] sm:$0xf0]  ;;  %11846 = vmatpush.bf16.msrb.mxu2 %v18419_v34  ;;  %v17015_v34 = vor.u32 %v20148_v29, %v17012_v33  ;;  %v20116_v33 = vld [vmem:[#allocation8 + $0xdc] sm:$0xf] }
 0x935   :  { %v18386_v53 = vld [vmem:[#allocation8 + $0xc98] sm:$0xf]  ;;  %v18131_v59 = vor.u32 %v20432_v7, %v18130_v20  ;;  %11821 = vmatpush.bf16.msrb.mxu0 %v17875_v58  ;;  %v20140_v20 = vld [vmem:[#allocation8 + $0x19c] sm:$0xf] }
 0x936   :  { %v20496_v40 = vld [vmem:[#allocation8 + $0xcb4] sm:$0xf0]  ;;  %11757 = vmatpush.bf16.msrb.mxu3 %v18607_v63  ;;  %v16980_v7 = vld [vmem:[#allocation8 + $0x1b8] sm:$0xf0] }
 0x937   :  { %v17842_v27 = vld [vmem:[#allocation8 + $0x858] sm:$0xf]  ;;  %v18387_v1 = vor.u32 %v20496_v40, %v18386_v53  ;;  %11834 = vmatpush.bf16.msrb.mxu1 %v18131_v59  ;;  %v17527_v53 = vor.u32 %v20276_v8, %v17524_v39  ;;  %v20204_v40 = vld [vmem:[#allocation8 + $0x39c] sm:$0xf]  ;;  %v16983_v58 = vor.u32 %v20140_v20, %v16980_v7  ;;  %v16887_v20 = vor.u32 %v20116_v33, %v16884_v14 }
 0x938   :  { %v20360_v60 = vld [vmem:[#allocation8 + $0x874] sm:$0xf0]  ;;  %v17239_v59 = vor.u32 %v20204_v40, %v17236_v47  ;;  %v21414_v26 = vpop.f32.mrf.mxu0  ;;  %v20244_v39 = vld [vmem:[#allocation8 + $0x4dc] sm:$0xf] }
 0x939   :  { %v18098_v2 = vld [vmem:[#allocation8 + $0xa58] sm:$0xf]  ;;  %v17843_v51 = vor.u32 %v20360_v60, %v17842_v27  ;;  %11847 = vmatpush.bf16.msrb.mxu2 %v18387_v1  ;;  %v20132_v27 = vld [vmem:[#allocation8 + $0x15c] sm:$0xf]  ;;  %v17495_v1 = vor.u32 %v20268_v37, %v17492_v19 }
 0x93a   :  { %v20424_v23 = vld [vmem:[#allocation8 + $0xa74] sm:$0xf0]  ;;  %11758 = vmatpush.bf16.msrb.mxu3 %v18575_v0  ;;  %v16948_v60 = vld [vmem:[#allocation8 + $0x178] sm:$0xf0] }
 0x93b   :  { %v18354_v28 = vld [vmem:[#allocation8 + $0xc58] sm:$0xf]  ;;  %v18099_v45 = vor.u32 %v20424_v23, %v18098_v2  ;;  %11822 = vmatpush.bf16.msrb.mxu0 %v17843_v51  ;;  %v20196_v2 = vld [vmem:[#allocation8 + $0x35c] sm:$0xf]  ;;  %v16951_v10 = vor.u32 %v20132_v27, %v16948_v60 }
 0x93c   :  { %v20488_v54 = vld [vmem:[#allocation8 + $0xc74] sm:$0xf0]  ;;  %v17204_v23 = vld [vmem:[#allocation8 + $0x378] sm:$0xf0] }
 0x93d   :  { %v17778_v36 = vld [vmem:[#allocation8 + $0x7d8] sm:$0xf]  ;;  %v18355_v41 = vor.u32 %v20488_v54, %v18354_v28  ;;  %11835 = vmatpush.bf16.msrb.mxu1 %v18099_v45  ;;  %11759 = vmatmul.bf16.vlgmr.msrb.gmra.mxu3 %v21305_v9  ;;  %v20260_v28 = vld [vmem:[#allocation8 + $0x55c] sm:$0xf] }
 0x93e   :  { %v20344_v4 = vld [vmem:[#allocation8 + $0x7f4] sm:$0xf0]  ;;  %v16916_v51 = vld [vmem:[#allocation8 + $0x138] sm:$0xf0]  ;;  %v17463_v45 = vor.u32 %v20260_v28, %v17460_v32 }
 0x93f   :  { %v17810_v42 = vld [vmem:[#allocation8 + $0x818] sm:$0xf]  ;;  %v17779_v11 = vor.u32 %v20344_v4, %v17778_v36  ;;  %11848 = vmatpush.bf16.msrb.mxu2 %v18355_v41  ;;  %v17207_v36 = vor.u32 %v20196_v2, %v17204_v23  ;;  %v20124_v4 = vld [vmem:[#allocation8 + $0x11c] sm:$0xf] }
 0x940   :  { %v20352_v25 = vld [vmem:[#allocation8 + $0x834] sm:$0xf0]  ;;  %v17172_v41 = vld [vmem:[#allocation8 + $0x338] sm:$0xf0] }
 0x941   :  { %v18066_v6 = vld [vmem:[#allocation8 + $0xa18] sm:$0xf]  ;;  %v17811_v49 = vor.u32 %v20352_v25, %v17810_v42  ;;  %11803 = vmatpush.bf16.msra.mxu3 %v17779_v11  ;;  %v20188_v25 = vld [vmem:[#allocation8 + $0x31c] sm:$0xf]  ;;  %v21416_v11 = vpop.f32.mrf.mxu1 }
 0x942   :  { %v20416_v31 = vld [vmem:[#allocation8 + $0xa34] sm:$0xf0]  ;;  %v20252_v0 = vld [vmem:[#allocation8 + $0x51c] sm:$0xf]  ;;  %v17175_v29 = vor.u32 %v20188_v25, %v17172_v41 }
 0x943   :  { %v18322_v21 = vld [vmem:[#allocation8 + $0xc18] sm:$0xf]  ;;  %v18067_v24 = vor.u32 %v20416_v31, %v18066_v6  ;;  %11823 = vmatpush.bf16.msrb.mxu0 %v17811_v49  ;;  %v17428_v6 = vld [vmem:[#allocation8 + $0x538] sm:$0xf0] }
 0x944   :  { %v20480_v12 = vld [vmem:[#allocation8 + $0xc34] sm:$0xf0]  ;;  %v17431_v35 = vor.u32 %v20252_v0, %v17428_v6  ;;  %v20180_v49 = vld [vmem:[#allocation8 + $0x2dc] sm:$0xf] }
 0x945   :  { %v17746_v15 = vld [vmem:[#allocation8 + $0x798] sm:$0xf]  ;;  %v18323_v30 = vor.u32 %v20480_v12, %v18322_v21  ;;  %11836 = vmatpush.bf16.msrb.mxu1 %v18067_v24  ;;  %v16919_v12 = vor.u32 %v20124_v4, %v16916_v51  ;;  %v17140_v24 = vld [vmem:[#allocation8 + $0x2f8] sm:$0xf0] }
 0x946   :  { %v20336_v3 = vld [vmem:[#allocation8 + $0x7b4] sm:$0xf0]  ;;  %11824 = vmatmul.bf16.vlgmr.msrb.gmra.mxu0 %v21265_v56  ;;  %v17143_v7 = vor.u32 %v20180_v49, %v17140_v24  ;;  %v20172_v37 = vld [vmem:[#allocation8 + $0x29c] sm:$0xf] }
 0x947   :  { %v17747_v43 = vor.u32 %v20336_v3, %v17746_v15  ;;  %v17714_v16 = vld [vmem:[#allocation8 + $0x758] sm:$0xf]  ;;  %11849 = vmatpush.bf16.msrb.mxu2 %v18323_v30  ;;  %11868 = vmatpush.bf16.msra.mxu0 %v17015_v34  ;;  %v11552_v15 = vpop.f32.mrf.mxu3  ;;  %v17396_v3 = vld [vmem:[#allocation8 + $0x4f8] sm:$0xf0] }
 0x948   :  { %v20328_v55 = vld [vmem:[#allocation8 + $0x774] sm:$0xf0]  ;;  %11837 = vmatmul.bf16.vlgmr.msrb.gmra.mxu1 %v21267_v50  ;;  %v17399_v40 = vor.u32 %v20244_v39, %v17396_v3  ;;  %v17108_v19 = vld [vmem:[#allocation8 + $0x2b8] sm:$0xf0] }
 0x949   :  { %11881 = vmatpush.bf16.msra.mxu1 %v17271_v48  ;;  %11804 = vmatpush.bf16.msra.mxu3 %v17747_v43  ;;  %v17715_v63 = vor.u32 %v20328_v55, %v17714_v16  ;;  %v17682_v54 = vld [vmem:[#allocation8 + $0x718] sm:$0xf]  ;;  %v21419_v48 = vadd.f32 %v11552_v15, %v21408_v38  ;;  %v16852_v43 = vld [vmem:[#allocation8 + $0xb8] sm:$0xf0]  ;;  %v21421_v55 = vpop.f32.mrf.mxu2  ;;  %v11619_v38 = vpop.f32.mrf.mxu0 }
 0x94a   :  { %v20320_v18 = vld [vmem:[#allocation8 + $0x734] sm:$0xf0]  ;;  %11850 = vmatmul.bf16.vlgmr.msrb.gmra.mxu2 %v21269_v52  ;;  %v20236_v16 = vld [vmem:[#allocation8 + $0x49c] sm:$0xf]  ;;  %v11632_v60 = vpop.f32.mrf.mxu1 }
 0x94b   :  { %11894 = vmatpush.bf16.msra.mxu2 %v17527_v53  ;;  %11869 = vmatpush.bf16.msra.mxu0 %v16983_v58  ;;  %v17683_v42 = vor.u32 %v20320_v18, %v17682_v54  ;;  %v17650_v31 = vld [vmem:[#allocation8 + $0x6d8] sm:$0xf]  ;;  %v20108_v53 = vld [vmem:[#allocation8 + $0x9c] sm:$0xf]  ;;  %vm11975_vm13 = vcmp.gt.f32.partialorder %v21419_v48, 0.0 }
 0x94c   :  { %v20312_v21 = vld [vmem:[#allocation8 + $0x6f4] sm:$0xf0]  ;;  %v17364_v58 = vld [vmem:[#allocation8 + $0x4b8] sm:$0xf0] }
 0x94d   :  { %11882 = vmatpush.bf16.msra.mxu1 %v17239_v59  ;;  %11805 = vmatpush.bf16.msra.mxu3 %v17715_v63  ;;  %v17651_v8 = vor.u32 %v20312_v21, %v17650_v31  ;;  %v17618_v30 = vld [vmem:[#allocation8 + $0x698] sm:$0xf]  ;;  %v17111_v63 = vor.u32 %v20172_v37, %v17108_v19  ;;  %v20100_v2 = vld [vmem:[#allocation8 + $0x5c] sm:$0xf]  ;;  %v17367_v28 = vor.u32 %v20236_v16, %v17364_v58 }
 0x94e   :  { %v20304_v34 = vld [vmem:[#allocation8 + $0x6b4] sm:$0xf0]  ;;  %v16820_v23 = vld [vmem:[#allocation8 + $0x78] sm:$0xf0] }
 0x94f   :  { %11895 = vmatpush.bf16.msra.mxu2 %v17495_v1  ;;  %11870 = vmatpush.bf16.msra.mxu0 %v16951_v10  ;;  %v17619_v47 = vor.u32 %v20304_v34, %v17618_v30  ;;  %v17586_v59 = vld [vmem:[#allocation8 + $0x658] sm:$0xf]  ;;  %v16855_v1 = vor.u32 %v20108_v53, %v16852_v43  ;;  %v20164_v54 = vld [vmem:[#allocation8 + $0x25c] sm:$0xf]  ;;  %v16823_v41 = vor.u32 %v20100_v2, %v16820_v23 }
 0x950   :  { %v20296_v27 = vld [vmem:[#allocation8 + $0x674] sm:$0xf0]  ;;  %v17076_v18 = vld [vmem:[#allocation8 + $0x278] sm:$0xf0] }
 0x951   :  { %11883 = vmatpush.bf16.msra.mxu1 %v17207_v36  ;;  %11806 = vmatpush.bf16.msra.mxu3 %v17683_v42  ;;  %v17587_v32 = vor.u32 %v20296_v27, %v17586_v59  ;;  %v20228_v10 = vld [vmem:[#allocation8 + $0x45c] sm:$0xf]  ;;  %v11554_v36 = vpop.f32.mrf.mxu3  ;;  %v17554_v51 = vld [vmem:[#allocation8 + $0x618] sm:$0xf]  ;;  %v17079_v0 = vor.u32 %v20164_v54, %v17076_v18 }
 0x952   :  { %v17332_v4 = vld [vmem:[#allocation8 + $0x478] sm:$0xf0]  ;;  %v18802_v42 = vld [vmem:[#allocation8 + $0xfd8] sm:$0xf] }
 0x953   :  { %11896 = vmatpush.bf16.msra.mxu2 %v17463_v45  ;;  %11871 = vmatpush.bf16.msra.mxu0 %v16919_v12  ;;  %v20288_v45 = vld [vmem:[#allocation8 + $0x634] sm:$0xf0]  ;;  %v20092_v6 = vld [vmem:[#allocation8 + $0x1c] sm:$0xf]  ;;  %v17335_v21 = vor.u32 %v20228_v10, %v17332_v4 }
 0x954   :  { %v20600_v25 = vld [vmem:[#allocation8 + $0xff4] sm:$0xf0]  ;;  %v16788_v31 = vld [vmem:[#allocation8 + $0x38] sm:$0xf0]  ;;  %v17555_v12 = vor.u32 %v20288_v45, %v17554_v51 }
 0x955   :  { %11884 = vmatpush.bf16.msra.mxu1 %v17175_v29  ;;  %11807 = vmatpush.bf16.msra.mxu3 %v17651_v8  ;;  %v20156_v29 = vld [vmem:[#allocation8 + $0x21c] sm:$0xf]  ;;  %v18803_v8 = vor.u32 %v20600_v25, %v18802_v42  ;;  %v16791_v34 = vor.u32 %v20092_v6, %v16788_v31  ;;  %v18770_v53 = vld [vmem:[#allocation8 + $0xf98] sm:$0xf]  ;;  %v8569_v6 = vperm.slane %v21399_v57, 5 }
 0x956   :  { %v17044_v33 = vld [vmem:[#allocation8 + $0x238] sm:$0xf0]  ;;  %v20592_v43 = vld [vmem:[#allocation8 + $0xfb4] sm:$0xf0] }
 0x957   :  { %11897 = vmatpush.bf16.msra.mxu2 %v17431_v35  ;;  %11872 = vmatpush.bf16.msra.mxu0 %v16887_v20  ;;  %v20220_v14 = vld [vmem:[#allocation8 + $0x41c] sm:$0xf]  ;;  %v11645_v35 = vpop.f32.mrf.mxu2  ;;  %v17047_v20 = vor.u32 %v20156_v29, %v17044_v33  ;;  %v18771_v59 = vor.u32 %v20592_v43, %v18770_v53  ;;  %v20584_v2 = vld [vmem:[#allocation8 + $0xf74] sm:$0xf0] }
 0x958   :  { %v17300_v49 = vld [vmem:[#allocation8 + $0x438] sm:$0xf0]  ;;  %v18706_v42 = vld [vmem:[#allocation8 + $0xf18] sm:$0xf] }
 0x959   :  { %11885 = vmatpush.bf16.msra.mxu1 %v17143_v7  ;;  %11808 = vmatpush.bf16.msra.mxu3 %v17619_v47  ;;  %v20404_v24 = vld [vmem:[#allocation8 + $0x9dc] sm:$0xf]  ;;  %v20576_v25 = vld [vmem:[#allocation8 + $0xf34] sm:$0xf0] }
 0x95a   :  { %v18036_v39 = vld [vmem:[#allocation8 + $0x9f8] sm:$0xf0]  ;;  %v18707_v29 = vor.u32 %v20576_v25, %v18706_v42  ;;  %v18674_v35 = vld [vmem:[#allocation8 + $0xed8] sm:$0xf] }
 0x95b   :  { %11898 = vmatpush.bf16.msra.mxu2 %v17399_v40  ;;  %11873 = vmatpush.bf16.msra.mxu0 %v16855_v1  ;;  %v20468_v15 = vld [vmem:[#allocation8 + $0xbdc] sm:$0xf]  ;;  %v17303_v40 = vor.u32 %v20220_v14, %v17300_v49  ;;  %v18039_v47 = vor.u32 %v20404_v24, %v18036_v39  ;;  %v11669_v49 = vpop.f32.mrf.mxu0 }
 0x95c   :  { %v18292_v3 = vld [vmem:[#allocation8 + $0xbf8] sm:$0xf0]  ;;  %v11670_v24 = vadd.f32 %v11669_v49, %v8569_v6 }
 0x95d   :  { %11886 = vmatpush.bf16.msra.mxu1 %v17111_v63  ;;  %11809 = vmatpush.bf16.msra.mxu3 %v17587_v32  ;;  %v20532_v30 = vld [vmem:[#allocation8 + $0xddc] sm:$0xf]  ;;  %v18295_v37 = vor.u32 %v20468_v15, %v18292_v3  ;;  %v18738_v63 = vld [vmem:[#allocation8 + $0xf58] sm:$0xf] }
 0x95e   :  { %v18548_v7 = vld [vmem:[#allocation8 + $0xdf8] sm:$0xf0]  ;;  %v18739_v10 = vor.u32 %v20584_v2, %v18738_v63 }
 0x95f   :  { %11899 = vmatpush.bf16.msra.mxu2 %v17367_v28  ;;  %11874 = vmatpush.bf16.msra.mxu0 %v16823_v41  ;;  %v20396_v19 = vld [vmem:[#allocation8 + $0x99c] sm:$0xf]  ;;  %v18551_v58 = vor.u32 %v20532_v30, %v18548_v7 }
 0x960   :  { %v18004_v16 = vld [vmem:[#allocation8 + $0x9b8] sm:$0xf0] }
 0x961   :  { %11887 = vmatpush.bf16.msra.mxu1 %v17079_v0  ;;  %11810 = vmatpush.bf16.msra.mxu3 %v17555_v12  ;;  %v20460_v27 = vld [vmem:[#allocation8 + $0xb9c] sm:$0xf]  ;;  %v18007_v23 = vor.u32 %v20396_v19, %v18004_v16  ;;  %v20560_v19 = vld [vmem:[#allocation8 + $0xeb4] sm:$0xf0] }
 0x962   :  { %v18260_v38 = vld [vmem:[#allocation8 + $0xbb8] sm:$0xf0] }
 0x963   :  { %11900 = vmatpush.bf16.msra.mxu2 %v17335_v21  ;;  %v20524_v60 = vld [vmem:[#allocation8 + $0xd9c] sm:$0xf]  ;;  %11875 = vmatpush.bf16.msra.mxu0 %v16791_v34  ;;  %v18263_v28 = vor.u32 %v20460_v27, %v18260_v38 }
 0x964   :  { %v18516_v1 = vld [vmem:[#allocation8 + $0xdb8] sm:$0xf0]  ;;  %11811 = vmatmul.bf16.vlgmr.msra.gmra.mxu3 %v21241_v61 }
 0x965   :  { %11855 = vmatpush.bf16.msrb.mxu3 %v18803_v8  ;;  %11888 = vmatpush.bf16.msra.mxu1 %v17047_v20  ;;  %v20388_v32 = vld [vmem:[#allocation8 + $0x95c] sm:$0xf]  ;;  %v18519_v18 = vor.u32 %v20524_v60, %v18516_v1  ;;  %v20568_v8 = vld [vmem:[#allocation8 + $0xef4] sm:$0xf0] }
 0x966   :  { %v17972_v54 = vld [vmem:[#allocation8 + $0x978] sm:$0xf0]  ;;  %11876 = vmatmul.bf16.vlgmr.msra.gmra.mxu0 %v21233_v62  ;;  %v18675_v34 = vor.u32 %v20568_v8, %v18674_v35 }
 0x967   :  { %11901 = vmatpush.bf16.msra.mxu2 %v17303_v40  ;;  %11920 = vmatpush.bf16.msrb.mxu0 %v18039_v47  ;;  %v20452_v36 = vld [vmem:[#allocation8 + $0xb5c] sm:$0xf]  ;;  %v17975_v41 = vor.u32 %v20388_v32, %v17972_v54  ;;  %v11604_v40 = vpop.f32.mrf.mxu3  ;;  %v11695_v32 = vpop.f32.mrf.mxu2 }
 0x968   :  { %v18228_v4 = vld [vmem:[#allocation8 + $0xb78] sm:$0xf0]  ;;  %11889 = vmatmul.bf16.vlgmr.msra.gmra.mxu1 %v21237_v17  ;;  %v11605_v16 = vadd.f32 %v11604_v40, %v21404_v13 }
 0x969   :  { %11933 = vmatpush.bf16.msrb.mxu1 %v18295_v37  ;;  %11856 = vmatpush.bf16.msrb.mxu3 %v18771_v59  ;;  %v20516_v51 = vld [vmem:[#allocation8 + $0xd5c] sm:$0xf]  ;;  %v18231_v0 = vor.u32 %v20452_v36, %v18228_v4  ;;  %v18642_v37 = vld [vmem:[#allocation8 + $0xe98] sm:$0xf]  ;;  %v11671_v36 = vpop.f32.mrf.mxu0 }
 0x96a   :  { %v18484_v45 = vld [vmem:[#allocation8 + $0xd78] sm:$0xf0]  ;;  %11902 = vmatmul.bf16.vlgmr.msra.gmra.mxu2 %v21239_v22  ;;  %v11682_v22 = vpop.f32.mrf.mxu1  ;;  %v11618_v60 = vadd.f32 %v21414_v26, %v11605_v16  ;;  %v18643_v63 = vor.u32 %v20560_v19, %v18642_v37  ;;  %v20616_v37 = vld [vmem:[#allocation11 + $0x78] sm:$0xff] }
 0x96b   :  { %11946 = vmatpush.bf16.msrb.mxu2 %v18551_v58  ;;  %11921 = vmatpush.bf16.msrb.mxu0 %v18007_v23  ;;  %v20380_v31 = vld [vmem:[#allocation8 + $0x91c] sm:$0xf]  ;;  %v18487_v12 = vor.u32 %v20516_v51, %v18484_v45  ;;  %v11683_v43 = vadd.f32 %v11682_v22, %v11670_v24  ;;  %v20624_v19 = vld [vmem:[#allocation11 + $0xb8] sm:$0xff] }
 0x96c   :  { %v17940_v21 = vld [vmem:[#allocation8 + $0x938] sm:$0xf0]  ;;  %v11631_v51 = vadd.f32 %v21416_v11, %v11618_v60  ;;  %v20544_v11 = vld [vmem:[#allocation8 + $0xe34] sm:$0xf0] }
 0x96d   :  { %11934 = vmatpush.bf16.msrb.mxu1 %v18263_v28  ;;  %11857 = vmatpush.bf16.msrb.mxu3 %v18739_v10  ;;  %v20444_v62 = vld [vmem:[#allocation8 + $0xb1c] sm:$0xf]  ;;  %v17943_v39 = vor.u32 %v20380_v31, %v17940_v21  ;;  %v20552_v10 = vld [vmem:[#allocation8 + $0xe74] sm:$0xf0]  ;;  %v21430_v13 = vadd.f32 %v11695_v32, %v11683_v43  ;;  %v20622_v32 = vld [vmem:[#allocation11 + $0xa8] sm:$0xff] }
 0x96e   :  { %v18196_v33 = vld [vmem:[#allocation8 + $0xb38] sm:$0xf0] }
 0x96f   :  { %11947 = vmatpush.bf16.msrb.mxu2 %v18519_v18  ;;  %v20508_v17 = vld [vmem:[#allocation8 + $0xd1c] sm:$0xf]  ;;  %11922 = vmatpush.bf16.msrb.mxu0 %v17975_v41  ;;  %v18199_v15 = vor.u32 %v20444_v62, %v18196_v33  ;;  %v18610_v18 = vld [vmem:[#allocation8 + $0xe58] sm:$0xf] }
 0x970   :  { %v18452_v14 = vld [vmem:[#allocation8 + $0xd38] sm:$0xf0]  ;;  %v18578_v33 = vld [vmem:[#allocation8 + $0xe18] sm:$0xf] }
 0x971   :  { %11935 = vmatpush.bf16.msrb.mxu1 %v18231_v0  ;;  %v20372_v57 = vld [vmem:[#allocation8 + $0x8dc] sm:$0xf]  ;;  %11858 = vmatpush.bf16.msrb.mxu3 %v18707_v29  ;;  %v18455_v30 = vor.u32 %v20508_v17, %v18452_v14  ;;  %v18611_v0 = vor.u32 %v20552_v10, %v18610_v18  ;;  %v11606_v29 = vpop.f32.mrf.mxu3  ;;  %v18579_v24 = vor.u32 %v20544_v11, %v18578_v33 }
 0x972   :  { %v17908_v3 = vld [vmem:[#allocation8 + $0x8f8] sm:$0xf0]  ;;  %v11684_v4 = vpop.f32.mrf.mxu1 }
 0x973   :  { %11948 = vmatpush.bf16.msrb.mxu2 %v18487_v12  ;;  %v20436_v20 = vld [vmem:[#allocation8 + $0xadc] sm:$0xf]  ;;  %11923 = vmatpush.bf16.msrb.mxu0 %v17943_v39  ;;  %v17911_v58 = vor.u32 %v20372_v57, %v17908_v3  ;;  %v21434_v12 = vadd.f32 %v21421_v55, %v11631_v51  ;;  %v11697_v55 = vpop.f32.mrf.mxu2 }
 0x974   :  { %v18164_v7 = vld [vmem:[#allocation8 + $0xaf8] sm:$0xf0]  ;;  %v20618_v55 = vld [vmem:[#allocation11 + $0x88] sm:$0xff] }
 0x975   :  { %v20500_v53 = vld [vmem:[#allocation8 + $0xcdc] sm:$0xf]  ;;  %11936 = vmatpush.bf16.msrb.mxu1 %v18199_v15  ;;  %v18167_v59 = vor.u32 %v20436_v20, %v18164_v7  ;;  %11859 = vmatpush.bf16.msrb.mxu3 %v18675_v34 }
 0x976   :  { %v18420_v47 = vld [vmem:[#allocation8 + $0xcf8] sm:$0xf0] }
 0x977   :  { %v20364_v27 = vld [vmem:[#allocation8 + $0x89c] sm:$0xf]  ;;  %11949 = vmatpush.bf16.msrb.mxu2 %v18455_v30  ;;  %v18423_v1 = vor.u32 %v20500_v53, %v18420_v47  ;;  %11924 = vmatpush.bf16.msrb.mxu0 %v17911_v58  ;;  %v20608_v47 = vld [vmem:[#allocation11 + $0x38] sm:$0xff] }
 0x978   :  { %v17876_v38 = vld [vmem:[#allocation8 + $0x8b8] sm:$0xf0] }
 0x979   :  { %v20428_v2 = vld [vmem:[#allocation8 + $0xa9c] sm:$0xf]  ;;  %11937 = vmatpush.bf16.msrb.mxu1 %v18167_v59  ;;  %v17879_v45 = vor.u32 %v20364_v27, %v17876_v38  ;;  %11860 = vmatpush.bf16.msrb.mxu3 %v18643_v63 }
 0x97a   :  { %v18132_v23 = vld [vmem:[#allocation8 + $0xab8] sm:$0xf0] }
 0x97b   :  { %v20492_v28 = vld [vmem:[#allocation8 + $0xc9c] sm:$0xf]  ;;  %v18135_v42 = vor.u32 %v20428_v2, %v18132_v23  ;;  %11950 = vmatpush.bf16.msrb.mxu2 %v18423_v1  ;;  %11925 = vmatpush.bf16.msrb.mxu0 %v17879_v45  ;;  %v20606_v23 = vld [vmem:[#allocation11 + $0x28] sm:$0xff] }
 0x97c   :  { %v18388_v54 = vld [vmem:[#allocation8 + $0xcb8] sm:$0xf0]  ;;  %v21440_v36 = vpop.f32.mrf.mxu0  ;;  %v21444_v45 = vpop.f32.mrf.mxu3 }
 0x97d   :  { %v20356_v26 = vld [vmem:[#allocation8 + $0x85c] sm:$0xf]  ;;  %v18391_v41 = vor.u32 %v20492_v28, %v18388_v54  ;;  %11938 = vmatpush.bf16.msrb.mxu1 %v18135_v42  ;;  %11861 = vmatpush.bf16.msrb.mxu3 %v18611_v0  ;;  %v20614_v28 = vld [vmem:[#allocation11 + $0x68] sm:$0xff]  ;;  %v20620_v0 = vld [vmem:[#allocation11 + $0x98] sm:$0xff] }
 0x97e   :  { %v17844_v25 = vld [vmem:[#allocation8 + $0x878] sm:$0xf0]  ;;  %v21442_v4 = vpop.f32.mrf.mxu1 }
 0x97f   :  { %v20420_v6 = vld [vmem:[#allocation8 + $0xa5c] sm:$0xf]  ;;  %v17847_v35 = vor.u32 %v20356_v26, %v17844_v25  ;;  %11951 = vmatpush.bf16.msrb.mxu2 %v18391_v41  ;;  %v20604_v25 = vld [vmem:[#allocation11 + $0x18] sm:$0xff] }
 0x980   :  { %v18100_v31 = vld [vmem:[#allocation8 + $0xa78] sm:$0xf0]  ;;  %v20612_v41 = vld [vmem:[#allocation11 + $0x58] sm:$0xff] }
 0x981   :  { %v20484_v21 = vld [vmem:[#allocation8 + $0xc5c] sm:$0xf]  ;;  %v18103_v8 = vor.u32 %v20420_v6, %v18100_v31  ;;  %11926 = vmatpush.bf16.msrb.mxu0 %v17847_v35  ;;  %11862 = vmatpush.bf16.msrb.mxu3 %v18579_v24 }
 0x982   :  { %v18356_v62 = vld [vmem:[#allocation8 + $0xc78] sm:$0xf0] }
 0x983   :  { %v20340_v17 = vld [vmem:[#allocation8 + $0x7dc] sm:$0xf]  ;;  %v18359_v22 = vor.u32 %v20484_v21, %v18356_v62  ;;  %11939 = vmatpush.bf16.msrb.mxu1 %v18103_v8 }
 0x984   :  { %v17780_v14 = vld [vmem:[#allocation8 + $0x7f8] sm:$0xf0]  ;;  %11863 = vmatmul.bf16.vlgmr.msrb.gmra.mxu3 %v21305_v9  ;;  %v11723_v62 = vpop.f32.mrf.mxu0  ;;  %v11658_v8 = vpop.f32.mrf.mxu3 }
 0x985   :  { %v20348_v49 = vld [vmem:[#allocation8 + $0x81c] sm:$0xf]  ;;  %v17783_v3 = vor.u32 %v20340_v17, %v17780_v14  ;;  %11952 = vmatpush.bf16.msrb.mxu2 %v18359_v22 }
 0x986   :  { %v17812_v39 = vld [vmem:[#allocation8 + $0x838] sm:$0xf0]  ;;  %v21446_v31 = vpop.f32.mrf.mxu2  ;;  %v11736_v33 = vpop.f32.mrf.mxu1 }
 0x987   :  { %v20412_v15 = vld [vmem:[#allocation8 + $0xa1c] sm:$0xf]  ;;  %v17815_v20 = vor.u32 %v20348_v49, %v17812_v39  ;;  %11907 = vmatpush.bf16.msra.mxu3 %v17783_v3  ;;  %v20645_v33 = vld [vmem:[#allocation11 + $0x160] sm:$0xff] }
 0x988   :  { %v18068_v57 = vld [vmem:[#allocation8 + $0xa38] sm:$0xf0] }
 0x989   :  { %v20476_v30 = vld [vmem:[#allocation8 + $0xc1c] sm:$0xf]  ;;  %v18071_v7 = vor.u32 %v20412_v15, %v18068_v57  ;;  %11927 = vmatpush.bf16.msrb.mxu0 %v17815_v20  ;;  %v20602_v15 = vld [vmem:[#allocation11 + $0x8] sm:$0xff] }
 0x98a   :  { %v18324_v34 = vld [vmem:[#allocation8 + $0xc38] sm:$0xf0]  ;;  %v20610_v57 = vld [vmem:[#allocation11 + $0x48] sm:$0xff] }
 0x98b   :  { %v20332_v53 = vld [vmem:[#allocation8 + $0x79c] sm:$0xf]  ;;  %v18327_v40 = vor.u32 %v20476_v30, %v18324_v34  ;;  %11940 = vmatpush.bf16.msrb.mxu1 %v18071_v7  ;;  %v11980_v30 = vmul.f32 0.2, %v21349_v44  ;;  %v11981_v34 = vmul.f32 0.2, %v21365_v5 }
 0x98c   :  { %v17748_v43 = vld [vmem:[#allocation8 + $0x7b8] sm:$0xf0]  ;;  %11928 = vmatmul.bf16.vlgmr.msrb.gmra.mxu0 %v21265_v56  ;;  %v20605_v56 = vld [vmem:[#allocation11 + $0x20] sm:$0xff] }
 0x98d   :  { %v17751_v16 = vor.u32 %v20332_v53, %v17748_v43  ;;  %v20324_v58 = vld [vmem:[#allocation8 + $0x75c] sm:$0xf]  ;;  %11953 = vmatpush.bf16.msrb.mxu2 %v18327_v40  ;;  %12520 = vmatpush.bf16.msra.mxu0 %v20608_v47  ;;  %v11982_v53 = vmul.f32 0.2, %v21391_v46  ;;  %v20601_v47 = vld [vmem:[#allocation11] sm:$0xff] }
 0x98e   :  { %v17716_v59 = vld [vmem:[#allocation8 + $0x778] sm:$0xf0]  ;;  %11941 = vmatmul.bf16.vlgmr.msrb.gmra.mxu1 %v21267_v50  ;;  %v20613_v50 = vld [vmem:[#allocation11 + $0x60] sm:$0xff]  ;;  %v11749_v20 = vpop.f32.mrf.mxu2 }
 0x98f   :  { %12533 = vmatpush.bf16.msra.mxu1 %v20616_v37  ;;  %v20607_v27 = vld [vmem:[#allocation11 + $0x30] sm:$0xff]  ;;  %11908 = vmatpush.bf16.msra.mxu3 %v17751_v16  ;;  %v17719_v1 = vor.u32 %v20324_v58, %v17716_v59  ;;  %v20609_v37 = vld [vmem:[#allocation11 + $0x40] sm:$0xff]  ;;  %v11988_v16 = vsel %vm11972_vm8, %v21349_v44, %v11980_v30  ;;  %v11989_v58 = vsel %vm11973_vm9, %v21365_v5, %v11981_v34  ;;  %v20640_v59 = vld [vmem:[#allocation11 + $0x138] sm:$0xff] }
 0x990   :  { %v20615_v38 = vld [vmem:[#allocation11 + $0x70] sm:$0xff]  ;;  %11954 = vmatmul.bf16.vlgmr.msrb.gmra.mxu2 %v21269_v52  ;;  %v20621_v52 = vld [vmem:[#allocation11 + $0xa0] sm:$0xff]  ;;  %v11657_v30 = vadd.f32 %v21444_v45, %v21434_v12 }
 0x991   :  { %12546 = vmatpush.bf16.msra.mxu2 %v20624_v19  ;;  %v20623_v60 = vld [vmem:[#allocation11 + $0xb0] sm:$0xff]  ;;  %12521 = vmatpush.bf16.msra.mxu0 %v20607_v27  ;;  %v20617_v19 = vld [vmem:[#allocation11 + $0x80] sm:$0xff] }
 0x992   :  { %v20316_v63 = vld [vmem:[#allocation8 + $0x71c] sm:$0xf]  ;;  %vm11976_vm11 = vcmp.gt.f32.partialorder %v11657_v30, 0.0  ;;  %v20641_v12 = vld [vmem:[#allocation11 + $0x140] sm:$0xff] }
 0x993   :  { %v17684_v2 = vld [vmem:[#allocation8 + $0x738] sm:$0xf0]  ;;  %12534 = vmatpush.bf16.msra.mxu1 %v20615_v38  ;;  %11909 = vmatpush.bf16.msra.mxu3 %v17719_v1  ;;  %v11990_v38 = vsel %vm11974_vm10, %v21391_v46, %v11982_v53 }
 0x994   :  { %v17687_v54 = vor.u32 %v20316_v63, %v17684_v2  ;;  %v20308_v18 = vld [vmem:[#allocation8 + $0x6dc] sm:$0xf]  ;;  %v20648_v63 = vld [vmem:[#allocation11 + $0x178] sm:$0xff]  ;;  %v11996_v2 = vpack.c.bf16 %v11988_v16, %v11988_v16  ;;  %v11998_v44 = vpack.c.bf16 %v11990_v38, %v11990_v38 }
 0x995   :  { %12547 = vmatpush.bf16.msra.mxu2 %v20623_v60  ;;  %v17652_v10 = vld [vmem:[#allocation8 + $0x6f8] sm:$0xf0]  ;;  %12522 = vmatpush.bf16.msra.mxu0 %v20606_v23  ;;  %v11997_v23 = vpack.c.bf16 %v11989_v58, %v11989_v58 }
 0x996   :  { %v17655_v51 = vor.u32 %v20308_v18, %v17652_v10  ;;  %v20300_v42 = vld [vmem:[#allocation8 + $0x69c] sm:$0xf]  ;;  %v20638_v18 = vld [vmem:[#allocation11 + $0x128] sm:$0xff] }
 0x997   :  { %12535 = vmatpush.bf16.msra.mxu1 %v20614_v28  ;;  %11910 = vmatpush.bf16.msra.mxu3 %v17687_v54  ;;  %v17620_v26 = vld [vmem:[#allocation8 + $0x6b8] sm:$0xf0] }
 0x998   :  { %v17623_v6 = vor.u32 %v20300_v42, %v17620_v26  ;;  %v20292_v21 = vld [vmem:[#allocation8 + $0x65c] sm:$0xf] }
 0x999   :  { %12548 = vmatpush.bf16.msra.mxu2 %v20622_v32  ;;  %12523 = vmatpush.bf16.msra.mxu0 %v20605_v56  ;;  %v17588_v29 = vld [vmem:[#allocation8 + $0x678] sm:$0xf0]  ;;  %v21462_v56 = vld [vmem:[#allocation10] sm:$0xff] }
 0x99a   :  { %v20603_v11 = vld [vmem:[#allocation11 + $0x10] sm:$0xff]  ;;  %v17591_v35 = vor.u32 %v20292_v21, %v17588_v29 }
 0x99b   :  { %12536 = vmatpush.bf16.msra.mxu1 %v20613_v50  ;;  %11911 = vmatpush.bf16.msra.mxu3 %v17655_v51  ;;  %v20611_v17 = vld [vmem:[#allocation11 + $0x50] sm:$0xff]  ;;  %v20646_v51 = vld [vmem:[#allocation11 + $0x168] sm:$0xff] }
 0x99c   :  { %v20619_v14 = vld [vmem:[#allocation11 + $0x90] sm:$0xff]  ;;  %v11773_v42 = vpop.f32.mrf.mxu0 }
 0x99d   :  { %12549 = vmatpush.bf16.msra.mxu2 %v20621_v52  ;;  %12524 = vmatpush.bf16.msra.mxu0 %v20604_v25  ;;  %v20284_v49 = vld [vmem:[#allocation8 + $0x61c] sm:$0xf] }
 0x99e   :  { %v17556_v22 = vld [vmem:[#allocation8 + $0x638] sm:$0xf0]  ;;  %v11786_v26 = vpop.f32.mrf.mxu1 }
 0x99f   :  { %12537 = vmatpush.bf16.msra.mxu1 %v20612_v41  ;;  %11912 = vmatpush.bf16.msra.mxu3 %v17623_v6  ;;  %v20596_v24 = vld [vmem:[#allocation8 + $0xfdc] sm:$0xf]  ;;  %v17559_v3 = vor.u32 %v20284_v49, %v17556_v22  ;;  %v20637_v41 = vld [vmem:[#allocation11 + $0x120] sm:$0xff]  ;;  %v20644_v49 = vld [vmem:[#allocation11 + $0x158] sm:$0xff] }
 0x9a0   :  { %v18804_v39 = vld [vmem:[#allocation8 + $0xff8] sm:$0xf0]  ;;  %v11708_v62 = vpop.f32.mrf.mxu3 }
 0x9a1   :  { %12550 = vmatpush.bf16.msra.mxu2 %v20620_v0  ;;  %12525 = vmatpush.bf16.msra.mxu0 %v20603_v11  ;;  %v18807_v7 = vor.u32 %v20596_v24, %v18804_v39  ;;  %v20588_v43 = vld [vmem:[#allocation8 + $0xf9c] sm:$0xf]  ;;  %v20636_v11 = vld [vmem:[#allocation11 + $0x118] sm:$0xff]  ;;  %v11709_v45 = vadd.f32 %v11708_v62, %v21430_v13 }
 0x9a2   :  { %v18772_v40 = vld [vmem:[#allocation8 + $0xfb8] sm:$0xf0] }
 0x9a3   :  { %12538 = vmatpush.bf16.msra.mxu1 %v20611_v17  ;;  %11913 = vmatpush.bf16.msra.mxu3 %v17591_v35  ;;  %v18775_v27 = vor.u32 %v20588_v43, %v18772_v40  ;;  %v20580_v60 = vld [vmem:[#allocation8 + $0xf5c] sm:$0xf]  ;;  %v20632_v43 = vld [vmem:[#allocation11 + $0xf8] sm:$0xff]  ;;  %v11984_v40 = vmul.f32 0.2, %v11657_v30  ;;  %v11722_v38 = vadd.f32 %v21440_v36, %v11709_v45 }
 0x9a4   :  { %v18740_v1 = vld [vmem:[#allocation8 + $0xf78] sm:$0xf0]  ;;  %v11775_v24 = vpop.f32.mrf.mxu0 }
 0x9a5   :  { %12551 = vmatpush.bf16.msra.mxu2 %v20619_v14  ;;  %12526 = vmatpush.bf16.msra.mxu0 %v20602_v15  ;;  %v20639_v28 = vld [vmem:[#allocation11 + $0x130] sm:$0xff]  ;;  %v18743_v5 = vor.u32 %v20580_v60, %v18740_v1  ;;  %v11992_v58 = vsel %vm11976_vm11, %v11657_v30, %v11984_v40  ;;  %v20629_v60 = vld [vmem:[#allocation11 + $0xe0] sm:$0xff]  ;;  %v11735_v1 = vadd.f32 %v21442_v4, %v11722_v38 }
 0x9a6   :  { %v20572_v32 = vld [vmem:[#allocation8 + $0xf1c] sm:$0xf]  ;;  %v11799_v8 = vpop.f32.mrf.mxu2  ;;  %v11788_v39 = vpop.f32.mrf.mxu1  ;;  %v20677_v38 = vld [vmem:[#allocation13] ss:$0 sm:$0xff] }
 0x9a7   :  { %12539 = vmatpush.bf16.msra.mxu1 %v20610_v57  ;;  %11914 = vmatpush.bf16.msra.mxu3 %v17559_v3  ;;  %v18708_v54 = vld [vmem:[#allocation8 + $0xf38] sm:$0xf0]  ;;  %v11748_v13 = vadd.f32 %v21446_v31, %v11735_v1 }
 0x9a8   :  { %v20647_v46 = vld [vmem:[#allocation11 + $0x170] sm:$0xff]  ;;  %v18711_v10 = vor.u32 %v20572_v32, %v18708_v54  ;;  %v11710_v34 = vpop.f32.mrf.mxu3  ;;  %v20656_v32 = vld [vmem:[#allocation11 + $0x1b8] sm:$0xff] }
 0x9a9   :  { %12552 = vmatpush.bf16.msra.mxu2 %v20618_v55  ;;  %12527 = vmatpush.bf16.msra.mxu0 %v20601_v47  ;;  %v20564_v50 = vld [vmem:[#allocation8 + $0xedc] sm:$0xf] }
 0x9aa   :  { %11915 = vmatmul.bf16.vlgmr.msra.gmra.mxu3 %v21241_v61  ;;  %v8570_v61 = vperm.slane %v21462_v56, 6  ;;  %v18676_v52 = vld [vmem:[#allocation8 + $0xef8] sm:$0xf0] }
 0x9ab   :  { %11959 = vmatpush.bf16.msrb.mxu3 %v18807_v7  ;;  %12540 = vmatpush.bf16.msra.mxu1 %v20609_v37  ;;  %v18679_v0 = vor.u32 %v20564_v50, %v18676_v52  ;;  %v20556_v6 = vld [vmem:[#allocation8 + $0xe9c] sm:$0xf]  ;;  %v20634_v7 = vld [vmem:[#allocation11 + $0x108] sm:$0xff]  ;;  %v20625_v50 = vld [vmem:[#allocation11 + $0xc0] sm:$0xff] }
 0x9ac   :  { %12528 = vmatmul.bf16.vlgmr.msra.gmra.mxu0 %v11996_v2  ;;  %v11774_v25 = vadd.f32 %v11773_v42, %v8570_v61  ;;  %v18644_v21 = vld [vmem:[#allocation8 + $0xeb8] sm:$0xf0]  ;;  %v20642_v37 = vld [vmem:[#allocation11 + $0x148] sm:$0xff]  ;;  %v11983_v61 = vmul.f32 0.2, %v21419_v48 }
 0x9ad   :  { %12553 = vmatpush.bf16.msra.mxu2 %v20617_v19  ;;  %12572 = vmatpush.bf16.msrb.mxu0 %v20640_v59  ;;  %v18647_v17 = vor.u32 %v20556_v6, %v18644_v21  ;;  %v20548_v14 = vld [vmem:[#allocation8 + $0xe5c] sm:$0xf]  ;;  %v20633_v19 = vld [vmem:[#allocation11 + $0x100] sm:$0xff]  ;;  %v12000_v59 = vpack.c.bf16 %v11992_v58, %v11992_v58  ;;  %v20654_v42 = vld [vmem:[#allocation11 + $0x1a8] sm:$0xff]  ;;  %v8571_v6 = vperm.slane %v21462_v56, 7 }
 0x9ae   :  { %12541 = vmatmul.bf16.vlgmr.msra.gmra.mxu1 %v11997_v23  ;;  %v11787_v29 = vadd.f32 %v11786_v26, %v11774_v25  ;;  %v18612_v35 = vld [vmem:[#allocation8 + $0xe78] sm:$0xf0]  ;;  %v11801_v47 = vpop.f32.mrf.mxu2  ;;  %v20628_v23 = vld [vmem:[#allocation11 + $0xd8] sm:$0xff] }
 0x9af   :  { %11960 = vmatpush.bf16.msrb.mxu3 %v18775_v27  ;;  %12585 = vmatpush.bf16.msrb.mxu1 %v20648_v63  ;;  %v20635_v15 = vld [vmem:[#allocation11 + $0x110] sm:$0xff]  ;;  %v18615_v57 = vor.u32 %v20548_v14, %v18612_v35  ;;  %v20630_v27 = vld [vmem:[#allocation11 + $0xe8] sm:$0xff]  ;;  %v20649_v14 = vld [vmem:[#allocation11 + $0x180] sm:$0xff] }
 0x9b0   :  { %12554 = vmatmul.bf16.vlgmr.msra.gmra.mxu2 %v11998_v44  ;;  %v21465_v22 = vadd.f32 %v11799_v8, %v11787_v29  ;;  %v20540_v55 = vld [vmem:[#allocation8 + $0xe1c] sm:$0xf] }
 0x9b1   :  { %12573 = vmatpush.bf16.msrb.mxu0 %v20639_v28  ;;  %v18580_v3 = vld [vmem:[#allocation8 + $0xe38] sm:$0xf0]  ;;  %12598 = vmatpush.bf16.msrb.mxu2 %v20656_v32 }
 0x9b2   :  { %v20643_v20 = vld [vmem:[#allocation11 + $0x150] sm:$0xff]  ;;  %v18583_v53 = vor.u32 %v20540_v55, %v18580_v3 }
 0x9b3   :  { %11961 = vmatpush.bf16.msrb.mxu3 %v18743_v5  ;;  %12586 = vmatpush.bf16.msrb.mxu1 %v20647_v46  ;;  %v20631_v16 = vld [vmem:[#allocation11 + $0xf0] sm:$0xff] }
 0x9b4   :  { %v20627_v28 = vld [vmem:[#allocation11 + $0xd0] sm:$0xff] }
 0x9b5   :  { %12574 = vmatpush.bf16.msrb.mxu0 %v20638_v18  ;;  %v20655_v52 = vld [vmem:[#allocation11 + $0x1b0] sm:$0xff] }
 0x9b6   :  { %12599 = vmatpush.bf16.msrb.mxu2 %v20655_v52  ;;  %v20651_v21 = vld [vmem:[#allocation11 + $0x190] sm:$0xff] }
 0x9b7   :  { %11962 = vmatpush.bf16.msrb.mxu3 %v18711_v10  ;;  %12587 = vmatpush.bf16.msrb.mxu1 %v20646_v51  ;;  %v20626_v10 = vld [vmem:[#allocation11 + $0xc8] sm:$0xff]  ;;  %v11991_v51 = vsel %vm11975_vm13, %v21419_v48, %v11983_v61  ;;  %v20663_v58 = vld [vmem:[#allocation11 + $0x1f0] sm:$0xff] }
 0x9b8   :  { %v11999_v25 = vpack.c.bf16 %v11991_v51, %v11991_v51 }
 0x9b9   :  { %12575 = vmatpush.bf16.msrb.mxu0 %v20637_v41  ;;  %v20653_v41 = vld [vmem:[#allocation11 + $0x1a0] sm:$0xff] }
 0x9ba   :  { %12600 = vmatpush.bf16.msrb.mxu2 %v20654_v42 }
 0x9bb   :  { %11963 = vmatpush.bf16.msrb.mxu3 %v18679_v0  ;;  %12588 = vmatpush.bf16.msrb.mxu1 %v20645_v33  ;;  %v20652_v0 = vld [vmem:[#allocation11 + $0x198] sm:$0xff] }
 0x9bd   :  { %12576 = vmatpush.bf16.msrb.mxu0 %v20636_v11  ;;  %v20650_v11 = vld [vmem:[#allocation11 + $0x188] sm:$0xff] }
 0x9be   :  { %12601 = vmatpush.bf16.msrb.mxu2 %v20653_v41 }
 0x9bf   :  { %11964 = vmatpush.bf16.msrb.mxu3 %v18647_v17  ;;  %12589 = vmatpush.bf16.msrb.mxu1 %v20644_v49 }
 0x9c0   :  { %v11760_v44 = vpop.f32.mrf.mxu3 }
 0x9c1   :  { %12577 = vmatpush.bf16.msrb.mxu0 %v20635_v15 }
 0x9c2   :  { %12602 = vmatpush.bf16.msrb.mxu2 %v20652_v0 }
 0x9c3   :  { %11965 = vmatpush.bf16.msrb.mxu3 %v18615_v57  ;;  %12590 = vmatpush.bf16.msrb.mxu1 %v20643_v20  ;;  %v11825_v63 = vpop.f32.mrf.mxu0 }
 0x9c5   :  { %12578 = vmatpush.bf16.msrb.mxu0 %v20634_v7  ;;  %v11838_v2 = vpop.f32.mrf.mxu1 }
 0x9c6   :  { %12603 = vmatpush.bf16.msrb.mxu2 %v20651_v21 }
 0x9c7   :  { %11966 = vmatpush.bf16.msrb.mxu3 %v18583_v53  ;;  %12591 = vmatpush.bf16.msrb.mxu1 %v20642_v37  ;;  %v20664_v53 = vld [vmem:[#allocation11 + $0x1f8] sm:$0xff] }
 0x9c8   :  { %v11762_v31 = vpop.f32.mrf.mxu3 }
 0x9c9   :  { %12579 = vmatpush.bf16.msrb.mxu0 %v20633_v19 }
 0x9ca   :  { %11967 = vmatmul.bf16.vlgmr.msrb.gmra.mxu3 %v21305_v9  ;;  %v11761_v9 = vadd.f32 %v11760_v44, %v11748_v13  ;;  %12604 = vmatpush.bf16.msrb.mxu2 %v20650_v11 }
 0x9cb   :  { %12559 = vmatpush.bf16.msra.mxu3 %v20632_v43  ;;  %12592 = vmatpush.bf16.msrb.mxu1 %v20641_v12  ;;  %v11827_v46 = vpop.f32.mrf.mxu0 }
 0x9cc   :  { %12580 = vmatmul.bf16.vlgmr.msrb.gmra.mxu0 %v12000_v59  ;;  %vm11977_vm12 = vcmp.gt.f32.partialorder %v11761_v9, 0.0  ;;  %v11985_v5 = vmul.f32 0.2, %v11761_v9  ;;  %v20661_v59 = vld [vmem:[#allocation11 + $0x1e0] sm:$0xff] }
 0x9cd   :  { %v11851_v54 = vpop.f32.mrf.mxu2  ;;  %v11840_v18 = vpop.f32.mrf.mxu1 }
 0x9ce   :  { %v11993_v36 = vsel %vm11977_vm12, %v11761_v9, %v11985_v5  ;;  %12605 = vmatpush.bf16.msrb.mxu2 %v20649_v14  ;;  %v20657_v9 = vld [vmem:[#allocation11 + $0x1c0] sm:$0xff] }
 0x9cf   :  { %12560 = vmatpush.bf16.msra.mxu3 %v20631_v16  ;;  %v12001_v4 = vpack.c.bf16 %v11993_v36, %v11993_v36 }
 0x9d1   :  { %12593 = vmatmul.bf16.vlgmr.msrb.gmra.mxu1 %v12001_v4 }
 0x9d3   :  { %12561 = vmatpush.bf16.msra.mxu3 %v20630_v27  ;;  %v20660_v27 = vld [vmem:[#allocation11 + $0x1d8] sm:$0xff] }
 0x9d5   :  { %v11853_v26 = vpop.f32.mrf.mxu2 }
 0x9d7   :  { %12562 = vmatpush.bf16.msra.mxu3 %v20629_v60  ;;  %v20659_v60 = vld [vmem:[#allocation11 + $0x1d0] sm:$0xff] }
 0x9db   :  { %12563 = vmatpush.bf16.msra.mxu3 %v20628_v23  ;;  %v20658_v23 = vld [vmem:[#allocation11 + $0x1c8] sm:$0xff] }
 0x9df   :  { %12564 = vmatpush.bf16.msra.mxu3 %v20627_v28 }
 0x9e3   :  { %12565 = vmatpush.bf16.msra.mxu3 %v20626_v10  ;;  %v11877_v29 = vpop.f32.mrf.mxu0 }
 0x9e4   :  { %v11878_v33 = vadd.f32 %v11877_v29, %v8571_v6 }
 0x9e5   :  { %v11890_v62 = vpop.f32.mrf.mxu1 }
 0x9e6   :  { %v11891_v48 = vadd.f32 %v11890_v62, %v11878_v33 }
 0x9e7   :  { %12566 = vmatpush.bf16.msra.mxu3 %v20625_v50  ;;  %v11812_v17 = vpop.f32.mrf.mxu3 }
 0x9e8   :  { %v11813_v57 = vadd.f32 %v11812_v17, %v21465_v22  ;;  %v20662_v22 = vld [vmem:[#allocation11 + $0x1e8] sm:$0xff] }
 0x9ea   :  { %12567 = vmatmul.bf16.vlgmr.msra.gmra.mxu3 %v11999_v25  ;;  %v11826_v56 = vadd.f32 %v11825_v63, %v11813_v57 }
 0x9eb   :  { %v11879_v49 = vpop.f32.mrf.mxu0  ;;  %12611 = vmatpush.bf16.msrb.mxu3 %v20664_v53 }
 0x9ec   :  { %v11839_v55 = vadd.f32 %v11838_v2, %v11826_v56 }
 0x9ed   :  { %v11903_v35 = vpop.f32.mrf.mxu2  ;;  %v11892_v24 = vpop.f32.mrf.mxu1 }
 0x9ee   :  { %v11904_v8 = vadd.f32 %v11903_v35, %v11891_v48  ;;  %v11852_v34 = vadd.f32 %v11851_v54, %v11839_v55 }
 0x9ef   :  { %v11814_v39 = vpop.f32.mrf.mxu3  ;;  %12612 = vmatpush.bf16.msrb.mxu3 %v20663_v58 }
 0x9f3   :  { %12613 = vmatpush.bf16.msrb.mxu3 %v20662_v22 }
 0x9f5   :  { %v11905_v15 = vpop.f32.mrf.mxu2 }
 0x9f7   :  { %12614 = vmatpush.bf16.msrb.mxu3 %v20661_v59 }
 0x9fb   :  { %12615 = vmatpush.bf16.msrb.mxu3 %v20660_v27 }
 0x9ff   :  { %12616 = vmatpush.bf16.msrb.mxu3 %v20659_v60 }
 0xa03   :  { %12617 = vmatpush.bf16.msrb.mxu3 %v20658_v23 }
 0xa07   :  { %v11864_v20 = vpop.f32.mrf.mxu3  ;;  %12618 = vmatpush.bf16.msrb.mxu3 %v20657_v9 }
 0xa08   :  { %v11865_v7 = vadd.f32 %v11864_v20, %v11852_v34 }
 0xa09   :  { %v11929_v3 = vpop.f32.mrf.mxu0 }
 0xa0a   :  { %vm11978_vm14 = vcmp.gt.f32.partialorder %v11865_v7, 0.0  ;;  %v11986_v43 = vmul.f32 0.2, %v11865_v7 }
 0xa0b   :  { %v11942_v30 = vpop.f32.mrf.mxu1 }
 0xa0c   :  { %v11994_v47 = vsel %vm11978_vm14, %v11865_v7, %v11986_v43 }
 0xa0d   :  { %v12002_v16 = vpack.c.bf16 %v11994_v47, %v11994_v47 }
 0xa0f   :  { %v11866_v12 = vpop.f32.mrf.mxu3  ;;  %12606 = vmatmul.bf16.vlgmr.msrb.gmra.mxu2 %v12002_v16 }
 0xa11   :  { %v11931_v37 = vpop.f32.mrf.mxu0 }
 0xa13   :  { %v11955_v40 = vpop.f32.mrf.mxu2  ;;  %v11944_v19 = vpop.f32.mrf.mxu1 }
 0xa1b   :  { %v11957_v45 = vpop.f32.mrf.mxu2 }
 0xa29   :  { %v12529_v1 = vpop.f32.mrf.mxu0 }
 0xa2a   :  { %v12530_v2 = vadd.f32 %v20677_v38, %v12529_v1 }
 0xa2b   :  { %v12542_v63 = vpop.f32.mrf.mxu1 }
 0xa2c   :  { %v12543_v13 = vadd.f32 %v12542_v63, %v12530_v2 }
 0xa2d   :  { %v11916_v44 = vpop.f32.mrf.mxu3 }
 0xa2e   :  { %v11917_v18 = vadd.f32 %v11916_v44, %v11904_v8 }
 0xa30   :  { %v11930_v10 = vadd.f32 %v11929_v3, %v11917_v18 }
 0xa31   :  { %v12531_v32 = vpop.f32.mrf.mxu0 }
 0xa32   :  { %v11943_v4 = vadd.f32 %v11942_v30, %v11930_v10 }
 0xa33   :  { %v12555_v28 = vpop.f32.mrf.mxu2  ;;  %v12544_v54 = vpop.f32.mrf.mxu1 }
 0xa34   :  { %v12556_v5 = vadd.f32 %v12555_v28, %v12543_v13  ;;  %v11956_v31 = vadd.f32 %v11955_v40, %v11943_v4 }
 0xa35   :  { %v11918_v36 = vpop.f32.mrf.mxu3 }
 0xa3b   :  { %v12557_v46 = vpop.f32.mrf.mxu2 }
 0xa49   :  { %v12581_v61 = vpop.f32.mrf.mxu0 }
 0xa4d   :  { %v11968_v50 = vpop.f32.mrf.mxu3 }
 0xa4e   :  { %v11969_v52 = vadd.f32 %v11968_v50, %v11956_v31  ;;  %v12594_v0 = vpop.f32.mrf.mxu1 }
 0xa50   :  { %vm11979_vm15 = vcmp.gt.f32.partialorder %v11969_v52, 0.0  ;;  %v11987_v51 = vmul.f32 0.2, %v11969_v52 }
 0xa51   :  { %v12583_v25 = vpop.f32.mrf.mxu0 }
 0xa52   :  { %v11995_v42 = vsel %vm11979_vm15, %v11969_v52, %v11987_v51 }
 0xa53   :  { %v12003_v26 = vpack.c.bf16 %v11995_v42, %v11995_v42 }
 0xa55   :  { %v11970_v41 = vpop.f32.mrf.mxu3  ;;  %12619 = vmatmul.bf16.vlgmr.msrb.gmra.mxu3 %v12003_v26 }
 0xa56   :  { %v12596_v6 = vpop.f32.mrf.mxu1 }
 0xa6d   :  { %v12568_v21 = vpop.f32.mrf.mxu3 }
 0xa6e   :  { %v12569_v29 = vadd.f32 %v12568_v21, %v12556_v5 }
 0xa70   :  { %v12582_v62 = vadd.f32 %v12581_v61, %v12569_v29 }
 0xa72   :  { %v12595_v33 = vadd.f32 %v12594_v0, %v12582_v62 }
 0xa75   :  { %v12570_v11 = vpop.f32.mrf.mxu3 }
 0xa92   :  { %v12607_v48 = vpop.f32.mrf.mxu2 }
 0xa93   :  { %v12608_v14 = vadd.f32 %v12607_v48, %v12595_v33 }
 0xa9a   :  { %v12609_v17 = vpop.f32.mrf.mxu2 }
 0xad8   :  { %v12620_v35 = vpop.f32.mrf.mxu3 }
 0xad9   :  { %v12621_v8 = vadd.f32 %v12620_v35, %v12608_v14 }
 0xadb   :  { %v19064_v49 = vmul.f32 -1.442695, %v12621_v8 }
 0xadd   :  { %20678 = vpow2.f32 %v19064_v49 }
 0xae0   :  { %v12622_v24 = vpop.f32.mrf.mxu3 }
 0xae3   :  { %v20679_v39 = vpop.eup %20678 }
 0xae4   :  { %v12627_v15 = vadd.f32 1.0, %v20679_v39 }
 0xae6   :  { %20680 = vrcp.f32 %v12627_v15  ;;  %v12639_v3 = vand.u32 2147483648, %v12627_v15  ;;  %v12637_v34 = vand.u32 2147483647, %v12627_v15  ;;  %vm12633_vm1 = vweird.f32 %v12627_v15 }
 0xae8   :  { %v12640_v7 = vor.u32 1.1754944e-38, %v12639_v3  ;;  %vm12638_vm3 = vcmp.eq.f32.partialorder %v12637_v34, 8.507059e+37 }
 0xaec   :  { %v20681_v57 = vpop.eup %20680 }
 0xaed   :  { %v12629_v56 = vmul.f32 %v20681_v57, %v12627_v15  ;;  %vm12634_vm0 = vweird.f32 %v20681_v57 }
 0xaee   :  { %vm12635_vm2 = vmor %vm12633_vm1, %vm12634_vm0 }
 0xaef   :  { %v12630_v55 = vsub.f32 1.0, %v12629_v56 }
 0xaf1   :  { %v12631_v30 = vmul.f32 %v20681_v57, %v12630_v55 }
 0xaf3   :  { %v12632_v20 = vadd.f32 %v20681_v57, %v12631_v30 }
 0xaf5   :  { %v12636_v53 = vsel %vm12635_vm2, %v20681_v57, %v12632_v20 }
 0xaf6   :  { %v12641_v43 = vsel %vm12638_vm3, %v12640_v7, %v12636_v53 }
 0xaf7   :  { %12643 = vst [vmem:[#allocation14] sm:$0xff] %v12641_v43 }
 0xaf8   :  { %12654 = dma.vmem_to_hbm [thread:$0]  %s12650_s6, 128, %s12652_s14, [#allocation4]  }
 0xaf9   :  { %20892 = dma.done.wait [#allocation4], 128  }
 0xafa   :  { %20893 = vsyncadd [#allocation4], 4294967168 }
 0xafb   :  { %12659 = vsyncpa [#allocation3], 1 }
 0xafc   :  { %12660 = vsyncpa [#allocation6], 1 }
 0xafd   :  { %12661 = vsyncpa [#allocation9], 1 }
 0xafe   :  { %12662 = vsyncpa [#allocation12], 1 }
 0xaff   :  { %12663 = vsyncpa [#allocation4], 1 }

</bundles_post_ra>
